<compile_context>
chip_gen: v5e
topology: v5e:2x2
jax: 0.10.0
libtpu: 0.0.40
codegen_flags: <defaults>
</compile_context>

<pallas_src>
import functools

import jax
import jax.numpy as jnp
from jax.experimental import pallas as pl
from jax.experimental.pallas import tpu as pltpu


# ----------------------------------------------------------------------------
# Fused kernel: projections + BN + softmax + lambdas + combine + motion head
# ----------------------------------------------------------------------------
def _interframe_fused_kernel(
    x_ref,      # (B*N, dim)       bf16  activations, ORIGINAL frame order
    cor_ref,    # (B*N, 2)         bf16
    wq_ref,     # (dim, K*H)       bf16
    wkv_ref,    # (dim, K+Vd)      bf16  [wk | wv] fused
    wce_ref,    # (2, K*H)         bf16
    bce_ref,    # (1, K*H)         f32
    gq_ref,     # (1, K*H)         f32   BN gamma (q)
    bq_ref,     # (1, K*H)         f32   BN beta  (q)
    gv_ref,     # (1, Vd)          f32   BN gamma (v)
    bv_ref,     # (1, Vd)          f32   BN beta  (v)
    sel_ref,    # (K*H, K*H*Vd)    bf16  0/1 head-gather matrix
    rel_ref,    # (K*N, N)         bf16  flattened rel-pos table
    wcc_ref,    # (H*Vd, K*H)      bf16
    wm_ref,     # (K*H, Mo)        bf16
    bm_ref,     # (1, Mo)          f32
    out_ref,    # (B*N, out_pad)   f32   [appearance | motion | zero pad]
    *, B, N, H, K, Vd, Mo,
):
    KH = H * K
    HVd = H * Vd
    BN = B * N
    eps = 1e-5
    inv_cnt = 1.0 / float(BN)

    # ---- 1x1-conv projections (bf16 in, f32 acc); half-swap done by indexing -
    q = jnp.dot(x_ref[...], wq_ref[...], preferred_element_type=jnp.float32)    # (BN, KH)
    kv = jnp.dot(x_ref[...], wkv_ref[...], preferred_element_type=jnp.float32)  # (BN, K+Vd)
    k_raw = kv[:, :K]
    v_raw = kv[:, K:]
    ce = jnp.dot(cor_ref[...], wce_ref[...],
                 preferred_element_type=jnp.float32) + bce_ref[...]              # (BN, KH)

    # ---- training-mode BatchNorm2d: stats over (batch, spatial), biased var --
    def bn(t, gamma, beta):
        mean = jnp.sum(t, axis=0, keepdims=True) * inv_cnt
        d = t - mean
        var = jnp.sum(d * d, axis=0, keepdims=True) * inv_cnt
        scale = gamma * jax.lax.rsqrt(var + eps)
        return t * scale + (beta - mean * scale)

    q_n = bn(q, gq_ref[...], bq_ref[...])          # (BN, KH)
    v_n = bn(v_raw, gv_ref[...], bv_ref[...])      # (BN, Vd)

    # ---- key softmax over the spatial axis, per (original-order) frame -------
    k3 = k_raw.reshape(B, N, K)
    km = jnp.max(k3, axis=1, keepdims=True)
    ke = jnp.exp(k3 - km)
    ks = jnp.sum(ke, axis=1, keepdims=True)
    ksm = ke * pl.reciprocal(ks, approx=True)      # (B, N, K), EUP slot

    # ---- per-output-frame value / content-lambda lane blocks -----------------
    # output frame b consumes x_reverse[b] == x[(b + B//2) % B]
    v_bf = v_n.astype(jnp.bfloat16)
    v_blocks = []
    lamc_blocks = []
    for b in range(B):                             # B small & static
        rb = (b + B // 2) % B
        vf32 = v_n[rb * N:(rb + 1) * N]            # (N, Vd)
        vf16 = v_bf[rb * N:(rb + 1) * N]
        lam_c = jax.lax.dot_general(ksm[rb], vf32, (((0,), (0,)), ((), ())),
                                    preferred_element_type=jnp.float32)   # (K, Vd)
        v_blocks.extend([vf16] * H)                # head-tiled on lanes
        lamc_blocks.extend([lam_c] * H)
    v_wide = jnp.concatenate(v_blocks, axis=1)       # (N, B*HVd)  bf16
    lamc_rows = jnp.concatenate(lamc_blocks, axis=1)  # (K, B*HVd)  f32

    # ---- all K positional lambdas for ALL frames in ONE bf16 matmul ----------
    lamp = jnp.dot(rel_ref[...], v_wide,
                   preferred_element_type=jnp.float32)                    # (K*N, B*HVd)
    # fold the (n-independent) content lambda in: Y = sum_k coef_k * (lam_p+lam_c)
    lam_all = (lamp.reshape(K, N, B * HVd)
               + lamc_rows.reshape(K, 1, B * HVd)).reshape(K * N, B * HVd)

    # ---- head-packed coefficient tiles via a 0/1 selection matmul (MXU gather)
    # coef[n, k*HVd + h*Vd + v] = Q_n[n, h*K + k]   (same gather for cor-embed)
    coef_q = jnp.dot(q_n.astype(jnp.bfloat16), sel_ref[...],
                     preferred_element_type=jnp.float32)                  # (BN, K*HVd)
    coef_c = jnp.dot(ce.astype(jnp.bfloat16), sel_ref[...],
                     preferred_element_type=jnp.float32)                  # (BN, K*HVd)

    # ---- per-position combine over k: broadcast-FMA on (N, HVd) tiles --------
    app_blocks = []
    ycor_blocks = []
    for b in range(B):
        cq = coef_q[b * N:(b + 1) * N]             # (N, K*HVd)
        cc = coef_c[b * N:(b + 1) * N]
        lam_b = lam_all[:, b * HVd:(b + 1) * HVd]  # (K*N, HVd)
        yq = cq[:, :HVd] * lam_b[:N]               # k = 0 initializes
        yc = cc[:, :HVd] * lam_b[:N]
        for kk in range(1, K):
            lam_k = lam_b[kk * N:(kk + 1) * N]     # (N, HVd)
            yq = yq + cq[:, kk * HVd:(kk + 1) * HVd] * lam_k
            yc = yc + cc[:, kk * HVd:(kk + 1) * HVd] * lam_k
        app_blocks.append(yq)
        ycor_blocks.append(yc)
    app_all = jnp.concatenate(app_blocks, axis=0)    # (BN, HVd)  appearance
    ycor_all = jnp.concatenate(ycor_blocks, axis=0)  # (BN, HVd)

    # ---- motion head ----------------------------------------------------------
    cor_rev = jnp.dot(ycor_all.astype(jnp.bfloat16), wcc_ref[...],
                      preferred_element_type=jnp.float32)                 # (BN, KH)
    motion = jnp.dot((cor_rev - ce).astype(jnp.bfloat16), wm_ref[...],
                     preferred_element_type=jnp.float32) + bm_ref[...]    # (BN, Mo)

    # ---- single lane-dense writeback slab -------------------------------------
    pad_w = out_ref.shape[1] - (HVd + Mo)
    parts = [app_all, motion]
    if pad_w > 0:
        parts.append(jnp.zeros((BN, pad_w), jnp.float32))
    out_ref[...] = jnp.concatenate(parts, axis=1)


# ----------------------------------------------------------------------------
# Parameter setup / glue
# ----------------------------------------------------------------------------
def gather_rel_table(rel_pos_emb, n):
    """Replicates calc_rel_pos + rel_pos_emb[n_idx, m_idx]; returns (K, N, N)."""
    ii, jj = jnp.meshgrid(jnp.arange(n), jnp.arange(n), indexing="ij")
    pos = jnp.stack([ii.reshape(-1), jj.reshape(-1)], axis=-1)        # (n*n, 2)
    rel = pos[None, :, :] - pos[:, None, :] + (n - 1)                 # (N, N, 2)
    g = rel_pos_emb[rel[..., 0], rel[..., 1]]                         # (N, N, K, U)
    return jnp.transpose(g[..., 0], (2, 0, 1))                        # (K, N, N), U==1


def _head_gather_matrix(heads, dim_k, dim_v):
    """0/1 matrix S with S[h*K + k, k*HVd + h*Vd + v] = 1 (MXU column gather)."""
    KH = heads * dim_k
    HVd = heads * dim_v
    h_i = jnp.arange(heads)[:, None, None]
    k_i = jnp.arange(dim_k)[None, :, None]
    v_i = jnp.arange(dim_v)[None, None, :]
    rows = jnp.broadcast_to(h_i * dim_k + k_i, (heads, dim_k, dim_v)).reshape(-1)
    cols = (k_i * HVd + h_i * dim_v + v_i).reshape(-1)
    sel = jnp.zeros((KH, dim_k * HVd), jnp.float32).at[rows, cols].set(1.0)
    return sel.astype(jnp.bfloat16)


def make_params(key, dim, dim_k, heads, dim_u, dim_out, motion_dim, n):
    assert dim_u == 1, "kernel implemented for dim_u == 1 (module default)"
    dim_v = dim_out // heads
    ks = jax.random.split(key, 13)
    init = lambda k, shape, s=0.1: s * jax.random.normal(k, shape, jnp.float32)
    return dict(
        wq=init(ks[0], (dim, dim_k * heads)),
        wk=init(ks[1], (dim, dim_k * dim_u)),
        wv=init(ks[2], (dim, dim_v * dim_u)),
        wce=init(ks[3], (2, dim_k * heads)),
        bce=init(ks[4], (1, dim_k * heads)),
        wcc=init(ks[5], (dim_out, dim_k * heads)),
        wm=init(ks[6], (dim_k * heads, motion_dim)),
        bm=init(ks[7], (1, motion_dim)),
        gq=1.0 + init(ks[8], (1, dim_k * heads)),
        bq=init(ks[9], (1, dim_k * heads)),
        gv=1.0 + init(ks[10], (1, dim_v * dim_u)),
        bv=init(ks[11], (1, dim_v * dim_u)),
        rel_pos_emb=init(ks[12], (2 * n - 1, 2 * n - 1, dim_k, dim_u)),
    )


def interframe_lambda(x, cor, params, *, heads, dim_k):
    B, hh, ww, dim = x.shape
    assert hh == ww, "non-local branch requires h == w == n"
    N = hh * ww
    KH = dim_k * heads
    dim_out = params["wcc"].shape[0]
    Vd = dim_out // heads
    HVd = heads * Vd
    Mo = params["wm"].shape[1]
    out_w = HVd + Mo
    out_pad = ((out_w + 127) // 128) * 128       # lane-dense output slab

    # ---- pure-JAX layout plumbing / bf16 casts (free) -------------------------
    x2 = x.reshape(B * N, dim).astype(jnp.bfloat16)
    cor2 = cor.reshape(B * N, 2).astype(jnp.bfloat16)
    wq = params["wq"].astype(jnp.bfloat16)
    wkv = jnp.concatenate([params["wk"], params["wv"]], axis=1).astype(jnp.bfloat16)
    wce = params["wce"].astype(jnp.bfloat16)
    wcc = params["wcc"].astype(jnp.bfloat16)
    wm = params["wm"].astype(jnp.bfloat16)
    rel_flat = gather_rel_table(params["rel_pos_emb"], hh)
    rel_flat = rel_flat.reshape(dim_k * N, N).astype(jnp.bfloat16)
    sel = _head_gather_matrix(heads, dim_k, Vd)

    # ---- rough VMEM budget; conservative gate (v5e default ~16 MiB scoped,
    #      v7x physical 64 MiB/TC -> cap well below it) -------------------------
    bf16_elems = (B * N * (dim + 2) + dim * (KH + dim_k + Vd) + 2 * KH
                  + KH * dim_k * HVd + dim_k * N * N + HVd * KH + KH * Mo)
    f32_elems = (B * N * (3 * KH + dim_k + Vd + out_pad)
                 + 2 * B * N * dim_k * HVd
                 + 2 * dim_k * N * B * HVd)
    need = 2 * bf16_elems + 4 * f32_elems + (2 << 20)
    limit = int(min(need + (8 << 20), 48 << 20)) if need > (12 << 20) else None
    cp = (pltpu.CompilerParams(vmem_limit_bytes=limit) if limit
          else pltpu.CompilerParams())

    vspec = pl.BlockSpec(memory_space=pltpu.MemorySpace.VMEM)
    kern = functools.partial(_interframe_fused_kernel,
                             B=B, N=N, H=heads, K=dim_k, Vd=Vd, Mo=Mo)
    out = pl.pallas_call(
        kern,
        out_shape=jax.ShapeDtypeStruct((B * N, out_pad), jnp.float32),
        in_specs=[vspec] * 15,
        out_specs=vspec,
        compiler_params=cp,
    )(x2, cor2, wq, wkv, wce, params["bce"], params["gq"], params["bq"],
      params["gv"], params["bv"], sel, rel_flat, wcc, wm, params["bm"])

    appearance = out[:, :HVd].reshape(B, hh, ww, HVd)
    motion = out[:, HVd:HVd + Mo].reshape(B, hh, ww, Mo)
    return appearance, motion


# ----------------------------------------------------------------------------
# Pure-JAX reference (mirrors the torch einsums) for a sanity check
# ----------------------------------------------------------------------------
def reference(x, cor, params, *, heads, dim_k):
    B, hh, ww, dim = x.shape
    N = hh * ww
    dim_out = params["wcc"].shape[0]
    Vd = dim_out // heads
    motion_dim = params["wm"].shape[1]

    xf = x.reshape(B, N, dim)
    cf = cor.reshape(B, N, 2)
    rev = jnp.array(list(range(B // 2, B)) + list(range(B // 2)))
    xr = xf[rev]

    q = xf @ params["wq"]          # (B, N, K*H)
    k = xr @ params["wk"]          # (B, N, K)
    v = xr @ params["wv"]          # (B, N, Vd)

    def bn(t, g, b):
        mean = t.mean(axis=(0, 1), keepdims=True)
        var = ((t - mean) ** 2).mean(axis=(0, 1), keepdims=True)
        return (t - mean) / jnp.sqrt(var + 1e-5) * g + b

    Q = bn(q, params["gq"], params["bq"]).reshape(B, N, heads, dim_k)
    V = bn(v, params["gv"], params["bv"])                       # (B, N, Vd)
    ksm = jax.nn.softmax(k, axis=1)                             # softmax over spatial

    lam_c = jnp.einsum("bmk,bmv->bkv", ksm, V)
    Yc = jnp.einsum("bnhk,bkv->bnhv", Q, lam_c)

    rel_g = jnp.transpose(gather_rel_table(params["rel_pos_emb"], hh), (1, 2, 0))  # (N,N,K)
    lam_p = jnp.einsum("nmk,bmv->bnkv", rel_g, V)
    Yp = jnp.einsum("bnhk,bnkv->bnhv", Q, lam_p)

    appearance = (Yc + Yp).reshape(B, N, heads * Vd)

    ce = cf @ params["wce"] + params["bce"]                     # (B, N, K*H)
    ceh = ce.reshape(B, N, heads, dim_k)
    crc = jnp.einsum("bnhk,bkv->bnhv", ceh, lam_c)
    crp = jnp.einsum("bnhk,bnkv->bnhv", ceh, lam_p)
    cor_rev = (crc + crp).reshape(B, N, heads * Vd) @ params["wcc"]
    motion = (cor_rev - ce) @ params["wm"] + params["bm"]

    return (appearance.reshape(B, hh, ww, heads * Vd),
            motion.reshape(B, hh, ww, motion_dim))


# ----------------------------------------------------------------------------
if __name__ == "__main__":
    B, n, dim = 2, 8, 32
    dim_k, heads, dim_u, motion_dim = 16, 4, 1, 8
    dim_out = dim  # default(dim_out, dim)

    key = jax.random.PRNGKey(0)
    kx, kc, kp = jax.random.split(key, 3)
    x = jax.random.normal(kx, (B, n, n, dim), jnp.float32)
    cor = jax.random.normal(kc, (B, n, n, 2), jnp.float32)
    params = make_params(kp, dim, dim_k, heads, dim_u, dim_out, motion_dim, n)

    app, mot = interframe_lambda(x, cor, params, heads=heads, dim_k=dim_k)
    jax.block_until_ready((app, mot))

    app_r, mot_r = reference(x, cor, params, heads=heads, dim_k=dim_k)
    err_a = float(jnp.max(jnp.abs(app - app_r)) / (jnp.max(jnp.abs(app_r)) + 1e-6))
    err_m = float(jnp.max(jnp.abs(mot - mot_r)) / (jnp.max(jnp.abs(mot_r)) + 1e-6))
    assert app.shape == (B, n, n, dim_out) and mot.shape == (B, n, n, motion_dim)
    assert err_a < 5e-2 and err_m < 5e-2, (err_a, err_m)

    print("KERNEL_OK")
</pallas_src>

<mosaic_0001>
module attributes {stable_mosaic.version = 11 : i64} {
  func.func @_interframe_fused_kernel(%arg0: memref<128x32xbf16, #tpu.memory_space<vmem>>, %arg1: memref<128x2xbf16, #tpu.memory_space<vmem>>, %arg2: memref<32x64xbf16, #tpu.memory_space<vmem>>, %arg3: memref<32x24xbf16, #tpu.memory_space<vmem>>, %arg4: memref<2x64xbf16, #tpu.memory_space<vmem>>, %arg5: memref<1x64xf32, #tpu.memory_space<vmem>>, %arg6: memref<1x64xf32, #tpu.memory_space<vmem>>, %arg7: memref<1x64xf32, #tpu.memory_space<vmem>>, %arg8: memref<1x8xf32, #tpu.memory_space<vmem>>, %arg9: memref<1x8xf32, #tpu.memory_space<vmem>>, %arg10: memref<64x512xbf16, #tpu.memory_space<vmem>>, %arg11: memref<1024x64xbf16, #tpu.memory_space<vmem>>, %arg12: memref<32x64xbf16, #tpu.memory_space<vmem>>, %arg13: memref<64x8xbf16, #tpu.memory_space<vmem>>, %arg14: memref<1x8xf32, #tpu.memory_space<vmem>>, %arg15: memref<128x128xf32, #tpu.memory_space<vmem>>) attributes {dimension_semantics = [], scalar_prefetch = 0 : i64, scratch_operands = 0 : i64, tpu.core_type = #tpu.core_type<tc>} {
    %c0 = arith.constant 0 : index
    %c0_0 = arith.constant 0 : index
    %0 = vector.load %arg0[%c0, %c0_0] : memref<128x32xbf16, #tpu.memory_space<vmem>>, vector<128x32xbf16>
    %c0_1 = arith.constant 0 : index
    %c0_2 = arith.constant 0 : index
    %1 = vector.load %arg2[%c0_1, %c0_2] : memref<32x64xbf16, #tpu.memory_space<vmem>>, vector<32x64xbf16>
    %cst = arith.constant dense<0.000000e+00> : vector<128x64xf32>
    %2 = tpu.matmul %0, %1, %cst {dimension_numbers = #tpu.dot_dimension_numbers<[1], [0], [0], [1], [0, 0, 1, 1], [], []>} : vector<128x32xbf16>, vector<32x64xbf16>, vector<128x64xf32> -> vector<128x64xf32>
    %c0_3 = arith.constant 0 : index
    %c0_4 = arith.constant 0 : index
    %3 = vector.load %arg0[%c0_3, %c0_4] : memref<128x32xbf16, #tpu.memory_space<vmem>>, vector<128x32xbf16>
    %c0_5 = arith.constant 0 : index
    %c0_6 = arith.constant 0 : index
    %4 = vector.load %arg3[%c0_5, %c0_6] : memref<32x24xbf16, #tpu.memory_space<vmem>>, vector<32x24xbf16>
    %cst_7 = arith.constant dense<0.000000e+00> : vector<128x24xf32>
    %5 = tpu.matmul %3, %4, %cst_7 {dimension_numbers = #tpu.dot_dimension_numbers<[1], [0], [0], [1], [0, 0, 1, 1], [], []>} : vector<128x32xbf16>, vector<32x24xbf16>, vector<128x24xf32> -> vector<128x24xf32>
    %6 = vector.extract_strided_slice %5 {offsets = [0, 0], sizes = [128, 16], strides = [1, 1]} : vector<128x24xf32> to vector<128x16xf32>
    %7 = vector.extract_strided_slice %5 {offsets = [0, 16], sizes = [128, 8], strides = [1, 1]} : vector<128x24xf32> to vector<128x8xf32>
    %c0_8 = arith.constant 0 : index
    %c0_9 = arith.constant 0 : index
    %8 = vector.load %arg1[%c0_8, %c0_9] : memref<128x2xbf16, #tpu.memory_space<vmem>>, vector<128x2xbf16>
    %c0_10 = arith.constant 0 : index
    %c0_11 = arith.constant 0 : index
    %9 = vector.load %arg4[%c0_10, %c0_11] : memref<2x64xbf16, #tpu.memory_space<vmem>>, vector<2x64xbf16>
    %cst_12 = arith.constant dense<0.000000e+00> : vector<128x64xf32>
    %10 = tpu.matmul %8, %9, %cst_12 {dimension_numbers = #tpu.dot_dimension_numbers<[1], [0], [0], [1], [0, 0, 1, 1], [], []>} : vector<128x2xbf16>, vector<2x64xbf16>, vector<128x64xf32> -> vector<128x64xf32>
    %c0_13 = arith.constant 0 : index
    %c0_14 = arith.constant 0 : index
    %11 = vector.load %arg5[%c0_13, %c0_14] : memref<1x64xf32, #tpu.memory_space<vmem>>, vector<1x64xf32>
    %12 = vector.broadcast %11 : vector<1x64xf32> to vector<128x64xf32>
    %13 = arith.addf %10, %12 : vector<128x64xf32>
    %c0_15 = arith.constant 0 : index
    %c0_16 = arith.constant 0 : index
    %14 = vector.load %arg6[%c0_15, %c0_16] : memref<1x64xf32, #tpu.memory_space<vmem>>, vector<1x64xf32>
    %c0_17 = arith.constant 0 : index
    %c0_18 = arith.constant 0 : index
    %15 = vector.load %arg7[%c0_17, %c0_18] : memref<1x64xf32, #tpu.memory_space<vmem>>, vector<1x64xf32>
    %cst_19 = arith.constant dense<0.000000e+00> : vector<64xf32>
    %16 = vector.multi_reduction <add>, %2, %cst_19 [0] : vector<128x64xf32> to vector<64xf32>
    %17 = vector.shape_cast %16 : vector<64xf32> to vector<1x64xf32>
    %cst_20 = arith.constant 7.812500e-03 : f32
    %18 = vector.broadcast %cst_20 : f32 to vector<1x64xf32>
    %19 = arith.mulf %17, %18 : vector<1x64xf32>
    %20 = vector.broadcast %19 : vector<1x64xf32> to vector<128x64xf32>
    %21 = arith.subf %2, %20 : vector<128x64xf32>
    %22 = arith.mulf %21, %21 : vector<128x64xf32>
    %cst_21 = arith.constant dense<0.000000e+00> : vector<64xf32>
    %23 = vector.multi_reduction <add>, %22, %cst_21 [0] : vector<128x64xf32> to vector<64xf32>
    %24 = vector.shape_cast %23 : vector<64xf32> to vector<1x64xf32>
    %cst_22 = arith.constant 7.812500e-03 : f32
    %25 = vector.broadcast %cst_22 : f32 to vector<1x64xf32>
    %26 = arith.mulf %24, %25 : vector<1x64xf32>
    %cst_23 = arith.constant 9.99999974E-6 : f32
    %27 = vector.broadcast %cst_23 : f32 to vector<1x64xf32>
    %28 = arith.addf %26, %27 : vector<1x64xf32>
    %29 = math.rsqrt %28 : vector<1x64xf32>
    %30 = arith.mulf %14, %29 : vector<1x64xf32>
    %31 = vector.broadcast %30 : vector<1x64xf32> to vector<128x64xf32>
    %32 = arith.mulf %2, %31 : vector<128x64xf32>
    %33 = arith.mulf %19, %30 : vector<1x64xf32>
    %34 = arith.subf %15, %33 : vector<1x64xf32>
    %35 = vector.broadcast %34 : vector<1x64xf32> to vector<128x64xf32>
    %36 = arith.addf %32, %35 : vector<128x64xf32>
    %c0_24 = arith.constant 0 : index
    %c0_25 = arith.constant 0 : index
    %37 = vector.load %arg8[%c0_24, %c0_25] : memref<1x8xf32, #tpu.memory_space<vmem>>, vector<1x8xf32>
    %c0_26 = arith.constant 0 : index
    %c0_27 = arith.constant 0 : index
    %38 = vector.load %arg9[%c0_26, %c0_27] : memref<1x8xf32, #tpu.memory_space<vmem>>, vector<1x8xf32>
    %cst_28 = arith.constant dense<0.000000e+00> : vector<8xf32>
    %39 = vector.multi_reduction <add>, %7, %cst_28 [0] : vector<128x8xf32> to vector<8xf32>
    %40 = vector.shape_cast %39 : vector<8xf32> to vector<1x8xf32>
    %cst_29 = arith.constant 7.812500e-03 : f32
    %41 = vector.broadcast %cst_29 : f32 to vector<1x8xf32>
    %42 = arith.mulf %40, %41 : vector<1x8xf32>
    %43 = vector.broadcast %42 : vector<1x8xf32> to vector<128x8xf32>
    %44 = arith.subf %7, %43 : vector<128x8xf32>
    %45 = arith.mulf %44, %44 : vector<128x8xf32>
    %cst_30 = arith.constant dense<0.000000e+00> : vector<8xf32>
    %46 = vector.multi_reduction <add>, %45, %cst_30 [0] : vector<128x8xf32> to vector<8xf32>
    %47 = vector.shape_cast %46 : vector<8xf32> to vector<1x8xf32>
    %cst_31 = arith.constant 7.812500e-03 : f32
    %48 = vector.broadcast %cst_31 : f32 to vector<1x8xf32>
    %49 = arith.mulf %47, %48 : vector<1x8xf32>
    %cst_32 = arith.constant 9.99999974E-6 : f32
    %50 = vector.broadcast %cst_32 : f32 to vector<1x8xf32>
    %51 = arith.addf %49, %50 : vector<1x8xf32>
    %52 = math.rsqrt %51 : vector<1x8xf32>
    %53 = arith.mulf %37, %52 : vector<1x8xf32>
    %54 = vector.broadcast %53 : vector<1x8xf32> to vector<128x8xf32>
    %55 = arith.mulf %7, %54 : vector<128x8xf32>
    %56 = arith.mulf %42, %53 : vector<1x8xf32>
    %57 = arith.subf %38, %56 : vector<1x8xf32>
    %58 = vector.broadcast %57 : vector<1x8xf32> to vector<128x8xf32>
    %59 = arith.addf %55, %58 : vector<128x8xf32>
    %60 = vector.shape_cast %6 : vector<128x16xf32> to vector<2x64x16xf32>
    %cst_33 = arith.constant dense<0xFF800000> : vector<2x16xf32>
    %61 = vector.multi_reduction <maximumf>, %60, %cst_33 [1] : vector<2x64x16xf32> to vector<2x16xf32>
    %62 = vector.shape_cast %61 : vector<2x16xf32> to vector<2x1x16xf32>
    %63 = vector.broadcast %62 : vector<2x1x16xf32> to vector<2x64x16xf32>
    %64 = arith.subf %60, %63 : vector<2x64x16xf32>
    %65 = math.exp %64 : vector<2x64x16xf32>
    %cst_34 = arith.constant dense<0.000000e+00> : vector<2x16xf32>
    %66 = vector.multi_reduction <add>, %65, %cst_34 [1] : vector<2x64x16xf32> to vector<2x16xf32>
    %67 = vector.shape_cast %66 : vector<2x16xf32> to vector<2x1x16xf32>
    %68 = tpu.reciprocal %67 {approx = true} : vector<2x1x16xf32> -> vector<2x1x16xf32>
    %69 = vector.broadcast %68 : vector<2x1x16xf32> to vector<2x64x16xf32>
    %70 = arith.mulf %65, %69 : vector<2x64x16xf32>
    %71 = arith.truncf %59 : vector<128x8xf32> to vector<128x8xbf16>
    %72 = vector.extract_strided_slice %59 {offsets = [64, 0], sizes = [64, 8], strides = [1, 1]} : vector<128x8xf32> to vector<64x8xf32>
    %73 = vector.extract_strided_slice %71 {offsets = [64, 0], sizes = [64, 8], strides = [1, 1]} : vector<128x8xbf16> to vector<64x8xbf16>
    %74 = vector.extract_strided_slice %70 {offsets = [1, 0, 0], sizes = [1, 64, 16], strides = [1, 1, 1]} : vector<2x64x16xf32> to vector<1x64x16xf32>
    %75 = vector.shape_cast %74 : vector<1x64x16xf32> to vector<64x16xf32>
    %cst_35 = arith.constant dense<0.000000e+00> : vector<16x8xf32>
    %76 = tpu.matmul %75, %72, %cst_35 {dimension_numbers = #tpu.dot_dimension_numbers<[0], [0], [1], [1], [0, 1, 1, 1], [], []>} : vector<64x16xf32>, vector<64x8xf32>, vector<16x8xf32> -> vector<16x8xf32>
    %77 = vector.extract_strided_slice %59 {offsets = [0, 0], sizes = [64, 8], strides = [1, 1]} : vector<128x8xf32> to vector<64x8xf32>
    %78 = vector.extract_strided_slice %71 {offsets = [0, 0], sizes = [64, 8], strides = [1, 1]} : vector<128x8xbf16> to vector<64x8xbf16>
    %79 = vector.extract_strided_slice %70 {offsets = [0, 0, 0], sizes = [1, 64, 16], strides = [1, 1, 1]} : vector<2x64x16xf32> to vector<1x64x16xf32>
    %80 = vector.shape_cast %79 : vector<1x64x16xf32> to vector<64x16xf32>
    %cst_36 = arith.constant dense<0.000000e+00> : vector<16x8xf32>
    %81 = tpu.matmul %80, %77, %cst_36 {dimension_numbers = #tpu.dot_dimension_numbers<[0], [0], [1], [1], [0, 1, 1, 1], [], []>} : vector<64x16xf32>, vector<64x8xf32>, vector<16x8xf32> -> vector<16x8xf32>
    %82 = tpu.concatenate %73, %73, %73, %73, %78, %78, %78, %78 in 1 : vector<64x8xbf16>, vector<64x8xbf16>, vector<64x8xbf16>, vector<64x8xbf16>, vector<64x8xbf16>, vector<64x8xbf16>, vector<64x8xbf16>, vector<64x8xbf16> -> vector<64x64xbf16>
    %83 = tpu.concatenate %76, %76, %76, %76, %81, %81, %81, %81 in 1 : vector<16x8xf32>, vector<16x8xf32>, vector<16x8xf32>, vector<16x8xf32>, vector<16x8xf32>, vector<16x8xf32>, vector<16x8xf32>, vector<16x8xf32> -> vector<16x64xf32>
    %c0_37 = arith.constant 0 : index
    %c0_38 = arith.constant 0 : index
    %84 = vector.load %arg11[%c0_37, %c0_38] : memref<1024x64xbf16, #tpu.memory_space<vmem>>, vector<1024x64xbf16>
    %cst_39 = arith.constant dense<0.000000e+00> : vector<1024x64xf32>
    %85 = tpu.matmul %84, %82, %cst_39 {dimension_numbers = #tpu.dot_dimension_numbers<[1], [0], [0], [1], [0, 0, 1, 1], [], []>} : vector<1024x64xbf16>, vector<64x64xbf16>, vector<1024x64xf32> -> vector<1024x64xf32>
    %86 = vector.shape_cast %85 : vector<1024x64xf32> to vector<16x64x64xf32>
    %87 = vector.shape_cast %83 : vector<16x64xf32> to vector<16x1x64xf32>
    %88 = vector.broadcast %87 : vector<16x1x64xf32> to vector<16x64x64xf32>
    %89 = arith.addf %86, %88 : vector<16x64x64xf32>
    %90 = vector.shape_cast %89 : vector<16x64x64xf32> to vector<1024x64xf32>
    %91 = arith.truncf %36 : vector<128x64xf32> to vector<128x64xbf16>
    %c0_40 = arith.constant 0 : index
    %c0_41 = arith.constant 0 : index
    %92 = vector.load %arg10[%c0_40, %c0_41] : memref<64x512xbf16, #tpu.memory_space<vmem>>, vector<64x512xbf16>
    %cst_42 = arith.constant dense<0.000000e+00> : vector<128x512xf32>
    %93 = tpu.matmul %91, %92, %cst_42 {dimension_numbers = #tpu.dot_dimension_numbers<[1], [0], [0], [1], [0, 0, 1, 1], [], []>} : vector<128x64xbf16>, vector<64x512xbf16>, vector<128x512xf32> -> vector<128x512xf32>
    %94 = arith.truncf %13 : vector<128x64xf32> to vector<128x64xbf16>
    %c0_43 = arith.constant 0 : index
    %c0_44 = arith.constant 0 : index
    %95 = vector.load %arg10[%c0_43, %c0_44] : memref<64x512xbf16, #tpu.memory_space<vmem>>, vector<64x512xbf16>
    %cst_45 = arith.constant dense<0.000000e+00> : vector<128x512xf32>
    %96 = tpu.matmul %94, %95, %cst_45 {dimension_numbers = #tpu.dot_dimension_numbers<[1], [0], [0], [1], [0, 0, 1, 1], [], []>} : vector<128x64xbf16>, vector<64x512xbf16>, vector<128x512xf32> -> vector<128x512xf32>
    %97 = vector.extract_strided_slice %93 {offsets = [0, 0], sizes = [64, 512], strides = [1, 1]} : vector<128x512xf32> to vector<64x512xf32>
    %98 = vector.extract_strided_slice %96 {offsets = [0, 0], sizes = [64, 512], strides = [1, 1]} : vector<128x512xf32> to vector<64x512xf32>
    %99 = vector.extract_strided_slice %90 {offsets = [0, 0], sizes = [1024, 32], strides = [1, 1]} : vector<1024x64xf32> to vector<1024x32xf32>
    %100 = vector.extract_strided_slice %97 {offsets = [0, 0], sizes = [64, 32], strides = [1, 1]} : vector<64x512xf32> to vector<64x32xf32>
    %101 = vector.extract_strided_slice %99 {offsets = [0, 0], sizes = [64, 32], strides = [1, 1]} : vector<1024x32xf32> to vector<64x32xf32>
    %102 = arith.mulf %100, %101 : vector<64x32xf32>
    %103 = vector.extract_strided_slice %98 {offsets = [0, 0], sizes = [64, 32], strides = [1, 1]} : vector<64x512xf32> to vector<64x32xf32>
    %104 = vector.extract_strided_slice %99 {offsets = [0, 0], sizes = [64, 32], strides = [1, 1]} : vector<1024x32xf32> to vector<64x32xf32>
    %105 = arith.mulf %103, %104 : vector<64x32xf32>
    %106 = vector.extract_strided_slice %99 {offsets = [64, 0], sizes = [64, 32], strides = [1, 1]} : vector<1024x32xf32> to vector<64x32xf32>
    %107 = vector.extract_strided_slice %97 {offsets = [0, 32], sizes = [64, 32], strides = [1, 1]} : vector<64x512xf32> to vector<64x32xf32>
    %108 = arith.mulf %107, %106 : vector<64x32xf32>
    %109 = arith.addf %102, %108 : vector<64x32xf32>
    %110 = vector.extract_strided_slice %98 {offsets = [0, 32], sizes = [64, 32], strides = [1, 1]} : vector<64x512xf32> to vector<64x32xf32>
    %111 = arith.mulf %110, %106 : vector<64x32xf32>
    %112 = arith.addf %105, %111 : vector<64x32xf32>
    %113 = vector.extract_strided_slice %99 {offsets = [128, 0], sizes = [64, 32], strides = [1, 1]} : vector<1024x32xf32> to vector<64x32xf32>
    %114 = vector.extract_strided_slice %97 {offsets = [0, 64], sizes = [64, 32], strides = [1, 1]} : vector<64x512xf32> to vector<64x32xf32>
    %115 = arith.mulf %114, %113 : vector<64x32xf32>
    %116 = arith.addf %109, %115 : vector<64x32xf32>
    %117 = vector.extract_strided_slice %98 {offsets = [0, 64], sizes = [64, 32], strides = [1, 1]} : vector<64x512xf32> to vector<64x32xf32>
    %118 = arith.mulf %117, %113 : vector<64x32xf32>
    %119 = arith.addf %112, %118 : vector<64x32xf32>
    %120 = vector.extract_strided_slice %99 {offsets = [192, 0], sizes = [64, 32], strides = [1, 1]} : vector<1024x32xf32> to vector<64x32xf32>
    %121 = vector.extract_strided_slice %97 {offsets = [0, 96], sizes = [64, 32], strides = [1, 1]} : vector<64x512xf32> to vector<64x32xf32>
    %122 = arith.mulf %121, %120 : vector<64x32xf32>
    %123 = arith.addf %116, %122 : vector<64x32xf32>
    %124 = vector.extract_strided_slice %98 {offsets = [0, 96], sizes = [64, 32], strides = [1, 1]} : vector<64x512xf32> to vector<64x32xf32>
    %125 = arith.mulf %124, %120 : vector<64x32xf32>
    %126 = arith.addf %119, %125 : vector<64x32xf32>
    %127 = vector.extract_strided_slice %99 {offsets = [256, 0], sizes = [64, 32], strides = [1, 1]} : vector<1024x32xf32> to vector<64x32xf32>
    %128 = vector.extract_strided_slice %97 {offsets = [0, 128], sizes = [64, 32], strides = [1, 1]} : vector<64x512xf32> to vector<64x32xf32>
    %129 = arith.mulf %128, %127 : vector<64x32xf32>
    %130 = arith.addf %123, %129 : vector<64x32xf32>
    %131 = vector.extract_strided_slice %98 {offsets = [0, 128], sizes = [64, 32], strides = [1, 1]} : vector<64x512xf32> to vector<64x32xf32>
    %132 = arith.mulf %131, %127 : vector<64x32xf32>
    %133 = arith.addf %126, %132 : vector<64x32xf32>
    %134 = vector.extract_strided_slice %99 {offsets = [320, 0], sizes = [64, 32], strides = [1, 1]} : vector<1024x32xf32> to vector<64x32xf32>
    %135 = vector.extract_strided_slice %97 {offsets = [0, 160], sizes = [64, 32], strides = [1, 1]} : vector<64x512xf32> to vector<64x32xf32>
    %136 = arith.mulf %135, %134 : vector<64x32xf32>
    %137 = arith.addf %130, %136 : vector<64x32xf32>
    %138 = vector.extract_strided_slice %98 {offsets = [0, 160], sizes = [64, 32], strides = [1, 1]} : vector<64x512xf32> to vector<64x32xf32>
    %139 = arith.mulf %138, %134 : vector<64x32xf32>
    %140 = arith.addf %133, %139 : vector<64x32xf32>
    %141 = vector.extract_strided_slice %99 {offsets = [384, 0], sizes = [64, 32], strides = [1, 1]} : vector<1024x32xf32> to vector<64x32xf32>
    %142 = vector.extract_strided_slice %97 {offsets = [0, 192], sizes = [64, 32], strides = [1, 1]} : vector<64x512xf32> to vector<64x32xf32>
    %143 = arith.mulf %142, %141 : vector<64x32xf32>
    %144 = arith.addf %137, %143 : vector<64x32xf32>
    %145 = vector.extract_strided_slice %98 {offsets = [0, 192], sizes = [64, 32], strides = [1, 1]} : vector<64x512xf32> to vector<64x32xf32>
    %146 = arith.mulf %145, %141 : vector<64x32xf32>
    %147 = arith.addf %140, %146 : vector<64x32xf32>
    %148 = vector.extract_strided_slice %99 {offsets = [448, 0], sizes = [64, 32], strides = [1, 1]} : vector<1024x32xf32> to vector<64x32xf32>
    %149 = vector.extract_strided_slice %97 {offsets = [0, 224], sizes = [64, 32], strides = [1, 1]} : vector<64x512xf32> to vector<64x32xf32>
    %150 = arith.mulf %149, %148 : vector<64x32xf32>
    %151 = arith.addf %144, %150 : vector<64x32xf32>
    %152 = vector.extract_strided_slice %98 {offsets = [0, 224], sizes = [64, 32], strides = [1, 1]} : vector<64x512xf32> to vector<64x32xf32>
    %153 = arith.mulf %152, %148 : vector<64x32xf32>
    %154 = arith.addf %147, %153 : vector<64x32xf32>
    %155 = vector.extract_strided_slice %99 {offsets = [512, 0], sizes = [64, 32], strides = [1, 1]} : vector<1024x32xf32> to vector<64x32xf32>
    %156 = vector.extract_strided_slice %97 {offsets = [0, 256], sizes = [64, 32], strides = [1, 1]} : vector<64x512xf32> to vector<64x32xf32>
    %157 = arith.mulf %156, %155 : vector<64x32xf32>
    %158 = arith.addf %151, %157 : vector<64x32xf32>
    %159 = vector.extract_strided_slice %98 {offsets = [0, 256], sizes = [64, 32], strides = [1, 1]} : vector<64x512xf32> to vector<64x32xf32>
    %160 = arith.mulf %159, %155 : vector<64x32xf32>
    %161 = arith.addf %154, %160 : vector<64x32xf32>
    %162 = vector.extract_strided_slice %99 {offsets = [576, 0], sizes = [64, 32], strides = [1, 1]} : vector<1024x32xf32> to vector<64x32xf32>
    %163 = vector.extract_strided_slice %97 {offsets = [0, 288], sizes = [64, 32], strides = [1, 1]} : vector<64x512xf32> to vector<64x32xf32>
    %164 = arith.mulf %163, %162 : vector<64x32xf32>
    %165 = arith.addf %158, %164 : vector<64x32xf32>
    %166 = vector.extract_strided_slice %98 {offsets = [0, 288], sizes = [64, 32], strides = [1, 1]} : vector<64x512xf32> to vector<64x32xf32>
    %167 = arith.mulf %166, %162 : vector<64x32xf32>
    %168 = arith.addf %161, %167 : vector<64x32xf32>
    %169 = vector.extract_strided_slice %99 {offsets = [640, 0], sizes = [64, 32], strides = [1, 1]} : vector<1024x32xf32> to vector<64x32xf32>
    %170 = vector.extract_strided_slice %97 {offsets = [0, 320], sizes = [64, 32], strides = [1, 1]} : vector<64x512xf32> to vector<64x32xf32>
    %171 = arith.mulf %170, %169 : vector<64x32xf32>
    %172 = arith.addf %165, %171 : vector<64x32xf32>
    %173 = vector.extract_strided_slice %98 {offsets = [0, 320], sizes = [64, 32], strides = [1, 1]} : vector<64x512xf32> to vector<64x32xf32>
    %174 = arith.mulf %173, %169 : vector<64x32xf32>
    %175 = arith.addf %168, %174 : vector<64x32xf32>
    %176 = vector.extract_strided_slice %99 {offsets = [704, 0], sizes = [64, 32], strides = [1, 1]} : vector<1024x32xf32> to vector<64x32xf32>
    %177 = vector.extract_strided_slice %97 {offsets = [0, 352], sizes = [64, 32], strides = [1, 1]} : vector<64x512xf32> to vector<64x32xf32>
    %178 = arith.mulf %177, %176 : vector<64x32xf32>
    %179 = arith.addf %172, %178 : vector<64x32xf32>
    %180 = vector.extract_strided_slice %98 {offsets = [0, 352], sizes = [64, 32], strides = [1, 1]} : vector<64x512xf32> to vector<64x32xf32>
    %181 = arith.mulf %180, %176 : vector<64x32xf32>
    %182 = arith.addf %175, %181 : vector<64x32xf32>
    %183 = vector.extract_strided_slice %99 {offsets = [768, 0], sizes = [64, 32], strides = [1, 1]} : vector<1024x32xf32> to vector<64x32xf32>
    %184 = vector.extract_strided_slice %97 {offsets = [0, 384], sizes = [64, 32], strides = [1, 1]} : vector<64x512xf32> to vector<64x32xf32>
    %185 = arith.mulf %184, %183 : vector<64x32xf32>
    %186 = arith.addf %179, %185 : vector<64x32xf32>
    %187 = vector.extract_strided_slice %98 {offsets = [0, 384], sizes = [64, 32], strides = [1, 1]} : vector<64x512xf32> to vector<64x32xf32>
    %188 = arith.mulf %187, %183 : vector<64x32xf32>
    %189 = arith.addf %182, %188 : vector<64x32xf32>
    %190 = vector.extract_strided_slice %99 {offsets = [832, 0], sizes = [64, 32], strides = [1, 1]} : vector<1024x32xf32> to vector<64x32xf32>
    %191 = vector.extract_strided_slice %97 {offsets = [0, 416], sizes = [64, 32], strides = [1, 1]} : vector<64x512xf32> to vector<64x32xf32>
    %192 = arith.mulf %191, %190 : vector<64x32xf32>
    %193 = arith.addf %186, %192 : vector<64x32xf32>
    %194 = vector.extract_strided_slice %98 {offsets = [0, 416], sizes = [64, 32], strides = [1, 1]} : vector<64x512xf32> to vector<64x32xf32>
    %195 = arith.mulf %194, %190 : vector<64x32xf32>
    %196 = arith.addf %189, %195 : vector<64x32xf32>
    %197 = vector.extract_strided_slice %99 {offsets = [896, 0], sizes = [64, 32], strides = [1, 1]} : vector<1024x32xf32> to vector<64x32xf32>
    %198 = vector.extract_strided_slice %97 {offsets = [0, 448], sizes = [64, 32], strides = [1, 1]} : vector<64x512xf32> to vector<64x32xf32>
    %199 = arith.mulf %198, %197 : vector<64x32xf32>
    %200 = arith.addf %193, %199 : vector<64x32xf32>
    %201 = vector.extract_strided_slice %98 {offsets = [0, 448], sizes = [64, 32], strides = [1, 1]} : vector<64x512xf32> to vector<64x32xf32>
    %202 = arith.mulf %201, %197 : vector<64x32xf32>
    %203 = arith.addf %196, %202 : vector<64x32xf32>
    %204 = vector.extract_strided_slice %99 {offsets = [960, 0], sizes = [64, 32], strides = [1, 1]} : vector<1024x32xf32> to vector<64x32xf32>
    %205 = vector.extract_strided_slice %97 {offsets = [0, 480], sizes = [64, 32], strides = [1, 1]} : vector<64x512xf32> to vector<64x32xf32>
    %206 = arith.mulf %205, %204 : vector<64x32xf32>
    %207 = arith.addf %200, %206 : vector<64x32xf32>
    %208 = vector.extract_strided_slice %98 {offsets = [0, 480], sizes = [64, 32], strides = [1, 1]} : vector<64x512xf32> to vector<64x32xf32>
    %209 = arith.mulf %208, %204 : vector<64x32xf32>
    %210 = arith.addf %203, %209 : vector<64x32xf32>
    %211 = vector.extract_strided_slice %93 {offsets = [64, 0], sizes = [64, 512], strides = [1, 1]} : vector<128x512xf32> to vector<64x512xf32>
    %212 = vector.extract_strided_slice %96 {offsets = [64, 0], sizes = [64, 512], strides = [1, 1]} : vector<128x512xf32> to vector<64x512xf32>
    %213 = vector.extract_strided_slice %90 {offsets = [0, 32], sizes = [1024, 32], strides = [1, 1]} : vector<1024x64xf32> to vector<1024x32xf32>
    %214 = vector.extract_strided_slice %211 {offsets = [0, 0], sizes = [64, 32], strides = [1, 1]} : vector<64x512xf32> to vector<64x32xf32>
    %215 = vector.extract_strided_slice %213 {offsets = [0, 0], sizes = [64, 32], strides = [1, 1]} : vector<1024x32xf32> to vector<64x32xf32>
    %216 = arith.mulf %214, %215 : vector<64x32xf32>
    %217 = vector.extract_strided_slice %212 {offsets = [0, 0], sizes = [64, 32], strides = [1, 1]} : vector<64x512xf32> to vector<64x32xf32>
    %218 = vector.extract_strided_slice %213 {offsets = [0, 0], sizes = [64, 32], strides = [1, 1]} : vector<1024x32xf32> to vector<64x32xf32>
    %219 = arith.mulf %217, %218 : vector<64x32xf32>
    %220 = vector.extract_strided_slice %213 {offsets = [64, 0], sizes = [64, 32], strides = [1, 1]} : vector<1024x32xf32> to vector<64x32xf32>
    %221 = vector.extract_strided_slice %211 {offsets = [0, 32], sizes = [64, 32], strides = [1, 1]} : vector<64x512xf32> to vector<64x32xf32>
    %222 = arith.mulf %221, %220 : vector<64x32xf32>
    %223 = arith.addf %216, %222 : vector<64x32xf32>
    %224 = vector.extract_strided_slice %212 {offsets = [0, 32], sizes = [64, 32], strides = [1, 1]} : vector<64x512xf32> to vector<64x32xf32>
    %225 = arith.mulf %224, %220 : vector<64x32xf32>
    %226 = arith.addf %219, %225 : vector<64x32xf32>
    %227 = vector.extract_strided_slice %213 {offsets = [128, 0], sizes = [64, 32], strides = [1, 1]} : vector<1024x32xf32> to vector<64x32xf32>
    %228 = vector.extract_strided_slice %211 {offsets = [0, 64], sizes = [64, 32], strides = [1, 1]} : vector<64x512xf32> to vector<64x32xf32>
    %229 = arith.mulf %228, %227 : vector<64x32xf32>
    %230 = arith.addf %223, %229 : vector<64x32xf32>
    %231 = vector.extract_strided_slice %212 {offsets = [0, 64], sizes = [64, 32], strides = [1, 1]} : vector<64x512xf32> to vector<64x32xf32>
    %232 = arith.mulf %231, %227 : vector<64x32xf32>
    %233 = arith.addf %226, %232 : vector<64x32xf32>
    %234 = vector.extract_strided_slice %213 {offsets = [192, 0], sizes = [64, 32], strides = [1, 1]} : vector<1024x32xf32> to vector<64x32xf32>
    %235 = vector.extract_strided_slice %211 {offsets = [0, 96], sizes = [64, 32], strides = [1, 1]} : vector<64x512xf32> to vector<64x32xf32>
    %236 = arith.mulf %235, %234 : vector<64x32xf32>
    %237 = arith.addf %230, %236 : vector<64x32xf32>
    %238 = vector.extract_strided_slice %212 {offsets = [0, 96], sizes = [64, 32], strides = [1, 1]} : vector<64x512xf32> to vector<64x32xf32>
    %239 = arith.mulf %238, %234 : vector<64x32xf32>
    %240 = arith.addf %233, %239 : vector<64x32xf32>
    %241 = vector.extract_strided_slice %213 {offsets = [256, 0], sizes = [64, 32], strides = [1, 1]} : vector<1024x32xf32> to vector<64x32xf32>
    %242 = vector.extract_strided_slice %211 {offsets = [0, 128], sizes = [64, 32], strides = [1, 1]} : vector<64x512xf32> to vector<64x32xf32>
    %243 = arith.mulf %242, %241 : vector<64x32xf32>
    %244 = arith.addf %237, %243 : vector<64x32xf32>
    %245 = vector.extract_strided_slice %212 {offsets = [0, 128], sizes = [64, 32], strides = [1, 1]} : vector<64x512xf32> to vector<64x32xf32>
    %246 = arith.mulf %245, %241 : vector<64x32xf32>
    %247 = arith.addf %240, %246 : vector<64x32xf32>
    %248 = vector.extract_strided_slice %213 {offsets = [320, 0], sizes = [64, 32], strides = [1, 1]} : vector<1024x32xf32> to vector<64x32xf32>
    %249 = vector.extract_strided_slice %211 {offsets = [0, 160], sizes = [64, 32], strides = [1, 1]} : vector<64x512xf32> to vector<64x32xf32>
    %250 = arith.mulf %249, %248 : vector<64x32xf32>
    %251 = arith.addf %244, %250 : vector<64x32xf32>
    %252 = vector.extract_strided_slice %212 {offsets = [0, 160], sizes = [64, 32], strides = [1, 1]} : vector<64x512xf32> to vector<64x32xf32>
    %253 = arith.mulf %252, %248 : vector<64x32xf32>
    %254 = arith.addf %247, %253 : vector<64x32xf32>
    %255 = vector.extract_strided_slice %213 {offsets = [384, 0], sizes = [64, 32], strides = [1, 1]} : vector<1024x32xf32> to vector<64x32xf32>
    %256 = vector.extract_strided_slice %211 {offsets = [0, 192], sizes = [64, 32], strides = [1, 1]} : vector<64x512xf32> to vector<64x32xf32>
    %257 = arith.mulf %256, %255 : vector<64x32xf32>
    %258 = arith.addf %251, %257 : vector<64x32xf32>
    %259 = vector.extract_strided_slice %212 {offsets = [0, 192], sizes = [64, 32], strides = [1, 1]} : vector<64x512xf32> to vector<64x32xf32>
    %260 = arith.mulf %259, %255 : vector<64x32xf32>
    %261 = arith.addf %254, %260 : vector<64x32xf32>
    %262 = vector.extract_strided_slice %213 {offsets = [448, 0], sizes = [64, 32], strides = [1, 1]} : vector<1024x32xf32> to vector<64x32xf32>
    %263 = vector.extract_strided_slice %211 {offsets = [0, 224], sizes = [64, 32], strides = [1, 1]} : vector<64x512xf32> to vector<64x32xf32>
    %264 = arith.mulf %263, %262 : vector<64x32xf32>
    %265 = arith.addf %258, %264 : vector<64x32xf32>
    %266 = vector.extract_strided_slice %212 {offsets = [0, 224], sizes = [64, 32], strides = [1, 1]} : vector<64x512xf32> to vector<64x32xf32>
    %267 = arith.mulf %266, %262 : vector<64x32xf32>
    %268 = arith.addf %261, %267 : vector<64x32xf32>
    %269 = vector.extract_strided_slice %213 {offsets = [512, 0], sizes = [64, 32], strides = [1, 1]} : vector<1024x32xf32> to vector<64x32xf32>
    %270 = vector.extract_strided_slice %211 {offsets = [0, 256], sizes = [64, 32], strides = [1, 1]} : vector<64x512xf32> to vector<64x32xf32>
    %271 = arith.mulf %270, %269 : vector<64x32xf32>
    %272 = arith.addf %265, %271 : vector<64x32xf32>
    %273 = vector.extract_strided_slice %212 {offsets = [0, 256], sizes = [64, 32], strides = [1, 1]} : vector<64x512xf32> to vector<64x32xf32>
    %274 = arith.mulf %273, %269 : vector<64x32xf32>
    %275 = arith.addf %268, %274 : vector<64x32xf32>
    %276 = vector.extract_strided_slice %213 {offsets = [576, 0], sizes = [64, 32], strides = [1, 1]} : vector<1024x32xf32> to vector<64x32xf32>
    %277 = vector.extract_strided_slice %211 {offsets = [0, 288], sizes = [64, 32], strides = [1, 1]} : vector<64x512xf32> to vector<64x32xf32>
    %278 = arith.mulf %277, %276 : vector<64x32xf32>
    %279 = arith.addf %272, %278 : vector<64x32xf32>
    %280 = vector.extract_strided_slice %212 {offsets = [0, 288], sizes = [64, 32], strides = [1, 1]} : vector<64x512xf32> to vector<64x32xf32>
    %281 = arith.mulf %280, %276 : vector<64x32xf32>
    %282 = arith.addf %275, %281 : vector<64x32xf32>
    %283 = vector.extract_strided_slice %213 {offsets = [640, 0], sizes = [64, 32], strides = [1, 1]} : vector<1024x32xf32> to vector<64x32xf32>
    %284 = vector.extract_strided_slice %211 {offsets = [0, 320], sizes = [64, 32], strides = [1, 1]} : vector<64x512xf32> to vector<64x32xf32>
    %285 = arith.mulf %284, %283 : vector<64x32xf32>
    %286 = arith.addf %279, %285 : vector<64x32xf32>
    %287 = vector.extract_strided_slice %212 {offsets = [0, 320], sizes = [64, 32], strides = [1, 1]} : vector<64x512xf32> to vector<64x32xf32>
    %288 = arith.mulf %287, %283 : vector<64x32xf32>
    %289 = arith.addf %282, %288 : vector<64x32xf32>
    %290 = vector.extract_strided_slice %213 {offsets = [704, 0], sizes = [64, 32], strides = [1, 1]} : vector<1024x32xf32> to vector<64x32xf32>
    %291 = vector.extract_strided_slice %211 {offsets = [0, 352], sizes = [64, 32], strides = [1, 1]} : vector<64x512xf32> to vector<64x32xf32>
    %292 = arith.mulf %291, %290 : vector<64x32xf32>
    %293 = arith.addf %286, %292 : vector<64x32xf32>
    %294 = vector.extract_strided_slice %212 {offsets = [0, 352], sizes = [64, 32], strides = [1, 1]} : vector<64x512xf32> to vector<64x32xf32>
    %295 = arith.mulf %294, %290 : vector<64x32xf32>
    %296 = arith.addf %289, %295 : vector<64x32xf32>
    %297 = vector.extract_strided_slice %213 {offsets = [768, 0], sizes = [64, 32], strides = [1, 1]} : vector<1024x32xf32> to vector<64x32xf32>
    %298 = vector.extract_strided_slice %211 {offsets = [0, 384], sizes = [64, 32], strides = [1, 1]} : vector<64x512xf32> to vector<64x32xf32>
    %299 = arith.mulf %298, %297 : vector<64x32xf32>
    %300 = arith.addf %293, %299 : vector<64x32xf32>
    %301 = vector.extract_strided_slice %212 {offsets = [0, 384], sizes = [64, 32], strides = [1, 1]} : vector<64x512xf32> to vector<64x32xf32>
    %302 = arith.mulf %301, %297 : vector<64x32xf32>
    %303 = arith.addf %296, %302 : vector<64x32xf32>
    %304 = vector.extract_strided_slice %213 {offsets = [832, 0], sizes = [64, 32], strides = [1, 1]} : vector<1024x32xf32> to vector<64x32xf32>
    %305 = vector.extract_strided_slice %211 {offsets = [0, 416], sizes = [64, 32], strides = [1, 1]} : vector<64x512xf32> to vector<64x32xf32>
    %306 = arith.mulf %305, %304 : vector<64x32xf32>
    %307 = arith.addf %300, %306 : vector<64x32xf32>
    %308 = vector.extract_strided_slice %212 {offsets = [0, 416], sizes = [64, 32], strides = [1, 1]} : vector<64x512xf32> to vector<64x32xf32>
    %309 = arith.mulf %308, %304 : vector<64x32xf32>
    %310 = arith.addf %303, %309 : vector<64x32xf32>
    %311 = vector.extract_strided_slice %213 {offsets = [896, 0], sizes = [64, 32], strides = [1, 1]} : vector<1024x32xf32> to vector<64x32xf32>
    %312 = vector.extract_strided_slice %211 {offsets = [0, 448], sizes = [64, 32], strides = [1, 1]} : vector<64x512xf32> to vector<64x32xf32>
    %313 = arith.mulf %312, %311 : vector<64x32xf32>
    %314 = arith.addf %307, %313 : vector<64x32xf32>
    %315 = vector.extract_strided_slice %212 {offsets = [0, 448], sizes = [64, 32], strides = [1, 1]} : vector<64x512xf32> to vector<64x32xf32>
    %316 = arith.mulf %315, %311 : vector<64x32xf32>
    %317 = arith.addf %310, %316 : vector<64x32xf32>
    %318 = vector.extract_strided_slice %213 {offsets = [960, 0], sizes = [64, 32], strides = [1, 1]} : vector<1024x32xf32> to vector<64x32xf32>
    %319 = vector.extract_strided_slice %211 {offsets = [0, 480], sizes = [64, 32], strides = [1, 1]} : vector<64x512xf32> to vector<64x32xf32>
    %320 = arith.mulf %319, %318 : vector<64x32xf32>
    %321 = arith.addf %314, %320 : vector<64x32xf32>
    %322 = vector.extract_strided_slice %212 {offsets = [0, 480], sizes = [64, 32], strides = [1, 1]} : vector<64x512xf32> to vector<64x32xf32>
    %323 = arith.mulf %322, %318 : vector<64x32xf32>
    %324 = arith.addf %317, %323 : vector<64x32xf32>
    %325 = tpu.concatenate %207, %321 in 0 : vector<64x32xf32>, vector<64x32xf32> -> vector<128x32xf32>
    %326 = tpu.concatenate %210, %324 in 0 : vector<64x32xf32>, vector<64x32xf32> -> vector<128x32xf32>
    %327 = arith.truncf %326 : vector<128x32xf32> to vector<128x32xbf16>
    %c0_46 = arith.constant 0 : index
    %c0_47 = arith.constant 0 : index
    %328 = vector.load %arg12[%c0_46, %c0_47] : memref<32x64xbf16, #tpu.memory_space<vmem>>, vector<32x64xbf16>
    %cst_48 = arith.constant dense<0.000000e+00> : vector<128x64xf32>
    %329 = tpu.matmul %327, %328, %cst_48 {dimension_numbers = #tpu.dot_dimension_numbers<[1], [0], [0], [1], [0, 0, 1, 1], [], []>} : vector<128x32xbf16>, vector<32x64xbf16>, vector<128x64xf32> -> vector<128x64xf32>
    %330 = arith.subf %329, %13 : vector<128x64xf32>
    %331 = arith.truncf %330 : vector<128x64xf32> to vector<128x64xbf16>
    %c0_49 = arith.constant 0 : index
    %c0_50 = arith.constant 0 : index
    %332 = vector.load %arg13[%c0_49, %c0_50] : memref<64x8xbf16, #tpu.memory_space<vmem>>, vector<64x8xbf16>
    %cst_51 = arith.constant dense<0.000000e+00> : vector<128x8xf32>
    %333 = tpu.matmul %331, %332, %cst_51 {dimension_numbers = #tpu.dot_dimension_numbers<[1], [0], [0], [1], [0, 0, 1, 1], [], []>} : vector<128x64xbf16>, vector<64x8xbf16>, vector<128x8xf32> -> vector<128x8xf32>
    %c0_52 = arith.constant 0 : index
    %c0_53 = arith.constant 0 : index
    %334 = vector.load %arg14[%c0_52, %c0_53] : memref<1x8xf32, #tpu.memory_space<vmem>>, vector<1x8xf32>
    %335 = vector.broadcast %334 : vector<1x8xf32> to vector<128x8xf32>
    %336 = arith.addf %333, %335 : vector<128x8xf32>
    %cst_54 = arith.constant 0.000000e+00 : f32
    %337 = vector.broadcast %cst_54 : f32 to vector<128x88xf32>
    %338 = tpu.concatenate %325, %336, %337 in 1 : vector<128x32xf32>, vector<128x8xf32>, vector<128x88xf32> -> vector<128x128xf32>
    %c0_55 = arith.constant 0 : index
    %c0_56 = arith.constant 0 : index
    %339 = vector.load %arg15[%c0_55, %c0_56] : memref<128x128xf32, #tpu.memory_space<vmem>>, vector<128x128xf32>
    tpu.vector_store %arg15[%c0_55, %c0_56], %338 {strides = array<i32>} : memref<128x128xf32, #tpu.memory_space<vmem>>, vector<128x128xf32>,
    return
  }
}

</mosaic_0001>

<bundles_post_ra>
// kernel: tpu_custom_call.1
= control target key start
LH: loop header
LB: loop body
LE: loop exit
PB: predicated region body
PF: predicated region fallthrough
CT: control target
= control target key end

     0   :  { %s12923_s0 = inlined_call_operand.vmem [shape: bf16[128,32], index: 0, kind: input, shape index: {}]   ;;  %s12924_s1 = inlined_call_operand.vmem [shape: bf16[128,2], index: 1, kind: input, shape index: {}]   ;;  %s12925_s2 = inlined_call_operand.vmem [shape: bf16[32,64], index: 2, kind: input, shape index: {}]   ;;  %s12926_s3 = inlined_call_operand.vmem [shape: bf16[32,24], index: 3, kind: input, shape index: {}]   ;;  %s12927_s4 = inlined_call_operand.vmem [shape: bf16[2,64], index: 4, kind: input, shape index: {}]   ;;  %s12928_s5 = inlined_call_operand.vmem [shape: f32[1,64], index: 5, kind: input, shape index: {}]   ;;  %s12929_s6 = inlined_call_operand.vmem [shape: f32[1,64], index: 6, kind: input, shape index: {}]   ;;  %s12930_s7 = inlined_call_operand.vmem [shape: f32[1,64], index: 7, kind: input, shape index: {}]   ;;  %s12931_s8 = inlined_call_operand.vmem [shape: f32[1,8], index: 8, kind: input, shape index: {}]   ;;  %s12932_s9 = inlined_call_operand.vmem [shape: f32[1,8], index: 9, kind: input, shape index: {}]   ;;  %s12933_s10 = inlined_call_operand.vmem [shape: bf16[64,512], index: 10, kind: input, shape index: {}]   ;;  %s12934_s11 = inlined_call_operand.vmem [shape: bf16[1024,64], index: 11, kind: input, shape index: {}]   ;;  %s12935_s12 = inlined_call_operand.vmem [shape: bf16[32,64], index: 12, kind: input, shape index: {}]   ;;  %s12936_s13 = inlined_call_operand.vmem [shape: bf16[64,8], index: 13, kind: input, shape index: {}]   ;;  %s12937_s14 = inlined_call_operand.vmem [shape: f32[1,8], index: 14, kind: input, shape index: {}]   ;;  %s12938_s15 = inlined_call_operand.hbm [shape: f32[128,128], index: 15, kind: output, shape index: {}]  }
   0x1   :  { %v7214_v0 = vld [vmem:[%s12926_s3 + $0x8] sm:$0xff]  ;;  %v7213_v1 = vld [vmem:[%s12926_s3] sm:$0xff] }
   0x2   :  { %220 = vmatpush.bf16.msra.mxu1 %v7214_v0  ;;  %7309 = vmatpush.bf16.msra.mxu2 %v7214_v0 }
   0x3   :  { %20 = vsyncpa [#allocation3], 0  ;;  %v7543_v2 = vld [vmem:[%s12923_s0] sm:$0xff]  ;;  %vm124_vm0 = vcmask 261120   ;;  %v7550_v3 = vld [vmem:[%s12923_s0 + $0x8] sm:$0xff]  ;;  %vm740_vm1 = vcmask 130048  }
   0x4   :  { %v7557_v4 = vld [vmem:[%s12923_s0 + $0x10] sm:$0xff]  ;;  %v7564_v5 = vld [vmem:[%s12923_s0 + $0x18] sm:$0xff]  ;;  %v7578_v7 = vld [vmem:[%s12923_s0 + $0x20] sm:$0xff]  ;;  %vm567_vm2 = vcmask 195712   ;;  %s7442_s24 = smov 16   ;;  %vm404_vm6 = vcmask 523264  }
   0x5   :  { %v7571_v6 = vld [vmem:[%s12923_s0 + $0x38] sm:$0xff]  ;;  %v7585_v8 = vld [vmem:[%s12923_s0 + $0x28] sm:$0xff]  ;;  %v7592_v9 = vld [vmem:[%s12923_s0 + $0x30] sm:$0xff]  ;;  %s7441_s0 = smov 112   ;;  %vm349_vm7 = vcmask 1040384   ;;  %vm324_vm8 = vcmask 15360  }
   0x6   :  { %221 = vmatpush.bf16.msra.mxu1 %v7213_v1  ;;  %7310 = vmatpush.bf16.msra.mxu2 %v7213_v1  ;;  %s7443_s19 = smov 24   ;;  %s7444_s20 = smov 8   ;;  %vm1189_vm12 = vcmask 64512   ;;  %vm1210_vm13 = vcmask 195584   ;;  %vm1227_vm14 = vcmask 326656   ;;  %vm1236_vm15 = vcmask 392192  }
   0x7   :  { %s7445_s21 = smov 32   ;;  %s7446_s25 = smov 40  }
   0x8   :  { %s7448_s28 = smov 48   ;;  %s7449_s29 = smov 56  }
   0x9   :  { %6663 = vmatmul.msk.bf16.vlgmr.msra.gmra.mxu1 %vm124_vm0, %v7543_v2  ;;  %6670 = vmatmul.msk.bf16.vlgmr.msra.gmra.mxu2 %vm124_vm0, %v7571_v6  ;;  %s7450_s16 = smov 96   ;;  %s7452_s27 = smov [#allocation2]  }
  0x19   :  { %6664 = vmatmul.msk.bf16.gmra.mxu1 %vm124_vm0, %v7550_v3 }
  0x29   :  { %6665 = vmatmul.msk.bf16.gmra.mxu1 %vm124_vm0, %v7557_v4 }
  0x39   :  { %6666 = vmatmul.msk.bf16.gmra.mxu1 %vm124_vm0, %v7564_v5 }
  0x49   :  { %6667 = vmatmul.msk.bf16.gmra.mxu1 %vm124_vm0, %v7578_v7 }
  0x59   :  { %6668 = vmatmul.msk.bf16.gmra.mxu1 %vm124_vm0, %v7585_v8 }
  0x69   :  { %6669 = vmatmul.msk.bf16.gmra.mxu1 %vm124_vm0, %v7592_v9 }
  0x86   :  { %v7596_v10 = vpop.f32.mrf.mxu1 }
  0x87   :  { %v741_v19 = vsel %vm740_vm1, %v7596_v10, -inf }
  0x8e   :  { %v7598_v11 = vpop.f32.mrf.mxu1 }
  0x8f   :  { %v742_v20 = vsel %vm740_vm1, %v7598_v11, -inf }
  0x96   :  { %v7600_v12 = vpop.f32.mrf.mxu1 }
  0x97   :  { %v743_v17 = vsel %vm740_vm1, %v7600_v12, -inf }
  0x98   :  { %v744_v23 = vmax.f32 %v741_v19, %v743_v17  ;;  %v569_v17 = vsel %vm567_vm2, %v7598_v11, 0.0 }
  0x9e   :  { %v7602_v13 = vpop.f32.mrf.mxu1 }
  0x9f   :  { %v745_v18 = vsel %vm740_vm1, %v7602_v13, -inf }
  0xa0   :  { %v746_v24 = vmax.f32 %v742_v20, %v745_v18 }
  0xa6   :  { %v7604_v14 = vpop.f32.mrf.mxu1 }
  0xa7   :  { %v747_v21 = vsel %vm740_vm1, %v7604_v14, -inf }
  0xa8   :  { %v748_v26 = vmax.f32 %v744_v23, %v747_v21  ;;  %v568_v21 = vsel %vm567_vm2, %v7596_v10, 0.0 }
  0xae   :  { %v7606_v15 = vpop.f32.mrf.mxu1 }
  0xaf   :  { %v749_v22 = vsel %vm740_vm1, %v7606_v15, -inf }
  0xb0   :  { %v750_v27 = vmax.f32 %v746_v24, %v749_v22  ;;  %v571_v22 = vsel %vm567_vm2, %v7600_v12, 0.0 }
  0xb6   :  { %v7608_v16 = vpop.f32.mrf.mxu1 }
  0xb7   :  { %v751_v25 = vsel %vm740_vm1, %v7608_v16, -inf }
  0xb8   :  { %v752_v30 = vmax.f32 %v748_v26, %v751_v25  ;;  %v570_v25 = vadd.f32 %v569_v17, %v568_v21  ;;  %v7670_v26 = vpop.f32.mrf.mxu2 }
  0xb9   :  { %v772_v21 = vsel %vm740_vm1, %v7670_v26, -inf }
  0xbe   :  { %v7624_v28 = vpop.f32.mrf.mxu1 }
  0xbf   :  { %v753_v29 = vsel %vm740_vm1, %v7624_v28, -inf }
  0xc0   :  { %v754_v31 = vmax.f32 %v750_v27, %v753_v29  ;;  %v573_v29 = vsel %vm567_vm2, %v7602_v13, 0.0  ;;  %v7706_v17 = vpop.f32.mrf.mxu2 }
  0xc2   :  { %v755_v32 = vmax.f32 %v752_v30, %v754_v31 }
  0xc4   :  { %v756_v33 = vrot.slane %v755_v32, 4 }
  0xc6   :  { %v757_v34 = vmax.f32 %v755_v32, %v756_v33  ;;  %v7628_v35 = vpop.f32.mrf.mxu1  ;;  %v572_v32 = vadd.f32 %v571_v22, %v570_v25 }
  0xc8   :  { %v758_v36 = vrot.slane %v757_v34, 2 }
  0xca   :  { %v759_v37 = vmax.f32 %v757_v34, %v758_v36  ;;  %v575_v34 = vsel %vm567_vm2, %v7604_v14, 0.0  ;;  %v762_v36 = vsel %vm740_vm1, %v7628_v35, -inf }
  0xcc   :  { %v760_v38 = vrot.slane %v759_v37, 1 }
  0xce   :  { %v761_v39 = vmax.f32 %v759_v37, %v760_v38  ;;  %v7630_v40 = vpop.f32.mrf.mxu1 }
  0xd0   :  { %v783_v41 = vsub.f32 %v7596_v10, %v761_v39  ;;  %v784_v42 = vsub.f32 %v7598_v11, %v761_v39  ;;  %v785_v43 = vsub.f32 %v7600_v12, %v761_v39  ;;  %v786_v44 = vsub.f32 %v7602_v13, %v761_v39 }
  0xd1   :  { %v787_v45 = vsub.f32 %v7604_v14, %v761_v39  ;;  %v788_v49 = vsub.f32 %v7606_v15, %v761_v39  ;;  %v789_v52 = vsub.f32 %v7608_v16, %v761_v39  ;;  %v790_v54 = vsub.f32 %v7624_v28, %v761_v39 }
  0xd2   :  { %v799_v46 = vmul.f32 1.442695, %v783_v41  ;;  %v801_v47 = vmul.f32 1.442695, %v784_v42  ;;  %v803_v48 = vmul.f32 1.442695, %v785_v43  ;;  %v574_v41 = vadd.f32 %v573_v29, %v572_v32 }
  0xd3   :  { %v805_v50 = vmul.f32 1.442695, %v786_v44  ;;  %v807_v53 = vmul.f32 1.442695, %v787_v45  ;;  %v809_v55 = vmul.f32 1.442695, %v788_v49 }
  0xd4   :  { %7375 = vpow2.f32 %v799_v46  ;;  %v811_v56 = vmul.f32 1.442695, %v789_v52  ;;  %v813_v59 = vmul.f32 1.442695, %v790_v54  ;;  %v577_v44 = vsel %vm567_vm2, %v7606_v15, 0.0 }
  0xd5   :  { %7377 = vpow2.f32 %v801_v47  ;;  %v576_v46 = vadd.f32 %v575_v34, %v574_v41  ;;  %v579_v47 = vsel %vm567_vm2, %v7608_v16, 0.0  ;;  %v763_v52 = vsel %vm740_vm1, %v7630_v40, -inf }
  0xd6   :  { %v7638_v51 = vpop.f32.mrf.mxu1  ;;  %7379 = vpow2.f32 %v803_v48 }
  0xd7   :  { %7381 = vpow2.f32 %v805_v50  ;;  %v764_v37 = vsel %vm740_vm1, %v7638_v51, -inf }
  0xd8   :  { %7383 = vpow2.f32 %v807_v53  ;;  %v765_v48 = vmax.f32 %v762_v36, %v764_v37  ;;  %v587_v37 = vsel %vm567_vm2, %v7638_v51, 0.0 }
  0xd9   :  { %7385 = vpow2.f32 %v809_v55  ;;  %v578_v55 = vadd.f32 %v577_v44, %v576_v46 }
  0xda   :  { %v7642_v57 = vpop.eup %7375  ;;  %7387 = vpow2.f32 %v811_v56 }
  0xdb   :  { %v7644_v58 = vpop.eup %7377  ;;  %v831_v60 = vsel %vm740_vm1, %v7642_v57, 0.0  ;;  %7389 = vpow2.f32 %v813_v59  ;;  %v581_v59 = vsel %vm567_vm2, %v7624_v28, 0.0 }
  0xdc   :  { %v7648_v61 = vpop.eup %7379  ;;  %v832_v62 = vsel %vm740_vm1, %v7644_v58, 0.0 }
  0xdd   :  { %v7652_v63 = vpop.eup %7381  ;;  %v833_v1 = vadd.f32 %v832_v62, %v831_v60  ;;  %v834_v18 = vsel %vm740_vm1, %v7648_v61, 0.0  ;;  %v580_v60 = vadd.f32 %v579_v47, %v578_v55 }
  0xde   :  { %v7654_v0 = vpop.f32.mrf.mxu1  ;;  %v7660_v19 = vpop.eup %7383  ;;  %v836_v23 = vsel %vm740_vm1, %v7652_v63, 0.0 }
  0xdf   :  { %v835_v20 = vadd.f32 %v834_v18, %v833_v1  ;;  %v7668_v24 = vpop.eup %7385  ;;  %v838_v30 = vsel %vm740_vm1, %v7660_v19, 0.0  ;;  %v766_v53 = vsel %vm740_vm1, %v7654_v0, -inf  ;;  %v582_v22 = vadd.f32 %v581_v59, %v580_v60 }
  0xe0   :  { %v7676_v31 = vpop.eup %7387  ;;  %v840_v38 = vsel %vm740_vm1, %v7668_v24, 0.0  ;;  %v767_v62 = vmax.f32 %v763_v52, %v766_v53  ;;  %v589_v44 = vsel %vm567_vm2, %v7654_v0, 0.0  ;;  %v595_v59 = vsel %vm567_vm2, %v7670_v26, 0.0 }
  0xe1   :  { %v837_v27 = vadd.f32 %v836_v23, %v835_v20  ;;  %v7686_v39 = vpop.eup %7389  ;;  %v842_v45 = vsel %vm740_vm1, %v7676_v31, 0.0  ;;  %v583_v20 = vsel %vm567_vm2, %v7628_v35, 0.0 }
  0xe2   :  { %v844_v50 = vsel %vm740_vm1, %v7686_v39, 0.0  ;;  %v584_v32 = vadd.f32 %v583_v20, %v582_v22 }
  0xe3   :  { %v839_v33 = vadd.f32 %v838_v30, %v837_v27  ;;  %v585_v27 = vsel %vm567_vm2, %v7630_v40, 0.0  ;;  %v774_v30 = vsel %vm740_vm1, %v7706_v17, -inf }
  0xe5   :  { %v841_v43 = vadd.f32 %v840_v38, %v839_v33  ;;  %v586_v38 = vadd.f32 %v585_v27, %v584_v32 }
  0xe6   :  { %v7688_v42 = vpop.f32.mrf.mxu1 }
  0xe7   :  { %v843_v49 = vadd.f32 %v842_v45, %v841_v43  ;;  %v768_v54 = vsel %vm740_vm1, %v7688_v42, -inf  ;;  %v588_v45 = vadd.f32 %v587_v37, %v586_v38 }
  0xe8   :  { %v769_v1 = vmax.f32 %v765_v48, %v768_v54  ;;  %v591_v48 = vsel %vm567_vm2, %v7688_v42, 0.0 }
  0xe9   :  { %v845_v56 = vadd.f32 %v844_v50, %v843_v49  ;;  %v590_v49 = vadd.f32 %v589_v44, %v588_v45 }
  0xea   :  { %v773_v33 = vmax.f32 %v769_v1, %v772_v21 }
  0xeb   :  { %v846_v18 = vrot.slane %v845_v56, 4  ;;  %v592_v54 = vadd.f32 %v591_v48, %v590_v49 }
  0xed   :  { %v847_v25 = vadd.f32 %v846_v18, %v845_v56  ;;  %v597_v18 = vsel %vm567_vm2, %v7706_v17, 0.0 }
  0xee   :  { %v7712_v23 = vpop.f32.mrf.mxu1 }
  0xef   :  { %v770_v29 = vsel %vm740_vm1, %v7712_v23, -inf  ;;  %v848_v36 = vrot.slane %v847_v25, 2  ;;  %v593_v53 = vsel %vm567_vm2, %v7712_v23, 0.0 }
  0xf0   :  { %v771_v34 = vmax.f32 %v767_v62, %v770_v29  ;;  %v594_v56 = vadd.f32 %v593_v53, %v592_v54 }
  0xf1   :  { %v849_v43 = vadd.f32 %v848_v36, %v847_v25 }
  0xf2   :  { %v775_v41 = vmax.f32 %v771_v34, %v774_v30  ;;  %v596_v1 = vadd.f32 %v595_v59, %v594_v56 }
  0xf3   :  { %v850_v47 = vrot.slane %v849_v43, 1 }
  0xf4   :  { %v776_v46 = vmax.f32 %v773_v33, %v775_v41  ;;  %v598_v22 = vadd.f32 %v597_v18, %v596_v1 }
  0xf5   :  { %v851_v52 = vadd.f32 %v850_v47, %v849_v43 }
  0xf6   :  { %v777_v50 = vrot.slane %v776_v46, 4  ;;  %v599_v27 = vrot.slane %v598_v22, 4 }
  0xf7   :  { %7391 = vrcp.f32 %v851_v52 }
  0xf8   :  { %v778_v55 = vmax.f32 %v776_v46, %v777_v50  ;;  %v600_v32 = vadd.f32 %v599_v27, %v598_v22 }
  0xfa   :  { %v779_v60 = vrot.slane %v778_v55, 2  ;;  %v601_v36 = vrot.slane %v600_v32, 2 }
  0xfc   :  { %v780_v21 = vmax.f32 %v778_v55, %v779_v60  ;;  %v602_v45 = vadd.f32 %v601_v36, %v600_v32 }
  0xfd   :  { %v7730_v62 = vpop.eup %7391 }
  0xfe   :  { %v875_v20 = vmul.f32 %v7730_v62, %v7642_v57  ;;  %v781_v25 = vrot.slane %v780_v21, 1  ;;  %v876_v29 = vmul.f32 %v7730_v62, %v7644_v58  ;;  %v877_v38 = vmul.f32 %v7730_v62, %v7648_v61 }
  0xff   :  { %v603_v61 = vrot.slane %v602_v45, 1  ;;  %v878_v54 = vmul.f32 %v7730_v62, %v7652_v63 }
 0x100   :  { %1000 = vxpose.xlu0.b32.start [1/8] (short) (narrow) %v875_v20, 16  ;;  %v782_v30 = vmax.f32 %v780_v21, %v781_v25 }
 0x101   :  { %v604_v60 = vadd.f32 %v603_v61, %v602_v45 }
 0x102   :  { %v791_v33 = vsub.f32 %v7628_v35, %v782_v30  ;;  %v792_v34 = vsub.f32 %v7630_v40, %v782_v30  ;;  %v793_v37 = vsub.f32 %v7638_v51, %v782_v30  ;;  %v794_v57 = vsub.f32 %v7654_v0, %v782_v30 }
 0x103   :  { %v795_v41 = vsub.f32 %v7688_v42, %v782_v30  ;;  %v796_v43 = vsub.f32 %v7712_v23, %v782_v30  ;;  %v797_v46 = vsub.f32 %v7670_v26, %v782_v30  ;;  %v798_v50 = vsub.f32 %v7706_v17, %v782_v30 }
 0x104   :  { %v815_v58 = vmul.f32 1.442695, %v791_v33  ;;  %v817_v44 = vmul.f32 1.442695, %v792_v34  ;;  %v819_v47 = vmul.f32 1.442695, %v793_v37  ;;  %v879_v33 = vmul.f32 %v7730_v62, %v7660_v19 }
 0x105   :  { %v821_v48 = vmul.f32 1.442695, %v794_v57  ;;  %v823_v49 = vmul.f32 1.442695, %v795_v41  ;;  %v825_v52 = vmul.f32 1.442695, %v796_v43 }
 0x106   :  { %7393 = vpow2.f32 %v815_v58  ;;  %v827_v53 = vmul.f32 1.442695, %v797_v46  ;;  %v829_v55 = vmul.f32 1.442695, %v798_v50  ;;  %v7770_v30 = vmul.f32 0.0078125, %v604_v60 }
 0x107   :  { %7395 = vpow2.f32 %v817_v44 }
 0x108   :  { %1001 = vxpose.xlu0.b32.cont [2/8] (short) (narrow) %v876_v29, 16  ;;  %7397 = vpow2.f32 %v819_v47  ;;  %v606_v41 = vsub.f32 %v7596_v10, %v7770_v30  ;;  %v607_v43 = vsub.f32 %v7598_v11, %v7770_v30  ;;  %v608_v50 = vsub.f32 %v7600_v12, %v7770_v30 }
 0x109   :  { %7399 = vpow2.f32 %v821_v48 }
 0x10a   :  { %7401 = vpow2.f32 %v823_v49  ;;  %v622_v46 = vmul.f32 %v606_v41, %v606_v41  ;;  %v623_v47 = vmul.f32 %v607_v43, %v607_v43  ;;  %v880_v49 = vmul.f32 %v7730_v62, %v7668_v24 }
 0x10b   :  { %7403 = vpow2.f32 %v825_v52  ;;  %v624_v60 = vmul.f32 %v608_v50, %v608_v50  ;;  %v881_v24 = vmul.f32 %v7730_v62, %v7676_v31  ;;  %v882_v31 = vmul.f32 %v7730_v62, %v7686_v39 }
 0x10c   :  { %v7750_v56 = vpop.eup %7393  ;;  %7405 = vpow2.f32 %v827_v53  ;;  %v638_v61 = vsel %vm567_vm2, %v622_v46, 0.0  ;;  %v639_v53 = vsel %vm567_vm2, %v623_v47, 0.0  ;;  %v614_v39 = vsub.f32 %v7628_v35, %v7770_v30 }
 0x10d   :  { %v7752_v59 = vpop.eup %7395  ;;  %v852_v1 = vsel %vm740_vm1, %v7750_v56, 0.0  ;;  %7407 = vpow2.f32 %v829_v55  ;;  %v609_v55 = vsub.f32 %v7602_v13, %v7770_v30 }
 0x10e   :  { %v7756_v18 = vpop.eup %7397  ;;  %v853_v20 = vsel %vm740_vm1, %v7752_v59, 0.0 }
 0x10f   :  { %v7760_v21 = vpop.eup %7399  ;;  %v854_v63 = vadd.f32 %v853_v20, %v852_v1  ;;  %v855_v22 = vsel %vm740_vm1, %v7756_v18, 0.0  ;;  %v640_v20 = vadd.f32 %v639_v53, %v638_v61 }
 0x110   :  { %1002 = vxpose.xlu0.b32.cont [3/8] (short) (narrow) %v877_v38, 16  ;;  %v7764_v25 = vpop.eup %7401  ;;  %v857_v27 = vsel %vm740_vm1, %v7760_v21, 0.0 }
 0x111   :  { %v7768_v29 = vpop.eup %7403  ;;  %v856_v32 = vadd.f32 %v855_v22, %v854_v63  ;;  %v859_v34 = vsel %vm740_vm1, %v7764_v25, 0.0  ;;  %v610_v22 = vsub.f32 %v7604_v14, %v7770_v30 }
 0x112   :  { %v7776_v36 = vpop.eup %7405  ;;  %v861_v57 = vsel %vm740_vm1, %v7768_v29, 0.0 }
 0x113   :  { %v858_v37 = vadd.f32 %v857_v27, %v856_v32  ;;  %v7780_v38 = vpop.eup %7407  ;;  %v863_v19 = vsel %vm740_vm1, %v7776_v36, 0.0  ;;  %v625_v27 = vmul.f32 %v609_v55, %v609_v55  ;;  %v641_v32 = vsel %vm567_vm2, %v624_v60, 0.0 }
 0x114   :  { %v865_v45 = vsel %vm740_vm1, %v7780_v38, 0.0  ;;  %v626_v41 = vmul.f32 %v610_v22, %v610_v22  ;;  %v615_v60 = vsub.f32 %v7630_v40, %v7770_v30 }
 0x115   :  { %v860_v58 = vadd.f32 %v859_v34, %v858_v37  ;;  %v642_v34 = vadd.f32 %v641_v32, %v640_v20  ;;  %v643_v43 = vsel %vm567_vm2, %v625_v27, 0.0 }
 0x116   :  { %v645_v46 = vsel %vm567_vm2, %v626_v41, 0.0  ;;  %v631_v22 = vmul.f32 %v615_v60, %v615_v60 }
 0x117   :  { %v862_v44 = vadd.f32 %v861_v57, %v860_v58  ;;  %v611_v57 = vsub.f32 %v7606_v15, %v7770_v30 }
 0x118   :  { %1003 = vxpose.xlu0.b32.cont [4/8] (short) (narrow) %v878_v54, 16 }
 0x119   :  { %v864_v48 = vadd.f32 %v863_v19, %v862_v44  ;;  %v644_v19 = vadd.f32 %v643_v43, %v642_v34  ;;  %v612_v44 = vsub.f32 %v7608_v16, %v7770_v30 }
 0x11b   :  { %v866_v52 = vadd.f32 %v865_v45, %v864_v48  ;;  %v627_v45 = vmul.f32 %v611_v57, %v611_v57  ;;  %v646_v47 = vadd.f32 %v645_v46, %v644_v19  ;;  %v628_v50 = vmul.f32 %v612_v44, %v612_v44 }
 0x11d   :  { %v867_v54 = vrot.slane %v866_v52, 4 }
 0x11f   :  { %v868_v1 = vadd.f32 %v867_v54, %v866_v52  ;;  %v647_v52 = vsel %vm567_vm2, %v627_v45, 0.0  ;;  %v649_v54 = vsel %vm567_vm2, %v628_v50, 0.0 }
 0x120   :  { %1004 = vxpose.xlu0.b32.cont [5/8] (short) (narrow) %v879_v33, 16  ;;  %v648_v61 = vadd.f32 %v647_v52, %v646_v47 }
 0x121   :  { %v869_v63 = vrot.slane %v868_v1, 2 }
 0x122   :  { %v650_v55 = vadd.f32 %v649_v54, %v648_v61  ;;  %v621_v61 = vsub.f32 %v7706_v17, %v7770_v30 }
 0x123   :  { %v870_v33 = vadd.f32 %v869_v63, %v868_v1  ;;  %v630_v1 = vmul.f32 %v614_v39, %v614_v39 }
 0x125   :  { %v871_v37 = vrot.slane %v870_v33, 1  ;;  %v653_v27 = vsel %vm567_vm2, %v630_v1, 0.0 }
 0x127   :  { %v872_v58 = vadd.f32 %v871_v37, %v870_v33  ;;  %v617_v33 = vsub.f32 %v7654_v0, %v7770_v30  ;;  %v655_v37 = vsel %vm567_vm2, %v631_v22, 0.0 }
 0x128   :  { %1005 = vxpose.xlu0.b32.cont [6/8] (short) (narrow) %v880_v49, 16  ;;  %v613_v49 = vsub.f32 %v7624_v28, %v7770_v30 }
 0x129   :  { %7409 = vrcp.f32 %v872_v58  ;;  %v633_v43 = vmul.f32 %v617_v33, %v617_v33 }
 0x12a   :  { %v629_v62 = vmul.f32 %v613_v49, %v613_v49 }
 0x12b   :  { %v659_v45 = vsel %vm567_vm2, %v633_v43, 0.0 }
 0x12c   :  { %v651_v20 = vsel %vm567_vm2, %v629_v62, 0.0 }
 0x12d   :  { %v652_v63 = vadd.f32 %v651_v20, %v650_v55  ;;  %v637_v55 = vmul.f32 %v621_v61, %v621_v61 }
 0x12f   :  { %v7410_v48 = vpop.eup %7409  ;;  %v654_v32 = vadd.f32 %v653_v27, %v652_v63  ;;  %v667_v1 = vsel %vm567_vm2, %v637_v55, 0.0 }
 0x130   :  { %1006 = vxpose.xlu0.b32.cont [7/8] (short) (narrow) %v881_v24, 16  ;;  %v883_v53 = vmul.f32 %v7410_v48, %v7750_v56  ;;  %v884_v24 = vmul.f32 %v7410_v48, %v7752_v59  ;;  %v616_v56 = vsub.f32 %v7638_v51, %v7770_v30  ;;  %v885_v41 = vmul.f32 %v7410_v48, %v7756_v18 }
 0x131   :  { %v656_v57 = vadd.f32 %v655_v37, %v654_v32  ;;  %v618_v59 = vsub.f32 %v7688_v42, %v7770_v30  ;;  %v886_v47 = vmul.f32 %v7410_v48, %v7760_v21  ;;  %v620_v18 = vsub.f32 %v7670_v26, %v7770_v30 }
 0x132   :  { %907 = vxpose.xlu2.b32.start [1/8] (short) (narrow) %v883_v53, 16  ;;  %v632_v34 = vmul.f32 %v616_v56, %v616_v56  ;;  %v887_v54 = vmul.f32 %v7410_v48, %v7764_v25  ;;  %v888_v63 = vmul.f32 %v7410_v48, %v7768_v29  ;;  %v889_v56 = vmul.f32 %v7410_v48, %v7776_v36 }
 0x133   :  { %v634_v44 = vmul.f32 %v618_v59, %v618_v59  ;;  %v636_v53 = vmul.f32 %v620_v18, %v620_v18  ;;  %v890_v32 = vmul.f32 %v7410_v48, %v7780_v38  ;;  %v7211_v18 = vld [vmem:[%s12925_s2] sm:$0xff] }
 0x134   :  { %v657_v58 = vsel %vm567_vm2, %v632_v34, 0.0 }
 0x135   :  { %v658_v19 = vadd.f32 %v657_v58, %v656_v57  ;;  %v661_v50 = vsel %vm567_vm2, %v634_v44, 0.0  ;;  %v665_v21 = vsel %vm567_vm2, %v636_v53, 0.0 }
 0x137   :  { %v660_v46 = vadd.f32 %v659_v45, %v658_v19 }
 0x138   :  { %1007 = vxpose.xlu0.b32.end [8/8] (short) (narrow) %v882_v31, 16  ;;  %v619_v31 = vsub.f32 %v7712_v23, %v7770_v30 }
 0x139   :  { %v662_v52 = vadd.f32 %v661_v50, %v660_v46 }
 0x13a   :  { %908 = vxpose.xlu2.b32.cont [2/8] (short) (narrow) %v884_v24, 16  ;;  %v635_v49 = vmul.f32 %v619_v31, %v619_v31  ;;  %v565_v31 = vld [vmem:[%s12931_s8] sm:$0x1]  ;;  %s7453_s8 = smov 128  }
 0x13c   :  { %v663_v39 = vsel %vm567_vm2, %v635_v49, 0.0  ;;  %vm1245_vm2 = vcmask 457728  }
 0x13d   :  { %v664_v62 = vadd.f32 %v663_v39, %v662_v52 }
 0x13f   :  { %v666_v60 = vadd.f32 %v665_v21, %v664_v62 }
 0x141   :  { %v668_v20 = vadd.f32 %v667_v1, %v666_v60 }
 0x142   :  { %909 = vxpose.xlu2.b32.cont [3/8] (short) (narrow) %v885_v41, 16 }
 0x143   :  { %v669_v24 = vrot.slane %v668_v20, 4 }
 0x145   :  { %v670_v22 = vadd.f32 %v669_v24, %v668_v20 }
 0x147   :  { %v671_v27 = vrot.slane %v670_v22, 2 }
 0x149   :  { %v672_v25 = vadd.f32 %v671_v27, %v670_v22 }
 0x14a   :  { %910 = vxpose.xlu2.b32.cont [4/8] (short) (narrow) %v886_v47, 16  ;;  %v7212_v47 = vld [vmem:[%s12925_s2 + $0x8] sm:$0xff]  ;;  %s7447_s2 = smov 120  }
 0x14b   :  { %v673_v33 = vrot.slane %v672_v25, 1  ;;  %155 = vmatpush.bf16.msra.mxu0 %v7212_v47 }
 0x14d   :  { %v674_v34 = vadd.f32 %v673_v33, %v672_v25 }
 0x14f   :  { %v675_v37 = vmul.f32 0.0078125, %v674_v34  ;;  %156 = vmatpush.bf16.msra.mxu0 %v7211_v18 }
 0x151   :  { %v676_v57 = vadd.f32 1e-05, %v675_v37 }
 0x152   :  { %911 = vxpose.xlu2.b32.cont [5/8] (short) (narrow) %v887_v54, 16  ;;  %6647 = vmatmul.msk.bf16.vlgmr.msra.gmra.mxu0 %vm124_vm0, %v7543_v2  ;;  %v566_v2 = vld [vmem:[%s12932_s9] sm:$0x1] }
 0x153   :  { %7411 = vrsqrt.f32 %v676_v57  ;;  %vm683_vm4 = vweird.f32 %v676_v57 }
 0x159   :  { %v7412_v41 = vpop.eup %7411 }
 0x15a   :  { %912 = vxpose.xlu2.b32.cont [6/8] (short) (narrow) %v888_v63, 16  ;;  %v678_v59 = vmul.f32 %v7412_v41, %v676_v57  ;;  %vm684_vm3 = vweird.f32 %v7412_v41  ;;  %v279_v63 = vld [vmem:[%s12927_s4] sm:$0x1] }
 0x15b   :  { %vm685_vm5 = vmor %vm683_vm4, %vm684_vm3  ;;  %v351_v24 = vsel %vm349_vm7, %v279_v63, 0 }
 0x15c   :  { %v679_v43 = vmul.f32 %v7412_v41, %v678_v59  ;;  %360 = vmatpush.bf16.msrb.mxu2 %v351_v24 }
 0x15e   :  { %v680_v29 = vmul.f32 0.5, %v679_v43 }
 0x160   :  { %v681_v58 = vsub.f32 1.5, %v680_v29 }
 0x162   :  { %913 = vxpose.xlu2.b32.cont [7/8] (short) (narrow) %v889_v56, 16  ;;  %v682_v19 = vmul.f32 %v7412_v41, %v681_v58  ;;  %6648 = vmatmul.msk.bf16.gmra.mxu0 %vm124_vm0, %v7550_v3  ;;  %v7215_v56 = vld [vmem:[%s12924_s1] sm:$0xff] }
 0x163   :  { %6703 = vmatmul.msk.bf16.vlgmr.msrb.gmra.mxu2 %vm324_vm8, %v7215_v56 }
 0x164   :  { %v686_v36 = vsel %vm685_vm5, %v7412_v41, %v682_v19 }
 0x16a   :  { %914 = vxpose.xlu2.b32.end [8/8] (short) (narrow) %v890_v32, 16 }
 0x172   :  { %6649 = vmatmul.msk.bf16.gmra.mxu0 %vm124_vm0, %v7557_v4 }
 0x182   :  { %6650 = vmatmul.msk.bf16.gmra.mxu0 %vm124_vm0, %v7564_v5 }
 0x192   :  { %6651 = vmatmul.msk.bf16.gmra.mxu0 %vm124_vm0, %v7578_v7 }
 0x1a2   :  { %6652 = vmatmul.msk.bf16.gmra.mxu0 %vm124_vm0, %v7585_v8 }
 0x1a4   :  { %v7849_v38 = vpop.trf.xlu0 }
 0x1a6   :  { %688 = vrot.lane.b32.xlu0 %v686_v36, %s7441_s0  ;;  %v7216_v36 = vld [vmem:[%s12924_s1 + $0x8] sm:$0xff] }
 0x1a7   :  { %6704 = vmatmul.msk.bf16.gmra.mxu2 %vm324_vm8, %v7216_v36 }
 0x1ac   :  { %v7851_v48 = vpop.trf.xlu0 }
 0x1b2   :  { %6653 = vmatmul.msk.bf16.gmra.mxu0 %vm124_vm0, %v7592_v9 }
 0x1c2   :  { %6654 = vmatmul.msk.bf16.gmra.mxu0 %vm124_vm0, %v7571_v6 }
 0x1cf   :  { %v7888_v5 = vpop.f32.mrf.mxu0 }
 0x1d0   :  { %v405_v39 = vsel %vm404_vm6, %v7888_v5, 0.0 }
 0x1d7   :  { %v7890_v7 = vpop.f32.mrf.mxu0 }
 0x1d8   :  { %v406_v62 = vsel %vm404_vm6, %v7890_v7, 0.0 }
 0x1d9   :  { %v407_v55 = vadd.f32 %v406_v62, %v405_v39 }
 0x1df   :  { %v7892_v8 = vpop.f32.mrf.mxu0 }
 0x1e0   :  { %v408_v21 = vsel %vm404_vm6, %v7892_v8, 0.0 }
 0x1e1   :  { %v409_v60 = vadd.f32 %v408_v21, %v407_v55 }
 0x1e7   :  { %v7894_v52 = vpop.f32.mrf.mxu0 }
 0x1e8   :  { %v410_v1 = vsel %vm404_vm6, %v7894_v52, 0.0 }
 0x1e9   :  { %v411_v22 = vadd.f32 %v410_v1, %v409_v60 }
 0x1ef   :  { %v7896_v9 = vpop.f32.mrf.mxu0 }
 0x1f0   :  { %v412_v27 = vsel %vm404_vm6, %v7896_v9, 0.0 }
 0x1f1   :  { %v413_v32 = vadd.f32 %v412_v27, %v411_v22 }
 0x1f7   :  { %v7898_v6 = vpop.f32.mrf.mxu0 }
 0x1f8   :  { %v414_v25 = vsel %vm404_vm6, %v7898_v6, 0.0 }
 0x1f9   :  { %v415_v34 = vadd.f32 %v414_v25, %v413_v32 }
 0x1ff   :  { %v7900_v61 = vpop.f32.mrf.mxu0 }
 0x200   :  { %v416_v37 = vsel %vm404_vm6, %v7900_v61, 0.0 }
 0x201   :  { %v417_v57 = vadd.f32 %v416_v37, %v415_v34 }
 0x207   :  { %v7902_v53 = vpop.f32.mrf.mxu0 }
 0x208   :  { %v418_v41 = vsel %vm404_vm6, %v7902_v53, 0.0 }
 0x20f   :  { %v7908_v54 = vpop.f32.mrf.mxu0 }
 0x217   :  { %v7914_v20 = vpop.f32.mrf.mxu0 }
 0x218   :  { %v689_v44 = vpop.permute.xlu0 %688  ;;  %v422_v55 = vsel %vm404_vm6, %v7914_v20, 0.0 }
 0x219   :  { %v691_v45 = vmul.f32 %v689_v44, %v565_v31  ;;  %v419_v44 = vadd.f32 %v418_v41, %v417_v57 }
 0x21b   :  { %v693_v46 = vperm.slane %v691_v45, 0  ;;  %v420_v45 = vsel %vm404_vm6, %v7908_v54, 0.0 }
 0x21d   :  { %694 = vrot.lane.b32.xlu0 %v693_v46, %s7442_s24 }
 0x21f   :  { %v7927_v33 = vpop.f32.mrf.mxu0 }
 0x220   :  { %v424_v25 = vsel %vm404_vm6, %v7927_v33, 0.0 }
 0x227   :  { %v7933_v59 = vpop.f32.mrf.mxu0 }
 0x22f   :  { %v7979_v1 = vpop.f32.mrf.mxu0 }
 0x28f   :  { %v7867_v49 = vpop.permute.xlu0 %694 }
 0x290   :  { %v713_v50 = vmul.f32 %v7867_v49, %v7770_v30  ;;  %v707_v43 = vmul.f32 %v7867_v49, %v7638_v51  ;;  %v708_v29 = vmul.f32 %v7867_v49, %v7654_v0  ;;  %v705_v58 = vmul.f32 %v7867_v49, %v7628_v35 }
 0x291   :  { %v706_v19 = vmul.f32 %v7867_v49, %v7630_v40  ;;  %v711_v35 = vmul.f32 %v7867_v49, %v7670_v26  ;;  %v712_v40 = vmul.f32 %v7867_v49, %v7706_v17  ;;  %v710_v39 = vmul.f32 %v7867_v49, %v7712_v23 }
 0x292   :  { %715 = vrot.lane.b32.xlu1 %v713_v50, %s7441_s0  ;;  %v697_v26 = vmul.f32 %v7867_v49, %v7596_v10  ;;  %v701_v23 = vmul.f32 %v7867_v49, %v7604_v14  ;;  %v702_v10 = vmul.f32 %v7867_v49, %v7606_v15  ;;  %v700_v56 = vmul.f32 %v7867_v49, %v7602_v13 }
 0x293   :  { %v703_v41 = vmul.f32 %v7867_v49, %v7608_v16 }
 0x304   :  { %v716_v3 = vpop.permute.xlu1 %715 }
 0x305   :  { %v718_v4 = vsub.f32 %v566_v2, %v716_v3  ;;  %v709_v3 = vmul.f32 %v7867_v49, %v7688_v42  ;;  %v698_v42 = vmul.f32 %v7867_v49, %v7598_v11  ;;  %v699_v11 = vmul.f32 %v7867_v49, %v7600_v12 }
 0x307   :  { %v720_v30 = vperm.slane %v718_v4, 0 }
 0x309   :  { %721 = vrot.lane.b32.xlu1 %v720_v30, %s7442_s24  ;;  %v421_v30 = vadd.f32 %v420_v45, %v419_v44 }
 0x30b   :  { %v423_v14 = vadd.f32 %v422_v55, %v421_v30 }
 0x30d   :  { %v425_v45 = vadd.f32 %v424_v25, %v423_v14 }
 0x37b   :  { %v722_v31 = vpop.permute.xlu1 %721 }
 0x37c   :  { %v734_v46 = vadd.f32 %v722_v31, %v707_v43  ;;  %v735_v51 = vadd.f32 %v722_v31, %v708_v29  ;;  %v7948_v47 = vadd.f32 %v722_v31, %v705_v58  ;;  %v7950_v0 = vadd.f32 %v722_v31, %v706_v19 }
 0x37d   :  { %v7971_v21 = vadd.f32 %v722_v31, %v711_v35  ;;  %v7973_v60 = vadd.f32 %v722_v31, %v712_v40  ;;  %v724_v24 = vadd.f32 %v722_v31, %v697_v26  ;;  %v7987_v22 = vadd.f32 %v722_v31, %v709_v3 }
 0x37e   :  { %v902_v18 = vpack.c.bf16 %v735_v51, %v735_v51  ;;  %v7338_v50 = vpack.i.bf16 %v735_v51, %v734_v46  ;;  %v901_v2 = vpack.c.bf16 %v734_v46, %v734_v46  ;;  %v7333_v4 = vpack.i.bf16 %v7950_v0, %v7948_v47 }
 0x37f   :  { %v7989_v27 = vadd.f32 %v722_v31, %v710_v39  ;;  %v725_v32 = vadd.f32 %v722_v31, %v698_v42  ;;  %v891_v15 = vpack.c.bf16 %v724_v24, %v724_v24  ;;  %v726_v34 = vadd.f32 %v722_v31, %v699_v11 }
 0x380   :  { %v1104_v62 = vunpack.c.l.b16 %v902_v18  ;;  %7339 = vrot.lane.b32.xlu1 %v7338_v50, %s7441_s0  ;;  %v1103_v17 = vunpack.c.l.b16 %v901_v2  ;;  %7334 = vrot.lane.b32.xlu0 %v7333_v4, %s7441_s0  ;;  %v727_v37 = vadd.f32 %v722_v31, %v700_v56  ;;  %v7348_v12 = vpack.i.bf16 %v7973_v60, %v7971_v21  ;;  %v8007_v50 = vpop.f32.mrf.mxu0 }
 0x381   :  { %v892_v57 = vpack.c.bf16 %v725_v32, %v725_v32  ;;  %v728_v13 = vadd.f32 %v722_v31, %v701_v23  ;;  %v1145_v43 = vunpack.c.l.b16 %v891_v15  ;;  %v729_v29 = vadd.f32 %v722_v31, %v702_v10 }
 0x382   :  { %v7981_v63 = vpack.c.b16 %v1104_v62, %v1103_v17  ;;  %v894_v58 = vpack.c.bf16 %v727_v37, %v727_v37  ;;  %v893_v19 = vpack.c.bf16 %v726_v34, %v726_v34  ;;  %v7343_v36 = vpack.i.bf16 %v7989_v27, %v7987_v22 }
 0x383   :  { %v1146_v44 = vunpack.c.l.b16 %v892_v57  ;;  %v704_v46 = vmul.f32 %v7867_v49, %v7624_v28  ;;  %v426_v40 = vsel %vm404_vm6, %v7933_v59, 0.0  ;;  %v730_v16 = vadd.f32 %v722_v31, %v703_v41  ;;  %v7217_v28 = vld [vmem:[%s12924_s1 + $0x10] sm:$0xff] }
 0x384   :  { %1115 = vrot.lane.b32.xlu2 %v7981_v63, %s7441_s0  ;;  %v1148_v51 = vunpack.c.l.b16 %v894_v58  ;;  %v1147_v35 = vunpack.c.l.b16 %v893_v19  ;;  %v895_v3 = vpack.c.bf16 %v728_v13, %v728_v13  ;;  %v896_v4 = vpack.c.bf16 %v729_v29, %v729_v29  ;;  %6705 = vmatmul.msk.bf16.gmra.mxu2 %vm324_vm8, %v7217_v28 }
 0x385   :  { %v731_v18 = vadd.f32 %v722_v31, %v704_v46  ;;  %v8009_v2 = vpack.c.b16 %v1146_v44, %v1145_v43  ;;  %v427_v49 = vadd.f32 %v426_v40, %v425_v45  ;;  %v897_v39 = vpack.c.bf16 %v730_v16, %v730_v16 }
 0x386   :  { %v428_v31 = vsel %vm404_vm6, %v7979_v1, 0.0  ;;  %v8018_v26 = vpack.c.b16 %v1148_v51, %v1147_v35  ;;  %v7353_v55 = vpack.i.bf16 %v725_v32, %v724_v24  ;;  %v1149_v42 = vunpack.c.l.b16 %v895_v3 }
 0x387   :  { %v898_v30 = vpack.c.bf16 %v731_v18, %v731_v18  ;;  %v1151_v17 = vunpack.c.l.b16 %v897_v39  ;;  %v1150_v23 = vunpack.c.l.b16 %v896_v4  ;;  %v429_v10 = vadd.f32 %v428_v31, %v427_v49 }
 0x388   :  { %7349 = vrot.lane.b32.xlu1 %v7348_v12, %s7441_s0  ;;  %7344 = vrot.lane.b32.xlu0 %v7343_v36, %s7441_s0  ;;  %v430_v56 = vsel %vm404_vm6, %v8007_v50, 0.0  ;;  %v8028_v14 = vpop.f32.mrf.mxu0  ;;  %v7358_v25 = vpack.i.bf16 %v727_v37, %v726_v34  ;;  %v7363_v19 = vpack.i.bf16 %v729_v29, %v728_v13  ;;  %v900_v45 = vpack.c.bf16 %v7950_v0, %v7950_v0  ;;  %v7218_v13 = vld [vmem:[%s12924_s1 + $0x18] sm:$0xff] }
 0x389   :  { %v1152_v62 = vunpack.c.l.b16 %v898_v30  ;;  %v8030_v15 = vpack.c.b16 %v1150_v23, %v1149_v42  ;;  %v431_v24 = vadd.f32 %v430_v56, %v429_v10  ;;  %v432_v32 = vsel %vm404_vm6, %v8028_v14, 0.0 }
 0x38a   :  { %v899_v46 = vpack.c.bf16 %v7948_v47, %v7948_v47  ;;  %v7368_v51 = vpack.i.bf16 %v731_v18, %v730_v16  ;;  %v1102_v40 = vunpack.c.l.b16 %v900_v45  ;;  %v904_v4 = vpack.c.bf16 %v7989_v27, %v7989_v27  ;;  %v7219_v45 = vld [vmem:[%s12924_s1 + $0x20] sm:$0xff] }
 0x38b   :  { %v8021_v11 = vpack.c.b16 %v1152_v62, %v1151_v17  ;;  %v433_v12 = vadd.f32 %v432_v32, %v431_v24  ;;  %v903_v28 = vpack.c.bf16 %v7987_v22, %v7987_v22 }
 0x38c   :  { %1165 = vrot.lane.b32.xlu2 %v8009_v2, %s7443_s19  ;;  %v1101_v3 = vunpack.c.l.b16 %v899_v46  ;;  %v1106_v42 = vunpack.c.l.b16 %v904_v4 }
 0x38d   :  { %v1105_v27 = vunpack.c.l.b16 %v903_v28 }
 0x38e   :  { %v8071_v49 = vpack.c.b16 %v1102_v40, %v1101_v3 }
 0x390   :  { %7354 = vrot.lane.b32.xlu1 %v7353_v55, %s7441_s0  ;;  %1131 = vrot.lane.b32.xlu0 %v7981_v63, %s7444_s20  ;;  %v8037_v57 = vpop.f32.mrf.mxu0 }
 0x391   :  { %v434_v41 = vsel %vm404_vm6, %v8037_v57, 0.0 }
 0x392   :  { %v435_v43 = vadd.f32 %v434_v41, %v433_v12 }
 0x394   :  { %1169 = vrot.lane.b32.xlu2 %v8030_v15, %s7443_s19  ;;  %v436_v58 = vrot.slane %v435_v43, 4  ;;  %6706 = vmatmul.msk.bf16.gmra.mxu2 %vm324_vm8, %v7218_v13 }
 0x396   :  { %v437_v36 = vadd.f32 %v436_v58, %v435_v43  ;;  %v906_v43 = vpack.c.bf16 %v7973_v60, %v7973_v60  ;;  %v905_v58 = vpack.c.bf16 %v7971_v21, %v7971_v21 }
 0x398   :  { %7359 = vrot.lane.b32.xlu1 %v7358_v25, %s7441_s0  ;;  %v438_v44 = vrot.slane %v437_v36, 2  ;;  %v1107_v13 = vunpack.c.l.b16 %v905_v58 }
 0x39a   :  { %v439_v34 = vadd.f32 %v438_v44, %v437_v36 }
 0x39c   :  { %1173 = vrot.lane.b32.xlu2 %v8009_v2, %s7445_s21  ;;  %v440_v37 = vrot.slane %v439_v34, 1 }
 0x39e   :  { %v441_v35 = vadd.f32 %v440_v37, %v439_v34 }
 0x3a0   :  { %7364 = vrot.lane.b32.xlu1 %v7363_v19, %s7441_s0  ;;  %v8054_v29 = vmul.f32 0.0078125, %v441_v35  ;;  %v8093_v19 = vpack.c.b16 %v1106_v42, %v1105_v27  ;;  %v1108_v35 = vunpack.c.l.b16 %v906_v43 }
 0x3a2   :  { %v443_v0 = vsub.f32 %v7888_v5, %v8054_v29  ;;  %v444_v47 = vsub.f32 %v7890_v7, %v8054_v29  ;;  %v445_v16 = vsub.f32 %v7892_v8, %v8054_v29  ;;  %v446_v18 = vsub.f32 %v7894_v52, %v8054_v29 }
 0x3a3   :  { %v447_v30 = vsub.f32 %v7896_v9, %v8054_v29  ;;  %v448_v17 = vsub.f32 %v7898_v6, %v8054_v29  ;;  %v449_v22 = vsub.f32 %v7900_v61, %v8054_v29  ;;  %v450_v25 = vsub.f32 %v7902_v53, %v8054_v29 }
 0x3a4   :  { %1177 = vrot.lane.b32.xlu2 %v8030_v15, %s7445_s21  ;;  %v459_v39 = vmul.f32 %v443_v0, %v443_v0  ;;  %v460_v31 = vmul.f32 %v444_v47, %v444_v47  ;;  %v461_v62 = vmul.f32 %v445_v16, %v445_v16  ;;  %v462_v55 = vmul.f32 %v446_v18, %v446_v18 }
 0x3a5   :  { %v463_v23 = vmul.f32 %v447_v30, %v447_v30  ;;  %v464_v12 = vmul.f32 %v448_v17, %v448_v17  ;;  %v451_v44 = vsub.f32 %v7908_v54, %v8054_v29  ;;  %v465_v34 = vmul.f32 %v449_v22, %v449_v22  ;;  %6707 = vmatmul.msk.bf16.gmra.mxu2 %vm324_vm8, %v7219_v45 }
 0x3a6   :  { %v475_v10 = vsel %vm404_vm6, %v459_v39, 0.0  ;;  %v476_v56 = vsel %vm404_vm6, %v460_v31, 0.0  ;;  %v478_v24 = vsel %vm404_vm6, %v461_v62, 0.0  ;;  %v480_v41 = vsel %vm404_vm6, %v462_v55, 0.0 }
 0x3a7   :  { %v477_v32 = vadd.f32 %v476_v56, %v475_v10  ;;  %v482_v37 = vsel %vm404_vm6, %v463_v23, 0.0  ;;  %v452_v21 = vsub.f32 %v7914_v20, %v8054_v29  ;;  %v466_v46 = vmul.f32 %v450_v25, %v450_v25 }
 0x3a8   :  { %7369 = vrot.lane.b32.xlu1 %v7368_v51, %s7441_s0  ;;  %v484_v51 = vsel %vm404_vm6, %v464_v12, 0.0  ;;  %v453_v3 = vsub.f32 %v7927_v33, %v8054_v29  ;;  %v467_v0 = vmul.f32 %v451_v44, %v451_v44  ;;  %v486_v47 = vsel %vm404_vm6, %v465_v34, 0.0  ;;  %v7220_v44 = vld [vmem:[%s12924_s1 + $0x28] sm:$0xff] }
 0x3a9   :  { %v479_v36 = vadd.f32 %v478_v24, %v477_v32  ;;  %v454_v18 = vsub.f32 %v7933_v59, %v8054_v29  ;;  %v468_v4 = vmul.f32 %v452_v21, %v452_v21  ;;  %v488_v28 = vsel %vm404_vm6, %v466_v46, 0.0 }
 0x3aa   :  { %v8113_v39 = vpack.c.b16 %v1108_v35, %v1107_v13  ;;  %v455_v31 = vsub.f32 %v7979_v1, %v8054_v29  ;;  %v469_v62 = vmul.f32 %v453_v3, %v453_v3  ;;  %v490_v17 = vsel %vm404_vm6, %v467_v0, 0.0 }
 0x3ab   :  { %v481_v60 = vadd.f32 %v480_v41, %v479_v36  ;;  %v456_v42 = vsub.f32 %v8007_v50, %v8054_v29  ;;  %v470_v27 = vmul.f32 %v454_v18, %v454_v18  ;;  %v492_v22 = vsel %vm404_vm6, %v468_v4, 0.0 }
 0x3ac   :  { %1181 = vrot.lane.b32.xlu2 %v8009_v2, %s7446_s25  ;;  %v457_v10 = vsub.f32 %v8028_v14, %v8054_v29  ;;  %v471_v56 = vmul.f32 %v455_v31, %v455_v31  ;;  %v494_v24 = vsel %vm404_vm6, %v469_v62, 0.0  ;;  %v458_v25 = vsub.f32 %v8037_v57, %v8054_v29  ;;  %v7222_v31 = vld [vmem:[%s12924_s1 + $0x38] sm:$0xff] }
 0x3ad   :  { %v483_v40 = vadd.f32 %v482_v37, %v481_v60  ;;  %v472_v12 = vmul.f32 %v456_v42, %v456_v42  ;;  %v496_v41 = vsel %vm404_vm6, %v470_v27, 0.0  ;;  %v8153_v42 = vpop.f32.mrf.mxu2 }
 0x3ae   :  { %v473_v58 = vmul.f32 %v457_v10, %v457_v10  ;;  %v498_v36 = vsel %vm404_vm6, %v471_v56, 0.0  ;;  %v474_v37 = vmul.f32 %v458_v25, %v458_v25 }
 0x3af   :  { %v485_v16 = vadd.f32 %v484_v51, %v483_v40  ;;  %v500_v45 = vsel %vm404_vm6, %v472_v12, 0.0 }
 0x3b0   :  { %1113 = vrot.lane.b32.xlu1 %v8071_v49, %s7441_s0  ;;  %v502_v21 = vsel %vm404_vm6, %v473_v58, 0.0  ;;  %v504_v51 = vsel %vm404_vm6, %v474_v37, 0.0  ;;  %v402_v58 = vld [vmem:[%s12929_s6] sm:$0x1] }
 0x3b1   :  { %v487_v30 = vadd.f32 %v486_v47, %v485_v16  ;;  %v7221_v47 = vld [vmem:[%s12924_s1 + $0x30] sm:$0xff] }
 0x3b3   :  { %v489_v55 = vadd.f32 %v488_v28, %v487_v30 }
 0x3b4   :  { %1185 = vrot.lane.b32.xlu2 %v8030_v15, %s7446_s25 }
 0x3b5   :  { %v491_v23 = vadd.f32 %v490_v17, %v489_v55  ;;  %6708 = vmatmul.msk.bf16.gmra.mxu2 %vm324_vm8, %v7220_v44 }
 0x3b7   :  { %v493_v32 = vadd.f32 %v492_v22, %v491_v23 }
 0x3b8   :  { %1117 = vrot.lane.b32.xlu1 %v8093_v19, %s7441_s0 }
 0x3b9   :  { %v495_v43 = vadd.f32 %v494_v24, %v493_v32  ;;  %v8157_v24 = vpop.f32.mrf.mxu2 }
 0x3bb   :  { %v497_v34 = vadd.f32 %v496_v41, %v495_v43 }
 0x3bd   :  { %v499_v60 = vadd.f32 %v498_v36, %v497_v34 }
 0x3bf   :  { %v501_v46 = vadd.f32 %v500_v45, %v499_v60 }
 0x3c0   :  { %1119 = vrot.lane.b32.xlu1 %v8113_v39, %s7441_s0 }
 0x3c1   :  { %v503_v35 = vadd.f32 %v502_v21, %v501_v46  ;;  %v8166_v60 = vpop.f32.mrf.mxu2  ;;  %v7301_v46 = vld [vmem:[%s12933_s10 + $0x6c] sm:$0xf0] }
 0x3c3   :  { %v505_v13 = vadd.f32 %v504_v51, %v503_v35 }
 0x3c5   :  { %v506_v40 = vrot.slane %v505_v13, 4  ;;  %6709 = vmatmul.msk.bf16.gmra.mxu2 %vm324_vm8, %v7221_v47 }
 0x3c7   :  { %v507_v3 = vadd.f32 %v506_v40, %v505_v13  ;;  %v403_v13 = vld [vmem:[%s12930_s7] sm:$0x1]  ;;  %v923_v40 = vpop.trf.xlu2  ;;  %s6595_s7 = sshll.u32 %s12938_s15, 4  ;;  %s6596_s7 = int_to_ptr.hbm [resolvable:$true] %s6595_s7 }
 0x3c8   :  { %1121 = vrot.lane.b32.xlu1 %v8071_v49, %s7447_s2 }
 0x3c9   :  { %v508_v0 = vrot.slane %v507_v3, 2 }
 0x3cb   :  { %v509_v16 = vadd.f32 %v508_v0, %v507_v3 }
 0x3cd   :  { %v510_v18 = vrot.slane %v509_v16, 1 }
 0x3cf   :  { %v511_v4 = vadd.f32 %v510_v18, %v509_v16  ;;  %v7069_v16 = vld [vmem:[%s12933_s10 + $0x40] sm:$0xf] }
 0x3d0   :  { %1123 = vrot.lane.b32.xlu1 %v7981_v63, %s7447_s2 }
 0x3d1   :  { %v512_v28 = vmul.f32 0.0078125, %v511_v4 }
 0x3d3   :  { %v513_v30 = vadd.f32 1e-05, %v512_v28 }
 0x3d5   :  { %7413 = vrsqrt.f32 %v513_v30  ;;  %6710 = vmatmul.msk.bf16.gmra.mxu2 %vm324_vm8, %v7222_v31  ;;  %vm520_vm9 = vweird.f32 %v513_v30  ;;  %v7293_v31 = vld [vmem:[%s12933_s10 + $0x2c] sm:$0xf0] }
 0x3d8   :  { %1125 = vrot.lane.b32.xlu1 %v8093_v19, %s7447_s2 }
 0x3db   :  { %v7414_v62 = vpop.eup %7413 }
 0x3dc   :  { %v515_v17 = vmul.f32 %v7414_v62, %v513_v30  ;;  %vm521_vm10 = vweird.f32 %v7414_v62  ;;  %v7053_v30 = vld [vmem:[%s12933_s10 + $0x20] sm:$0xf] }
 0x3dd   :  { %vm522_vm11 = vmor %vm520_vm9, %vm521_vm10 }
 0x3de   :  { %v516_v55 = vmul.f32 %v7414_v62, %v515_v17 }
 0x3e0   :  { %1127 = vrot.lane.b32.xlu1 %v8113_v39, %s7447_s2  ;;  %v517_v23 = vmul.f32 0.5, %v516_v55  ;;  %s6593_s2 = sshll.u32 %s7452_s27, 4  ;;  %s6594_s2 = int_to_ptr.vmem [resolvable:$true] %s6593_s2 }
 0x3e2   :  { %v518_v10 = vsub.f32 1.5, %v517_v23 }
 0x3e4   :  { %v519_v12 = vmul.f32 %v7414_v62, %v518_v10  ;;  %v7037_v10 = vld [vmem:[%s12933_s10] sm:$0xf] }
 0x3e6   :  { %v523_v36 = vsel %vm522_vm11, %v7414_v62, %v519_v12  ;;  %v8200_v62 = vpop.f32.mrf.mxu2 }
 0x3e7   :  { %v524_v45 = vmul.f32 %v523_v36, %v402_v58 }
 0x3e8   :  { %1129 = vrot.lane.b32.xlu1 %v8071_v49, %s7444_s20 }
 0x3e9   :  { %v544_v35 = vmul.f32 %v524_v45, %v8054_v29  ;;  %v7297_v29 = vld [vmem:[%s12933_s10 + $0x4c] sm:$0xf0]  ;;  %v8188_v18 = vperm.slane %v524_v45, 0 }
 0x3ea   :  { %v8192_v28 = vor.u32 %v7297_v29, %v7069_v16 }
 0x3eb   :  { %v545_v4 = vsub.f32 %v403_v13, %v544_v35  ;;  %v528_v55 = vmul.f32 %v8188_v18, %v7888_v5  ;;  %v532_v16 = vmul.f32 %v8188_v18, %v7896_v9 }
 0x3ed   :  { %v8202_v17 = vperm.slane %v545_v4, 0 }
 0x3ef   :  { %v549_v5 = vadd.f32 %v8202_v17, %v528_v55  ;;  %v535_v55 = vmul.f32 %v8188_v18, %v7902_v53  ;;  %v537_v53 = vmul.f32 %v8188_v18, %v7914_v20  ;;  %v539_v20 = vmul.f32 %v8188_v18, %v7933_v59  ;;  %v7095_v59 = vld [vmem:[%s12933_s10 + $0x78] sm:$0xf0] }
 0x3f0   :  { %1133 = vrot.lane.b32.xlu1 %v8093_v19, %s7444_s20 }
 0x3f2   :  { %v7340_v27 = vpop.permute.xlu1 %7339  ;;  %v7335_v22 = vpop.permute.xlu0 %7334 }
 0x3f3   :  { %v7342_v37 = vunpack.i.h.bf16 %v7340_v27  ;;  %v7341_v21 = vunpack.i.l.bf16 %v7340_v27  ;;  %v7337_v51 = vunpack.i.h.bf16 %v7335_v22  ;;  %v7336_v3 = vunpack.i.l.bf16 %v7335_v22 }
 0x3f4   :  { %v529_v27 = vmul.f32 %v8188_v18, %v7890_v7  ;;  %v8211_v22 = vor.u32 %v7293_v31, %v7053_v30 }
 0x3f6   :  { %v550_v7 = vadd.f32 %v8202_v17, %v529_v27 }
 0x3f8   :  { %1135 = vrot.lane.b32.xlu1 %v8113_v39, %s7444_s20 }
 0x3fa   :  { %v7350_v56 = vpop.permute.xlu1 %7349  ;;  %v7345_v25 = vpop.permute.xlu0 %7344 }
 0x3fb   :  { %v7352_v32 = vunpack.i.h.bf16 %v7350_v56  ;;  %v7351_v41 = vunpack.i.l.bf16 %v7350_v56  ;;  %v7347_v43 = vunpack.i.h.bf16 %v7345_v25  ;;  %v7346_v44 = vunpack.i.l.bf16 %v7345_v25  ;;  %v7289_v56 = vld [vmem:[%s12933_s10 + $0xc] sm:$0xf0] }
 0x3fc   :  { %v8227_v25 = vpack.c.bf16 %v550_v7, %v549_v5 }
 0x3fd   :  { %985 = vmatpush.msra.mxu2 %v7352_v32  ;;  %v8223_v32 = vor.u32 %v7289_v56, %v7037_v10  ;;  %v556_v10 = vadd.f32 %v8202_v17, %v535_v55  ;;  %v7292_v55 = vld [vmem:[%s12933_s10 + $0x2c] sm:$0xf] }
 0x3ff   :  { %986 = vmatpush.msra.mxu2 %v7351_v41 }
 0x400   :  { %1157 = vrot.lane.b32.xlu1 %v8009_v2, %s7442_s24  ;;  %v7085_v2 = vld [vmem:[%s12933_s10 + $0x60] sm:$0xf] }
 0x401   :  { %987 = vmatpush.msra.mxu2 %v7347_v43  ;;  %v8180_v0 = vor.u32 %v7301_v46, %v7085_v2 }
 0x402   :  { %v8164_v34 = vpop.permute.xlu1 %7354 }
 0x403   :  { %988 = vmatpush.msra.mxu2 %v7346_v44  ;;  %v530_v44 = vmul.f32 %v8188_v18, %v7892_v8  ;;  %v7357_v8 = vunpack.i.h.bf16 %v8164_v34 }
 0x405   :  { %989 = vmatpush.msra.mxu2 %v7342_v37  ;;  %v531_v37 = vmul.f32 %v8188_v18, %v7894_v52 }
 0x407   :  { %990 = vmatpush.msra.mxu2 %v7341_v21  ;;  %v8229_v12 = vpop.f32.mrf.mxu2  ;;  %v552_v35 = vadd.f32 %v8202_v17, %v531_v37 }
 0x408   :  { %1159 = vrot.lane.b32.xlu1 %v8018_v26, %s7442_s24 }
 0x409   :  { %991 = vmatpush.msra.mxu2 %v7337_v51  ;;  %v551_v51 = vadd.f32 %v8202_v17, %v530_v44 }
 0x40a   :  { %v7360_v47 = vpop.permute.xlu1 %7359 }
 0x40b   :  { %992 = vmatpush.msra.mxu2 %v7336_v3  ;;  %v7362_v46 = vunpack.i.h.bf16 %v7360_v47  ;;  %v7361_v13 = vunpack.i.l.bf16 %v7360_v47  ;;  %v8249_v52 = vpack.c.bf16 %v552_v35, %v551_v51 }
 0x40c   :  { %6711 = vmatmul.msk.f32.vlgmr.msra.gmra.mxu2 %vm404_vm6, %v923_v40  ;;  %v7356_v40 = vunpack.i.l.bf16 %v8164_v34  ;;  %v533_v34 = vmul.f32 %v8188_v18, %v7898_v6 }
 0x40d   :  { %2595 = vmatpush.bf16.msrb.mxu2 %v8180_v0  ;;  %13354 = vst [vmem:[#allocation5_spill] sm:$0xff] %v8249_v52 }
 0x40e   :  { %v554_v4 = vadd.f32 %v8202_v17, %v533_v34  ;;  %v541_v34 = vmul.f32 %v8188_v18, %v8007_v50 }
 0x40f   :  { %v8242_v2 = vpop.f32.mrf.mxu2 }
 0x410   :  { %1161 = vrot.lane.b32.xlu1 %v8030_v15, %s7442_s24  ;;  %v924_v15 = vpop.trf.xlu2  ;;  %v562_v50 = vadd.f32 %v8202_v17, %v541_v34 }
 0x411   :  { %2596 = vmatpush.bf16.msrb.mxu2 %v8192_v28 }
 0x412   :  { %v7365_v23 = vpop.permute.xlu1 %7364 }
 0x413   :  { %v7367_v36 = vunpack.i.h.bf16 %v7365_v23  ;;  %v7366_v45 = vunpack.i.l.bf16 %v7365_v23 }
 0x414   :  { %6712 = vmatmul.msk.f32.gmra.mxu2 %vm404_vm6, %v924_v15 }
 0x415   :  { %2597 = vmatpush.bf16.msrb.mxu2 %v8211_v22 }
 0x417   :  { %v8258_v47 = vpop.f32.mrf.mxu2 }
 0x418   :  { %1163 = vrot.lane.b32.xlu1 %v8021_v11, %s7442_s24 }
 0x419   :  { %2598 = vmatpush.bf16.msrb.mxu2 %v8223_v32 }
 0x41a   :  { %v7370_v41 = vpop.permute.xlu1 %7369 }
 0x41b   :  { %v7372_v43 = vunpack.i.h.bf16 %v7370_v41  ;;  %v7371_v58 = vunpack.i.l.bf16 %v7370_v41  ;;  %v558_v41 = vadd.f32 %v8202_v17, %v537_v53  ;;  %v7047_v53 = vld [vmem:[%s12933_s10 + $0x18] sm:$0xf0] }
 0x41c   :  { %7099 = vmatmul.msk.bf16.vlgmr.msrb.gmra.mxu2 %vm404_vm6, %v8227_v25 }
 0x41d   :  { %1078 = vmatpush.msra.mxu3 %v7372_v43 }
 0x41f   :  { %1079 = vmatpush.msra.mxu3 %v7371_v58  ;;  %v8272_v30 = vpop.f32.mrf.mxu2 }
 0x420   :  { %1167 = vrot.lane.b32.xlu1 %v8018_v26, %s7443_s19 }
 0x421   :  { %1080 = vmatpush.msra.mxu3 %v7367_v36 }
 0x422   :  { %v8240_v21 = vpop.permute.xlu1 %1113 }
 0x423   :  { %1081 = vmatpush.msra.mxu3 %v7366_v45  ;;  %v560_v45 = vadd.f32 %v8202_v17, %v539_v20 }
 0x425   :  { %1082 = vmatpush.msra.mxu3 %v7362_v46 }
 0x427   :  { %1083 = vmatpush.msra.mxu3 %v7361_v13 }
 0x428   :  { %1171 = vrot.lane.b32.xlu1 %v8021_v11, %s7443_s19  ;;  %v8282_v6 = vpop.f32.mrf.mxu2 }
 0x429   :  { %1084 = vmatpush.msra.mxu3 %v7357_v8  ;;  %v7296_v8 = vld [vmem:[%s12933_s10 + $0x4c] sm:$0xf] }
 0x42a   :  { %v8252_v3 = vpop.permute.xlu1 %1117 }
 0x42b   :  { %1085 = vmatpush.msra.mxu3 %v7356_v40  ;;  %v7079_v40 = vld [vmem:[%s12933_s10 + $0x58] sm:$0xf0] }
 0x42c   :  { %6713 = vmatmul.msk.f32.vlgmr.msra.gmra.mxu3 %vm404_vm6, %v7849_v38  ;;  %7100 = vmatmul.msk.bf16.gmra.mxu2 %vm404_vm6, %v8249_v52  ;;  %v553_v38 = vadd.f32 %v8202_v17, %v532_v16  ;;  %v540_v16 = vmul.f32 %v8188_v18, %v7979_v1 }
 0x42e   :  { %v8276_v31 = vpack.c.bf16 %v554_v4, %v553_v38  ;;  %v8357_v38 = vor.u32 %v7296_v8, %v7079_v40  ;;  %v561_v1 = vadd.f32 %v8202_v17, %v540_v16 }
 0x430   :  { %1175 = vrot.lane.b32.xlu1 %v8018_v26, %s7445_s21  ;;  %v8298_v15 = vpop.f32.mrf.mxu2  ;;  %13355 = vst [vmem:[#allocation6_spill] sm:$0xff] %v8357_v38 }
 0x432   :  { %v8266_v29 = vpop.permute.xlu1 %1119 }
 0x434   :  { %6714 = vmatmul.msk.f32.gmra.mxu3 %vm404_vm6, %v7851_v48  ;;  %v534_v48 = vmul.f32 %v8188_v18, %v7900_v61  ;;  %v536_v61 = vmul.f32 %v8188_v18, %v7908_v54  ;;  %v538_v54 = vmul.f32 %v8188_v18, %v7927_v33  ;;  %v7300_v33 = vld [vmem:[%s12933_s10 + $0x6c] sm:$0xf] }
 0x435   :  { %v8344_v13 = vor.u32 %v7300_v33, %v7095_v59  ;;  %v1116_v59 = vpop.permute.xlu2 %1115 }
 0x436   :  { %v555_v23 = vadd.f32 %v8202_v17, %v534_v48  ;;  %v559_v37 = vadd.f32 %v8202_v17, %v538_v54 }
 0x437   :  { %2742 = vmatpush.bf16.msra.mxu2 %v8344_v13 }
 0x438   :  { %1179 = vrot.lane.b32.xlu1 %v8021_v11, %s7445_s21  ;;  %v8296_v56 = vpack.c.bf16 %v556_v10, %v555_v23  ;;  %v8310_v7 = vpop.f32.mrf.mxu2  ;;  %v8332_v51 = vpack.c.bf16 %v560_v45, %v559_v37  ;;  %v7063_v23 = vld [vmem:[%s12933_s10 + $0x38] sm:$0xf0]  ;;  %v543_v37 = vmul.f32 %v8188_v18, %v8037_v57  ;;  %v542_v45 = vmul.f32 %v8188_v18, %v8028_v14 }
 0x439   :  { %v8372_v10 = vor.u32 %v7292_v55, %v7063_v23 }
 0x43a   :  { %v8278_v9 = vpop.permute.xlu1 %1121  ;;  %v564_v8 = vadd.f32 %v8202_v17, %v543_v37  ;;  %v563_v40 = vadd.f32 %v8202_v17, %v542_v45 }
 0x43b   :  { %2743 = vmatpush.bf16.msra.mxu2 %v8357_v38  ;;  %13356 = vst [vmem:[#allocation7_spill] sm:$0xff] %v8372_v10 }
 0x43c   :  { %7101 = vmatmul.msk.bf16.gmra.mxu2 %vm404_vm6, %v8276_v31  ;;  %v8400_v34 = vpack.c.bf16 %v564_v8, %v563_v40 }
 0x43d   :  { %v8404_v23 = vpop.permute.xlu2 %1165 }
 0x43f   :  { %2744 = vmatpush.bf16.msra.mxu2 %v8372_v10 }
 0x440   :  { %1183 = vrot.lane.b32.xlu1 %v8018_v26, %s7446_s25  ;;  %v8320_v36 = vpop.f32.mrf.mxu2 }
 0x442   :  { %v8290_v27 = vpop.permute.xlu1 %1123 }
 0x445   :  { %v1170_v18 = vpop.permute.xlu2 %1169 }
 0x448   :  { %1187 = vrot.lane.b32.xlu1 %v8021_v11, %s7446_s25  ;;  %v557_v11 = vadd.f32 %v8202_v17, %v536_v61  ;;  %v8330_v46 = vpop.f32.mrf.mxu2  ;;  %v7288_v61 = vld [vmem:[%s12933_s10 + $0xc] sm:$0xf] }
 0x44a   :  { %v8300_v26 = vpop.permute.xlu1 %1125  ;;  %v8314_v43 = vpack.c.bf16 %v558_v41, %v557_v11  ;;  %v8381_v11 = vpack.c.bf16 %v562_v50, %v561_v1  ;;  %v8383_v41 = vor.u32 %v7288_v61, %v7047_v53 }
 0x44b   :  { %v1198_v40 = vsel %vm1189_vm12, %v8252_v3, %v8300_v26 }
 0x44c   :  { %7102 = vmatmul.msk.bf16.gmra.mxu2 %vm404_vm6, %v8296_v56  ;;  %13357 = vst [vmem:[#allocation8_spill] sm:$0xff] %v8383_v41 }
 0x44d   :  { %2745 = vmatpush.bf16.msra.mxu2 %v8383_v41  ;;  %v8420_v50 = vpop.permute.xlu2 %1173 }
 0x450   :  { %v8359_v4 = vpop.f32.mrf.mxu2 }
 0x452   :  { %v8308_v5 = vpop.permute.xlu1 %1127 }
 0x455   :  { %v1178_v45 = vpop.permute.xlu2 %1177 }
 0x458   :  { %v8387_v20 = vpop.f32.mrf.mxu2 }
 0x459   :  { %13358 = vst [vmem:[#allocation9_spill] sm:$0xff] %v8387_v20  ;;  %v1207_v20 = vsel %vm740_vm1, %v1198_v40, %v8093_v19  ;;  %v1192_v19 = vsel %vm1189_vm12, %v8240_v21, %v8278_v9 }
 0x45a   :  { %v8316_v58 = vpop.permute.xlu1 %1129  ;;  %v1203_v9 = vsel %vm740_vm1, %v1192_v19, %v8071_v49  ;;  %v7236_v19 = vld [vmem:[%s12934_s11 + $0x68] sm:$0xff] }
 0x45c   :  { %7103 = vmatmul.msk.bf16.gmra.mxu2 %vm404_vm6, %v8314_v43 }
 0x460   :  { %v8398_v16 = vpop.f32.mrf.mxu2 }
 0x461   :  { %13359 = vst [vmem:[#allocation10_spill] sm:$0xff] %v8398_v16  ;;  %v1182_v16 = vpop.permute.xlu2 %1181 }
 0x462   :  { %v8326_v44 = vpop.permute.xlu1 %1133 }
 0x463   :  { %v1216_v10 = vsel %vm1210_vm13, %v1207_v20, %v8326_v44 }
 0x469   :  { %v1186_v20 = vpop.permute.xlu2 %1185 }
 0x46a   :  { %v8334_v35 = vpop.permute.xlu1 %1135 }
 0x46c   :  { %7104 = vmatmul.msk.bf16.gmra.mxu2 %vm404_vm6, %v8332_v51 }
 0x472   :  { %v8361_v48 = vpop.permute.xlu1 %1157 }
 0x47a   :  { %v8385_v54 = vpop.permute.xlu1 %1159 }
 0x47c   :  { %7105 = vmatmul.msk.bf16.gmra.mxu2 %vm404_vm6, %v8381_v11 }
 0x482   :  { %v1162_v33 = vpop.permute.xlu1 %1161 }
 0x483   :  { %v1224_v26 = vsel %vm124_vm0, %v1216_v10, %v1162_v33  ;;  %v1132_v10 = vpop.permute.xlu0 %1131 }
 0x48a   :  { %v1164_v55 = vpop.permute.xlu1 %1163 }
 0x48c   :  { %7106 = vmatmul.msk.bf16.gmra.mxu2 %vm404_vm6, %v8400_v34 }
 0x48f   :  { %v8406_v57 = vpop.f32.mrf.mxu2 }
 0x490   :  { %1260 = vrot.lane.b32.xlu2 %v8406_v57, %s7444_s20  ;;  %1272 = vrot.lane.b32.xlu1 %v8406_v57, %s7443_s19 }
 0x492   :  { %v8412_v14 = vpop.permute.xlu1 %1167 }
 0x497   :  { %v8418_v1 = vpop.f32.mrf.mxu2 }
 0x498   :  { %1266 = vrot.lane.b32.xlu2 %v8406_v57, %s7442_s24 }
 0x49a   :  { %v1172_v17 = vpop.permute.xlu1 %1171 }
 0x49c   :  { %7123 = vmatmul.msk.bf16.vlgmr.msra.gmra.mxu2 %vm404_vm6, %v8227_v25 }
 0x49f   :  { %v8422_v53 = vpop.f32.mrf.mxu2 }
 0x4a0   :  { %13360 = vst [vmem:[#allocation11_spill] sm:$0xff] %v8422_v53 }
 0x4a2   :  { %v1176_v61 = vpop.permute.xlu1 %1175 }
 0x4a7   :  { %v8432_v41 = vpop.f32.mrf.mxu2 }
 0x4a8   :  { %13361 = vst [vmem:[#allocation12_spill] sm:$0xff] %v8432_v41 }
 0x4aa   :  { %v1180_v37 = vpop.permute.xlu1 %1179 }
 0x4ac   :  { %7124 = vmatmul.msk.bf16.gmra.mxu2 %vm404_vm6, %v8249_v52  ;;  %v1201_v52 = vsel %vm1189_vm12, %v8266_v29, %v8308_v5  ;;  %v1233_v29 = vsel %vm1227_vm14, %v1224_v26, %v1170_v18  ;;  %v7225_v26 = vld [vmem:[%s12934_s11 + $0x10] sm:$0xff] }
 0x4ad   :  { %v1209_v38 = vsel %vm740_vm1, %v1201_v52, %v8113_v39  ;;  %v1195_v52 = vsel %vm1189_vm12, %v1116_v59, %v8290_v27  ;;  %v1242_v27 = vsel %vm1236_vm15, %v1233_v29, %v1178_v45  ;;  %v7235_v45 = vld [vmem:[%s12934_s11 + $0x60] sm:$0xff]  ;;  %v7093_v29 = vld [vmem:[%s12933_s10 + $0x68] sm:$0xf] }
 0x4ae   :  { %v1218_v3 = vsel %vm1210_vm13, %v1209_v38, %v8334_v35  ;;  %v1205_v21 = vsel %vm740_vm1, %v1195_v52, %v7981_v63  ;;  %v1253_v49 = vsel %vm1245_vm2, %v1242_v27, %v1186_v20  ;;  %v7061_v27 = vld [vmem:[%s12933_s10 + $0x28] sm:$0xf] }
 0x4af   :  { %v1087_v8 = vpop.f32.mrf.mxu3  ;;  %v1226_v41 = vsel %vm124_vm0, %v1218_v3, %v1164_v55  ;;  %v8461_v38 = vpop.f32.mrf.mxu2  ;;  %v1214_v63 = vsel %vm1210_vm13, %v1205_v21, %v1132_v10  ;;  %v7298_v21 = vld [vmem:[%s12933_s10 + $0x54] sm:$0xf0] }
 0x4b0   :  { %1280 = vrot.lane.b32.xlu0 %v1087_v8, %s7445_s21  ;;  %1286 = vrot.lane.b32.xlu2 %v1087_v8, %s7446_s25  ;;  %v1235_v39 = vsel %vm1227_vm14, %v1226_v41, %v1172_v17  ;;  %13362 = vst [vmem:[#allocation13_spill] sm:$0xff] %v8461_v38  ;;  %v1212_v41 = vsel %vm1210_vm13, %v1203_v9, %v8316_v58  ;;  %v7294_v10 = vld [vmem:[%s12933_s10 + $0x34] sm:$0xf0] }
 0x4b1   :  { %1292 = vrot.lane.b32.xlu1 %v1087_v8, %s7448_s28  ;;  %v1244_v5 = vsel %vm1236_vm15, %v1235_v39, %v1180_v37  ;;  %v1220_v33 = vsel %vm124_vm0, %v1212_v41, %v8361_v48  ;;  %v1222_v55 = vsel %vm124_vm0, %v1214_v63, %v8385_v54  ;;  %v7248_v39 = vld [vmem:[%s12934_s11 + $0xc8] sm:$0xff]  ;;  %v7062_v41 = vor.u32 %v7294_v10, %v7061_v27  ;;  %v7290_v63 = vld [vmem:[%s12933_s10 + $0x14] sm:$0xf0] }
 0x4b2   :  { %v1184_v53 = vpop.permute.xlu1 %1183  ;;  %v1229_v58 = vsel %vm1227_vm14, %v1220_v33, %v8404_v23  ;;  %v1231_v48 = vsel %vm1227_vm14, %v1222_v55, %v8412_v14  ;;  %v7223_v14 = vld [vmem:[%s12934_s11] sm:$0xff]  ;;  %v7226_v33 = vld [vmem:[%s12934_s11 + $0x18] sm:$0xff]  ;;  %v7249_v55 = vld [vmem:[%s12934_s11 + $0xd0] sm:$0xff] }
 0x4b3   :  { %v1240_v18 = vsel %vm1236_vm15, %v1231_v48, %v1176_v61  ;;  %v1238_v37 = vsel %vm1236_vm15, %v1229_v58, %v8420_v50  ;;  %v7234_v61 = vld [vmem:[%s12934_s11 + $0x58] sm:$0xff] }
 0x4b4   :  { %v1250_v17 = vsel %vm1245_vm2, %v1240_v18, %v1184_v53  ;;  %v1247_v23 = vsel %vm1245_vm2, %v1238_v37, %v1182_v16  ;;  %v7246_v50 = vld [vmem:[%s12934_s11 + $0xb8] sm:$0xff]  ;;  %v7224_v53 = vld [vmem:[%s12934_s11 + $0x8] sm:$0xff]  ;;  %v7227_v18 = vld [vmem:[%s12934_s11 + $0x20] sm:$0xff] }
 0x4b5   :  { %v7250_v37 = vld [vmem:[%s12934_s11 + $0xd8] sm:$0xff] }
 0x4b7   :  { %v1090_v59 = vpop.f32.mrf.mxu3  ;;  %v8490_v54 = vpop.f32.mrf.mxu2 }
 0x4b8   :  { %1298 = vrot.lane.b32.xlu0 %v1087_v8, %s7449_s29  ;;  %1274 = vrot.lane.b32.xlu2 %v8418_v1, %s7443_s19  ;;  %13363 = vst [vmem:[#allocation14_spill] sm:$0xff] %v8490_v54  ;;  %v7247_v8 = vld [vmem:[%s12934_s11 + $0xc0] sm:$0xff] }
 0x4b9   :  { %1262 = vrot.lane.b32.xlu1 %v8418_v1, %s7444_s20 }
 0x4ba   :  { %v1188_v44 = vpop.permute.xlu1 %1187 }
 0x4bb   :  { %v1256_v35 = vsel %vm1245_vm2, %v1244_v5, %v1188_v44  ;;  %v7302_v5 = vld [vmem:[%s12933_s10 + $0x74] sm:$0xf0] }
 0x4bc   :  { %1962 = vmatpush.bf16.msrb.mxu0 %v1256_v35  ;;  %7311 = vmatpush.bf16.msrb.mxu1 %v1256_v35  ;;  %v7094_v44 = vor.u32 %v7302_v5, %v7093_v29  ;;  %v7229_v29 = vld [vmem:[%s12934_s11 + $0x30] sm:$0xff]  ;;  %v7240_v5 = vld [vmem:[%s12934_s11 + $0x88] sm:$0xff] }
 0x4bd   :  { %7312 = vmatpush.bf16.msrb.mxu3 %v1256_v35  ;;  %7125 = vmatmul.msk.bf16.gmra.mxu2 %vm404_vm6, %v8276_v31  ;;  %v7077_v35 = vld [vmem:[%s12933_s10 + $0x48] sm:$0xf] }
 0x4be   :  { %2921 = vmatpush.bf16.msrb.mxu2 %v7094_v44  ;;  %v7078_v9 = vor.u32 %v7298_v21, %v7077_v35 }
 0x4bf   :  { %v8509_v16 = vpop.f32.mrf.mxu2 }
 0x4c0   :  { %1268 = vrot.lane.b32.xlu0 %v8418_v1, %s7442_s24  ;;  %1294 = vrot.lane.b32.xlu2 %v1090_v59, %s7448_s28  ;;  %13364 = vst [vmem:[#allocation15_spill] sm:$0xff] %v8509_v16  ;;  %s7451_s28 = smov 64  }
 0x4c1   :  { %1282 = vrot.lane.b32.xlu1 %v1090_v59, %s7445_s21  ;;  %1963 = vmatpush.bf16.msrb.mxu0 %v1253_v49 }
 0x4c2   :  { %7313 = vmatpush.bf16.msrb.mxu1 %v1253_v49  ;;  %7314 = vmatpush.bf16.msrb.mxu3 %v1253_v49  ;;  %v7237_v49 = vld [vmem:[%s12934_s11 + $0x70] sm:$0xff] }
 0x4c3   :  { %2922 = vmatpush.bf16.msrb.mxu2 %v7078_v9 }
 0x4c5   :  { %1964 = vmatpush.bf16.msrb.mxu0 %v1250_v17 }
 0x4c6   :  { %7315 = vmatpush.bf16.msrb.mxu1 %v1250_v17  ;;  %7316 = vmatpush.bf16.msrb.mxu3 %v1250_v17  ;;  %v7238_v17 = vld [vmem:[%s12934_s11 + $0x78] sm:$0xff] }
 0x4c7   :  { %v8520_v40 = vpop.f32.mrf.mxu2  ;;  %2923 = vmatpush.bf16.msrb.mxu2 %v7062_v41 }
 0x4c8   :  { %1288 = vrot.lane.b32.xlu0 %v1090_v59, %s7446_s25  ;;  %13365 = vst [vmem:[#allocation16_spill] sm:$0xff] %v8520_v40 }
 0x4c9   :  { %1300 = vrot.lane.b32.xlu1 %v1090_v59, %s7449_s29  ;;  %1965 = vmatpush.bf16.msrb.mxu0 %v1247_v23  ;;  %v7045_v59 = vld [vmem:[%s12933_s10 + $0x8] sm:$0xf] }
 0x4ca   :  { %7317 = vmatpush.bf16.msrb.mxu1 %v1247_v23  ;;  %7318 = vmatpush.bf16.msrb.mxu3 %v1247_v23  ;;  %v7046_v58 = vor.u32 %v7290_v63, %v7045_v59  ;;  %v7230_v59 = vld [vmem:[%s12934_s11 + $0x38] sm:$0xff]  ;;  %v7241_v63 = vld [vmem:[%s12934_s11 + $0x90] sm:$0xff] }
 0x4cc   :  { %6971 = vmatmul.msk.bf16.vlgmr.msrb.gmra.mxu0 %vm404_vm6, %v7223_v14  ;;  %2924 = vmatpush.bf16.msrb.mxu2 %v7046_v58  ;;  %v8606_v14 = vld [vmem:[%s12928_s5] ss:$0 sm:$0xff] }
 0x4cd   :  { %6982 = vmatmul.msk.bf16.vlgmr.msrb.gmra.mxu1 %vm404_vm6, %v7234_v61  ;;  %6994 = vmatmul.msk.bf16.vlgmr.msrb.gmra.mxu3 %vm404_vm6, %v7246_v50  ;;  %v8612_v50 = vadd.f32 %v8606_v14, %v8153_v42  ;;  %v8672_v10 = vadd.f32 %v8606_v14, %v8229_v12 }
 0x4ce   :  { %7126 = vmatmul.msk.bf16.gmra.mxu2 %vm404_vm6, %v8296_v56  ;;  %2693 = vmatpush.bf16.msra.mxu1 %v7094_v44  ;;  %v7252_v44 = vld [vmem:[%s12934_s11 + $0xe8] sm:$0xff] }
 0x4cf   :  { %v8527_v3 = vpop.f32.mrf.mxu2  ;;  %13372 = vst [vmem:[#allocation23_spill] sm:$0xff] %v8612_v50 }
 0x4d0   :  { %13366 = vst [vmem:[#allocation17_spill] sm:$0xff] %v8527_v3 }
 0x4d1   :  { %13379 = vst [vmem:[#allocation30_spill] sm:$0xff] %v8672_v10 }
 0x4d2   :  { %2694 = vmatpush.bf16.msra.mxu1 %v7078_v9 }
 0x4d6   :  { %2695 = vmatpush.bf16.msra.mxu1 %v7062_v41  ;;  %v8676_v41 = vadd.f32 %v8606_v14, %v8242_v2 }
 0x4d7   :  { %v8541_v52 = vpop.f32.mrf.mxu2 }
 0x4d8   :  { %13367 = vst [vmem:[#allocation18_spill] sm:$0xff] %v8541_v52  ;;  %v8690_v2 = vpack.c.bf16 %v8676_v41, %v8672_v10 }
 0x4d9   :  { %13380 = vst [vmem:[#allocation31_spill] sm:$0xff] %v8676_v41 }
 0x4da   :  { %2696 = vmatpush.bf16.msra.mxu1 %v7046_v58 }
 0x4dc   :  { %6972 = vmatmul.msk.bf16.gmra.mxu0 %vm404_vm6, %v7224_v53  ;;  %v8616_v53 = vadd.f32 %v8606_v14, %v8157_v24 }
 0x4dd   :  { %6983 = vmatmul.msk.bf16.gmra.mxu1 %vm404_vm6, %v7235_v45  ;;  %6995 = vmatmul.msk.bf16.gmra.mxu3 %vm404_vm6, %v7247_v8  ;;  %v7228_v45 = vld [vmem:[%s12934_s11 + $0x28] sm:$0xff]  ;;  %v7239_v8 = vld [vmem:[%s12934_s11 + $0x80] sm:$0xff] }
 0x4de   :  { %7127 = vmatmul.msk.bf16.gmra.mxu2 %vm404_vm6, %v8314_v43  ;;  %13373 = vst [vmem:[#allocation24_spill] sm:$0xff] %v8616_v53  ;;  %v8629_v42 = vpack.c.bf16 %v8616_v53, %v8612_v50  ;;  %v7257_v50 = vld [vmem:[%s12934_s11 + $0x110] sm:$0xff] }
 0x4df   :  { %v8563_v20 = vpop.f32.mrf.mxu2 }
 0x4e0   :  { %13368 = vst [vmem:[#allocation19_spill] sm:$0xff] %v8563_v20 }
 0x4e7   :  { %v8585_v48 = vpop.f32.mrf.mxu2 }
 0x4e8   :  { %13369 = vst [vmem:[#allocation20_spill] sm:$0xff] %v8585_v48 }
 0x4ec   :  { %6973 = vmatmul.msk.bf16.gmra.mxu0 %vm404_vm6, %v7225_v26  ;;  %v7251_v26 = vld [vmem:[%s12934_s11 + $0xe0] sm:$0xff] }
 0x4ed   :  { %6984 = vmatmul.msk.bf16.gmra.mxu1 %vm404_vm6, %v7236_v19  ;;  %6996 = vmatmul.msk.bf16.gmra.mxu3 %vm404_vm6, %v7248_v39  ;;  %v8640_v19 = vadd.f32 %v8606_v14, %v8166_v60  ;;  %v8644_v39 = vadd.f32 %v8606_v14, %v8200_v62  ;;  %v1261_v62 = vpop.permute.xlu2 %1260 }
 0x4ee   :  { %7128 = vmatmul.msk.bf16.gmra.mxu2 %vm404_vm6, %v8332_v51  ;;  %v1304_v27 = vsel %vm1189_vm12, %v8406_v57, %v1261_v62  ;;  %v7253_v57 = vld [vmem:[%s12934_s11 + $0xf0] sm:$0xff] }
 0x4ef   :  { %v8596_v23 = vpop.f32.mrf.mxu2  ;;  %13375 = vst [vmem:[#allocation26_spill] sm:$0xff] %v8640_v19  ;;  %v8659_v60 = vpack.c.bf16 %v8644_v39, %v8640_v19 }
 0x4f0   :  { %13370 = vst [vmem:[#allocation21_spill] sm:$0xff] %v8596_v23 }
 0x4f1   :  { %13376 = vst [vmem:[#allocation27_spill] sm:$0xff] %v8644_v39 }
 0x4f5   :  { %v1267_v9 = vpop.permute.xlu2 %1266 }
 0x4f6   :  { %v1306_v12 = vsel %vm740_vm1, %v1304_v27, %v1267_v9  ;;  %v7231_v27 = vld [vmem:[%s12934_s11 + $0x40] sm:$0xff] }
 0x4f7   :  { %v8608_v61 = vpop.f32.mrf.mxu2 }
 0x4f8   :  { %13371 = vst [vmem:[#allocation22_spill] sm:$0xff] %v8608_v61 }
 0x4fc   :  { %6974 = vmatmul.msk.bf16.gmra.mxu0 %vm404_vm6, %v7226_v33 }
 0x4fd   :  { %6985 = vmatmul.msk.bf16.gmra.mxu1 %vm404_vm6, %v7237_v49  ;;  %6997 = vmatmul.msk.bf16.gmra.mxu3 %vm404_vm6, %v7249_v55 }
 0x4fe   :  { %7129 = vmatmul.msk.bf16.gmra.mxu2 %vm404_vm6, %v8381_v11 }
 0x4ff   :  { %v8636_v24 = vpop.f32.mrf.mxu2 }
 0x500   :  { %13374 = vst [vmem:[#allocation25_spill] sm:$0xff] %v8636_v24 }
 0x502   :  { %v1273_v49 = vpop.permute.xlu1 %1272 }
 0x503   :  { %v1308_v55 = vsel %vm1210_vm13, %v1306_v12, %v1273_v49  ;;  %v7299_v12 = vld [vmem:[%s12933_s10 + $0x64] sm:$0xf]  ;;  %v7087_v49 = vld [vmem:[%s12933_s10 + $0x70] sm:$0xf0] }
 0x507   :  { %v8655_v35 = vpop.f32.mrf.mxu2 }
 0x508   :  { %13377 = vst [vmem:[#allocation28_spill] sm:$0xff] %v8655_v35 }
 0x50c   :  { %6975 = vmatmul.msk.bf16.gmra.mxu0 %vm404_vm6, %v7227_v18 }
 0x50d   :  { %6986 = vmatmul.msk.bf16.gmra.mxu1 %vm404_vm6, %v7238_v17  ;;  %6998 = vmatmul.msk.bf16.gmra.mxu3 %vm404_vm6, %v7250_v37  ;;  %v1287_v17 = vpop.permute.xlu2 %1286 }
 0x50e   :  { %7130 = vmatmul.msk.bf16.gmra.mxu2 %vm404_vm6, %v8400_v34 }
 0x50f   :  { %v8666_v21 = vpop.f32.mrf.mxu2 }
 0x510   :  { %13378 = vst [vmem:[#allocation29_spill] sm:$0xff] %v8666_v21 }
 0x517   :  { %v8696_v58 = vpop.f32.mrf.mxu2 }
 0x518   :  { %13381 = vst [vmem:[#allocation32_spill] sm:$0xff] %v8696_v58 }
 0x51c   :  { %6976 = vmatmul.msk.bf16.gmra.mxu0 %vm404_vm6, %v7228_v45 }
 0x51d   :  { %6987 = vmatmul.msk.bf16.gmra.mxu1 %vm404_vm6, %v7239_v8  ;;  %6999 = vmatmul.msk.bf16.gmra.mxu3 %vm404_vm6, %v7251_v26 }
 0x51e   :  { %7147 = vmatmul.msk.bf16.vlgmr.msrb.gmra.mxu2 %vm404_vm6, %v8629_v42 }
 0x51f   :  { %v8714_v62 = vpop.f32.mrf.mxu2 }
 0x520   :  { %13384 = vst [vmem:[#allocation35_spill] sm:$0xff] %v8714_v62 }
 0x522   :  { %v1281_v33 = vpop.permute.xlu0 %1280 }
 0x523   :  { %v1310_v18 = vsel %vm124_vm0, %v1308_v55, %v1281_v33  ;;  %v1293_v8 = vpop.permute.xlu1 %1292  ;;  %v7090_v55 = vor.u32 %v7299_v12, %v7087_v49  ;;  %v8775_v49 = vadd.f32 %v8606_v14, %v8282_v6  ;;  %v7255_v6 = vld [vmem:[%s12934_s11 + $0x100] sm:$0xff] }
 0x524   :  { %v1312_v37 = vsel %vm1227_vm14, %v1310_v18, %v1287_v17 }
 0x525   :  { %v1314_v26 = vsel %vm1236_vm15, %v1312_v37, %v1293_v8  ;;  %2644 = vmatpush.bf16.msra.mxu0 %v7090_v55  ;;  %2872 = vmatpush.bf16.msrb.mxu1 %v7090_v55  ;;  %13388 = vst [vmem:[#allocation39_spill] sm:$0xff] %v8775_v49  ;;  %v8779_v55 = vadd.f32 %v8606_v14, %v8298_v15 }
 0x527   :  { %v8752_v37 = vpop.f32.mrf.mxu2  ;;  %13389 = vst [vmem:[#allocation40_spill] sm:$0xff] %v8779_v55  ;;  %v8806_v41 = vpack.c.bf16 %v8779_v55, %v8775_v49 }
 0x528   :  { %13386 = vst [vmem:[#allocation37_spill] sm:$0xff] %v8752_v37 }
 0x52a   :  { %v1299_v45 = vpop.permute.xlu0 %1298 }
 0x52c   :  { %6977 = vmatmul.msk.bf16.gmra.mxu0 %vm404_vm6, %v7229_v29  ;;  %v8704_v29 = vsel %vm1245_vm2, %v1314_v26, %v1299_v45  ;;  %v7295_v26 = vld [vmem:[%s12933_s10 + $0x44] sm:$0xf] }
 0x52d   :  { %6988 = vmatmul.msk.bf16.gmra.mxu1 %vm404_vm6, %v7240_v5  ;;  %7000 = vmatmul.msk.bf16.gmra.mxu3 %vm404_vm6, %v7252_v44  ;;  %v8708_v5 = vadd.f32 %v8606_v14, %v8258_v47  ;;  %v8712_v44 = vadd.f32 %v8606_v14, %v8272_v30  ;;  %v8717_v9 = vperm.slane %v8704_v29, 0  ;;  %v7254_v47 = vld [vmem:[%s12934_s11 + $0xf8] sm:$0xff]  ;;  %v2295_v48 = vrot.slane %v8704_v29, 7 }
 0x52e   :  { %7148 = vmatmul.msk.bf16.gmra.mxu2 %vm404_vm6, %v8659_v60 }
 0x52f   :  { %13382 = vst [vmem:[#allocation33_spill] sm:$0xff] %v8708_v5 }
 0x530   :  { %13383 = vst [vmem:[#allocation34_spill] sm:$0xff] %v8712_v44 }
 0x53c   :  { %6978 = vmatmul.msk.bf16.gmra.mxu0 %vm404_vm6, %v7230_v59  ;;  %v7242_v59 = vld [vmem:[%s12934_s11 + $0x98] sm:$0xff] }
 0x53d   :  { %6989 = vmatmul.msk.bf16.gmra.mxu1 %vm404_vm6, %v7241_v63  ;;  %7001 = vmatmul.msk.bf16.gmra.mxu3 %vm404_vm6, %v7253_v57  ;;  %v8735_v57 = vpack.c.bf16 %v8712_v44, %v8708_v5  ;;  %v7287_v44 = vld [vmem:[%s12933_s10 + $0x4] sm:$0xf]  ;;  %v7039_v5 = vld [vmem:[%s12933_s10 + $0x10] sm:$0xf0] }
 0x53e   :  { %7149 = vmatmul.msk.bf16.gmra.mxu2 %vm404_vm6, %v8690_v2 }
 0x549   :  { %v1967_v33 = vpop.f32.mrf.mxu0 }
 0x54a   :  { %v8729_v30 = vadd.f32 %v8717_v9, %v1967_v33  ;;  %v8731_v63 = vpop.f32.mrf.mxu1 }
 0x54c   :  { %13385 = vst [vmem:[#allocation36_spill] sm:$0xff] %v8729_v30  ;;  %6979 = vmatmul.msk.bf16.gmra.mxu0 %vm404_vm6, %v7231_v27  ;;  %4671 = vrot.lane.b32.xlu2 %v8729_v30, %s7450_s16  ;;  %v7071_v27 = vld [vmem:[%s12933_s10 + $0x50] sm:$0xf0]  ;;  %v2289_v30 = vrot.slane %v8704_v29, 1 }
 0x54d   :  { %6990 = vmatmul.msk.bf16.gmra.mxu1 %vm404_vm6, %v7242_v59  ;;  %7002 = vmatmul.msk.bf16.gmra.mxu3 %vm404_vm6, %v7254_v47  ;;  %v7074_v33 = vor.u32 %v7295_v26, %v7071_v27  ;;  %v7291_v59 = vld [vmem:[%s12933_s10 + $0x24] sm:$0xf]  ;;  %v7055_v47 = vld [vmem:[%s12933_s10 + $0x30] sm:$0xf0]  ;;  %v7232_v26 = vld [vmem:[%s12934_s11 + $0x48] sm:$0xff] }
 0x54e   :  { %7150 = vmatmul.msk.bf16.gmra.mxu2 %vm404_vm6, %v8735_v57  ;;  %v7058_v12 = vor.u32 %v7291_v59, %v7055_v47  ;;  %v7243_v59 = vld [vmem:[%s12934_s11 + $0xa0] sm:$0xff]  ;;  %v2294_v47 = vrot.slane %v8704_v29, 6 }
 0x54f   :  { %2645 = vmatpush.bf16.msra.mxu0 %v7074_v33  ;;  %2873 = vmatpush.bf16.msrb.mxu1 %v7074_v33 }
 0x550   :  { %v8750_v18 = vpop.f32.mrf.mxu3  ;;  %v8817_v10 = vperm.slane %v2294_v47, 0 }
 0x551   :  { %v1969_v17 = vpop.f32.mrf.mxu0 }
 0x552   :  { %v8755_v45 = vadd.f32 %v8717_v9, %v1969_v17  ;;  %v8757_v8 = vpop.f32.mrf.mxu1 }
 0x553   :  { %2646 = vmatpush.bf16.msra.mxu0 %v7058_v12  ;;  %2874 = vmatpush.bf16.msrb.mxu1 %v7058_v12  ;;  %v7042_v12 = vor.u32 %v7287_v44, %v7039_v5 }
 0x554   :  { %13387 = vst [vmem:[#allocation38_spill] sm:$0xff] %v8755_v45  ;;  %4673 = vrot.lane.b32.xlu0 %v8755_v45, %s7450_s16  ;;  %v13406_v45 = vld [vmem:[#allocation6_spill] sm:$0xff] }
 0x557   :  { %2647 = vmatpush.bf16.msra.mxu0 %v7042_v12  ;;  %2875 = vmatpush.bf16.msrb.mxu1 %v7042_v12 }
 0x558   :  { %v8781_v17 = vpop.f32.mrf.mxu3 }
 0x559   :  { %v1972_v27 = vpop.f32.mrf.mxu0 }
 0x55a   :  { %v8793_v33 = vadd.f32 %v8717_v9, %v1972_v27  ;;  %v8795_v15 = vpop.f32.mrf.mxu1  ;;  %v8808_v27 = vpop.f32.mrf.mxu2 }
 0x55b   :  { %13391 = vst [vmem:[#allocation42_spill] sm:$0xff] %v8808_v27  ;;  %2823 = vmatpush.bf16.msrb.mxu0 %v8180_v0  ;;  %v8836_v0 = vadd.f32 %v8606_v14, %v8310_v7  ;;  %v7256_v7 = vld [vmem:[%s12934_s11 + $0x108] sm:$0xff] }
 0x55c   :  { %13390 = vst [vmem:[#allocation41_spill] sm:$0xff] %v8793_v33  ;;  %6980 = vmatmul.msk.bf16.gmra.mxu0 %vm404_vm6, %v7232_v26  ;;  %4675 = vrot.lane.b32.xlu1 %v8793_v33, %s7450_s16 }
 0x55d   :  { %6991 = vmatmul.msk.bf16.gmra.mxu1 %vm404_vm6, %v7243_v59  ;;  %7003 = vmatmul.msk.bf16.gmra.mxu3 %vm404_vm6, %v7255_v6  ;;  %13394 = vst [vmem:[#allocation45_spill] sm:$0xff] %v8836_v0 }
 0x55e   :  { %7151 = vmatmul.msk.bf16.gmra.mxu2 %vm404_vm6, %v8806_v41 }
 0x55f   :  { %2824 = vmatpush.bf16.msrb.mxu0 %v8192_v28  ;;  %v7233_v28 = vld [vmem:[%s12934_s11 + $0x50] sm:$0xff] }
 0x560   :  { %v2087_v55 = vpop.f32.mrf.mxu3 }
 0x561   :  { %v8821_v26 = vadd.f32 %v8817_v10, %v2087_v55  ;;  %v1974_v49 = vpop.f32.mrf.mxu0  ;;  %v8840_v55 = vadd.f32 %v8606_v14, %v8320_v36 }
 0x562   :  { %v8824_v5 = vadd.f32 %v8717_v9, %v1974_v49  ;;  %v8826_v44 = vpop.f32.mrf.mxu1  ;;  %v8831_v59 = vpop.f32.mrf.mxu2 }
 0x563   :  { %13393 = vst [vmem:[#allocation44_spill] sm:$0xff] %v8831_v59  ;;  %2825 = vmatpush.bf16.msrb.mxu0 %v8211_v22  ;;  %v7244_v22 = vld [vmem:[%s12934_s11 + $0xa8] sm:$0xff] }
 0x564   :  { %13392 = vst [vmem:[#allocation43_spill] sm:$0xff] %v8824_v5  ;;  %4677 = vrot.lane.b32.xlu2 %v8824_v5, %s7450_s16 }
 0x565   :  { %13395 = vst [vmem:[#allocation46_spill] sm:$0xff] %v8840_v55 }
 0x567   :  { %2826 = vmatpush.bf16.msrb.mxu0 %v8223_v32 }
 0x568   :  { %v2089_v49 = vpop.f32.mrf.mxu3 }
 0x569   :  { %v8846_v6 = vadd.f32 %v8817_v10, %v2089_v49  ;;  %v1977_v47 = vpop.f32.mrf.mxu0  ;;  %v8862_v49 = vpack.c.bf16 %v8840_v55, %v8836_v0 }
 0x56a   :  { %v8855_v36 = vadd.f32 %v8717_v9, %v1977_v47  ;;  %v8857_v12 = vpop.f32.mrf.mxu1  ;;  %v8871_v47 = vpop.f32.mrf.mxu2 }
 0x56b   :  { %13397 = vst [vmem:[#allocation48_spill] sm:$0xff] %v8862_v49 }
 0x56c   :  { %13396 = vst [vmem:[#allocation47_spill] sm:$0xff] %v8855_v36  ;;  %6981 = vmatmul.msk.bf16.gmra.mxu0 %vm404_vm6, %v7233_v28  ;;  %4679 = vrot.lane.b32.xlu0 %v8855_v36, %s7450_s16  ;;  %v8884_v28 = vadd.f32 %v8606_v14, %v8330_v46 }
 0x56d   :  { %6992 = vmatmul.msk.bf16.gmra.mxu1 %vm404_vm6, %v7244_v22  ;;  %7004 = vmatmul.msk.bf16.gmra.mxu3 %vm404_vm6, %v7256_v7  ;;  %13398 = vst [vmem:[#allocation49_spill] sm:$0xff] %v8871_v47  ;;  %v8888_v22 = vadd.f32 %v8606_v14, %v8359_v4 }
 0x56e   :  { %7152 = vmatmul.msk.bf16.gmra.mxu2 %vm404_vm6, %v8862_v49  ;;  %13400 = vst [vmem:[#allocation51_spill] sm:$0xff] %v8884_v28  ;;  %v2293_v49 = vrot.slane %v8704_v29, 5 }
 0x56f   :  { %13401 = vst [vmem:[#allocation52_spill] sm:$0xff] %v8888_v22 }
 0x570   :  { %v8873_v39 = vpop.f32.mrf.mxu3 }
 0x571   :  { %v1979_v32 = vpop.f32.mrf.mxu0 }
 0x572   :  { %v8876_v55 = vadd.f32 %v8717_v9, %v1979_v32  ;;  %v8878_v0 = vpop.f32.mrf.mxu1  ;;  %v7245_v32 = vld [vmem:[%s12934_s11 + $0xb0] sm:$0xff]  ;;  %v8899_v36 = vpop.f32.mrf.mxu2 }
 0x573   :  { %13402 = vst [vmem:[#allocation53_spill] sm:$0xff] %v8899_v36  ;;  %v13411_v36 = vld [vmem:[#allocation10_spill] sm:$0xff] }
 0x574   :  { %13399 = vst [vmem:[#allocation50_spill] sm:$0xff] %v8876_v55  ;;  %4681 = vrot.lane.b32.xlu1 %v8876_v55, %s7450_s16 }
 0x578   :  { %v2094_v7 = vpop.f32.mrf.mxu3 }
 0x579   :  { %v8891_v19 = vadd.f32 %v8817_v10, %v2094_v7  ;;  %v1982_v53 = vpop.f32.mrf.mxu0  ;;  %v8908_v7 = vpack.c.bf16 %v8888_v22, %v8884_v28 }
 0x57a   :  { %v8902_v46 = vadd.f32 %v8717_v9, %v1982_v53  ;;  %v8904_v4 = vpop.f32.mrf.mxu1 }
 0x57b   :  { %13404 = vst [vmem:[#allocation55_spill] sm:$0xff] %v8908_v7 }
 0x57c   :  { %13403 = vst [vmem:[#allocation54_spill] sm:$0xff] %v8902_v46  ;;  %4683 = vrot.lane.b32.xlu2 %v8902_v46, %s7450_s16  ;;  %7107 = vmatmul.msk.bf16.vlgmr.msra.gmra.mxu0 %vm404_vm6, %v8227_v25 }
 0x57d   :  { %6993 = vmatmul.msk.bf16.gmra.mxu1 %vm404_vm6, %v7245_v32  ;;  %7005 = vmatmul.msk.bf16.gmra.mxu3 %vm404_vm6, %v7257_v50  ;;  %v8928_v32 = vpop.f32.mrf.mxu2  ;;  %v13408_v50 = vld [vmem:[#allocation7_spill] sm:$0xff] }
 0x57e   :  { %7153 = vmatmul.msk.bf16.gmra.mxu2 %vm404_vm6, %v8908_v7  ;;  %2970 = vmatpush.bf16.msra.mxu0 %v8344_v13  ;;  %13407 = vst [vmem:[#allocation6_spill] sm:$0xff] %v8928_v32  ;;  %v13409_v13 = vld [vmem:[#allocation9_spill] sm:$0xff]  ;;  %v7258_v32 = vld [vmem:[%s12934_s11 + $0x118] sm:$0xff] }
 0x57f   :  { %v8935_v55 = vadd.f32 %v8606_v14, %v13409_v13  ;;  %v13414_v13 = vld [vmem:[#allocation8_spill] sm:$0xff] }
 0x580   :  { %v8919_v53 = vpop.f32.mrf.mxu3 }
 0x581   :  { %v1984_v5 = vpop.f32.mrf.mxu0  ;;  %13410 = vst [vmem:[#allocation7_spill] sm:$0xff] %v8935_v55 }
 0x582   :  { %v8922_v22 = vadd.f32 %v8717_v9, %v1984_v5  ;;  %v8924_v28 = vpop.f32.mrf.mxu1  ;;  %2971 = vmatpush.bf16.msra.mxu0 %v13406_v45  ;;  %v8939_v9 = vadd.f32 %v8606_v14, %v13411_v36  ;;  %v8941_v5 = vperm.slane %v2289_v30, 0  ;;  %v13416_v30 = vld [vmem:[#allocation5_spill] sm:$0xff] }
 0x584   :  { %13405 = vst [vmem:[#allocation56_spill] sm:$0xff] %v8922_v22  ;;  %4685 = vrot.lane.b32.xlu0 %v8922_v22, %s7450_s16  ;;  %v8956_v14 = vpack.c.bf16 %v8939_v9, %v8935_v55 }
 0x585   :  { %13412 = vst [vmem:[#allocation9_spill] sm:$0xff] %v8939_v9  ;;  %v8965_v36 = vpop.f32.mrf.mxu2 }
 0x586   :  { %2972 = vmatpush.bf16.msra.mxu0 %v13408_v50  ;;  %13415 = vst [vmem:[#allocation8_spill] sm:$0xff] %v8956_v14 }
 0x587   :  { %13417 = vst [vmem:[#allocation5_spill] sm:$0xff] %v8965_v36 }
 0x588   :  { %v8943_v45 = vpop.f32.mrf.mxu3 }
 0x589   :  { %v1987_v47 = vpop.f32.mrf.mxu0 }
 0x58a   :  { %v8949_v22 = vadd.f32 %v8941_v5, %v1987_v47  ;;  %v8951_v50 = vpop.f32.mrf.mxu1  ;;  %2973 = vmatpush.bf16.msra.mxu0 %v13414_v13 }
 0x58c   :  { %13413 = vst [vmem:[#allocation10_spill] sm:$0xff] %v8949_v22  ;;  %3039 = vrot.lane.b32.xlu2 %v8949_v22, %s7445_s21  ;;  %7108 = vmatmul.msk.bf16.gmra.mxu0 %vm404_vm6, %v13416_v30 }
 0x58d   :  { %7006 = vmatmul.msk.bf16.gmra.mxu3 %vm404_vm6, %v7258_v32  ;;  %7115 = vmatmul.msk.bf16.vlgmr.msra.gmra.mxu1 %vm404_vm6, %v8227_v25  ;;  %v2292_v25 = vrot.slane %v8704_v29, 4 }
 0x58e   :  { %7154 = vmatmul.msk.bf16.gmra.mxu2 %vm404_vm6, %v8956_v14 }
 0x58f   :  { %v8982_v36 = vperm.slane %v2292_v25, 0 }
 0x590   :  { %v2102_v47 = vpop.f32.mrf.mxu3 }
 0x591   :  { %v8970_v13 = vadd.f32 %v8817_v10, %v2102_v47  ;;  %v1989_v9 = vpop.f32.mrf.mxu0  ;;  %v7259_v47 = vld [vmem:[%s12934_s11 + $0x120] sm:$0xff] }
 0x592   :  { %v8973_v55 = vadd.f32 %v8941_v5, %v1989_v9  ;;  %v8975_v27 = vpop.f32.mrf.mxu1 }
 0x594   :  { %13418 = vst [vmem:[#allocation57_spill] sm:$0xff] %v8973_v55  ;;  %3041 = vrot.lane.b32.xlu0 %v8973_v55, %s7445_s21 }
 0x598   :  { %v8980_v32 = vpop.f32.mrf.mxu3 }
 0x599   :  { %v1992_v59 = vpop.f32.mrf.mxu0 }
 0x59a   :  { %v8988_v37 = vadd.f32 %v8941_v5, %v1992_v59  ;;  %v2047_v9 = vpop.f32.mrf.mxu1 }
 0x59b   :  { %v8991_v62 = vadd.f32 %v8982_v36, %v2047_v9 }
 0x59c   :  { %13419 = vst [vmem:[#allocation58_spill] sm:$0xff] %v8988_v37  ;;  %3043 = vrot.lane.b32.xlu1 %v8988_v37, %s7445_s21  ;;  %7109 = vmatmul.msk.bf16.gmra.mxu0 %vm404_vm6, %v8276_v31 }
 0x59d   :  { %13420 = vst [vmem:[#allocation59_spill] sm:$0xff] %v8991_v62  ;;  %7007 = vmatmul.msk.bf16.gmra.mxu3 %vm404_vm6, %v7259_v47  ;;  %7116 = vmatmul.msk.bf16.gmra.mxu1 %vm404_vm6, %v13416_v30  ;;  %v7260_v47 = vld [vmem:[%s12934_s11 + $0x128] sm:$0xff] }
 0x5a0   :  { %v9000_v25 = vpop.f32.mrf.mxu3 }
 0x5a1   :  { %v1994_v46 = vpop.f32.mrf.mxu0 }
 0x5a2   :  { %v9003_v59 = vadd.f32 %v8941_v5, %v1994_v46  ;;  %v9005_v33 = vpop.f32.mrf.mxu1  ;;  %v2290_v46 = vrot.slane %v8704_v29, 2 }
 0x5a4   :  { %13421 = vst [vmem:[#allocation60_spill] sm:$0xff] %v9003_v59  ;;  %3045 = vrot.lane.b32.xlu2 %v9003_v59, %s7445_s21  ;;  %v9027_v40 = vperm.slane %v2290_v46, 0 }
 0x5a6   :  { %v9033_v3 = vadd.f32 %v9027_v40, %v8757_v8 }
 0x5a8   :  { %v9009_v9 = vpop.f32.mrf.mxu3 }
 0x5a9   :  { %v1997_v52 = vpop.f32.mrf.mxu0 }
 0x5aa   :  { %v9015_v30 = vadd.f32 %v8941_v5, %v1997_v52  ;;  %v9017_v16 = vpop.f32.mrf.mxu1 }
 0x5ac   :  { %13422 = vst [vmem:[#allocation61_spill] sm:$0xff] %v9015_v30  ;;  %3047 = vrot.lane.b32.xlu0 %v9015_v30, %s7445_s21  ;;  %7110 = vmatmul.msk.bf16.gmra.mxu0 %vm404_vm6, %v8296_v56 }
 0x5ad   :  { %7008 = vmatmul.msk.bf16.gmra.mxu3 %vm404_vm6, %v7260_v47  ;;  %7117 = vmatmul.msk.bf16.gmra.mxu1 %vm404_vm6, %v8276_v31  ;;  %v2291_v47 = vrot.slane %v8704_v29, 3 }
 0x5af   :  { %v9046_v31 = vperm.slane %v2291_v47, 0 }
 0x5b0   :  { %v9029_v38 = vpop.f32.mrf.mxu3 }
 0x5b1   :  { %v1999_v52 = vpop.f32.mrf.mxu0  ;;  %v9059_v30 = vadd.f32 %v9046_v31, %v8857_v12  ;;  %v9085_v35 = vadd.f32 %v9046_v31, %v8904_v4  ;;  %v7262_v4 = vld [vmem:[%s12934_s11 + $0x138] sm:$0xff]  ;;  %v9121_v23 = vadd.f32 %v9046_v31, %v8795_v15 }
 0x5b2   :  { %v9036_v54 = vadd.f32 %v8941_v5, %v1999_v52  ;;  %v2054_v58 = vpop.f32.mrf.mxu1  ;;  %v7261_v52 = vld [vmem:[%s12934_s11 + $0x130] sm:$0xff] }
 0x5b3   :  { %v9039_v24 = vadd.f32 %v8982_v36, %v2054_v58  ;;  %v9055_v58 = vadd.f32 %v9046_v31, %v8826_v44  ;;  %v9078_v44 = vperm.slane %v2295_v48, 0  ;;  %v1263_v48 = vpop.permute.xlu1 %1262 }
 0x5b4   :  { %13423 = vst [vmem:[#allocation62_spill] sm:$0xff] %v9036_v54  ;;  %3181 = vrot.lane.b32.xlu0 %v9033_v3, %s7451_s28  ;;  %3049 = vrot.lane.b32.xlu1 %v9036_v54, %s7445_s21  ;;  %v1305_v15 = vsel %vm1189_vm12, %v8418_v1, %v1263_v48  ;;  %v9155_v48 = vadd.f32 %v8817_v10, %v8943_v45 }
 0x5b5   :  { %13424 = vst [vmem:[#allocation63_spill] sm:$0xff] %v9039_v24 }
 0x5b8   :  { %v9048_v8 = vpop.f32.mrf.mxu3 }
 0x5b9   :  { %v2002_v46 = vpop.f32.mrf.mxu0 }
 0x5ba   :  { %v9062_v14 = vadd.f32 %v8941_v5, %v2002_v46  ;;  %v9064_v47 = vpop.f32.mrf.mxu1 }
 0x5bc   :  { %13425 = vst [vmem:[#allocation64_spill] sm:$0xff] %v9062_v14  ;;  %3297 = vrot.lane.b32.xlu0 %v9055_v58, %s7450_s16  ;;  %3299 = vrot.lane.b32.xlu1 %v9059_v30, %s7450_s16 }
 0x5bd   :  { %7009 = vmatmul.msk.bf16.gmra.mxu3 %vm404_vm6, %v7261_v52  ;;  %3051 = vrot.lane.b32.xlu2 %v9062_v14, %s7445_s21  ;;  %v9089_v52 = vadd.f32 %v9046_v31, %v8924_v28 }
 0x5be   :  { %7111 = vmatmul.msk.bf16.gmra.mxu0 %vm404_vm6, %v8314_v43  ;;  %7118 = vmatmul.msk.bf16.gmra.mxu1 %vm404_vm6, %v8296_v56  ;;  %v9098_v56 = vadd.f32 %v9027_v40, %v8731_v63  ;;  %v9113_v63 = vadd.f32 %v8817_v10, %v8873_v39  ;;  %v1275_v39 = vpop.permute.xlu2 %1274 }
 0x5c0   :  { %v2117_v12 = vpop.f32.mrf.mxu3 }
 0x5c1   :  { %v9081_v46 = vadd.f32 %v9078_v44, %v2117_v12  ;;  %v2004_v55 = vpop.f32.mrf.mxu0 }
 0x5c2   :  { %v9092_v54 = vadd.f32 %v8941_v5, %v2004_v55  ;;  %v9094_v7 = vpop.f32.mrf.mxu1  ;;  %v1269_v55 = vpop.permute.xlu0 %1268  ;;  %v9117_v5 = vadd.f32 %v9046_v31, %v8975_v27  ;;  %v9143_v27 = vperm.slane %v2293_v49, 0  ;;  %v9159_v49 = vadd.f32 %v9046_v31, %v8878_v0 }
 0x5c3   :  { %13426 = vst [vmem:[#allocation65_spill] sm:$0xff] %v9081_v46  ;;  %v1307_v29 = vsel %vm740_vm1, %v1305_v15, %v1269_v55 }
 0x5c4   :  { %13427 = vst [vmem:[#allocation66_spill] sm:$0xff] %v9092_v54  ;;  %3303 = vrot.lane.b32.xlu0 %v9085_v35, %s7450_s16  ;;  %3305 = vrot.lane.b32.xlu1 %v9089_v52, %s7450_s16  ;;  %v9151_v1 = vadd.f32 %v9143_v27, %v8781_v17 }
 0x5c5   :  { %3179 = vrot.lane.b32.xlu2 %v9098_v56, %s7451_s28 }
 0x5c6   :  { %13430 = vst [vmem:[#allocation69_spill] sm:$0xff] %v9151_v1  ;;  %v1295_v0 = vpop.permute.xlu2 %1294 }
 0x5c8   :  { %v9106_v28 = vpop.f32.mrf.mxu3 }
 0x5c9   :  { %v9123_v37 = vpop.f32.mrf.mxu0 }
 0x5ca   :  { %v2062_v12 = vpop.f32.mrf.mxu1  ;;  %13428 = vst [vmem:[#allocation67_spill] sm:$0xff] %v9123_v37  ;;  %v1309_v37 = vsel %vm1210_vm13, %v1307_v29, %v1275_v39  ;;  %v1289_v54 = vpop.permute.xlu0 %1288 }
 0x5cb   :  { %v9126_v46 = vadd.f32 %v8982_v36, %v2062_v12 }
 0x5cc   :  { %3309 = vrot.lane.b32.xlu0 %v9117_v5, %s7450_s16  ;;  %3587 = vrot.lane.b32.xlu1 %v9113_v63, %s7451_s28 }
 0x5cd   :  { %13429 = vst [vmem:[#allocation68_spill] sm:$0xff] %v9126_v46  ;;  %7010 = vmatmul.msk.bf16.gmra.mxu3 %vm404_vm6, %v7262_v4  ;;  %3295 = vrot.lane.b32.xlu2 %v9121_v23, %s7450_s16  ;;  %v1283_v46 = vpop.permute.xlu1 %1282 }
 0x5ce   :  { %7112 = vmatmul.msk.bf16.gmra.mxu0 %vm404_vm6, %v8332_v51  ;;  %7119 = vmatmul.msk.bf16.gmra.mxu1 %vm404_vm6, %v8314_v43  ;;  %v1311_v17 = vsel %vm124_vm0, %v1309_v37, %v1283_v46  ;;  %v9183_v37 = vadd.f32 %v9078_v44, %v9029_v38 }
 0x5cf   :  { %v1313_v45 = vsel %vm1227_vm14, %v1311_v17, %v1289_v54 }
 0x5d0   :  { %v2122_v12 = vpop.f32.mrf.mxu3  ;;  %v1315_v29 = vsel %vm1236_vm15, %v1313_v45, %v1295_v0  ;;  %v9213_v45 = vadd.f32 %v8817_v10, %v8919_v53  ;;  %v9217_v0 = vadd.f32 %v9143_v27, %v8750_v18  ;;  %v7264_v18 = vld [vmem:[%s12934_s11 + $0x148] sm:$0xff]  ;;  %v9235_v53 = vadd.f32 %v8817_v10, %v8980_v32 }
 0x5d1   :  { %v9146_v4 = vadd.f32 %v9078_v44, %v2122_v12  ;;  %v9169_v39 = vpop.f32.mrf.mxu0  ;;  %v9254_v32 = vadd.f32 %v9078_v44, %v9009_v9 }
 0x5d2   :  { %v2064_v43 = vpop.f32.mrf.mxu1  ;;  %13434 = vst [vmem:[#allocation73_spill] sm:$0xff] %v9217_v0 }
 0x5d3   :  { %v9162_v55 = vadd.f32 %v8982_v36, %v2064_v43  ;;  %v7263_v43 = vld [vmem:[%s12934_s11 + $0x140] sm:$0xff] }
 0x5d4   :  { %3469 = vrot.lane.b32.xlu0 %v9151_v1, %s7445_s21  ;;  %3593 = vrot.lane.b32.xlu1 %v9155_v48, %s7451_s28  ;;  %v9187_v1 = vadd.f32 %v9046_v31, %v8951_v50 }
 0x5d5   :  { %13431 = vst [vmem:[#allocation70_spill] sm:$0xff] %v9162_v55  ;;  %3301 = vrot.lane.b32.xlu2 %v9159_v49, %s7450_s16  ;;  %v1301_v46 = vpop.permute.xlu1 %1300 }
 0x5d6   :  { %v9190_v54 = vsel %vm1245_vm2, %v1315_v29, %v1301_v46 }
 0x5d7   :  { %13432 = vst [vmem:[#allocation71_spill] sm:$0xff] %v9190_v54  ;;  %v9204_v38 = vperm.slane %v9190_v54, 0 }
 0x5d8   :  { %v2124_v15 = vpop.f32.mrf.mxu3 }
 0x5d9   :  { %v9176_v12 = vadd.f32 %v9078_v44, %v2124_v15  ;;  %v9206_v50 = vpop.f32.mrf.mxu0 }
 0x5dc   :  { %3585 = vrot.lane.b32.xlu0 %v8846_v6, %s7451_s28  ;;  %3715 = vrot.lane.b32.xlu1 %v9183_v37, %s7450_s16 }
 0x5dd   :  { %7011 = vmatmul.msk.bf16.gmra.mxu3 %vm404_vm6, %v7263_v43  ;;  %3307 = vrot.lane.b32.xlu2 %v9187_v1, %s7450_s16 }
 0x5de   :  { %7113 = vmatmul.msk.bf16.gmra.mxu0 %vm404_vm6, %v8381_v11  ;;  %7120 = vmatmul.msk.bf16.gmra.mxu1 %vm404_vm6, %v8332_v51 }
 0x5e0   :  { %v2127_v31 = vpop.f32.mrf.mxu3 }
 0x5e1   :  { %v9209_v17 = vadd.f32 %v9204_v38, %v2127_v31  ;;  %v9225_v15 = vpop.f32.mrf.mxu0  ;;  %v9276_v31 = vpop.f32.mrf.mxu1 }
 0x5e3   :  { %13433 = vst [vmem:[#allocation72_spill] sm:$0xff] %v9209_v17 }
 0x5e4   :  { %3591 = vrot.lane.b32.xlu0 %v9213_v45, %s7451_s28  ;;  %4931 = vrot.lane.b32.xlu1 %v9059_v30, %s7451_s28  ;;  %v9248_v30 = vpop.permute.xlu2 %4671 }
 0x5e5   :  { %3467 = vrot.lane.b32.xlu2 %v9217_v0, %s7445_s21  ;;  %13436 = vst [vmem:[#allocation75_spill] sm:$0xff] %v9248_v30 }
 0x5e8   :  { %v2129_v51 = vpop.f32.mrf.mxu3 }
 0x5e9   :  { %v9228_v29 = vadd.f32 %v9204_v38, %v2129_v51  ;;  %v9260_v43 = vpop.f32.mrf.mxu0 }
 0x5eb   :  { %13435 = vst [vmem:[#allocation74_spill] sm:$0xff] %v9228_v29 }
 0x5ec   :  { %3597 = vrot.lane.b32.xlu0 %v9235_v53, %s7451_s28  ;;  %4937 = vrot.lane.b32.xlu1 %v9089_v52, %s7451_s28  ;;  %v9258_v52 = vadd.f32 %v8982_v36, %v9017_v16  ;;  %v7265_v16 = vld [vmem:[%s12934_s11 + $0x150] sm:$0xff] }
 0x5ed   :  { %7012 = vmatmul.msk.bf16.gmra.mxu3 %vm404_vm6, %v7264_v18  ;;  %3583 = vrot.lane.b32.xlu2 %v8821_v26, %s7451_s28  ;;  %v9287_v18 = vpop.permute.xlu0 %4673 }
 0x5ee   :  { %7114 = vmatmul.msk.bf16.gmra.mxu0 %vm404_vm6, %v8400_v34  ;;  %7121 = vmatmul.msk.bf16.gmra.mxu1 %vm404_vm6, %v8381_v11  ;;  %13437 = vst [vmem:[#allocation76_spill] sm:$0xff] %v9258_v52  ;;  %v9268_v11 = vpop.permute.xlu2 %4677 }
 0x5ef   :  { %13438 = vst [vmem:[#allocation77_spill] sm:$0xff] %v9268_v11 }
 0x5f0   :  { %v9250_v10 = vpop.f32.mrf.mxu3  ;;  %13440 = vst [vmem:[#allocation79_spill] sm:$0xff] %v9287_v18 }
 0x5f1   :  { %v9282_v51 = vpop.f32.mrf.mxu0 }
 0x5f4   :  { %3713 = vrot.lane.b32.xlu0 %v9254_v32, %s7450_s16  ;;  %5059 = vrot.lane.b32.xlu1 %v9258_v52, %s7450_s16 }
 0x5f5   :  { %3589 = vrot.lane.b32.xlu2 %v8891_v19, %s7451_s28  ;;  %v9310_v11 = vpop.permute.xlu0 %4679 }
 0x5f6   :  { %13443 = vst [vmem:[#allocation82_spill] sm:$0xff] %v9310_v11 }
 0x5f8   :  { %v2134_v46 = vpop.f32.mrf.mxu3 }
 0x5f9   :  { %v9271_v9 = vadd.f32 %v9204_v38, %v2134_v46  ;;  %v9293_v46 = vpop.permute.xlu2 %4683 }
 0x5fa   :  { %13441 = vst [vmem:[#allocation80_spill] sm:$0xff] %v9293_v46 }
 0x5fb   :  { %13439 = vst [vmem:[#allocation78_spill] sm:$0xff] %v9271_v9 }
 0x5fc   :  { %4821 = vrot.lane.b32.xlu0 %v9033_v3, %s7445_s21  ;;  %5211 = vrot.lane.b32.xlu1 %v9113_v63, %s7445_s21 }
 0x5fd   :  { %7013 = vmatmul.msk.bf16.gmra.mxu3 %vm404_vm6, %v7265_v16  ;;  %3595 = vrot.lane.b32.xlu2 %v8970_v13, %s7451_s28  ;;  %v9300_v16 = vadd.f32 %v9078_v44, %v9000_v25  ;;  %v7266_v25 = vld [vmem:[%s12934_s11 + $0x158] sm:$0xff]  ;;  %v9334_v11 = vpop.permute.xlu0 %4685 }
 0x5fe   :  { %7122 = vmatmul.msk.bf16.gmra.mxu1 %vm404_vm6, %v8400_v34  ;;  %7131 = vmatmul.msk.bf16.vlgmr.msrb.gmra.mxu0 %vm404_vm6, %v8629_v42  ;;  %v9306_v34 = vpop.f32.mrf.mxu1  ;;  %13447 = vst [vmem:[#allocation86_spill] sm:$0xff] %v9334_v11 }
 0x600   :  { %v2137_v3 = vpop.f32.mrf.mxu3 }
 0x601   :  { %v9296_v63 = vadd.f32 %v9204_v38, %v2137_v3  ;;  %v9312_v46 = vpop.permute.xlu2 %3039  ;;  %v9314_v3 = vpop.f32.mrf.mxu0 }
 0x602   :  { %13444 = vst [vmem:[#allocation83_spill] sm:$0xff] %v9312_v46 }
 0x603   :  { %13442 = vst [vmem:[#allocation81_spill] sm:$0xff] %v9296_v63 }
 0x604   :  { %4929 = vrot.lane.b32.xlu0 %v9055_v58, %s7451_s28  ;;  %5217 = vrot.lane.b32.xlu1 %v9155_v48, %s7445_s21  ;;  %13445 = vst [vmem:[#allocation84_spill] sm:$0xff] %v9314_v3  ;;  %v9323_v58 = vadd.f32 %v9078_v44, %v9048_v8  ;;  %v9332_v48 = vpop.permute.xlu1 %4675 }
 0x605   :  { %3711 = vrot.lane.b32.xlu2 %v9300_v16, %s7450_s16  ;;  %13446 = vst [vmem:[#allocation85_spill] sm:$0xff] %v9332_v48  ;;  %v9351_v48 = vadd.f32 %v8982_v36, %v9094_v7 }
 0x606   :  { %v9340_v8 = vpop.f32.mrf.mxu1  ;;  %v9361_v52 = vpop.permute.xlu0 %3041 }
 0x607   :  { %13451 = vst [vmem:[#allocation90_spill] sm:$0xff] %v9351_v48 }
 0x608   :  { %v9316_v18 = vpop.f32.mrf.mxu3  ;;  %13453 = vst [vmem:[#allocation92_spill] sm:$0xff] %v9361_v52  ;;  %v13514_v52 = vld [vmem:[#allocation28_spill] sm:$0xff] }
 0x609   :  { %v9344_v30 = vpop.f32.mrf.mxu0 }
 0x60a   :  { %13449 = vst [vmem:[#allocation88_spill] sm:$0xff] %v9344_v30 }
 0x60c   :  { %4935 = vrot.lane.b32.xlu0 %v9085_v35, %s7451_s28  ;;  %5331 = vrot.lane.b32.xlu1 %v9183_v37, %s7451_s28  ;;  %v9342_v35 = vpop.permute.xlu2 %3045  ;;  %v9359_v11 = vpop.permute.xlu1 %4681 }
 0x60d   :  { %7014 = vmatmul.msk.bf16.gmra.mxu3 %vm404_vm6, %v7266_v25  ;;  %3717 = vrot.lane.b32.xlu2 %v9323_v58, %s7450_s16  ;;  %13448 = vst [vmem:[#allocation87_spill] sm:$0xff] %v9342_v35 }
 0x60e   :  { %7132 = vmatmul.msk.bf16.gmra.mxu0 %vm404_vm6, %v8659_v60  ;;  %7139 = vmatmul.msk.bf16.vlgmr.msrb.gmra.mxu1 %vm404_vm6, %v8629_v42  ;;  %13452 = vst [vmem:[#allocation91_spill] sm:$0xff] %v9359_v11  ;;  %v2296_v11 = vrot.slane %v9190_v54, 1 }
 0x610   :  { %v2142_v37 = vpop.f32.mrf.mxu3 }
 0x611   :  { %v9347_v25 = vadd.f32 %v9204_v38, %v2142_v37  ;;  %v9380_v30 = vpop.f32.mrf.mxu0 }
 0x612   :  { %13457 = vst [vmem:[#allocation96_spill] sm:$0xff] %v9380_v30 }
 0x613   :  { %13450 = vst [vmem:[#allocation89_spill] sm:$0xff] %v9347_v25  ;;  %v9365_v25 = vpop.f32.mrf.mxu1 }
 0x614   :  { %4941 = vrot.lane.b32.xlu0 %v9117_v5, %s7451_s28  ;;  %5065 = vrot.lane.b32.xlu1 %v9351_v48, %s7450_s16  ;;  %v7267_v5 = vld [vmem:[%s12934_s11 + $0x160] sm:$0xff]  ;;  %v4711_v48 = vmul.f32 %v8563_v20, %v8949_v22  ;;  %v9407_v22 = vadd.f32 %v8982_v36, %v9064_v47 }
 0x615   :  { %4819 = vrot.lane.b32.xlu2 %v9098_v56, %s7445_s21  ;;  %v9377_v56 = vadd.f32 %v8982_v36, %v9005_v33 }
 0x616   :  { %13462 = vst [vmem:[#allocation101_spill] sm:$0xff] %v9407_v22 }
 0x617   :  { %v9363_v0 = vpop.permute.xlu2 %3051  ;;  %13456 = vst [vmem:[#allocation95_spill] sm:$0xff] %v9377_v56 }
 0x618   :  { %13454 = vst [vmem:[#allocation93_spill] sm:$0xff] %v9363_v0  ;;  %v2144_v37 = vpop.f32.mrf.mxu3 }
 0x619   :  { %v9368_v7 = vadd.f32 %v9204_v38, %v2144_v37  ;;  %v9388_v37 = vpop.permute.xlu1 %3043 }
 0x61a   :  { %13458 = vst [vmem:[#allocation97_spill] sm:$0xff] %v9388_v37 }
 0x61b   :  { %13455 = vst [vmem:[#allocation94_spill] sm:$0xff] %v9368_v7  ;;  %v9396_v7 = vperm.slane %v2296_v11, 0  ;;  %v9409_v20 = vpop.f32.mrf.mxu1  ;;  %v9414_v11 = vpop.f32.mrf.mxu0 }
 0x61c   :  { %5057 = vrot.lane.b32.xlu0 %v9377_v56, %s7450_s16  ;;  %4727 = vrot.lane.b32.xlu1 %v4711_v48, %s7450_s16  ;;  %13463 = vst [vmem:[#allocation102_spill] sm:$0xff] %v9414_v11 }
 0x61d   :  { %7015 = vmatmul.msk.bf16.gmra.mxu3 %vm404_vm6, %v7267_v5  ;;  %4927 = vrot.lane.b32.xlu2 %v9121_v23, %s7451_s28  ;;  %v4714_v23 = vmul.f32 %v8608_v61, %v9003_v59 }
 0x61e   :  { %7133 = vmatmul.msk.bf16.gmra.mxu0 %vm404_vm6, %v8690_v2  ;;  %7140 = vmatmul.msk.bf16.gmra.mxu1 %vm404_vm6, %v8659_v60  ;;  %v9394_v33 = vpop.permute.xlu0 %3047 }
 0x61f   :  { %13459 = vst [vmem:[#allocation98_spill] sm:$0xff] %v9394_v33  ;;  %v9398_v56 = vpop.permute.xlu2 %3179 }
 0x620   :  { %13460 = vst [vmem:[#allocation99_spill] sm:$0xff] %v9398_v56  ;;  %v2147_v48 = vpop.f32.mrf.mxu3 }
 0x621   :  { %v9401_v5 = vadd.f32 %v9396_v7, %v2147_v48 }
 0x623   :  { %13461 = vst [vmem:[#allocation100_spill] sm:$0xff] %v9401_v5 }
 0x624   :  { %5063 = vrot.lane.b32.xlu0 %v9407_v22, %s7450_s16  ;;  %4733 = vrot.lane.b32.xlu1 %v4714_v23, %s7450_s16  ;;  %v7268_v22 = vld [vmem:[%s12934_s11 + $0x168] sm:$0xff]  ;;  %v4717_v23 = vmul.f32 %v8666_v21, %v9062_v14 }
 0x625   :  { %4933 = vrot.lane.b32.xlu2 %v9159_v49, %s7451_s28  ;;  %v9435_v49 = vpop.f32.mrf.mxu1 }
 0x626   :  { %v9418_v48 = vpop.permute.xlu0 %3181  ;;  %v9420_v30 = vpop.permute.xlu1 %3049 }
 0x627   :  { %13464 = vst [vmem:[#allocation103_spill] sm:$0xff] %v9418_v48  ;;  %v9422_v59 = vpop.permute.xlu2 %3295 }
 0x628   :  { %13465 = vst [vmem:[#allocation104_spill] sm:$0xff] %v9420_v30  ;;  %v2149_v36 = vpop.f32.mrf.mxu3 }
 0x629   :  { %13466 = vst [vmem:[#allocation105_spill] sm:$0xff] %v9422_v59  ;;  %v9425_v47 = vadd.f32 %v9396_v7, %v2149_v36 }
 0x62b   :  { %13467 = vst [vmem:[#allocation106_spill] sm:$0xff] %v9425_v47 }
 0x62c   :  { %5209 = vrot.lane.b32.xlu0 %v8846_v6, %s7445_s21  ;;  %4739 = vrot.lane.b32.xlu1 %v4717_v23, %s7450_s16  ;;  %v9448_v6 = vpop.f32.mrf.mxu0 }
 0x62d   :  { %7016 = vmatmul.msk.bf16.gmra.mxu3 %vm404_vm6, %v7268_v22  ;;  %4939 = vrot.lane.b32.xlu2 %v9187_v1, %s7451_s28  ;;  %13470 = vst [vmem:[#allocation109_spill] sm:$0xff] %v9448_v6  ;;  %v2396_v22 = vadd.f32 %v9078_v44, %v9106_v28  ;;  %v9465_v6 = vpop.f32.mrf.mxu1  ;;  %v7269_v28 = vld [vmem:[%s12934_s11 + $0x170] sm:$0xff] }
 0x62e   :  { %7134 = vmatmul.msk.bf16.gmra.mxu0 %vm404_vm6, %v8735_v57  ;;  %7141 = vmatmul.msk.bf16.gmra.mxu1 %vm404_vm6, %v8690_v2  ;;  %v9444_v36 = vpop.permute.xlu0 %3297  ;;  %v9446_v14 = vpop.permute.xlu1 %3299  ;;  %13474 = vst [vmem:[#allocation113_spill] sm:$0xff] %v9465_v6 }
 0x62f   :  { %13468 = vst [vmem:[#allocation107_spill] sm:$0xff] %v9444_v36  ;;  %v9450_v23 = vpop.permute.xlu2 %3301 }
 0x630   :  { %13469 = vst [vmem:[#allocation108_spill] sm:$0xff] %v9446_v14  ;;  %v9452_v61 = vpop.f32.mrf.mxu3 }
 0x631   :  { %13471 = vst [vmem:[#allocation110_spill] sm:$0xff] %v9450_v23 }
 0x634   :  { %5215 = vrot.lane.b32.xlu0 %v9213_v45, %s7445_s21  ;;  %3721 = vrot.lane.b32.xlu1 %v2396_v22, %s7450_s16  ;;  %v9469_v33 = vpop.f32.mrf.mxu0 }
 0x635   :  { %5055 = vrot.lane.b32.xlu2 %v8991_v62, %s7450_s16  ;;  %13476 = vst [vmem:[#allocation115_spill] sm:$0xff] %v9469_v33  ;;  %v9493_v6 = vpop.f32.mrf.mxu1 }
 0x636   :  { %v9461_v1 = vpop.permute.xlu0 %3303  ;;  %v9463_v36 = vpop.permute.xlu1 %3305  ;;  %13481 = vst [vmem:[#allocation120_spill] sm:$0xff] %v9493_v6 }
 0x637   :  { %13472 = vst [vmem:[#allocation111_spill] sm:$0xff] %v9461_v1  ;;  %v9467_v21 = vpop.permute.xlu2 %3307  ;;  %v13489_v1 = vld [vmem:[#allocation66_spill] sm:$0xff] }
 0x638   :  { %13473 = vst [vmem:[#allocation112_spill] sm:$0xff] %v9463_v36  ;;  %v2154_v48 = vpop.f32.mrf.mxu3  ;;  %v13513_v36 = vld [vmem:[#allocation62_spill] sm:$0xff] }
 0x639   :  { %13475 = vst [vmem:[#allocation114_spill] sm:$0xff] %v9467_v21  ;;  %v9472_v44 = vadd.f32 %v9396_v7, %v2154_v48  ;;  %v4716_v14 = vmul.f32 %v13514_v52, %v13513_v36  ;;  %v13522_v36 = vld [vmem:[#allocation57_spill] sm:$0xff] }
 0x63b   :  { %13477 = vst [vmem:[#allocation116_spill] sm:$0xff] %v9472_v44 }
 0x63c   :  { %5221 = vrot.lane.b32.xlu0 %v9235_v53, %s7445_s21  ;;  %5337 = vrot.lane.b32.xlu1 %v2396_v22, %s7451_s28 }
 0x63d   :  { %7017 = vmatmul.msk.bf16.gmra.mxu3 %vm404_vm6, %v7269_v28  ;;  %5061 = vrot.lane.b32.xlu2 %v9039_v24, %s7450_s16  ;;  %v2353_v28 = vadd.f32 %v9027_v40, %v9206_v50  ;;  %v9500_v24 = vpop.f32.mrf.mxu0  ;;  %v7270_v50 = vld [vmem:[%s12934_s11 + $0x178] sm:$0xff] }
 0x63e   :  { %7135 = vmatmul.msk.bf16.gmra.mxu0 %vm404_vm6, %v8806_v41  ;;  %7142 = vmatmul.msk.bf16.gmra.mxu1 %vm404_vm6, %v8735_v57  ;;  %v9487_v45 = vpop.permute.xlu0 %3309  ;;  %v9489_v48 = vpop.permute.xlu1 %3587  ;;  %13483 = vst [vmem:[#allocation122_spill] sm:$0xff] %v9500_v24 }
 0x63f   :  { %13478 = vst [vmem:[#allocation117_spill] sm:$0xff] %v9487_v45  ;;  %v9491_v62 = vpop.permute.xlu2 %3467 }
 0x640   :  { %13479 = vst [vmem:[#allocation118_spill] sm:$0xff] %v9489_v48  ;;  %v2157_v53 = vpop.f32.mrf.mxu3  ;;  %v13505_v48 = vld [vmem:[#allocation21_spill] sm:$0xff] }
 0x641   :  { %13480 = vst [vmem:[#allocation119_spill] sm:$0xff] %v9491_v62  ;;  %v9496_v22 = vadd.f32 %v9396_v7, %v2157_v53 }
 0x643   :  { %13482 = vst [vmem:[#allocation121_spill] sm:$0xff] %v9496_v22 }
 0x644   :  { %5329 = vrot.lane.b32.xlu0 %v9254_v32, %s7451_s28  ;;  %3171 = vrot.lane.b32.xlu1 %v2353_v28, %s7451_s28  ;;  %v9519_v32 = vpop.f32.mrf.mxu1 }
 0x645   :  { %5207 = vrot.lane.b32.xlu2 %v8821_v26, %s7445_s21  ;;  %13488 = vst [vmem:[#allocation127_spill] sm:$0xff] %v9519_v32  ;;  %v9524_v26 = vpop.f32.mrf.mxu0 }
 0x646   :  { %v9507_v44 = vpop.permute.xlu0 %3469  ;;  %v9509_v45 = vpop.permute.xlu1 %3593  ;;  %13490 = vst [vmem:[#allocation128_spill] sm:$0xff] %v9524_v26 }
 0x647   :  { %13484 = vst [vmem:[#allocation123_spill] sm:$0xff] %v9507_v44  ;;  %v9511_v6 = vpop.permute.xlu2 %3583 }
 0x648   :  { %13485 = vst [vmem:[#allocation124_spill] sm:$0xff] %v9509_v45  ;;  %v2159_v53 = vpop.f32.mrf.mxu3 }
 0x649   :  { %13486 = vst [vmem:[#allocation125_spill] sm:$0xff] %v9511_v6  ;;  %v9514_v22 = vadd.f32 %v9396_v7, %v2159_v53  ;;  %v13491_v53 = vld [vmem:[#allocation48_spill] sm:$0xff] }
 0x64b   :  { %13487 = vst [vmem:[#allocation126_spill] sm:$0xff] %v9514_v22 }
 0x64c   :  { %3053 = vrot.lane.b32.xlu0 %v13489_v1, %s7445_s21  ;;  %4811 = vrot.lane.b32.xlu1 %v2353_v28, %s7445_s21  ;;  %v9550_v45 = vpop.f32.mrf.mxu1 }
 0x64d   :  { %7018 = vmatmul.msk.bf16.gmra.mxu3 %vm404_vm6, %v7270_v50  ;;  %5213 = vrot.lane.b32.xlu2 %v8891_v19, %s7445_s21  ;;  %v9544_v50 = vadd.f32 %v9143_v27, %v9340_v8  ;;  %v13497_v19 = vld [vmem:[#allocation65_spill] sm:$0xff] }
 0x64e   :  { %7136 = vmatmul.msk.bf16.gmra.mxu0 %vm404_vm6, %v13491_v53  ;;  %7143 = vmatmul.msk.bf16.gmra.mxu1 %vm404_vm6, %v8806_v41  ;;  %v9533_v22 = vpop.permute.xlu0 %3585  ;;  %v9535_v32 = vpop.permute.xlu1 %3715  ;;  %13498 = vst [vmem:[#allocation65_spill] sm:$0xff] %v9550_v45  ;;  %v2356_v45 = vadd.f32 %v9027_v40, %v9282_v51 }
 0x64f   :  { %13492 = vst [vmem:[#allocation48_spill] sm:$0xff] %v9533_v22  ;;  %v9537_v44 = vpop.permute.xlu2 %3589 }
 0x650   :  { %13493 = vst [vmem:[#allocation129_spill] sm:$0xff] %v9535_v32  ;;  %v2162_v28 = vpop.f32.mrf.mxu3 }
 0x651   :  { %13494 = vst [vmem:[#allocation130_spill] sm:$0xff] %v9537_v44  ;;  %v9540_v26 = vadd.f32 %v9396_v7, %v2162_v28  ;;  %v9558_v28 = vpop.f32.mrf.mxu0 }
 0x652   :  { %13496 = vst [vmem:[#allocation132_spill] sm:$0xff] %v9544_v50 }
 0x653   :  { %13495 = vst [vmem:[#allocation131_spill] sm:$0xff] %v9540_v26 }
 0x654   :  { %3719 = vrot.lane.b32.xlu0 %v13497_v19, %s7450_s16  ;;  %3459 = vrot.lane.b32.xlu1 %v9544_v50, %s7445_s21  ;;  %13501 = vst [vmem:[#allocation135_spill] sm:$0xff] %v9558_v28  ;;  %v7271_v50 = vld [vmem:[%s12934_s11 + $0x180] sm:$0xff] }
 0x655   :  { %5219 = vrot.lane.b32.xlu2 %v8970_v13, %s7445_s21  ;;  %v13504_v13 = vld [vmem:[#allocation58_spill] sm:$0xff] }
 0x656   :  { %v9554_v22 = vpop.permute.xlu0 %3591  ;;  %v9556_v32 = vpop.permute.xlu1 %4931 }
 0x657   :  { %13499 = vst [vmem:[#allocation133_spill] sm:$0xff] %v9554_v22  ;;  %v9560_v26 = vpop.permute.xlu2 %3595  ;;  %v4713_v22 = vmul.f32 %v13505_v48, %v13504_v13 }
 0x658   :  { %13500 = vst [vmem:[#allocation134_spill] sm:$0xff] %v9556_v32  ;;  %v2164_v8 = vpop.f32.mrf.mxu3  ;;  %v2297_v32 = vrot.slane %v9190_v54, 2 }
 0x659   :  { %13502 = vst [vmem:[#allocation136_spill] sm:$0xff] %v9560_v26  ;;  %v9563_v33 = vadd.f32 %v9396_v7, %v2164_v8  ;;  %v13506_v8 = vld [vmem:[#allocation55_spill] sm:$0xff]  ;;  %v9592_v48 = vpop.f32.mrf.mxu0 }
 0x65a   :  { %13511 = vst [vmem:[#allocation141_spill] sm:$0xff] %v9592_v48 }
 0x65b   :  { %13503 = vst [vmem:[#allocation137_spill] sm:$0xff] %v9563_v33  ;;  %v9586_v33 = vperm.slane %v2297_v32, 0 }
 0x65c   :  { %4731 = vrot.lane.b32.xlu0 %v4713_v22, %s7450_s16  ;;  %3177 = vrot.lane.b32.xlu1 %v2356_v45, %s7451_s28  ;;  %v9588_v22 = vpop.f32.mrf.mxu1 }
 0x65d   :  { %7019 = vmatmul.msk.bf16.gmra.mxu3 %vm404_vm6, %v7271_v50  ;;  %5327 = vrot.lane.b32.xlu2 %v9300_v16, %s7451_s28  ;;  %13509 = vst [vmem:[#allocation139_spill] sm:$0xff] %v9588_v22 }
 0x65e   :  { %7137 = vmatmul.msk.bf16.gmra.mxu0 %vm404_vm6, %v13506_v8  ;;  %7144 = vmatmul.msk.bf16.gmra.mxu1 %vm404_vm6, %v13491_v53  ;;  %v9582_v51 = vpop.permute.xlu0 %3597  ;;  %v9584_v13 = vpop.permute.xlu1 %4937 }
 0x65f   :  { %13507 = vst [vmem:[#allocation55_spill] sm:$0xff] %v9582_v51  ;;  %v9590_v28 = vpop.permute.xlu2 %3711 }
 0x660   :  { %13508 = vst [vmem:[#allocation138_spill] sm:$0xff] %v9584_v13  ;;  %v2167_v50 = vpop.f32.mrf.mxu3 }
 0x661   :  { %13510 = vst [vmem:[#allocation140_spill] sm:$0xff] %v9590_v28  ;;  %v9595_v16 = vadd.f32 %v9586_v33, %v2167_v50 }
 0x663   :  { %13512 = vst [vmem:[#allocation142_spill] sm:$0xff] %v9595_v16 }
 0x664   :  { %4737 = vrot.lane.b32.xlu0 %v4716_v14, %s7450_s16  ;;  %4817 = vrot.lane.b32.xlu1 %v2356_v45, %s7445_s21  ;;  %v9609_v13 = vpop.f32.mrf.mxu1  ;;  %v7272_v14 = vld [vmem:[%s12934_s11 + $0x188] sm:$0xff]  ;;  %v9619_v45 = vadd.f32 %v9204_v38, %v9250_v10 }
 0x665   :  { %5333 = vrot.lane.b32.xlu2 %v9323_v58, %s7451_s28  ;;  %13518 = vst [vmem:[#allocation146_spill] sm:$0xff] %v9609_v13  ;;  %v9621_v58 = vpop.f32.mrf.mxu0 }
 0x666   :  { %v9603_v32 = vpop.permute.xlu0 %3713  ;;  %v9605_v22 = vpop.permute.xlu1 %5059  ;;  %13520 = vst [vmem:[#allocation148_spill] sm:$0xff] %v9619_v45 }
 0x667   :  { %13515 = vst [vmem:[#allocation143_spill] sm:$0xff] %v9603_v32  ;;  %v9607_v51 = vpop.permute.xlu2 %3717  ;;  %v13532_v32 = vld [vmem:[#allocation25_spill] sm:$0xff] }
 0x668   :  { %13516 = vst [vmem:[#allocation144_spill] sm:$0xff] %v9605_v22  ;;  %v2169_v48 = vpop.f32.mrf.mxu3  ;;  %v13523_v22 = vld [vmem:[#allocation20_spill] sm:$0xff] }
 0x669   :  { %13517 = vst [vmem:[#allocation145_spill] sm:$0xff] %v9607_v51  ;;  %v9612_v50 = vadd.f32 %v9586_v33, %v2169_v48  ;;  %v4712_v16 = vmul.f32 %v13523_v22, %v13522_v36  ;;  %v13524_v48 = vld [vmem:[#allocation8_spill] sm:$0xff]  ;;  %v13531_v22 = vld [vmem:[#allocation61_spill] sm:$0xff] }
 0x66a   :  { %13521 = vst [vmem:[#allocation149_spill] sm:$0xff] %v9621_v58 }
 0x66b   :  { %13519 = vst [vmem:[#allocation147_spill] sm:$0xff] %v9612_v50 }
 0x66c   :  { %5335 = vrot.lane.b32.xlu0 %v13497_v19, %s7451_s28  ;;  %5459 = vrot.lane.b32.xlu1 %v9619_v45, %s7450_s16  ;;  %v9650_v45 = vpop.f32.mrf.mxu1 }
 0x66d   :  { %7020 = vmatmul.msk.bf16.gmra.mxu3 %vm404_vm6, %v7272_v14  ;;  %4729 = vrot.lane.b32.xlu2 %v4712_v16, %s7450_s16  ;;  %v2352_v14 = vadd.f32 %v9027_v40, %v9169_v39  ;;  %v9648_v16 = vadd.f32 %v9143_v27, %v9435_v49  ;;  %13530 = vst [vmem:[#allocation154_spill] sm:$0xff] %v9650_v45 }
 0x66e   :  { %7138 = vmatmul.msk.bf16.gmra.mxu0 %vm404_vm6, %v13524_v48  ;;  %7145 = vmatmul.msk.bf16.gmra.mxu1 %vm404_vm6, %v13506_v8  ;;  %v9635_v10 = vpop.permute.xlu0 %4821  ;;  %v9637_v13 = vpop.permute.xlu1 %5211 }
 0x66f   :  { %13525 = vst [vmem:[#allocation8_spill] sm:$0xff] %v9635_v10  ;;  %v9639_v36 = vpop.permute.xlu2 %4819  ;;  %v4715_v10 = vmul.f32 %v13532_v32, %v13531_v22  ;;  %v7273_v22 = vld [vmem:[%s12934_s11 + $0x190] sm:$0xff] }
 0x670   :  { %13526 = vst [vmem:[#allocation150_spill] sm:$0xff] %v9637_v13  ;;  %v2172_v19 = vpop.f32.mrf.mxu3  ;;  %v9657_v13 = vpop.f32.mrf.mxu0 }
 0x671   :  { %13527 = vst [vmem:[#allocation151_spill] sm:$0xff] %v9639_v36  ;;  %v9642_v50 = vadd.f32 %v9586_v33, %v2172_v19 }
 0x672   :  { %13529 = vst [vmem:[#allocation153_spill] sm:$0xff] %v9648_v16 }
 0x673   :  { %13528 = vst [vmem:[#allocation152_spill] sm:$0xff] %v9642_v50 }
 0x674   :  { %3169 = vrot.lane.b32.xlu0 %v2352_v14, %s7451_s28  ;;  %3465 = vrot.lane.b32.xlu1 %v9648_v16, %s7445_s21  ;;  %13533 = vst [vmem:[#allocation155_spill] sm:$0xff] %v9657_v13  ;;  %v9674_v16 = vadd.f32 %v9204_v38, %v9316_v18  ;;  %v13538_v13 = vld [vmem:[#allocation67_spill] sm:$0xff] }
 0x675   :  { %4735 = vrot.lane.b32.xlu2 %v4715_v10, %s7450_s16  ;;  %v2351_v10 = vadd.f32 %v9027_v40, %v13538_v13 }
 0x676   :  { %v9660_v19 = vpop.permute.xlu0 %4929  ;;  %v9662_v39 = vpop.permute.xlu1 %5217  ;;  %13537 = vst [vmem:[#allocation159_spill] sm:$0xff] %v9674_v16 }
 0x677   :  { %13534 = vst [vmem:[#allocation156_spill] sm:$0xff] %v9662_v39  ;;  %v9664_v49 = vpop.permute.xlu2 %4927  ;;  %v9681_v39 = vpop.f32.mrf.mxu1 }
 0x678   :  { %13535 = vst [vmem:[#allocation157_spill] sm:$0xff] %v9664_v49  ;;  %v2174_v50 = vpop.f32.mrf.mxu3  ;;  %v9693_v13 = vpop.f32.mrf.mxu0 }
 0x679   :  { %v9667_v45 = vadd.f32 %v9586_v33, %v2174_v50  ;;  %13539 = vst [vmem:[#allocation67_spill] sm:$0xff] %v9681_v39 }
 0x67a   :  { %13540 = vst [vmem:[#allocation160_spill] sm:$0xff] %v9693_v13 }
 0x67b   :  { %13536 = vst [vmem:[#allocation158_spill] sm:$0xff] %v9667_v45 }
 0x67c   :  { %4809 = vrot.lane.b32.xlu0 %v2352_v14, %s7445_s21  ;;  %5465 = vrot.lane.b32.xlu1 %v9674_v16, %s7450_s16 }
 0x67d   :  { %7021 = vmatmul.msk.bf16.gmra.mxu3 %vm404_vm6, %v7273_v22  ;;  %3167 = vrot.lane.b32.xlu2 %v2351_v10, %s7451_s28  ;;  %v9702_v22 = vadd.f32 %v9396_v7, %v9452_v61  ;;  %v7274_v7 = vld [vmem:[%s12934_s11 + $0x198] sm:$0xff] }
 0x67e   :  { %7146 = vmatmul.msk.bf16.gmra.mxu1 %vm404_vm6, %v13524_v48  ;;  %7155 = vmatmul.msk.bf16.vlgmr.msra.gmra.mxu0 %vm404_vm6, %v8629_v42  ;;  %v9689_v38 = vpop.permute.xlu0 %4935  ;;  %v9691_v18 = vpop.permute.xlu1 %5331 }
 0x67f   :  { %v9695_v50 = vpop.permute.xlu2 %4933  ;;  %13543 = vst [vmem:[#allocation163_spill] sm:$0xff] %v9702_v22 }
 0x680   :  { %13541 = vst [vmem:[#allocation161_spill] sm:$0xff] %v9695_v50  ;;  %v2177_v14 = vpop.f32.mrf.mxu3 }
 0x681   :  { %v9698_v16 = vadd.f32 %v9586_v33, %v2177_v14 }
 0x683   :  { %13542 = vst [vmem:[#allocation162_spill] sm:$0xff] %v9698_v16  ;;  %v9715_v16 = vpop.f32.mrf.mxu0 }
 0x684   :  { %5069 = vrot.lane.b32.xlu0 %v9162_v55, %s7450_s16  ;;  %3875 = vrot.lane.b32.xlu1 %v9702_v22, %s7445_s21  ;;  %13547 = vst [vmem:[#allocation167_spill] sm:$0xff] %v9715_v16  ;;  %v13549_v55 = vld [vmem:[#allocation11_spill] sm:$0xff] }
 0x685   :  { %4807 = vrot.lane.b32.xlu2 %v2351_v10, %s7445_s21  ;;  %v3063_v22 = vmul.f32 %v9312_v46, %v13549_v55  ;;  %v13550_v10 = vld [vmem:[#allocation68_spill] sm:$0xff] }
 0x686   :  { %v9709_v42 = vpop.permute.xlu0 %4941  ;;  %v9711_v39 = vpop.permute.xlu1 %5065 }
 0x687   :  { %13544 = vst [vmem:[#allocation164_spill] sm:$0xff] %v9709_v42  ;;  %v9713_v45 = vpop.permute.xlu2 %4939  ;;  %v13557_v42 = vld [vmem:[#allocation14_spill] sm:$0xff] }
 0x688   :  { %13545 = vst [vmem:[#allocation165_spill] sm:$0xff] %v9711_v39  ;;  %v2179_v14 = vpop.f32.mrf.mxu3 }
 0x689   :  { %13546 = vst [vmem:[#allocation166_spill] sm:$0xff] %v9713_v45  ;;  %v9718_v61 = vadd.f32 %v9586_v33, %v2179_v14 }
 0x68b   :  { %13548 = vst [vmem:[#allocation168_spill] sm:$0xff] %v9718_v61  ;;  %v9742_v16 = vpop.f32.mrf.mxu0 }
 0x68c   :  { %3725 = vrot.lane.b32.xlu0 %v9176_v12, %s7450_s16  ;;  %3079 = vrot.lane.b32.xlu1 %v3063_v22, %s7450_s16  ;;  %13555 = vst [vmem:[#allocation173_spill] sm:$0xff] %v9742_v16 }
 0x68d   :  { %7022 = vmatmul.msk.bf16.gmra.mxu3 %vm404_vm6, %v7274_v7  ;;  %5067 = vrot.lane.b32.xlu2 %v13550_v10, %s7450_s16  ;;  %v13556_v7 = vld [vmem:[#allocation32_spill] sm:$0xff] }
 0x68e   :  { %7156 = vmatmul.msk.bf16.gmra.mxu0 %vm404_vm6, %v8659_v60  ;;  %v9733_v14 = vpop.permute.xlu0 %5057  ;;  %v9735_v39 = vpop.permute.xlu1 %4727  ;;  %v4718_v10 = vmul.f32 %v13556_v7, %v13489_v1  ;;  %v3066_v60 = vmul.f32 %v9342_v35, %v13557_v42  ;;  %v7275_v1 = vld [vmem:[%s12934_s11 + $0x1a0] sm:$0xff] }
 0x68f   :  { %13551 = vst [vmem:[#allocation169_spill] sm:$0xff] %v9733_v14  ;;  %v9737_v61 = vpop.permute.xlu2 %5055 }
 0x690   :  { %13552 = vst [vmem:[#allocation170_spill] sm:$0xff] %v9735_v39  ;;  %v2182_v13 = vpop.f32.mrf.mxu3 }
 0x691   :  { %13553 = vst [vmem:[#allocation171_spill] sm:$0xff] %v9737_v61  ;;  %v9740_v46 = vadd.f32 %v9586_v33, %v2182_v13 }
 0x693   :  { %13554 = vst [vmem:[#allocation172_spill] sm:$0xff] %v9740_v46 }
 0x694   :  { %5341 = vrot.lane.b32.xlu0 %v9176_v12, %s7451_s28  ;;  %3085 = vrot.lane.b32.xlu1 %v3066_v60, %s7450_s16  ;;  %v9766_v12 = vadd.f32 %v9143_v27, %v9306_v34  ;;  %v13562_v60 = vld [vmem:[#allocation17_spill] sm:$0xff] }
 0x695   :  { %4741 = vrot.lane.b32.xlu2 %v4718_v10, %s7450_s16  ;;  %v2298_v10 = vrot.slane %v9190_v54, 3 }
 0x696   :  { %v9752_v22 = vpop.permute.xlu0 %5063  ;;  %v9754_v39 = vpop.permute.xlu1 %4733 }
 0x697   :  { %13558 = vst [vmem:[#allocation174_spill] sm:$0xff] %v9752_v22  ;;  %v9756_v13 = vpop.permute.xlu2 %5061  ;;  %v3069_v22 = vmul.f32 %v9363_v0, %v13562_v60 }
 0x698   :  { %13559 = vst [vmem:[#allocation175_spill] sm:$0xff] %v9754_v39  ;;  %v2184_v14 = vpop.f32.mrf.mxu3  ;;  %v9773_v39 = vpop.f32.mrf.mxu0 }
 0x699   :  { %13560 = vst [vmem:[#allocation176_spill] sm:$0xff] %v9756_v13  ;;  %v9759_v61 = vadd.f32 %v9586_v33, %v2184_v14  ;;  %v9785_v14 = vperm.slane %v2298_v10, 0 }
 0x69a   :  { %13563 = vst [vmem:[#allocation178_spill] sm:$0xff] %v9773_v39 }
 0x69b   :  { %13561 = vst [vmem:[#allocation177_spill] sm:$0xff] %v9759_v61 }
 0x69c   :  { %3457 = vrot.lane.b32.xlu0 %v9766_v12, %s7445_s21  ;;  %3091 = vrot.lane.b32.xlu1 %v3069_v22, %s7450_s16 }
 0x69d   :  { %7023 = vmatmul.msk.bf16.gmra.mxu3 %vm404_vm6, %v7275_v1  ;;  %3723 = vrot.lane.b32.xlu2 %v9146_v4, %s7450_s16  ;;  %v2355_v1 = vadd.f32 %v9027_v40, %v9260_v43 }
 0x69e   :  { %7157 = vmatmul.msk.bf16.gmra.mxu0 %vm404_vm6, %v8690_v2  ;;  %v9781_v34 = vpop.permute.xlu0 %5209  ;;  %v9783_v33 = vpop.permute.xlu1 %4739  ;;  %v3197_v2 = vmul.f32 %v9398_v56, %v13562_v60  ;;  %v7276_v56 = vld [vmem:[%s12934_s11 + $0x1a8] sm:$0xff] }
 0x69f   :  { %13564 = vst [vmem:[#allocation179_spill] sm:$0xff] %v9783_v33  ;;  %v9787_v13 = vpop.permute.xlu2 %5207 }
 0x6a0   :  { %13565 = vst [vmem:[#allocation180_spill] sm:$0xff] %v9787_v13  ;;  %v2187_v0 = vpop.f32.mrf.mxu3  ;;  %v9804_v33 = vpop.f32.mrf.mxu0 }
 0x6a1   :  { %v9790_v61 = vadd.f32 %v9785_v14, %v2187_v0  ;;  %13569 = vst [vmem:[#allocation184_spill] sm:$0xff] %v9804_v33 }
 0x6a3   :  { %13566 = vst [vmem:[#allocation181_spill] sm:$0xff] %v9790_v61 }
 0x6a4   :  { %3175 = vrot.lane.b32.xlu0 %v2355_v1, %s7451_s28  ;;  %3219 = vrot.lane.b32.xlu1 %v3197_v2, %s7451_s28  ;;  %v3319_v2 = vmul.f32 %v9422_v59, %v13549_v55 }
 0x6a5   :  { %5339 = vrot.lane.b32.xlu2 %v9146_v4, %s7451_s28  ;;  %v9816_v4 = vadd.f32 %v9143_v27, %v9276_v31 }
 0x6a6   :  { %v9800_v22 = vpop.permute.xlu0 %5215  ;;  %v9802_v10 = vpop.permute.xlu1 %3721 }
 0x6a7   :  { %13567 = vst [vmem:[#allocation182_spill] sm:$0xff] %v9800_v22  ;;  %v9806_v0 = vpop.permute.xlu2 %5213  ;;  %v13615_v22 = vld [vmem:[#allocation29_spill] sm:$0xff] }
 0x6a8   :  { %13568 = vst [vmem:[#allocation183_spill] sm:$0xff] %v9802_v10  ;;  %v2189_v61 = vpop.f32.mrf.mxu3  ;;  %v9833_v39 = vpop.f32.mrf.mxu0 }
 0x6a9   :  { %v9809_v43 = vadd.f32 %v9785_v14, %v2189_v61  ;;  %13571 = vst [vmem:[#allocation186_spill] sm:$0xff] %v9816_v4 }
 0x6aa   :  { %13575 = vst [vmem:[#allocation190_spill] sm:$0xff] %v9833_v39  ;;  %v13639_v39 = vld [vmem:[#allocation123_spill] sm:$0xff] }
 0x6ab   :  { %13570 = vst [vmem:[#allocation185_spill] sm:$0xff] %v9809_v43 }
 0x6ac   :  { %4815 = vrot.lane.b32.xlu0 %v2355_v1, %s7445_s21  ;;  %3335 = vrot.lane.b32.xlu1 %v3319_v2, %s7445_s21 }
 0x6ad   :  { %7024 = vmatmul.msk.bf16.gmra.mxu3 %vm404_vm6, %v7276_v56  ;;  %3455 = vrot.lane.b32.xlu2 %v9816_v4, %s7445_s21  ;;  %v2354_v56 = vadd.f32 %v9027_v40, %v9225_v15  ;;  %v7277_v40 = vld [vmem:[%s12934_s11 + $0x1b0] sm:$0xff]  ;;  %v9860_v15 = vadd.f32 %v9143_v27, %v9409_v20 }
 0x6ae   :  { %7158 = vmatmul.msk.bf16.gmra.mxu0 %vm404_vm6, %v8735_v57  ;;  %v9827_v61 = vpop.permute.xlu0 %5221  ;;  %v9829_v43 = vpop.permute.xlu1 %5337  ;;  %v3322_v57 = vmul.f32 %v9450_v23, %v13557_v42 }
 0x6af   :  { %13572 = vst [vmem:[#allocation187_spill] sm:$0xff] %v9827_v61  ;;  %v9831_v31 = vpop.permute.xlu2 %5219 }
 0x6b0   :  { %13573 = vst [vmem:[#allocation188_spill] sm:$0xff] %v9829_v43  ;;  %v2192_v46 = vpop.f32.mrf.mxu3 }
 0x6b1   :  { %13574 = vst [vmem:[#allocation189_spill] sm:$0xff] %v9831_v31  ;;  %v9836_v1 = vadd.f32 %v9785_v14, %v2192_v46 }
 0x6b2   :  { %13579 = vst [vmem:[#allocation194_spill] sm:$0xff] %v9860_v15 }
 0x6b3   :  { %13576 = vst [vmem:[#allocation191_spill] sm:$0xff] %v9836_v1 }
 0x6b4   :  { %5457 = vrot.lane.b32.xlu0 %v9228_v29, %s7450_s16  ;;  %3341 = vrot.lane.b32.xlu1 %v3322_v57, %s7445_s21  ;;  %v9862_v29 = vpop.f32.mrf.mxu0  ;;  %v3325_v57 = vmul.f32 %v9467_v21, %v13562_v60 }
 0x6b5   :  { %3173 = vrot.lane.b32.xlu2 %v2354_v56, %s7451_s28  ;;  %13580 = vst [vmem:[#allocation195_spill] sm:$0xff] %v9862_v29 }
 0x6b6   :  { %v9846_v2 = vpop.permute.xlu0 %5329  ;;  %v9848_v61 = vpop.permute.xlu1 %3171 }
 0x6b7   :  { %v9850_v35 = vpop.permute.xlu2 %5327 }
 0x6b8   :  { %13577 = vst [vmem:[#allocation192_spill] sm:$0xff] %v9850_v35  ;;  %v2194_v46 = vpop.f32.mrf.mxu3 }
 0x6b9   :  { %v9853_v1 = vadd.f32 %v9785_v14, %v2194_v46 }
 0x6bb   :  { %13578 = vst [vmem:[#allocation193_spill] sm:$0xff] %v9853_v1 }
 0x6bc   :  { %3463 = vrot.lane.b32.xlu0 %v9860_v15, %s7445_s21  ;;  %3347 = vrot.lane.b32.xlu1 %v3325_v57, %s7445_s21  ;;  %v13622_v15 = vld [vmem:[#allocation19_spill] sm:$0xff] }
 0x6bd   :  { %7025 = vmatmul.msk.bf16.gmra.mxu3 %vm404_vm6, %v7277_v40  ;;  %4813 = vrot.lane.b32.xlu2 %v2354_v56, %s7445_s21  ;;  %v3485_v40 = vmul.f32 %v9491_v62, %v9500_v24  ;;  %v9886_v56 = vpop.f32.mrf.mxu0  ;;  %v9905_v62 = vadd.f32 %v9143_v27, %v9365_v25 }
 0x6be   :  { %7159 = vmatmul.msk.bf16.gmra.mxu0 %vm404_vm6, %v8806_v41  ;;  %v9873_v46 = vpop.permute.xlu0 %3053  ;;  %v9875_v20 = vpop.permute.xlu1 %4811  ;;  %13582 = vst [vmem:[#allocation197_spill] sm:$0xff] %v9886_v56  ;;  %v13606_v56 = vld [vmem:[#allocation98_spill] sm:$0xff] }
 0x6bf   :  { %v9877_v1 = vpop.permute.xlu2 %5333 }
 0x6c0   :  { %v2197_v29 = vpop.f32.mrf.mxu3 }
 0x6c1   :  { %v9880_v60 = vadd.f32 %v9785_v14, %v2197_v29 }
 0x6c3   :  { %13581 = vst [vmem:[#allocation196_spill] sm:$0xff] %v9880_v60 }
 0x6c4   :  { %5463 = vrot.lane.b32.xlu0 %v9296_v63, %s7450_s16  ;;  %3507 = vrot.lane.b32.xlu1 %v3485_v40, %s7450_s16  ;;  %v7278_v63 = vld [vmem:[%s12934_s11 + $0x1b8] sm:$0xff]  ;;  %v3607_v40 = vmul.f32 %v9511_v6, %v9314_v3  ;;  %v13613_v6 = vld [vmem:[#allocation18_spill] sm:$0xff] }
 0x6c5   :  { %5455 = vrot.lane.b32.xlu2 %v9209_v17, %s7450_s16  ;;  %v9921_v25 = vpop.f32.mrf.mxu0 }
 0x6c6   :  { %v9891_v41 = vpop.permute.xlu0 %3719  ;;  %v9893_v57 = vpop.permute.xlu1 %3459  ;;  %13586 = vst [vmem:[#allocation201_spill] sm:$0xff] %v9921_v25  ;;  %v13600_v25 = vld [vmem:[#allocation92_spill] sm:$0xff] }
 0x6c7   :  { %v9895_v21 = vpop.permute.xlu2 %4729 }
 0x6c8   :  { %13583 = vst [vmem:[#allocation198_spill] sm:$0xff] %v9895_v21  ;;  %v2199_v29 = vpop.f32.mrf.mxu3 }
 0x6c9   :  { %v9898_v60 = vadd.f32 %v9785_v14, %v2199_v29 }
 0x6cb   :  { %13584 = vst [vmem:[#allocation199_spill] sm:$0xff] %v9898_v60 }
 0x6cc   :  { %3873 = vrot.lane.b32.xlu0 %v9425_v47, %s7445_s21  ;;  %3623 = vrot.lane.b32.xlu1 %v3607_v40, %s7451_s28 }
 0x6cd   :  { %7026 = vmatmul.msk.bf16.gmra.mxu3 %vm404_vm6, %v7278_v63  ;;  %3461 = vrot.lane.b32.xlu2 %v9905_v62, %s7445_s21  ;;  %v13589_v63 = vld [vmem:[#allocation13_spill] sm:$0xff] }
 0x6ce   :  { %7160 = vmatmul.msk.bf16.gmra.mxu0 %vm404_vm6, %v13491_v53  ;;  %v9917_v29 = vpop.permute.xlu0 %4731  ;;  %v9919_v27 = vpop.permute.xlu1 %3177  ;;  %v3065_v47 = vmul.f32 %v9388_v37, %v13589_v63  ;;  %v3610_v53 = vmul.f32 %v9537_v44, %v9414_v11  ;;  %v13594_v44 = vld [vmem:[#allocation16_spill] sm:$0xff] }
 0x6cf   :  { %13585 = vst [vmem:[#allocation200_spill] sm:$0xff] %v9917_v29  ;;  %v9923_v21 = vpop.permute.xlu2 %4735 }
 0x6d0   :  { %13587 = vst [vmem:[#allocation202_spill] sm:$0xff] %v9923_v21  ;;  %v2202_v17 = vpop.f32.mrf.mxu3 }
 0x6d1   :  { %v9926_v60 = vadd.f32 %v9785_v14, %v2202_v17 }
 0x6d3   :  { %13588 = vst [vmem:[#allocation203_spill] sm:$0xff] %v9926_v60  ;;  %v9942_v60 = vpop.f32.mrf.mxu0 }
 0x6d4   :  { %3083 = vrot.lane.b32.xlu0 %v3065_v47, %s7450_s16  ;;  %3629 = vrot.lane.b32.xlu1 %v3610_v53, %s7451_s28  ;;  %13592 = vst [vmem:[#allocation206_spill] sm:$0xff] %v9942_v60  ;;  %v7279_v47 = vld [vmem:[%s12934_s11 + $0x1c0] sm:$0xff]  ;;  %v2299_v53 = vrot.slane %v9190_v54, 4  ;;  %v13599_v60 = vld [vmem:[#allocation12_spill] sm:$0xff] }
 0x6d5   :  { %5461 = vrot.lane.b32.xlu2 %v9271_v9, %s7450_s16  ;;  %v3068_v9 = vmul.f32 %v9420_v30, %v13594_v44 }
 0x6d6   :  { %v9936_v40 = vpop.permute.xlu0 %4737  ;;  %v9938_v21 = vpop.permute.xlu1 %4817  ;;  %v9966_v54 = vperm.slane %v2299_v53, 0 }
 0x6d7   :  { %13590 = vst [vmem:[#allocation204_spill] sm:$0xff] %v9936_v40  ;;  %v9940_v29 = vpop.permute.xlu2 %3167  ;;  %v3613_v40 = vmul.f32 %v9560_v26, %v9500_v24 }
 0x6d8   :  { %13591 = vst [vmem:[#allocation205_spill] sm:$0xff] %v9938_v21  ;;  %v2204_v17 = vpop.f32.mrf.mxu3 }
 0x6d9   :  { %v9945_v37 = vadd.f32 %v9785_v14, %v2204_v17 }
 0x6db   :  { %13593 = vst [vmem:[#allocation207_spill] sm:$0xff] %v9945_v37  ;;  %v9977_v23 = vpop.f32.mrf.mxu0 }
 0x6dc   :  { %3089 = vrot.lane.b32.xlu0 %v3068_v9, %s7450_s16  ;;  %3635 = vrot.lane.b32.xlu1 %v3613_v40, %s7451_s28  ;;  %13601 = vst [vmem:[#allocation211_spill] sm:$0xff] %v9977_v23  ;;  %v3735_v40 = vmul.f32 %v9590_v28, %v9314_v3  ;;  %v7280_v23 = vld [vmem:[%s12934_s11 + $0x1c8] sm:$0xff]  ;;  %v3738_v28 = vmul.f32 %v9607_v51, %v9414_v11 }
 0x6dd   :  { %7027 = vmatmul.msk.bf16.gmra.mxu3 %vm404_vm6, %v7279_v47  ;;  %3871 = vrot.lane.b32.xlu2 %v9401_v5, %s7445_s21  ;;  %v13598_v47 = vld [vmem:[#allocation108_spill] sm:$0xff] }
 0x6de   :  { %7161 = vmatmul.msk.bf16.gmra.mxu0 %vm404_vm6, %v13506_v8  ;;  %v9962_v14 = vpop.permute.xlu0 %5335  ;;  %v9964_v17 = vpop.permute.xlu1 %5459  ;;  %v3321_v30 = vmul.f32 %v13598_v47, %v13589_v63  ;;  %v3064_v8 = vmul.f32 %v13600_v25, %v13599_v60  ;;  %v13628_v25 = vld [vmem:[#allocation22_spill] sm:$0xff] }
 0x6df   :  { %13595 = vst [vmem:[#allocation208_spill] sm:$0xff] %v9962_v14  ;;  %v9968_v37 = vpop.permute.xlu2 %4807 }
 0x6e0   :  { %13596 = vst [vmem:[#allocation209_spill] sm:$0xff] %v9964_v17  ;;  %v2207_v26 = vpop.f32.mrf.mxu3 }
 0x6e1   :  { %v9971_v9 = vadd.f32 %v9966_v54, %v2207_v26 }
 0x6e3   :  { %13597 = vst [vmem:[#allocation210_spill] sm:$0xff] %v9971_v9 }
 0x6e4   :  { %3339 = vrot.lane.b32.xlu0 %v3321_v30, %s7445_s21  ;;  %3751 = vrot.lane.b32.xlu1 %v3735_v40, %s7445_s21  ;;  %v13604_v30 = vld [vmem:[#allocation112_spill] sm:$0xff] }
 0x6e5   :  { %3081 = vrot.lane.b32.xlu2 %v3064_v8, %s7450_s16  ;;  %v3324_v5 = vmul.f32 %v13604_v30, %v13594_v44  ;;  %v13605_v8 = vld [vmem:[#allocation15_spill] sm:$0xff] }
 0x6e6   :  { %v9984_v53 = vpop.permute.xlu0 %3169  ;;  %v9986_v26 = vpop.permute.xlu1 %3465  ;;  %v3067_v40 = vmul.f32 %v13606_v56, %v13605_v8  ;;  %v13612_v56 = vld [vmem:[#allocation118_spill] sm:$0xff] }
 0x6e7   :  { %v9988_v17 = vpop.permute.xlu2 %5067 }
 0x6e8   :  { %13602 = vst [vmem:[#allocation212_spill] sm:$0xff] %v9988_v17  ;;  %v2209_v9 = vpop.f32.mrf.mxu3  ;;  %v10003_v17 = vpop.f32.mrf.mxu0 }
 0x6e9   :  { %v9991_v47 = vadd.f32 %v9966_v54, %v2209_v9  ;;  %13607 = vst [vmem:[#allocation214_spill] sm:$0xff] %v10003_v17  ;;  %v13611_v17 = vld [vmem:[#allocation96_spill] sm:$0xff] }
 0x6eb   :  { %13603 = vst [vmem:[#allocation213_spill] sm:$0xff] %v9991_v47 }
 0x6ec   :  { %3345 = vrot.lane.b32.xlu0 %v3324_v5, %s7445_s21  ;;  %3757 = vrot.lane.b32.xlu1 %v3738_v28, %s7445_s21 }
 0x6ed   :  { %7028 = vmatmul.msk.bf16.gmra.mxu3 %vm404_vm6, %v7280_v23  ;;  %3087 = vrot.lane.b32.xlu2 %v3067_v40, %s7450_s16  ;;  %v3609_v23 = vmul.f32 %v13612_v56, %v13611_v17  ;;  %v13614_v40 = vld [vmem:[#allocation103_spill] sm:$0xff] }
 0x6ee   :  { %7162 = vmatmul.msk.bf16.gmra.mxu0 %vm404_vm6, %v13524_v48  ;;  %v10010_v9 = vpop.permute.xlu0 %4809  ;;  %v10012_v47 = vpop.permute.xlu1 %5465  ;;  %v3198_v14 = vmul.f32 %v13614_v40, %v13613_v6  ;;  %v4837_v48 = vmul.f32 %v9639_v36, %v13615_v22  ;;  %v7281_v36 = vld [vmem:[%s12934_s11 + $0x1d0] sm:$0xff] }
 0x6ef   :  { %13608 = vst [vmem:[#allocation215_spill] sm:$0xff] %v10012_v47  ;;  %v10014_v30 = vpop.permute.xlu2 %4741  ;;  %v13619_v40 = vld [vmem:[#allocation115_spill] sm:$0xff] }
 0x6f0   :  { %13609 = vst [vmem:[#allocation216_spill] sm:$0xff] %v10014_v30  ;;  %v2212_v51 = vpop.f32.mrf.mxu3 }
 0x6f1   :  { %v10017_v5 = vadd.f32 %v9966_v54, %v2212_v51 }
 0x6f3   :  { %13610 = vst [vmem:[#allocation217_spill] sm:$0xff] %v10017_v5 }
 0x6f4   :  { %3627 = vrot.lane.b32.xlu0 %v3609_v23, %s7451_s28  ;;  %4859 = vrot.lane.b32.xlu1 %v4837_v48, %s7451_s28  ;;  %v13620_v23 = vld [vmem:[#allocation124_spill] sm:$0xff] }
 0x6f5   :  { %3221 = vrot.lane.b32.xlu2 %v3198_v14, %s7451_s28  ;;  %v3612_v56 = vmul.f32 %v13620_v23, %v13619_v40  ;;  %v13621_v14 = vld [vmem:[#allocation107_spill] sm:$0xff] }
 0x6f6   :  { %v10028_v28 = vpop.permute.xlu0 %5069  ;;  %v10030_v30 = vpop.permute.xlu1 %3875  ;;  %v3320_v48 = vmul.f32 %v13621_v14, %v13599_v60 }
 0x6f7   :  { %13616 = vst [vmem:[#allocation218_spill] sm:$0xff] %v10028_v28  ;;  %v10032_v51 = vpop.permute.xlu2 %3723  ;;  %v4951_v28 = vmul.f32 %v9664_v49, %v13622_v15  ;;  %v13626_v49 = vld [vmem:[#allocation129_spill] sm:$0xff] }
 0x6f8   :  { %13617 = vst [vmem:[#allocation219_spill] sm:$0xff] %v10030_v30  ;;  %v2214_v47 = vpop.f32.mrf.mxu3  ;;  %v3737_v59 = vmul.f32 %v13626_v49, %v13611_v17 }
 0x6f9   :  { %v10035_v5 = vadd.f32 %v9966_v54, %v2214_v47 }
 0x6fb   :  { %13618 = vst [vmem:[#allocation220_spill] sm:$0xff] %v10035_v5 }
 0x6fc   :  { %3633 = vrot.lane.b32.xlu0 %v3612_v56, %s7451_s28  ;;  %4967 = vrot.lane.b32.xlu1 %v4951_v28, %s7445_s21  ;;  %v13627_v56 = vld [vmem:[#allocation111_spill] sm:$0xff] }
 0x6fd   :  { %7029 = vmatmul.msk.bf16.gmra.mxu3 %vm404_vm6, %v7281_v36  ;;  %3337 = vrot.lane.b32.xlu2 %v3320_v48, %s7445_s21  ;;  %v3323_v36 = vmul.f32 %v13627_v56, %v13605_v8  ;;  %v4954_v48 = vmul.f32 %v9695_v50, %v13628_v25  ;;  %v7282_v50 = vld [vmem:[%s12934_s11 + $0x1d8] sm:$0xff]  ;;  %v13632_v56 = vld [vmem:[#allocation21_spill] sm:$0xff] }
 0x6fe   :  { %v10050_v47 = vpop.permute.xlu0 %3725  ;;  %v10054_v30 = vpop.permute.xlu1 %3079 }
 0x6ff   :  { %v10052_v5 = vpop.permute.xlu2 %5339  ;;  %13624 = vst [vmem:[#allocation222_spill] sm:$0xff] %v10054_v30 }
 0x700   :  { %13623 = vst [vmem:[#allocation221_spill] sm:$0xff] %v10052_v5  ;;  %v2217_v23 = vpop.f32.mrf.mxu3 }
 0x701   :  { %v10057_v14 = vadd.f32 %v9966_v54, %v2217_v23 }
 0x703   :  { %13625 = vst [vmem:[#allocation223_spill] sm:$0xff] %v10057_v14 }
 0x704   :  { %3755 = vrot.lane.b32.xlu0 %v3737_v59, %s7445_s21  ;;  %4973 = vrot.lane.b32.xlu1 %v4954_v48, %s7445_s21  ;;  %v13633_v59 = vld [vmem:[#allocation134_spill] sm:$0xff] }
 0x705   :  { %3343 = vrot.lane.b32.xlu2 %v3323_v36, %s7445_s21  ;;  %v4953_v8 = vmul.f32 %v13633_v59, %v13632_v56  ;;  %v13634_v36 = vld [vmem:[#allocation117_spill] sm:$0xff] }
 0x706   :  { %v10068_v28 = vpop.permute.xlu0 %5341  ;;  %v10072_v23 = vpop.permute.xlu1 %3085  ;;  %v3326_v48 = vmul.f32 %v13634_v36, %v13613_v6 }
 0x707   :  { %13629 = vst [vmem:[#allocation224_spill] sm:$0xff] %v10068_v28  ;;  %v10070_v30 = vpop.permute.xlu2 %3455  ;;  %v4957_v28 = vmul.f32 %v9713_v45, %v13615_v22  ;;  %v13637_v22 = vld [vmem:[#allocation138_spill] sm:$0xff] }
 0x708   :  { %13630 = vst [vmem:[#allocation225_spill] sm:$0xff] %v10072_v23  ;;  %v2219_v14 = vpop.f32.mrf.mxu3  ;;  %v4956_v45 = vmul.f32 %v13637_v22, %v13514_v52 }
 0x709   :  { %v10075_v49 = vadd.f32 %v9966_v54, %v2219_v14 }
 0x70b   :  { %13631 = vst [vmem:[#allocation226_spill] sm:$0xff] %v10075_v49 }
 0x70c   :  { %4971 = vrot.lane.b32.xlu0 %v4953_v8, %s7445_s21  ;;  %4979 = vrot.lane.b32.xlu1 %v4957_v28, %s7445_s21  ;;  %v13638_v8 = vld [vmem:[#allocation128_spill] sm:$0xff] }
 0x70d   :  { %7030 = vmatmul.msk.bf16.gmra.mxu3 %vm404_vm6, %v7282_v50  ;;  %3349 = vrot.lane.b32.xlu2 %v3326_v48, %s7445_s21  ;;  %v3486_v50 = vmul.f32 %v13639_v39, %v13638_v8  ;;  %v13640_v48 = vld [vmem:[#allocation135_spill] sm:$0xff]  ;;  %v13645_v39 = vld [vmem:[#allocation48_spill] sm:$0xff] }
 0x70e   :  { %v10090_v14 = vpop.permute.xlu0 %3457  ;;  %v10094_v49 = vpop.permute.xlu1 %3091  ;;  %v5111_v33 = vmul.f32 %v13640_v48, %v9816_v4  ;;  %v7283_v4 = vld [vmem:[%s12934_s11 + $0x1e0] sm:$0xff] }
 0x70f   :  { %v10092_v23 = vpop.permute.xlu2 %3173  ;;  %13635 = vst [vmem:[#allocation227_spill] sm:$0xff] %v10094_v49 }
 0x710   :  { %v2222_v59 = vpop.f32.mrf.mxu3 }
 0x711   :  { %v10097_v36 = vadd.f32 %v9966_v54, %v2222_v59 }
 0x713   :  { %13636 = vst [vmem:[#allocation228_spill] sm:$0xff] %v10097_v36 }
 0x714   :  { %4977 = vrot.lane.b32.xlu0 %v4956_v45, %s7445_s21  ;;  %5127 = vrot.lane.b32.xlu1 %v5111_v33, %s7450_s16  ;;  %v3740_v45 = vmul.f32 %v9802_v10, %v13619_v40  ;;  %v13649_v10 = vld [vmem:[#allocation133_spill] sm:$0xff] }
 0x715   :  { %3509 = vrot.lane.b32.xlu2 %v3486_v50, %s7450_s16  ;;  %v13644_v50 = vld [vmem:[#allocation88_spill] sm:$0xff] }
 0x716   :  { %v10108_v28 = vpop.permute.xlu0 %3175  ;;  %v10112_v59 = vpop.permute.xlu1 %3219  ;;  %v3608_v33 = vmul.f32 %v13645_v39, %v13644_v50 }
 0x717   :  { %13641 = vst [vmem:[#allocation229_spill] sm:$0xff] %v10108_v28  ;;  %v10110_v49 = vpop.permute.xlu2 %4813  ;;  %v5231_v28 = vmul.f32 %v9787_v13, %v13640_v48  ;;  %v5351_v13 = vmul.f32 %v9850_v35, %v13640_v48  ;;  %v13654_v35 = vld [vmem:[#allocation55_spill] sm:$0xff] }
 0x718   :  { %13642 = vst [vmem:[#allocation230_spill] sm:$0xff] %v10112_v59  ;;  %v2224_v36 = vpop.f32.mrf.mxu3 }
 0x719   :  { %v10115_v22 = vadd.f32 %v9966_v54, %v2224_v36 }
 0x71b   :  { %13643 = vst [vmem:[#allocation231_spill] sm:$0xff] %v10115_v22  ;;  %v13648_v22 = vld [vmem:[#allocation109_spill] sm:$0xff] }
 0x71c   :  { %3761 = vrot.lane.b32.xlu0 %v3740_v45, %s7445_s21  ;;  %5247 = vrot.lane.b32.xlu1 %v5231_v28, %s7451_s28  ;;  %v3611_v39 = vmul.f32 %v13649_v10, %v13648_v22  ;;  %v13650_v45 = vld [vmem:[#allocation121_spill] sm:$0xff]  ;;  %v13658_v10 = vld [vmem:[#allocation143_spill] sm:$0xff] }
 0x71d   :  { %7031 = vmatmul.msk.bf16.gmra.mxu3 %vm404_vm6, %v7283_v4  ;;  %3625 = vrot.lane.b32.xlu2 %v3608_v33, %s7451_s28 }
 0x71e   :  { %v10130_v54 = vpop.permute.xlu0 %4815  ;;  %v10134_v59 = vpop.permute.xlu1 %3335 }
 0x71f   :  { %v10132_v36 = vpop.permute.xlu2 %5455  ;;  %13647 = vst [vmem:[#allocation233_spill] sm:$0xff] %v10134_v59  ;;  %v7284_v59 = vld [vmem:[%s12934_s11 + $0x1e8] sm:$0xff] }
 0x720   :  { %13646 = vst [vmem:[#allocation232_spill] sm:$0xff] %v10132_v36  ;;  %v13653_v36 = vld [vmem:[#allocation132_spill] sm:$0xff] }
 0x721   :  { %v5113_v48 = vmul.f32 %v9621_v58, %v13653_v36  ;;  %v13657_v36 = vld [vmem:[#allocation150_spill] sm:$0xff] }
 0x724   :  { %3879 = vrot.lane.b32.xlu0 %v13650_v45, %s7445_s21  ;;  %5367 = vrot.lane.b32.xlu1 %v5351_v13, %s7445_s21  ;;  %v3614_v45 = vmul.f32 %v13654_v35, %v13638_v8  ;;  %v5233_v35 = vmul.f32 %v13657_v36, %v9621_v58 }
 0x725   :  { %3631 = vrot.lane.b32.xlu2 %v3611_v39, %s7451_s28  ;;  %v3191_v39 = vmul.f32 %v9940_v29, %v13549_v55  ;;  %v3736_v55 = vmul.f32 %v13658_v10, %v13644_v50 }
 0x726   :  { %v10144_v4 = vpop.permute.xlu0 %5457  ;;  %v10148_v33 = vpop.permute.xlu1 %3341 }
 0x727   :  { %13651 = vst [vmem:[#allocation234_spill] sm:$0xff] %v10144_v4  ;;  %v10146_v28 = vpop.permute.xlu2 %3461 }
 0x728   :  { %13652 = vst [vmem:[#allocation235_spill] sm:$0xff] %v10148_v33 }
 0x72c   :  { %5131 = vrot.lane.b32.xlu0 %v5113_v48, %s7450_s16  ;;  %3207 = vrot.lane.b32.xlu1 %v3191_v39, %s7451_s28  ;;  %v4831_v48 = vmul.f32 %v9968_v37, %v13622_v15  ;;  %v13661_v15 = vld [vmem:[#allocation8_spill] sm:$0xff] }
 0x72d   :  { %7032 = vmatmul.msk.bf16.gmra.mxu3 %vm404_vm6, %v7284_v59  ;;  %3637 = vrot.lane.b32.xlu2 %v3614_v45, %s7451_s28 }
 0x72e   :  { %v10163_v13 = vpop.permute.xlu0 %3463  ;;  %v10167_v4 = vpop.permute.xlu1 %3347 }
 0x72f   :  { %v10165_v33 = vpop.permute.xlu2 %5461  ;;  %13656 = vst [vmem:[#allocation237_spill] sm:$0xff] %v10167_v4  ;;  %v7285_v4 = vld [vmem:[%s12934_s11 + $0x1f0] sm:$0xff] }
 0x730   :  { %13655 = vst [vmem:[#allocation236_spill] sm:$0xff] %v10165_v33  ;;  %v5353_v33 = vmul.f32 %v9691_v18, %v9621_v58  ;;  %v3193_v58 = vmul.f32 %v9848_v61, %v13589_v63  ;;  %v4833_v63 = vmul.f32 %v9875_v20, %v13632_v56 }
 0x734   :  { %5251 = vrot.lane.b32.xlu0 %v5233_v35, %s7451_s28  ;;  %4847 = vrot.lane.b32.xlu1 %v4831_v48, %s7451_s28  ;;  %v4838_v35 = vmul.f32 %v13661_v15, %v13556_v7  ;;  %v13664_v15 = vld [vmem:[#allocation20_spill] sm:$0xff] }
 0x735   :  { %3753 = vrot.lane.b32.xlu2 %v3736_v55, %s7445_s21  ;;  %v3741_v55 = vmul.f32 %v10032_v51, %v9500_v24  ;;  %v4952_v24 = vmul.f32 %v9660_v19, %v13664_v15 }
 0x736   :  { %v10178_v59 = vpop.permute.xlu0 %5463  ;;  %v10182_v39 = vpop.permute.xlu1 %3507 }
 0x737   :  { %13659 = vst [vmem:[#allocation150_spill] sm:$0xff] %v10178_v59  ;;  %v10180_v45 = vpop.permute.xlu2 %3871 }
 0x738   :  { %13660 = vst [vmem:[#allocation143_spill] sm:$0xff] %v10182_v39 }
 0x73c   :  { %5371 = vrot.lane.b32.xlu0 %v5353_v33, %s7445_s21  ;;  %3763 = vrot.lane.b32.xlu1 %v3741_v55, %s7445_s21 }
 0x73d   :  { %7033 = vmatmul.msk.bf16.gmra.mxu3 %vm404_vm6, %v7285_v4  ;;  %4861 = vrot.lane.b32.xlu2 %v4838_v35, %s7451_s28  ;;  %v13665_v4 = vld [vmem:[#allocation126_spill] sm:$0xff] }
 0x73e   :  { %v10197_v48 = vpop.permute.xlu0 %3873  ;;  %v10201_v39 = vpop.permute.xlu1 %3623 }
 0x73f   :  { %v10199_v59 = vpop.permute.xlu2 %3081  ;;  %13663 = vst [vmem:[#allocation239_spill] sm:$0xff] %v10201_v39  ;;  %v7286_v39 = vld [vmem:[%s12934_s11 + $0x1f8] sm:$0xff] }
 0x740   :  { %13662 = vst [vmem:[#allocation238_spill] sm:$0xff] %v10199_v59  ;;  %v10222_v59 = vpop.f32.mrf.mxu2 }
 0x741   :  { %13669 = vst [vmem:[#allocation243_spill] sm:$0xff] %v10222_v59  ;;  %v13673_v59 = vld [vmem:[#allocation164_spill] sm:$0xff] }
 0x744   :  { %3211 = vrot.lane.b32.xlu0 %v3193_v58, %s7451_s28  ;;  %3881 = vrot.lane.b32.xlu1 %v13665_v4, %s7445_s21  ;;  %v3479_v58 = vmul.f32 %v10070_v30, %v9314_v3  ;;  %v13674_v4 = vld [vmem:[#allocation137_spill] sm:$0xff] }
 0x745   :  { %4969 = vrot.lane.b32.xlu2 %v4952_v24, %s7445_s21  ;;  %v4955_v24 = vmul.f32 %v9689_v38, %v13532_v32 }
 0x746   :  { %v10211_v33 = vpop.permute.xlu0 %3083  ;;  %v10215_v55 = vpop.permute.xlu1 %3629 }
 0x747   :  { %13666 = vst [vmem:[#allocation240_spill] sm:$0xff] %v10211_v33  ;;  %v10213_v35 = vpop.permute.xlu2 %3087  ;;  %v4958_v33 = vmul.f32 %v13673_v59, %v13556_v7  ;;  %v3481_v7 = vmul.f32 %v9893_v57, %v13611_v17  ;;  %v13685_v17 = vld [vmem:[#allocation167_spill] sm:$0xff]  ;;  %v13828_v59 = vld [vmem:[#allocation93_spill] sm:$0xff] }
 0x748   :  { %13667 = vst [vmem:[#allocation241_spill] sm:$0xff] %v10213_v35 }
 0x749   :  { %13668 = vst [vmem:[#allocation242_spill] sm:$0xff] %v10215_v55 }
 0x74c   :  { %4851 = vrot.lane.b32.xlu0 %v4833_v63, %s7451_s28  ;;  %3495 = vrot.lane.b32.xlu1 %v3479_v58, %s7450_s16  ;;  %v13675_v63 = vld [vmem:[#allocation155_spill] sm:$0xff] }
 0x74d   :  { %7034 = vmatmul.msk.bf16.gmra.mxu3 %vm404_vm6, %v7286_v39  ;;  %4975 = vrot.lane.b32.xlu2 %v4955_v24, %s7445_s21  ;;  %v5114_v3 = vmul.f32 %v13675_v63, %v9905_v62  ;;  %v10244_v39 = vpop.f32.mrf.mxu2 }
 0x74e   :  { %v10232_v55 = vpop.permute.xlu0 %3089  ;;  %v10236_v56 = vpop.permute.xlu1 %3635  ;;  %13676 = vst [vmem:[#allocation247_spill] sm:$0xff] %v10244_v39 }
 0x74f   :  { %13670 = vst [vmem:[#allocation244_spill] sm:$0xff] %v10232_v55  ;;  %v10234_v35 = vpop.permute.xlu2 %3221  ;;  %v3739_v55 = vmul.f32 %v9891_v41, %v13648_v22 }
 0x750   :  { %13671 = vst [vmem:[#allocation245_spill] sm:$0xff] %v10234_v35  ;;  %v5234_v35 = vmul.f32 %v9806_v0, %v13675_v63 }
 0x751   :  { %13672 = vst [vmem:[#allocation246_spill] sm:$0xff] %v10236_v56 }
 0x754   :  { %3885 = vrot.lane.b32.xlu0 %v13674_v4, %s7445_s21  ;;  %5133 = vrot.lane.b32.xlu1 %v5114_v3, %s7450_s16  ;;  %v3070_v4 = vmul.f32 %v9873_v46, %v13613_v6 }
 0x755   :  { %4981 = vrot.lane.b32.xlu2 %v4958_v33, %s7445_s21  ;;  %v10265_v33 = vpop.f32.mrf.mxu2 }
 0x756   :  { %v10248_v24 = vpop.permute.xlu0 %3339  ;;  %v10252_v56 = vpop.permute.xlu1 %3751  ;;  %13681 = vst [vmem:[#allocation252_spill] sm:$0xff] %v10265_v33 }
 0x757   :  { %13677 = vst [vmem:[#allocation248_spill] sm:$0xff] %v10248_v24  ;;  %v10250_v58 = vpop.permute.xlu2 %3337 }
 0x758   :  { %13678 = vst [vmem:[#allocation249_spill] sm:$0xff] %v10250_v58 }
 0x759   :  { %13679 = vst [vmem:[#allocation250_spill] sm:$0xff] %v10252_v56  ;;  %v13684_v56 = vld [vmem:[#allocation153_spill] sm:$0xff] }
 0x75a   :  { %v5116_v58 = vmul.f32 %v13685_v17, %v13684_v56  ;;  %v13811_v56 = vld [vmem:[#allocation97_spill] sm:$0xff] }
 0x75c   :  { %3499 = vrot.lane.b32.xlu0 %v3481_v7, %s7450_s16  ;;  %5253 = vrot.lane.b32.xlu1 %v5234_v35, %s7451_s28  ;;  %v5354_v7 = vmul.f32 %v9877_v1, %v13675_v63  ;;  %v3194_v63 = vmul.f32 %v10092_v23, %v13557_v42  ;;  %v13696_v42 = vld [vmem:[#allocation141_spill] sm:$0xff] }
 0x75d   :  { %3093 = vrot.lane.b32.xlu2 %v3070_v4, %s7450_s16 }
 0x75e   :  { %v10263_v3 = vpop.permute.xlu0 %3345  ;;  %v10269_v24 = vpop.permute.xlu1 %3757 }
 0x75f   :  { %13680 = vst [vmem:[#allocation251_spill] sm:$0xff] %v10263_v3  ;;  %v10267_v39 = vpop.permute.xlu2 %3343 }
 0x760   :  { %13682 = vst [vmem:[#allocation253_spill] sm:$0xff] %v10267_v39  ;;  %v13690_v39 = vld [vmem:[#allocation156_spill] sm:$0xff] }
 0x761   :  { %13683 = vst [vmem:[#allocation254_spill] sm:$0xff] %v10269_v24  ;;  %v10286_v24 = vpop.f32.mrf.mxu2  ;;  %v5236_v3 = vmul.f32 %v13690_v39, %v13685_v17  ;;  %v13787_v39 = vld [vmem:[#allocation113_spill] sm:$0xff] }
 0x762   :  { %13689 = vst [vmem:[#allocation258_spill] sm:$0xff] %v10286_v24  ;;  %v5356_v24 = vmul.f32 %v9829_v43, %v13685_v17  ;;  %v10319_v17 = vpop.f32.mrf.mxu1 }
 0x763   :  { %13700 = vst [vmem:[#allocation266_spill] sm:$0xff] %v10319_v17 }
 0x764   :  { %5137 = vrot.lane.b32.xlu0 %v5116_v58, %s7450_s16  ;;  %5373 = vrot.lane.b32.xlu1 %v5354_v7, %s7445_s21 }
 0x765   :  { %3759 = vrot.lane.b32.xlu2 %v3739_v55, %s7445_s21  ;;  %v13691_v55 = vld [vmem:[#allocation116_spill] sm:$0xff] }
 0x766   :  { %v10280_v4 = vpop.permute.xlu0 %3627  ;;  %v10284_v33 = vpop.permute.xlu1 %4859 }
 0x767   :  { %13686 = vst [vmem:[#allocation255_spill] sm:$0xff] %v10280_v4  ;;  %v10282_v35 = vpop.permute.xlu2 %3349 }
 0x768   :  { %13687 = vst [vmem:[#allocation256_spill] sm:$0xff] %v10282_v35  ;;  %v5112_v35 = vmul.f32 %v13696_v42, %v9766_v12 }
 0x769   :  { %13688 = vst [vmem:[#allocation257_spill] sm:$0xff] %v10284_v33  ;;  %v10304_v4 = vpop.f32.mrf.mxu2 }
 0x76a   :  { %13695 = vst [vmem:[#allocation262_spill] sm:$0xff] %v10304_v4  ;;  %v3196_v4 = vmul.f32 %v9919_v27, %v13594_v44  ;;  %v13755_v44 = vld [vmem:[#allocation208_spill] sm:$0xff] }
 0x76c   :  { %5257 = vrot.lane.b32.xlu0 %v5236_v3, %s7451_s28  ;;  %3213 = vrot.lane.b32.xlu1 %v3194_v63, %s7451_s28  ;;  %v4834_v3 = vmul.f32 %v10110_v49, %v13628_v25  ;;  %v5232_v25 = vmul.f32 %v9781_v34, %v13696_v42 }
 0x76d   :  { %3877 = vrot.lane.b32.xlu2 %v13691_v55, %s7445_s21 }
 0x76e   :  { %v10296_v58 = vpop.permute.xlu0 %3633  ;;  %v10300_v33 = vpop.permute.xlu1 %4967 }
 0x76f   :  { %13692 = vst [vmem:[#allocation259_spill] sm:$0xff] %v10296_v58  ;;  %v10298_v7 = vpop.permute.xlu2 %3509 }
 0x770   :  { %13693 = vst [vmem:[#allocation260_spill] sm:$0xff] %v10298_v7  ;;  %v13735_v7 = vld [vmem:[#allocation92_spill] sm:$0xff] }
 0x771   :  { %13694 = vst [vmem:[#allocation261_spill] sm:$0xff] %v10300_v33 }
 0x774   :  { %5377 = vrot.lane.b32.xlu0 %v5356_v24, %s7445_s21  ;;  %4853 = vrot.lane.b32.xlu1 %v4834_v3, %s7451_s28  ;;  %v3482_v24 = vmul.f32 %v10146_v28, %v9414_v11  ;;  %v13706_v11 = vld [vmem:[#allocation73_spill] sm:$0xff] }
 0x775   :  { %5129 = vrot.lane.b32.xlu2 %v5112_v35, %s7450_s16  ;;  %v10328_v35 = vpop.f32.mrf.mxu2 }
 0x776   :  { %v10313_v63 = vpop.permute.xlu0 %3755  ;;  %v10317_v58 = vpop.permute.xlu1 %4973  ;;  %13701 = vst [vmem:[#allocation267_spill] sm:$0xff] %v10328_v35  ;;  %v5117_v35 = vmul.f32 %v9742_v16, %v13706_v11 }
 0x777   :  { %13697 = vst [vmem:[#allocation263_spill] sm:$0xff] %v10313_v63  ;;  %v10315_v33 = vpop.permute.xlu2 %3625  ;;  %v4836_v63 = vmul.f32 %v9938_v21, %v13514_v52  ;;  %v13829_v21 = vld [vmem:[#allocation133_spill] sm:$0xff] }
 0x778   :  { %13698 = vst [vmem:[#allocation264_spill] sm:$0xff] %v10315_v33  ;;  %v10340_v33 = vpop.f32.mrf.mxu1 }
 0x779   :  { %13699 = vst [vmem:[#allocation265_spill] sm:$0xff] %v10317_v58 }
 0x77a   :  { %13705 = vst [vmem:[#allocation271_spill] sm:$0xff] %v10340_v33  ;;  %v4832_v33 = vmul.f32 %v10010_v9, %v13664_v15  ;;  %v3484_v15 = vmul.f32 %v9986_v26, %v13619_v40 }
 0x77c   :  { %3217 = vrot.lane.b32.xlu0 %v3196_v4, %s7451_s28  ;;  %3501 = vrot.lane.b32.xlu1 %v3482_v24, %s7450_s16  ;;  %v5352_v4 = vmul.f32 %v9846_v2, %v13696_v42  ;;  %v3192_v42 = vmul.f32 %v9984_v53, %v13599_v60 }
 0x77d   :  { %5249 = vrot.lane.b32.xlu2 %v5232_v25, %s7451_s28  ;;  %v10351_v24 = vpop.f32.mrf.mxu2 }
 0x77e   :  { %v10332_v3 = vpop.permute.xlu0 %4971  ;;  %v10336_v17 = vpop.permute.xlu1 %4979  ;;  %13708 = vst [vmem:[#allocation273_spill] sm:$0xff] %v10351_v24 }
 0x77f   :  { %13702 = vst [vmem:[#allocation268_spill] sm:$0xff] %v10332_v3  ;;  %v10334_v58 = vpop.permute.xlu2 %3631 }
 0x780   :  { %13703 = vst [vmem:[#allocation269_spill] sm:$0xff] %v10334_v58  ;;  %v5357_v58 = vmul.f32 %v10052_v5, %v9742_v16 }
 0x781   :  { %13704 = vst [vmem:[#allocation270_spill] sm:$0xff] %v10336_v17  ;;  %v5237_v17 = vmul.f32 %v9831_v31, %v9742_v16  ;;  %v13794_v31 = vld [vmem:[#allocation172_spill] sm:$0xff] }
 0x784   :  { %4857 = vrot.lane.b32.xlu0 %v4836_v63, %s7451_s28  ;;  %5139 = vrot.lane.b32.xlu1 %v5117_v35, %s7450_s16  ;;  %v13711_v63 = vld [vmem:[#allocation147_spill] sm:$0xff] }
 0x785   :  { %5369 = vrot.lane.b32.xlu2 %v5352_v4, %s7445_s21  ;;  %v10363_v4 = vpop.f32.mrf.mxu1  ;;  %v10373_v24 = vpop.f32.mrf.mxu2 }
 0x786   :  { %v10349_v25 = vpop.permute.xlu0 %4977  ;;  %v10355_v52 = vpop.permute.xlu1 %5127  ;;  %13712 = vst [vmem:[#allocation147_spill] sm:$0xff] %v10363_v4 }
 0x787   :  { %13707 = vst [vmem:[#allocation272_spill] sm:$0xff] %v10349_v25  ;;  %v10353_v3 = vpop.permute.xlu2 %3637 }
 0x788   :  { %13709 = vst [vmem:[#allocation274_spill] sm:$0xff] %v10353_v3 }
 0x789   :  { %13710 = vst [vmem:[#allocation275_spill] sm:$0xff] %v10355_v52 }
 0x78a   :  { %13716 = vst [vmem:[#allocation279_spill] sm:$0xff] %v10373_v24 }
 0x78c   :  { %4001 = vrot.lane.b32.xlu0 %v13711_v63, %s7451_s28  ;;  %5259 = vrot.lane.b32.xlu1 %v5237_v17, %s7451_s28 }
 0x78d   :  { %3209 = vrot.lane.b32.xlu2 %v3192_v42, %s7451_s28  ;;  %v10385_v17 = vpop.f32.mrf.mxu1  ;;  %v10393_v4 = vpop.f32.mrf.mxu2 }
 0x78e   :  { %v10367_v35 = vpop.permute.xlu0 %3761  ;;  %v10371_v52 = vpop.permute.xlu1 %5247  ;;  %13717 = vst [vmem:[#allocation280_spill] sm:$0xff] %v10385_v17  ;;  %v13726_v17 = vld [vmem:[#allocation184_spill] sm:$0xff] }
 0x78f   :  { %13713 = vst [vmem:[#allocation276_spill] sm:$0xff] %v10367_v35  ;;  %v10369_v25 = vpop.permute.xlu2 %3753 }
 0x790   :  { %13714 = vst [vmem:[#allocation277_spill] sm:$0xff] %v10369_v25  ;;  %v13727_v25 = vld [vmem:[#allocation83_spill] sm:$0xff] }
 0x791   :  { %13715 = vst [vmem:[#allocation278_spill] sm:$0xff] %v10371_v52  ;;  %v3111_v35 = vmul.f32 %v13727_v25, %v13726_v17 }
 0x792   :  { %13720 = vst [vmem:[#allocation283_spill] sm:$0xff] %v10393_v4 }
 0x794   :  { %5609 = vrot.lane.b32.xlu0 %v13711_v63, %s7445_s21  ;;  %5379 = vrot.lane.b32.xlu1 %v5357_v58, %s7445_s21  ;;  %v3742_v63 = vmul.f32 %v10050_v47, %v13638_v8 }
 0x795   :  { %4849 = vrot.lane.b32.xlu2 %v4832_v33, %s7451_s28  ;;  %v13721_v33 = vld [vmem:[#allocation152_spill] sm:$0xff]  ;;  %v10407_v16 = vpop.f32.mrf.mxu1  ;;  %v10412_v3 = vpop.f32.mrf.mxu2 }
 0x796   :  { %v10383_v42 = vpop.permute.xlu0 %3879  ;;  %v10389_v24 = vpop.permute.xlu1 %5367  ;;  %13725 = vst [vmem:[#allocation286_spill] sm:$0xff] %v10407_v16  ;;  %v3239_v16 = vmul.f32 %v9940_v29, %v13726_v17 }
 0x797   :  { %v10387_v52 = vpop.permute.xlu2 %4861  ;;  %13719 = vst [vmem:[#allocation282_spill] sm:$0xff] %v10389_v24 }
 0x798   :  { %13718 = vst [vmem:[#allocation281_spill] sm:$0xff] %v10387_v52 }
 0x799   :  { %13728 = vst [vmem:[#allocation83_spill] sm:$0xff] %v10412_v3 }
 0x79c   :  { %3505 = vrot.lane.b32.xlu0 %v3484_v15, %s7450_s16  ;;  %4003 = vrot.lane.b32.xlu1 %v13721_v33, %s7451_s28  ;;  %v13729_v15 = vld [vmem:[#allocation131_spill] sm:$0xff] }
 0x79d   :  { %3765 = vrot.lane.b32.xlu2 %v3742_v63, %s7445_s21  ;;  %v10426_v25 = vpop.f32.mrf.mxu1 }
 0x79e   :  { %v10401_v58 = vpop.permute.xlu0 %5131  ;;  %v10405_v24 = vpop.permute.xlu1 %3207  ;;  %13733 = vst [vmem:[#allocation290_spill] sm:$0xff] %v10426_v25 }
 0x79f   :  { %13722 = vst [vmem:[#allocation152_spill] sm:$0xff] %v10401_v58  ;;  %v10403_v52 = vpop.permute.xlu2 %4969 }
 0x7a0   :  { %13723 = vst [vmem:[#allocation284_spill] sm:$0xff] %v10403_v52 }
 0x7a1   :  { %13724 = vst [vmem:[#allocation285_spill] sm:$0xff] %v10405_v24 }
 0x7a4   :  { %3127 = vrot.lane.b32.xlu0 %v3111_v35, %s7450_s16  ;;  %5611 = vrot.lane.b32.xlu1 %v13721_v33, %s7445_s21  ;;  %v3480_v35 = vmul.f32 %v10090_v14, %v13644_v50  ;;  %v13741_v50 = vld [vmem:[#allocation194_spill] sm:$0xff] }
 0x7a5   :  { %3883 = vrot.lane.b32.xlu2 %v13729_v15, %s7445_s21  ;;  %v13734_v15 = vld [vmem:[#allocation190_spill] sm:$0xff] }
 0x7a6   :  { %v10418_v63 = vpop.permute.xlu0 %5251  ;;  %v10422_v52 = vpop.permute.xlu1 %4847  ;;  %v3112_v40 = vmul.f32 %v13735_v7, %v13734_v15  ;;  %v3240_v7 = vmul.f32 %v9984_v53, %v13734_v15  ;;  %v13748_v53 = vld [vmem:[#allocation162_spill] sm:$0xff] }
 0x7a7   :  { %13730 = vst [vmem:[#allocation287_spill] sm:$0xff] %v10418_v63  ;;  %v10420_v58 = vpop.permute.xlu2 %4975  ;;  %v10437_v63 = vpop.f32.mrf.mxu2 }
 0x7a8   :  { %13731 = vst [vmem:[#allocation288_spill] sm:$0xff] %v10420_v58  ;;  %v13740_v58 = vld [vmem:[#allocation105_spill] sm:$0xff] }
 0x7a9   :  { %13732 = vst [vmem:[#allocation289_spill] sm:$0xff] %v10422_v52  ;;  %v3367_v25 = vmul.f32 %v13740_v58, %v13726_v17  ;;  %v13747_v17 = vld [vmem:[#allocation182_spill] sm:$0xff] }
 0x7aa   :  { %13737 = vst [vmem:[#allocation291_spill] sm:$0xff] %v10437_v63 }
 0x7ac   :  { %3255 = vrot.lane.b32.xlu0 %v3239_v16, %s7451_s28  ;;  %3129 = vrot.lane.b32.xlu1 %v3112_v40, %s7450_s16  ;;  %v13742_v16 = vld [vmem:[#allocation160_spill] sm:$0xff]  ;;  %v10450_v40 = vpop.f32.mrf.mxu1 }
 0x7ad   :  { %3497 = vrot.lane.b32.xlu2 %v3480_v35, %s7450_s16  ;;  %v5115_v24 = vmul.f32 %v13742_v16, %v13741_v50  ;;  %13743 = vst [vmem:[#allocation105_spill] sm:$0xff] %v10450_v40 }
 0x7ae   :  { %v10435_v33 = vpop.permute.xlu0 %5371  ;;  %v10441_v29 = vpop.permute.xlu1 %3763 }
 0x7af   :  { %13736 = vst [vmem:[#allocation92_spill] sm:$0xff] %v10435_v33  ;;  %v10439_v52 = vpop.permute.xlu2 %4981  ;;  %v10460_v58 = vpop.f32.mrf.mxu2 }
 0x7b0   :  { %13738 = vst [vmem:[#allocation292_spill] sm:$0xff] %v10439_v52 }
 0x7b1   :  { %13739 = vst [vmem:[#allocation293_spill] sm:$0xff] %v10441_v29  ;;  %v5235_v29 = vmul.f32 %v13747_v17, %v13742_v16 }
 0x7b2   :  { %13746 = vst [vmem:[#allocation295_spill] sm:$0xff] %v10460_v58 }
 0x7b4   :  { %3383 = vrot.lane.b32.xlu0 %v3367_v25, %s7445_s21  ;;  %3257 = vrot.lane.b32.xlu1 %v3240_v7, %s7451_s28  ;;  %v13749_v25 = vld [vmem:[#allocation107_spill] sm:$0xff]  ;;  %v10472_v7 = vpop.f32.mrf.mxu1 }
 0x7b5   :  { %5135 = vrot.lane.b32.xlu2 %v5115_v24, %s7450_s16  ;;  %v3368_v40 = vmul.f32 %v13749_v25, %v13734_v15  ;;  %13751 = vst [vmem:[#allocation162_spill] sm:$0xff] %v10472_v7  ;;  %v13760_v15 = vld [vmem:[#allocation229_spill] sm:$0xff] }
 0x7b6   :  { %v10454_v35 = vpop.permute.xlu0 %3211  ;;  %v10458_v33 = vpop.permute.xlu1 %3881 }
 0x7b7   :  { %13744 = vst [vmem:[#allocation194_spill] sm:$0xff] %v10454_v35  ;;  %v10456_v52 = vpop.permute.xlu2 %3093  ;;  %v10478_v60 = vpop.f32.mrf.mxu2 }
 0x7b8   :  { %13745 = vst [vmem:[#allocation294_spill] sm:$0xff] %v10456_v52  ;;  %v5355_v52 = vmul.f32 %v13755_v44, %v13742_v16  ;;  %v13759_v16 = vld [vmem:[#allocation15_spill] sm:$0xff] }
 0x7b9   :  { %13754 = vst [vmem:[#allocation297_spill] sm:$0xff] %v10478_v60 }
 0x7bc   :  { %4007 = vrot.lane.b32.xlu0 %v13748_v53, %s7451_s28  ;;  %3385 = vrot.lane.b32.xlu1 %v3368_v40, %s7445_s21  ;;  %v10493_v7 = vpop.f32.mrf.mxu1 }
 0x7bd   :  { %5255 = vrot.lane.b32.xlu2 %v5235_v29, %s7451_s28  ;;  %v13756_v29 = vld [vmem:[#allocation168_spill] sm:$0xff]  ;;  %13758 = vst [vmem:[#allocation298_spill] sm:$0xff] %v10493_v7 }
 0x7be   :  { %v10470_v24 = vpop.permute.xlu0 %4851  ;;  %v10476_v8 = vpop.permute.xlu1 %3495 }
 0x7bf   :  { %13750 = vst [vmem:[#allocation182_spill] sm:$0xff] %v10470_v24  ;;  %v10474_v35 = vpop.permute.xlu2 %3759 }
 0x7c0   :  { %13752 = vst [vmem:[#allocation107_spill] sm:$0xff] %v10474_v35  ;;  %v3527_v35 = vmul.f32 %v10070_v30, %v10493_v7  ;;  %v13764_v30 = vld [vmem:[#allocation125_spill] sm:$0xff] }
 0x7c1   :  { %13753 = vst [vmem:[#allocation296_spill] sm:$0xff] %v10476_v8  ;;  %v3195_v8 = vmul.f32 %v13760_v15, %v13759_v16  ;;  %v3655_v43 = vmul.f32 %v13764_v30, %v10493_v7  ;;  %v13775_v16 = vld [vmem:[#allocation197_spill] sm:$0xff] }
 0x7c4   :  { %5615 = vrot.lane.b32.xlu0 %v13748_v53, %s7445_s21  ;;  %4009 = vrot.lane.b32.xlu1 %v13756_v29, %s7451_s28  ;;  %v10513_v5 = vpop.f32.mrf.mxu1 }
 0x7c5   :  { %5375 = vrot.lane.b32.xlu2 %v5355_v52, %s7445_s21  ;;  %v10500_v52 = vpop.f32.mrf.mxu2  ;;  %13765 = vst [vmem:[#allocation125_spill] sm:$0xff] %v10513_v5 }
 0x7c6   :  { %v10487_v40 = vpop.permute.xlu0 %3885  ;;  %v10491_v24 = vpop.permute.xlu1 %5133 }
 0x7c7   :  { %v10489_v25 = vpop.permute.xlu2 %3877  ;;  %13757 = vst [vmem:[#allocation168_spill] sm:$0xff] %v10491_v24 }
 0x7cc   :  { %3543 = vrot.lane.b32.xlu0 %v3527_v35, %s7450_s16  ;;  %5617 = vrot.lane.b32.xlu1 %v13756_v29, %s7445_s21  ;;  %v4835_v35 = vmul.f32 %v10130_v54, %v13532_v32 }
 0x7cd   :  { %3215 = vrot.lane.b32.xlu2 %v3195_v8, %s7451_s28  ;;  %v3528_v8 = vmul.f32 %v10090_v14, %v10513_v5  ;;  %v13770_v14 = vld [vmem:[#allocation48_spill] sm:$0xff] }
 0x7ce   :  { %v10505_v53 = vpop.permute.xlu0 %3499  ;;  %v10509_v6 = vpop.permute.xlu1 %5253 }
 0x7cf   :  { %13761 = vst [vmem:[#allocation229_spill] sm:$0xff] %v10505_v53  ;;  %v10507_v24 = vpop.permute.xlu2 %5129  ;;  %v13769_v53 = vld [vmem:[#allocation140_spill] sm:$0xff] }
 0x7d0   :  { %13762 = vst [vmem:[#allocation299_spill] sm:$0xff] %v10507_v24  ;;  %v3783_v32 = vmul.f32 %v13769_v53, %v10493_v7  ;;  %v13776_v53 = vld [vmem:[#allocation87_spill] sm:$0xff] }
 0x7d1   :  { %13763 = vst [vmem:[#allocation300_spill] sm:$0xff] %v10509_v6  ;;  %v10524_v6 = vpop.f32.mrf.mxu2  ;;  %v3114_v7 = vmul.f32 %v13776_v53, %v13775_v16 }
 0x7d4   :  { %3671 = vrot.lane.b32.xlu0 %v3655_v43, %s7451_s28  ;;  %3545 = vrot.lane.b32.xlu1 %v3528_v8, %s7450_s16  ;;  %v3656_v43 = vmul.f32 %v13770_v14, %v10513_v5 }
 0x7d5   :  { %4855 = vrot.lane.b32.xlu2 %v4835_v35, %s7451_s28  ;;  %v13771_v35 = vld [vmem:[#allocation142_spill] sm:$0xff] }
 0x7d6   :  { %v10522_v29 = vpop.permute.xlu0 %5137  ;;  %v10528_v30 = vpop.permute.xlu1 %5373 }
 0x7d7   :  { %13766 = vst [vmem:[#allocation301_spill] sm:$0xff] %v10522_v29  ;;  %v10526_v24 = vpop.permute.xlu2 %5249 }
 0x7d8   :  { %13767 = vst [vmem:[#allocation302_spill] sm:$0xff] %v10526_v24 }
 0x7d9   :  { %13768 = vst [vmem:[#allocation303_spill] sm:$0xff] %v10528_v30  ;;  %v10544_v30 = vpop.f32.mrf.mxu2 }
 0x7dc   :  { %3799 = vrot.lane.b32.xlu0 %v3783_v32, %s7445_s21  ;;  %3673 = vrot.lane.b32.xlu1 %v3656_v43, %s7451_s28  ;;  %v3784_v32 = vmul.f32 %v13658_v10, %v10513_v5  ;;  %v13780_v10 = vld [vmem:[#allocation100_spill] sm:$0xff]  ;;  %v13785_v5 = vld [vmem:[#allocation69_spill] sm:$0xff] }
 0x7dd   :  { %3999 = vrot.lane.b32.xlu2 %v13771_v35, %s7451_s28 }
 0x7de   :  { %v10538_v8 = vpop.permute.xlu0 %5257  ;;  %v10542_v24 = vpop.permute.xlu1 %3213 }
 0x7df   :  { %13772 = vst [vmem:[#allocation140_spill] sm:$0xff] %v10538_v8  ;;  %v10540_v29 = vpop.permute.xlu2 %5369 }
 0x7e0   :  { %13773 = vst [vmem:[#allocation48_spill] sm:$0xff] %v10540_v29  ;;  %v3242_v29 = vmul.f32 %v10092_v23, %v13775_v16  ;;  %v13784_v23 = vld [vmem:[#allocation110_spill] sm:$0xff] }
 0x7e1   :  { %13774 = vst [vmem:[#allocation142_spill] sm:$0xff] %v10542_v24  ;;  %v10562_v53 = vpop.f32.mrf.mxu2 }
 0x7e2   :  { %v5559_v24 = vmul.f32 %v10562_v53, %v13780_v10  ;;  %v3895_v10 = vmul.f32 %v10180_v45, %v13787_v39 }
 0x7e4   :  { %3133 = vrot.lane.b32.xlu0 %v3114_v7, %s7450_s16  ;;  %3801 = vrot.lane.b32.xlu1 %v3784_v32, %s7445_s21  ;;  %v3483_v7 = vmul.f32 %v10163_v13, %v13648_v22  ;;  %v13786_v22 = vld [vmem:[#allocation178_spill] sm:$0xff] }
 0x7e5   :  { %5607 = vrot.lane.b32.xlu2 %v13771_v35, %s7445_s21 }
 0x7e6   :  { %v10554_v14 = vpop.permute.xlu0 %5377  ;;  %v10558_v8 = vpop.permute.xlu1 %4853 }
 0x7e7   :  { %13777 = vst [vmem:[#allocation87_spill] sm:$0xff] %v10554_v14  ;;  %v10556_v43 = vpop.permute.xlu2 %3209 }
 0x7e8   :  { %13778 = vst [vmem:[#allocation304_spill] sm:$0xff] %v10556_v43  ;;  %v5118_v43 = vmul.f32 %v13786_v22, %v13785_v5  ;;  %v13810_v5 = vld [vmem:[#allocation195_spill] sm:$0xff] }
 0x7e9   :  { %13779 = vst [vmem:[#allocation305_spill] sm:$0xff] %v10558_v8  ;;  %v3370_v8 = vmul.f32 %v13784_v23, %v13775_v16  ;;  %v13791_v23 = vld [vmem:[#allocation187_spill] sm:$0xff]  ;;  %v13792_v16 = vld [vmem:[#allocation201_spill] sm:$0xff] }
 0x7ec   :  { %3261 = vrot.lane.b32.xlu0 %v3242_v29, %s7451_s28  ;;  %5575 = vrot.lane.b32.xlu1 %v5559_v24, %s7450_s16 }
 0x7ed   :  { %3503 = vrot.lane.b32.xlu2 %v3483_v7, %s7450_s16 }
 0x7ee   :  { %v10571_v35 = vpop.permute.xlu0 %3217  ;;  %v10575_v14 = vpop.permute.xlu1 %3501 }
 0x7ef   :  { %13781 = vst [vmem:[#allocation306_spill] sm:$0xff] %v10571_v35  ;;  %v10573_v32 = vpop.permute.xlu2 %4849 }
 0x7f0   :  { %13782 = vst [vmem:[#allocation307_spill] sm:$0xff] %v10573_v32  ;;  %v5238_v32 = vmul.f32 %v13791_v23, %v13786_v22 }
 0x7f1   :  { %13783 = vst [vmem:[#allocation308_spill] sm:$0xff] %v10575_v14  ;;  %v13793_v14 = vld [vmem:[#allocation98_spill] sm:$0xff] }
 0x7f2   :  { %v3115_v35 = vmul.f32 %v13793_v14, %v13792_v16  ;;  %v3243_v14 = vmul.f32 %v13760_v15, %v13792_v16  ;;  %v13802_v15 = vld [vmem:[#allocation158_spill] sm:$0xff] }
 0x7f4   :  { %3389 = vrot.lane.b32.xlu0 %v3370_v8, %s7445_s21  ;;  %3911 = vrot.lane.b32.xlu1 %v3895_v10, %s7450_s16 }
 0x7f5   :  { %5141 = vrot.lane.b32.xlu2 %v5118_v43, %s7450_s16 }
 0x7f6   :  { %v10586_v24 = vpop.permute.xlu0 %4857  ;;  %v10590_v7 = vpop.permute.xlu1 %5139 }
 0x7f7   :  { %13788 = vst [vmem:[#allocation110_spill] sm:$0xff] %v10586_v24  ;;  %v10588_v29 = vpop.permute.xlu2 %3765  ;;  %v3943_v24 = vmul.f32 %v10180_v45, %v10393_v4  ;;  %v13800_v45 = vld [vmem:[#allocation111_spill] sm:$0xff] }
 0x7f8   :  { %13789 = vst [vmem:[#allocation309_spill] sm:$0xff] %v10588_v29 }
 0x7f9   :  { %13790 = vst [vmem:[#allocation310_spill] sm:$0xff] %v10590_v7  ;;  %v13796_v7 = vld [vmem:[#allocation224_spill] sm:$0xff] }
 0x7fa   :  { %v5358_v29 = vmul.f32 %v13796_v7, %v13786_v22  ;;  %v3371_v22 = vmul.f32 %v13800_v45, %v13792_v16  ;;  %v13801_v7 = vld [vmem:[#allocation177_spill] sm:$0xff]  ;;  %v13809_v16 = vld [vmem:[#allocation130_spill] sm:$0xff] }
 0x7fc   :  { %5619 = vrot.lane.b32.xlu0 %v13794_v31, %s7445_s21  ;;  %3135 = vrot.lane.b32.xlu1 %v3115_v35, %s7450_s16 }
 0x7fd   :  { %5261 = vrot.lane.b32.xlu2 %v5238_v32, %s7451_s28  ;;  %v10617_v32 = vpop.f32.mrf.mxu1 }
 0x7fe   :  { %v10600_v8 = vpop.permute.xlu0 %4001  ;;  %v10604_v10 = vpop.permute.xlu1 %5259 }
 0x7ff   :  { %v10602_v43 = vpop.permute.xlu2 %3883  ;;  %13795 = vst [vmem:[#allocation98_spill] sm:$0xff] %v10604_v10 }
 0x804   :  { %3959 = vrot.lane.b32.xlu0 %v3943_v24, %s7450_s16  ;;  %3263 = vrot.lane.b32.xlu1 %v3243_v14, %s7451_s28 }
 0x805   :  { %5381 = vrot.lane.b32.xlu2 %v5358_v29, %s7445_s21 }
 0x806   :  { %v10615_v35 = vpop.permute.xlu0 %5609  ;;  %v10621_v23 = vpop.permute.xlu1 %5379 }
 0x807   :  { %13797 = vst [vmem:[#allocation172_spill] sm:$0xff] %v10615_v35  ;;  %v10619_v10 = vpop.permute.xlu2 %3497 }
 0x808   :  { %13798 = vst [vmem:[#allocation311_spill] sm:$0xff] %v10619_v10  ;;  %v10636_v10 = vpop.f32.mrf.mxu1 }
 0x809   :  { %13799 = vst [vmem:[#allocation312_spill] sm:$0xff] %v10621_v23  ;;  %v3530_v23 = vmul.f32 %v10146_v28, %v10636_v10  ;;  %v3113_v28 = vmul.f32 %v13811_v56, %v13810_v5  ;;  %v3241_v56 = vmul.f32 %v9848_v61, %v13810_v5 }
 0x80a   :  { %13805 = vst [vmem:[#allocation158_spill] sm:$0xff] %v10636_v10 }
 0x80c   :  { %4013 = vrot.lane.b32.xlu0 %v13801_v7, %s7451_s28  ;;  %3391 = vrot.lane.b32.xlu1 %v3371_v22, %s7445_s21 }
 0x80d   :  { %4005 = vrot.lane.b32.xlu2 %v13802_v15, %s7451_s28 }
 0x80e   :  { %v10630_v24 = vpop.permute.xlu0 %3505  ;;  %v10634_v14 = vpop.permute.xlu1 %4003 }
 0x80f   :  { %13803 = vst [vmem:[#allocation111_spill] sm:$0xff] %v10630_v24  ;;  %v10632_v29 = vpop.permute.xlu2 %5135  ;;  %v3658_v24 = vmul.f32 %v13809_v16, %v10636_v10  ;;  %v13815_v16 = vld [vmem:[#allocation145_spill] sm:$0xff] }
 0x810   :  { %13804 = vst [vmem:[#allocation177_spill] sm:$0xff] %v10632_v29  ;;  %v10684_v61 = vpop.f32.mrf.mxu1 }
 0x814   :  { %3549 = vrot.lane.b32.xlu0 %v3530_v23, %s7450_s16  ;;  %5621 = vrot.lane.b32.xlu1 %v13801_v7, %s7445_s21  ;;  %v3944_v23 = vmul.f32 %v10197_v48, %v10412_v3 }
 0x815   :  { %5613 = vrot.lane.b32.xlu2 %v13802_v15, %s7445_s21 }
 0x816   :  { %v10645_v22 = vpop.permute.xlu0 %3127  ;;  %v10649_v29 = vpop.permute.xlu1 %5611 }
 0x817   :  { %13806 = vst [vmem:[#allocation313_spill] sm:$0xff] %v10645_v22  ;;  %v10647_v45 = vpop.permute.xlu2 %5255  ;;  %v3786_v22 = vmul.f32 %v13815_v16, %v10636_v10  ;;  %v13822_v16 = vld [vmem:[#allocation108_spill] sm:$0xff] }
 0x818   :  { %13807 = vst [vmem:[#allocation314_spill] sm:$0xff] %v10647_v45  ;;  %v3369_v10 = vmul.f32 %v13822_v16, %v13810_v5 }
 0x819   :  { %13808 = vst [vmem:[#allocation315_spill] sm:$0xff] %v10649_v29  ;;  %v3659_v29 = vmul.f32 %v13829_v21, %v10684_v61  ;;  %v3787_v21 = vmul.f32 %v9891_v41, %v10684_v61 }
 0x81c   :  { %3677 = vrot.lane.b32.xlu0 %v3658_v24, %s7451_s28  ;;  %3961 = vrot.lane.b32.xlu1 %v3944_v23, %s7450_s16  ;;  %v13816_v24 = vld [vmem:[#allocation181_spill] sm:$0xff] }
 0x81d   :  { %3131 = vrot.lane.b32.xlu2 %v3113_v28, %s7450_s16 }
 0x81e   :  { %v10660_v7 = vpop.permute.xlu0 %3255  ;;  %v10664_v45 = vpop.permute.xlu1 %3129 }
 0x81f   :  { %13812 = vst [vmem:[#allocation130_spill] sm:$0xff] %v10660_v7  ;;  %v10662_v15 = vpop.permute.xlu2 %5375  ;;  %v13820_v7 = vld [vmem:[#allocation127_spill] sm:$0xff] }
 0x820   :  { %13813 = vst [vmem:[#allocation195_spill] sm:$0xff] %v10662_v15 }
 0x821   :  { %13814 = vst [vmem:[#allocation97_spill] sm:$0xff] %v10664_v45  ;;  %v13821_v45 = vld [vmem:[#allocation219_spill] sm:$0xff] }
 0x822   :  { %v3897_v11 = vmul.f32 %v13821_v45, %v13820_v7  ;;  %13823 = vst [vmem:[#allocation219_spill] sm:$0xff] %v10684_v61 }
 0x824   :  { %3805 = vrot.lane.b32.xlu0 %v3786_v22, %s7445_s21  ;;  %5727 = vrot.lane.b32.xlu1 %v13816_v24, %s7451_s28  ;;  %v3531_v22 = vmul.f32 %v10163_v13, %v10684_v61  ;;  %v13839_v61 = vld [vmem:[#allocation65_spill] sm:$0xff] }
 0x825   :  { %3259 = vrot.lane.b32.xlu2 %v3241_v56, %s7451_s28 }
 0x826   :  { %v10674_v28 = vpop.permute.xlu0 %3383  ;;  %v10678_v15 = vpop.permute.xlu1 %3257 }
 0x827   :  { %13817 = vst [vmem:[#allocation145_spill] sm:$0xff] %v10674_v28  ;;  %v10676_v23 = vpop.permute.xlu2 %3215 }
 0x828   :  { %13818 = vst [vmem:[#allocation181_spill] sm:$0xff] %v10676_v23 }
 0x829   :  { %13819 = vst [vmem:[#allocation316_spill] sm:$0xff] %v10678_v15  ;;  %v13827_v15 = vld [vmem:[#allocation211_spill] sm:$0xff] }
 0x82a   :  { %v3117_v16 = vmul.f32 %v13828_v59, %v13827_v15  ;;  %v3529_v59 = vmul.f32 %v9893_v57, %v10617_v32 }
 0x82c   :  { %3915 = vrot.lane.b32.xlu0 %v3897_v11, %s7450_s16  ;;  %3551 = vrot.lane.b32.xlu1 %v3531_v22, %s7450_s16  ;;  %v13832_v22 = vld [vmem:[#allocation99_spill] sm:$0xff] }
 0x82d   :  { %3387 = vrot.lane.b32.xlu2 %v3369_v10, %s7445_s21 }
 0x82e   :  { %v10691_v56 = vpop.permute.xlu0 %4007  ;;  %v10695_v28 = vpop.permute.xlu1 %3385 }
 0x82f   :  { %13824 = vst [vmem:[#allocation108_spill] sm:$0xff] %v10691_v56  ;;  %v10693_v23 = vpop.permute.xlu2 %4855 }
 0x830   :  { %13825 = vst [vmem:[#allocation317_spill] sm:$0xff] %v10693_v23  ;;  %v3245_v23 = vmul.f32 %v13832_v22, %v13827_v15  ;;  %v13837_v22 = vld [vmem:[#allocation114_spill] sm:$0xff] }
 0x831   :  { %13826 = vst [vmem:[#allocation318_spill] sm:$0xff] %v10695_v28  ;;  %v3373_v57 = vmul.f32 %v13837_v22, %v13827_v15  ;;  %v13843_v22 = vld [vmem:[#allocation129_spill] sm:$0xff] }
 0x834   :  { %3139 = vrot.lane.b32.xlu0 %v3117_v16, %s7450_s16  ;;  %3679 = vrot.lane.b32.xlu1 %v3659_v29, %s7451_s28 }
 0x835   :  { %4011 = vrot.lane.b32.xlu2 %v13794_v31, %s7451_s28  ;;  %v10718_v31 = vpop.f32.mrf.mxu2 }
 0x836   :  { %v10705_v11 = vpop.permute.xlu0 %5615  ;;  %v10709_v10 = vpop.permute.xlu1 %4009  ;;  %13833 = vst [vmem:[#allocation133_spill] sm:$0xff] %v10718_v31 }
 0x837   :  { %13830 = vst [vmem:[#allocation211_spill] sm:$0xff] %v10705_v11  ;;  %v10707_v13 = vpop.permute.xlu2 %3999  ;;  %v13838_v11 = vld [vmem:[#allocation118_spill] sm:$0xff] }
 0x838   :  { %13831 = vst [vmem:[#allocation93_spill] sm:$0xff] %v10709_v10  ;;  %v3657_v41 = vmul.f32 %v13838_v11, %v10617_v32  ;;  %v3785_v11 = vmul.f32 %v13843_v22, %v10617_v32  ;;  %v13844_v10 = vld [vmem:[#allocation214_spill] sm:$0xff] }
 0x839   :  { %v3118_v56 = vmul.f32 %v9873_v46, %v13844_v10 }
 0x83c   :  { %3267 = vrot.lane.b32.xlu0 %v3245_v23, %s7451_s28  ;;  %3807 = vrot.lane.b32.xlu1 %v3787_v21, %s7445_s21  ;;  %v3898_v23 = vmul.f32 %v10489_v25, %v13839_v61  ;;  %v13851_v61 = vld [vmem:[#allocation103_spill] sm:$0xff] }
 0x83d   :  { %3547 = vrot.lane.b32.xlu2 %v3529_v59, %s7450_s16  ;;  %v10739_v21 = vpop.f32.mrf.mxu2  ;;  %v3246_v44 = vmul.f32 %v13851_v61, %v13844_v10  ;;  %v13856_v61 = vld [vmem:[#allocation117_spill] sm:$0xff] }
 0x83e   :  { %v10722_v29 = vpop.permute.xlu0 %3543  ;;  %v10726_v28 = vpop.permute.xlu1 %5617 }
 0x83f   :  { %13834 = vst [vmem:[#allocation99_spill] sm:$0xff] %v10722_v29  ;;  %v10724_v16 = vpop.permute.xlu2 %5607 }
 0x840   :  { %13835 = vst [vmem:[#allocation319_spill] sm:$0xff] %v10724_v16 }
 0x841   :  { %13836 = vst [vmem:[#allocation320_spill] sm:$0xff] %v10726_v28 }
 0x844   :  { %3395 = vrot.lane.b32.xlu0 %v3373_v57, %s7445_s21  ;;  %3917 = vrot.lane.b32.xlu1 %v3898_v23, %s7450_s16  ;;  %v13845_v57 = vld [vmem:[#allocation185_spill] sm:$0xff] }
 0x845   :  { %3675 = vrot.lane.b32.xlu2 %v3657_v41, %s7451_s28 }
 0x846   :  { %v10737_v59 = vpop.permute.xlu0 %3671  ;;  %v10743_v28 = vpop.permute.xlu1 %3545 }
 0x847   :  { %13840 = vst [vmem:[#allocation114_spill] sm:$0xff] %v10737_v59  ;;  %v10741_v29 = vpop.permute.xlu2 %3503  ;;  %v10759_v59 = vpop.f32.mrf.mxu2 }
 0x848   :  { %13841 = vst [vmem:[#allocation118_spill] sm:$0xff] %v10741_v29  ;;  %v5562_v22 = vmul.f32 %v10759_v59, %v13691_v55  ;;  %v3946_v55 = vmul.f32 %v10489_v25, %v10460_v58  ;;  %v13860_v25 = vld [vmem:[#allocation206_spill] sm:$0xff]  ;;  %v13880_v58 = vld [vmem:[#allocation41_spill] sm:$0xff] }
 0x849   :  { %13842 = vst [vmem:[#allocation321_spill] sm:$0xff] %v10743_v28  ;;  %v13850_v28 = vld [vmem:[#allocation106_spill] sm:$0xff] }
 0x84a   :  { %13849 = vst [vmem:[#allocation323_spill] sm:$0xff] %v10759_v59  ;;  %v5560_v46 = vmul.f32 %v10718_v31, %v13850_v28 }
 0x84c   :  { %4129 = vrot.lane.b32.xlu0 %v13845_v57, %s7450_s16  ;;  %3141 = vrot.lane.b32.xlu1 %v3118_v56, %s7450_s16 }
 0x84d   :  { %3803 = vrot.lane.b32.xlu2 %v3785_v11, %s7445_s21 }
 0x84e   :  { %v10753_v41 = vpop.permute.xlu0 %3799  ;;  %v10757_v29 = vpop.permute.xlu1 %3673 }
 0x84f   :  { %13846 = vst [vmem:[#allocation129_spill] sm:$0xff] %v10753_v41  ;;  %v10755_v23 = vpop.permute.xlu2 %5141  ;;  %v13855_v41 = vld [vmem:[#allocation120_spill] sm:$0xff] }
 0x850   :  { %13847 = vst [vmem:[#allocation185_spill] sm:$0xff] %v10755_v23  ;;  %v3896_v28 = vmul.f32 %v10197_v48, %v13855_v41 }
 0x851   :  { %13848 = vst [vmem:[#allocation322_spill] sm:$0xff] %v10757_v29  ;;  %v3374_v29 = vmul.f32 %v13856_v61, %v13844_v10 }
 0x854   :  { %5581 = vrot.lane.b32.xlu0 %v5562_v22, %s7450_s16  ;;  %3269 = vrot.lane.b32.xlu1 %v3246_v44, %s7451_s28  ;;  %v10783_v22 = vpop.f32.mrf.mxu1 }
 0x855   :  { %5577 = vrot.lane.b32.xlu2 %v5560_v46, %s7450_s16 }
 0x856   :  { %v10770_v56 = vpop.permute.xlu0 %3133  ;;  %v10774_v23 = vpop.permute.xlu1 %3801 }
 0x857   :  { %13852 = vst [vmem:[#allocation103_spill] sm:$0xff] %v10770_v56  ;;  %v10772_v11 = vpop.permute.xlu2 %5261  ;;  %v13861_v56 = vld [vmem:[#allocation104_spill] sm:$0xff] }
 0x858   :  { %13853 = vst [vmem:[#allocation324_spill] sm:$0xff] %v10772_v11  ;;  %v3116_v48 = vmul.f32 %v13861_v56, %v13860_v25  ;;  %v3244_v56 = vmul.f32 %v9919_v27, %v13860_v25  ;;  %v13871_v27 = vld [vmem:[#allocation112_spill] sm:$0xff] }
 0x859   :  { %13854 = vst [vmem:[#allocation325_spill] sm:$0xff] %v10774_v23  ;;  %v13862_v23 = vld [vmem:[#allocation191_spill] sm:$0xff]  ;;  %v3372_v10 = vmul.f32 %v13871_v27, %v13860_v25  ;;  %v13879_v25 = vld [vmem:[#allocation10_spill] sm:$0xff] }
 0x85c   :  { %3965 = vrot.lane.b32.xlu0 %v3946_v55, %s7450_s16  ;;  %3397 = vrot.lane.b32.xlu1 %v3374_v29, %s7445_s21 }
 0x85d   :  { %3913 = vrot.lane.b32.xlu2 %v3896_v28, %s7450_s16  ;;  %v10802_v28 = vpop.f32.mrf.mxu1 }
 0x85e   :  { %v10787_v44 = vpop.permute.xlu0 %3261  ;;  %v10791_v11 = vpop.permute.xlu1 %5575 }
 0x85f   :  { %13857 = vst [vmem:[#allocation117_spill] sm:$0xff] %v10787_v44  ;;  %v10789_v46 = vpop.permute.xlu2 %5381 }
 0x860   :  { %13858 = vst [vmem:[#allocation326_spill] sm:$0xff] %v10789_v46  ;;  %v13866_v46 = vld [vmem:[#allocation119_spill] sm:$0xff] }
 0x861   :  { %13859 = vst [vmem:[#allocation327_spill] sm:$0xff] %v10791_v11  ;;  %v3533_v44 = vmul.f32 %v13866_v46, %v10802_v28  ;;  %v13870_v46 = vld [vmem:[#allocation136_spill] sm:$0xff] }
 0x862   :  { %v3661_v11 = vmul.f32 %v13870_v46, %v10802_v28  ;;  %v3789_v46 = vmul.f32 %v10032_v51, %v10802_v28 }
 0x864   :  { %5731 = vrot.lane.b32.xlu0 %v13862_v23, %s7451_s28  ;;  %4131 = vrot.lane.b32.xlu1 %v13862_v23, %s7450_s16 }
 0x865   :  { %3137 = vrot.lane.b32.xlu2 %v3116_v48, %s7450_s16  ;;  %v3947_v48 = vmul.f32 %v10383_v42, %v10478_v60  ;;  %v10835_v60 = vpop.f32.mrf.mxu1 }
 0x866   :  { %v10800_v55 = vpop.permute.xlu0 %3389  ;;  %v10806_v61 = vpop.permute.xlu1 %3911 }
 0x867   :  { %13863 = vst [vmem:[#allocation104_spill] sm:$0xff] %v10800_v55  ;;  %v10804_v29 = vpop.permute.xlu2 %4005 }
 0x868   :  { %13864 = vst [vmem:[#allocation191_spill] sm:$0xff] %v10804_v29 }
 0x869   :  { %13865 = vst [vmem:[#allocation328_spill] sm:$0xff] %v10806_v61 }
 0x86c   :  { %3555 = vrot.lane.b32.xlu0 %v3533_v44, %s7450_s16  ;;  %3967 = vrot.lane.b32.xlu1 %v3947_v48, %s7450_s16  ;;  %v13872_v44 = vld [vmem:[#allocation193_spill] sm:$0xff] }
 0x86d   :  { %3265 = vrot.lane.b32.xlu2 %v3244_v56, %s7451_s28  ;;  %13875 = vst [vmem:[#allocation193_spill] sm:$0xff] %v10835_v60 }
 0x86e   :  { %v10817_v23 = vpop.permute.xlu0 %5619  ;;  %v10821_v61 = vpop.permute.xlu1 %3135 }
 0x86f   :  { %13867 = vst [vmem:[#allocation119_spill] sm:$0xff] %v10817_v23  ;;  %v10819_v55 = vpop.permute.xlu2 %5613 }
 0x870   :  { %13868 = vst [vmem:[#allocation329_spill] sm:$0xff] %v10819_v55  ;;  %v13881_v55 = vld [vmem:[#allocation163_spill] sm:$0xff] }
 0x871   :  { %13869 = vst [vmem:[#allocation330_spill] sm:$0xff] %v10821_v61  ;;  %v13876_v61 = vld [vmem:[#allocation123_spill] sm:$0xff] }
 0x872   :  { %v3534_v27 = vmul.f32 %v13876_v61, %v10835_v60  ;;  %v3025_v61 = vmul.f32 %v13810_v5, %v13880_v58  ;;  %v13885_v5 = vld [vmem:[#allocation76_spill] sm:$0xff] }
 0x874   :  { %3683 = vrot.lane.b32.xlu0 %v3661_v11, %s7451_s28  ;;  %5733 = vrot.lane.b32.xlu1 %v13872_v44, %s7451_s28  ;;  %v10847_v11 = vpop.f32.mrf.mxu0 }
 0x875   :  { %3393 = vrot.lane.b32.xlu2 %v3372_v10, %s7445_s21  ;;  %v4759_v51 = vmul.f32 %v10847_v11, %v13879_v25 }
 0x876   :  { %v10831_v56 = vpop.permute.xlu0 %3959  ;;  %v10833_v23 = vpop.permute.xlu1 %3263 }
 0x877   :  { %13873 = vst [vmem:[#allocation136_spill] sm:$0xff] %v10831_v56  ;;  %v3132_v48 = vpop.permute.xlu2 %3131 }
 0x878   :  { %13874 = vst [vmem:[#allocation112_spill] sm:$0xff] %v10833_v23  ;;  %v3153_v59 = vadd.f32 %v3132_v48, %v3025_v61  ;;  %v4879_v48 = vmul.f32 %v9968_v37, %v10847_v11 }
 0x87c   :  { %3811 = vrot.lane.b32.xlu0 %v3789_v46, %s7445_s21  ;;  %3557 = vrot.lane.b32.xlu1 %v3534_v27, %s7450_s16  ;;  %v5561_v46 = vmul.f32 %v10739_v21, %v13881_v55  ;;  %v3433_v55 = vmul.f32 %v10617_v32, %v13885_v5  ;;  %v10885_v37 = vpop.f32.mrf.mxu0 }
 0x87d   :  { %4127 = vrot.lane.b32.xlu2 %v13816_v24, %s7450_s16  ;;  %v13882_v24 = vld [vmem:[#allocation55_spill] sm:$0xff] }
 0x87e   :  { %v10845_v10 = vpop.permute.xlu0 %4013  ;;  %v10849_v56 = vpop.permute.xlu1 %3391  ;;  %v3662_v27 = vmul.f32 %v13882_v24, %v10835_v60 }
 0x87f   :  { %13877 = vst [vmem:[#allocation123_spill] sm:$0xff] %v10845_v10  ;;  %v3260_v23 = vpop.permute.xlu2 %3259 }
 0x880   :  { %13878 = vst [vmem:[#allocation331_spill] sm:$0xff] %v10849_v56  ;;  %v3281_v10 = vadd.f32 %v3260_v23, %v3153_v59  ;;  %v3790_v59 = vmul.f32 %v10050_v47, %v10835_v60 }
 0x884   :  { %4775 = vrot.lane.b32.xlu0 %v4759_v51, %s7450_s16  ;;  %3685 = vrot.lane.b32.xlu1 %v3662_v27, %s7451_s28  ;;  %v3945_v51 = vmul.f32 %v13821_v45, %v10437_v63 }
 0x885   :  { %5579 = vrot.lane.b32.xlu2 %v5561_v46, %s7450_s16 }
 0x886   :  { %v10862_v56 = vpop.permute.xlu0 %3549  ;;  %v10864_v29 = vpop.permute.xlu1 %5621 }
 0x887   :  { %13883 = vst [vmem:[#allocation10_spill] sm:$0xff] %v10862_v56  ;;  %v3388_v25 = vpop.permute.xlu2 %3387 }
 0x888   :  { %v3409_v41 = vadd.f32 %v3388_v25, %v3281_v10  ;;  %13884 = vst [vmem:[#allocation55_spill] sm:$0xff] %v10864_v29  ;;  %v13894_v25 = vld [vmem:[#allocation146_spill] sm:$0xff]  ;;  %v13912_v29 = vld [vmem:[#allocation68_spill] sm:$0xff] }
 0x889   :  { %v3437_v5 = vmul.f32 %v10802_v28, %v13912_v29 }
 0x88a   :  { %v10870_v61 = vadd.f32 %v3433_v55, %v3409_v41  ;;  %v13889_v41 = vld [vmem:[#allocation157_spill] sm:$0xff] }
 0x88b   :  { %v4999_v45 = vmul.f32 %v13889_v41, %v10847_v11  ;;  %v13890_v55 = vld [vmem:[#allocation57_spill] sm:$0xff] }
 0x88c   :  { %13886 = vst [vmem:[#allocation332_spill] sm:$0xff] %v10870_v61  ;;  %4895 = vrot.lane.b32.xlu0 %v4879_v48, %s7451_s28  ;;  %3813 = vrot.lane.b32.xlu1 %v3790_v59, %s7445_s21  ;;  %v4760_v47 = vmul.f32 %v10885_v37, %v13890_v55  ;;  %v3900_v48 = vmul.f32 %v10458_v33, %v13894_v25  ;;  %v13898_v55 = vld [vmem:[#allocation124_spill] sm:$0xff]  ;;  %v13908_v61 = vld [vmem:[#allocation186_spill] sm:$0xff] }
 0x88d   :  { %3963 = vrot.lane.b32.xlu2 %v3945_v51, %s7450_s16  ;;  %v3532_v51 = vmul.f32 %v9986_v26, %v10783_v22  ;;  %v4880_v59 = vmul.f32 %v10010_v9, %v10885_v37  ;;  %v5000_v26 = vmul.f32 %v9660_v19, %v10885_v37  ;;  %v13899_v9 = vld [vmem:[#allocation196_spill] sm:$0xff] }
 0x88e   :  { %v10879_v23 = vpop.permute.xlu0 %3677  ;;  %v10883_v10 = vpop.permute.xlu1 %3961 }
 0x88f   :  { %13887 = vst [vmem:[#allocation333_spill] sm:$0xff] %v10879_v23  ;;  %v10881_v32 = vpop.permute.xlu2 %4011  ;;  %v13906_v23 = vld [vmem:[#allocation54_spill] sm:$0xff] }
 0x890   :  { %13888 = vst [vmem:[#allocation334_spill] sm:$0xff] %v10883_v10 }
 0x894   :  { %5015 = vrot.lane.b32.xlu0 %v4999_v45, %s7445_s21  ;;  %4777 = vrot.lane.b32.xlu1 %v4760_v47, %s7450_s16  ;;  %v3660_v47 = vmul.f32 %v13898_v55, %v10783_v22  ;;  %v13902_v55 = vld [vmem:[#allocation183_spill] sm:$0xff] }
 0x895   :  { %5729 = vrot.lane.b32.xlu2 %v13845_v57, %s7451_s28 }
 0x896   :  { %v10895_v46 = vpop.permute.xlu0 %3805  ;;  %v10899_v27 = vpop.permute.xlu1 %5727 }
 0x897   :  { %13891 = vst [vmem:[#allocation157_spill] sm:$0xff] %v10895_v46  ;;  %v10897_v24 = vpop.permute.xlu2 %3547  ;;  %v3788_v46 = vmul.f32 %v13902_v55, %v10783_v22  ;;  %v10945_v55 = vpop.f32.mrf.mxu2 }
 0x898   :  { %13892 = vst [vmem:[#allocation57_spill] sm:$0xff] %v10897_v24  ;;  %v3029_v24 = vmul.f32 %v13827_v15, %v13906_v23 }
 0x899   :  { %13893 = vst [vmem:[#allocation335_spill] sm:$0xff] %v10899_v27 }
 0x89a   :  { %13907 = vst [vmem:[#allocation340_spill] sm:$0xff] %v10945_v55 }
 0x89c   :  { %3921 = vrot.lane.b32.xlu0 %v3900_v48, %s7450_s16  ;;  %4897 = vrot.lane.b32.xlu1 %v4880_v59, %s7451_s28 }
 0x89d   :  { %3553 = vrot.lane.b32.xlu2 %v3532_v51, %s7450_s16 }
 0x89e   :  { %v10910_v57 = vpop.permute.xlu0 %3915  ;;  %v10914_v45 = vpop.permute.xlu1 %3551 }
 0x89f   :  { %13895 = vst [vmem:[#allocation336_spill] sm:$0xff] %v10910_v57  ;;  %v10912_v41 = vpop.permute.xlu2 %3675  ;;  %v13910_v57 = vld [vmem:[#allocation199_spill] sm:$0xff] }
 0x8a0   :  { %13896 = vst [vmem:[#allocation337_spill] sm:$0xff] %v10912_v41  ;;  %v13903_v41 = vld [vmem:[#allocation154_spill] sm:$0xff] }
 0x8a1   :  { %13897 = vst [vmem:[#allocation338_spill] sm:$0xff] %v10914_v45  ;;  %v3949_v45 = vmul.f32 %v10602_v43, %v10524_v6  ;;  %v3901_v19 = vmul.f32 %v10602_v43, %v13903_v41 }
 0x8a4   :  { %4135 = vrot.lane.b32.xlu0 %v13899_v9, %s7450_s16  ;;  %5017 = vrot.lane.b32.xlu1 %v5000_v26, %s7445_s21  ;;  %v10937_v26 = vpop.f32.mrf.mxu1 }
 0x8a5   :  { %3681 = vrot.lane.b32.xlu2 %v3660_v47, %s7451_s28  ;;  %v5159_v43 = vmul.f32 %v10937_v26, %v13908_v61 }
 0x8a6   :  { %v3140_v48 = vpop.permute.xlu0 %3139  ;;  %v10926_v59 = vpop.permute.xlu1 %3679 }
 0x8a7   :  { %v10924_v51 = vpop.permute.xlu2 %3803  ;;  %13901 = vst [vmem:[#allocation196_spill] sm:$0xff] %v10926_v59  ;;  %v3157_v56 = vadd.f32 %v3140_v48, %v3029_v24  ;;  %v13915_v24 = vld [vmem:[#allocation180_spill] sm:$0xff] }
 0x8a8   :  { %13900 = vst [vmem:[#allocation124_spill] sm:$0xff] %v10924_v51  ;;  %v5279_v48 = vmul.f32 %v13915_v24, %v10937_v26  ;;  %v10985_v24 = vpop.f32.mrf.mxu0 }
 0x8ac   :  { %3971 = vrot.lane.b32.xlu0 %v3949_v45, %s7450_s16  ;;  %3923 = vrot.lane.b32.xlu1 %v3901_v19, %s7450_s16  ;;  %v13909_v45 = vld [vmem:[#allocation121_spill] sm:$0xff] }
 0x8ad   :  { %3809 = vrot.lane.b32.xlu2 %v3788_v46, %s7445_s21  ;;  %v5563_v46 = vmul.f32 %v10945_v55, %v13909_v45 }
 0x8ae   :  { %v3268_v47 = vpop.permute.xlu0 %3267  ;;  %v10941_v59 = vpop.permute.xlu1 %3807 }
 0x8af   :  { %v10939_v51 = vpop.permute.xlu2 %5577  ;;  %13905 = vst [vmem:[#allocation339_spill] sm:$0xff] %v10941_v59  ;;  %v3285_v19 = vadd.f32 %v3268_v47, %v3157_v56  ;;  %v13916_v56 = vld [vmem:[#allocation139_spill] sm:$0xff] }
 0x8b0   :  { %13904 = vst [vmem:[#allocation183_spill] sm:$0xff] %v10939_v51  ;;  %v3899_v47 = vmul.f32 %v10383_v42, %v13916_v56  ;;  %v13929_v51 = vld [vmem:[#allocation161_spill] sm:$0xff] }
 0x8b4   :  { %5175 = vrot.lane.b32.xlu0 %v5159_v43, %s7450_s16  ;;  %4137 = vrot.lane.b32.xlu1 %v13910_v57, %s7450_s16  ;;  %v3950_v43 = vmul.f32 %v10487_v40, %v10544_v30 }
 0x8b5   :  { %5583 = vrot.lane.b32.xlu2 %v5563_v46, %s7450_s16  ;;  %v13917_v46 = vld [vmem:[#allocation192_spill] sm:$0xff] }
 0x8b6   :  { %v3396_v59 = vpop.permute.xlu0 %3395  ;;  %v10959_v61 = vpop.permute.xlu1 %3917  ;;  %v5399_v42 = vmul.f32 %v13917_v46, %v10937_v26  ;;  %v3948_v46 = vmul.f32 %v10458_v33, %v10500_v52 }
 0x8b7   :  { %v3413_v10 = vadd.f32 %v3396_v59, %v3285_v19  ;;  %v10955_v15 = vpop.permute.xlu2 %3913  ;;  %13913 = vst [vmem:[#allocation199_spill] sm:$0xff] %v10959_v61  ;;  %v13922_v61 = vld [vmem:[#allocation60_spill] sm:$0xff] }
 0x8b8   :  { %13911 = vst [vmem:[#allocation186_spill] sm:$0xff] %v10955_v15 }
 0x8b9   :  { %v10961_v58 = vadd.f32 %v3437_v5, %v3413_v10  ;;  %v10978_v10 = vpop.f32.mrf.mxu1 }
 0x8ba   :  { %v5160_v19 = vmul.f32 %v10978_v10, %v9766_v12  ;;  %v5280_v12 = vmul.f32 %v9781_v34, %v10978_v10  ;;  %v5400_v34 = vmul.f32 %v9846_v2, %v10978_v10  ;;  %v13925_v2 = vld [vmem:[#allocation203_spill] sm:$0xff] }
 0x8bb   :  { %13914 = vst [vmem:[#allocation341_spill] sm:$0xff] %v10961_v58 }
 0x8bc   :  { %5295 = vrot.lane.b32.xlu0 %v5279_v48, %s7451_s28  ;;  %3973 = vrot.lane.b32.xlu1 %v3950_v43, %s7450_s16 }
 0x8bd   :  { %3919 = vrot.lane.b32.xlu2 %v3899_v47, %s7450_s16 }
 0x8be   :  { %v10972_v28 = vpop.permute.xlu0 %4129  ;;  %v10976_v5 = vpop.permute.xlu1 %3141 }
 0x8bf   :  { %v10974_v59 = vpop.permute.xlu2 %3137 }
 0x8c4   :  { %5415 = vrot.lane.b32.xlu0 %v5399_v42, %s7445_s21  ;;  %5177 = vrot.lane.b32.xlu1 %v5160_v19, %s7450_s16  ;;  %v11006_v42 = vpop.f32.mrf.mxu0 }
 0x8c5   :  { %4133 = vrot.lane.b32.xlu2 %v13872_v44, %s7450_s16  ;;  %13920 = vst [vmem:[#allocation342_spill] sm:$0xff] %v11006_v42  ;;  %v4762_v33 = vmul.f32 %v11006_v42, %v13922_v61  ;;  %v13924_v61 = vld [vmem:[#allocation58_spill] sm:$0xff]  ;;  %v5002_v29 = vmul.f32 %v13929_v51, %v11006_v42 }
 0x8c6   :  { %v10990_v48 = vpop.permute.xlu0 %5581  ;;  %v10994_v43 = vpop.permute.xlu1 %3269  ;;  %v4761_v15 = vmul.f32 %v10985_v24, %v13924_v61  ;;  %v13934_v51 = vld [vmem:[#allocation134_spill] sm:$0xff] }
 0x8c7   :  { %13918 = vst [vmem:[#allocation180_spill] sm:$0xff] %v10990_v48  ;;  %v10992_v47 = vpop.permute.xlu2 %3265  ;;  %v5001_v23 = vmul.f32 %v13934_v51, %v10985_v24 }
 0x8cc   :  { %5737 = vrot.lane.b32.xlu0 %v13910_v57, %s7451_s28  ;;  %5297 = vrot.lane.b32.xlu1 %v5280_v12, %s7451_s28  ;;  %v11055_v48 = vpop.f32.mrf.mxu0 }
 0x8cd   :  { %3969 = vrot.lane.b32.xlu2 %v3948_v46, %s7450_s16  ;;  %13933 = vst [vmem:[#allocation347_spill] sm:$0xff] %v11055_v48  ;;  %v4883_v51 = vmul.f32 %v10130_v54, %v11055_v48  ;;  %v5003_v54 = vmul.f32 %v9689_v38, %v11055_v48 }
 0x8ce   :  { %v11004_v44 = vpop.permute.xlu0 %3965  ;;  %v11010_v45 = vpop.permute.xlu1 %3397 }
 0x8cf   :  { %13919 = vst [vmem:[#allocation192_spill] sm:$0xff] %v11004_v44  ;;  %v11008_v19 = vpop.permute.xlu2 %3393  ;;  %v4882_v44 = vmul.f32 %v10110_v49, %v11006_v42  ;;  %v4881_v49 = vmul.f32 %v9875_v20, %v10985_v24  ;;  %v4071_v20 = vmul.f32 %v10707_v13, %v10393_v4  ;;  %v13939_v42 = vld [vmem:[#allocation67_spill] sm:$0xff] }
 0x8d0   :  { %13921 = vst [vmem:[#allocation343_spill] sm:$0xff] %v11010_v45 }
 0x8d4   :  { %4781 = vrot.lane.b32.xlu0 %v4762_v33, %s7450_s16  ;;  %5417 = vrot.lane.b32.xlu1 %v5400_v34, %s7445_s21 }
 0x8d5   :  { %5735 = vrot.lane.b32.xlu2 %v13899_v9, %s7451_s28 }
 0x8d6   :  { %v11020_v57 = vpop.permute.xlu0 %5731  ;;  %v11024_v12 = vpop.permute.xlu1 %4131 }
 0x8d7   :  { %13923 = vst [vmem:[#allocation60_spill] sm:$0xff] %v11020_v57  ;;  %v11022_v46 = vpop.permute.xlu2 %4127 }
 0x8dc   :  { %4901 = vrot.lane.b32.xlu0 %v4882_v44, %s7451_s28  ;;  %5739 = vrot.lane.b32.xlu1 %v13925_v2, %s7451_s28  ;;  %v4023_v44 = vmul.f32 %v10707_v13, %v13787_v39  ;;  %v3902_v13 = vmul.f32 %v10487_v40, %v13939_v42  ;;  %v5680_v40 = vmul.f32 %v10615_v35, %v10718_v31 }
 0x8dd   :  { %4779 = vrot.lane.b32.xlu2 %v4761_v15, %s7450_s16 }
 0x8de   :  { %v11034_v9 = vpop.permute.xlu0 %3555  ;;  %v11038_v34 = vpop.permute.xlu1 %3967 }
 0x8df   :  { %13926 = vst [vmem:[#allocation58_spill] sm:$0xff] %v11034_v9  ;;  %v11036_v33 = vpop.permute.xlu2 %5579 }
 0x8e0   :  { %13927 = vst [vmem:[#allocation203_spill] sm:$0xff] %v11036_v33  ;;  %v13935_v33 = vld [vmem:[#allocation61_spill] sm:$0xff] }
 0x8e1   :  { %13928 = vst [vmem:[#allocation344_spill] sm:$0xff] %v11038_v34 }
 0x8e4   :  { %5021 = vrot.lane.b32.xlu0 %v5002_v29, %s7445_s21  ;;  %4039 = vrot.lane.b32.xlu1 %v4023_v44, %s7451_s28  ;;  %v4763_v29 = vmul.f32 %v11055_v48, %v13935_v33  ;;  %v13940_v33 = vld [vmem:[#allocation207_spill] sm:$0xff] }
 0x8e5   :  { %4899 = vrot.lane.b32.xlu2 %v4881_v49, %s7451_s28 }
 0x8e6   :  { %v11049_v15 = vpop.permute.xlu0 %3683  ;;  %v11053_v34 = vpop.permute.xlu1 %5733 }
 0x8e7   :  { %13930 = vst [vmem:[#allocation161_spill] sm:$0xff] %v11049_v15  ;;  %v11051_v61 = vpop.permute.xlu2 %3963 }
 0x8e8   :  { %13931 = vst [vmem:[#allocation345_spill] sm:$0xff] %v11051_v61 }
 0x8e9   :  { %13932 = vst [vmem:[#allocation346_spill] sm:$0xff] %v11053_v34 }
 0x8ec   :  { %4087 = vrot.lane.b32.xlu0 %v4071_v20, %s7451_s28  ;;  %4783 = vrot.lane.b32.xlu1 %v4763_v29, %s7450_s16  ;;  %v11078_v20 = vpop.f32.mrf.mxu1 }
 0x8ed   :  { %5019 = vrot.lane.b32.xlu2 %v5001_v23, %s7445_s21 }
 0x8ee   :  { %v11066_v49 = vpop.permute.xlu0 %3811  ;;  %v11070_v61 = vpop.permute.xlu1 %3557 }
 0x8ef   :  { %13936 = vst [vmem:[#allocation134_spill] sm:$0xff] %v11066_v49  ;;  %v11068_v44 = vpop.permute.xlu2 %5729 }
 0x8f0   :  { %13937 = vst [vmem:[#allocation61_spill] sm:$0xff] %v11068_v44 }
 0x8f1   :  { %13938 = vst [vmem:[#allocation348_spill] sm:$0xff] %v11070_v61 }
 0x8f4   :  { %4141 = vrot.lane.b32.xlu0 %v13940_v33, %s7450_s16  ;;  %4903 = vrot.lane.b32.xlu1 %v4883_v51, %s7451_s28  ;;  %v11094_v51 = vpop.f32.mrf.mxu1 }
 0x8f5   :  { %3925 = vrot.lane.b32.xlu2 %v3902_v13, %s7450_s16  ;;  %13942 = vst [vmem:[#allocation349_spill] sm:$0xff] %v11094_v51  ;;  %v5162_v38 = vmul.f32 %v11094_v51, %v9905_v62  ;;  %v13945_v62 = vld [vmem:[#allocation171_spill] sm:$0xff] }
 0x8f6   :  { %v4776_v23 = vpop.permute.xlu0 %4775  ;;  %v11084_v49 = vpop.permute.xlu1 %3685 }
 0x8f7   :  { %v11082_v29 = vpop.permute.xlu2 %3553  ;;  %13941 = vst [vmem:[#allocation207_spill] sm:$0xff] %v11084_v49  ;;  %v13944_v49 = vld [vmem:[#allocation75_spill] sm:$0xff] }
 0x8f8   :  { %v4703_v35 = vmul.f32 %v13944_v49, %v10847_v11  ;;  %v5095_v49 = vmul.f32 %v13945_v62, %v10937_v26  ;;  %v13962_v62 = vld [vmem:[#allocation64_spill] sm:$0xff] }
 0x8fa   :  { %v4799_v48 = vadd.f32 %v4776_v23, %v4703_v35  ;;  %v5282_v23 = vmul.f32 %v9806_v0, %v11094_v51  ;;  %v5402_v0 = vmul.f32 %v9877_v1, %v11094_v51  ;;  %v13975_v51 = vld [vmem:[#allocation166_spill] sm:$0xff] }
 0x8fc   :  { %5697 = vrot.lane.b32.xlu0 %v5680_v40, %s7451_s28  ;;  %5023 = vrot.lane.b32.xlu1 %v5003_v54, %s7445_s21  ;;  %v5679_v40 = vmul.f32 %v10724_v16, %v10562_v53  ;;  %v11115_v16 = vpop.f32.mrf.mxu1 }
 0x8fd   :  { %4139 = vrot.lane.b32.xlu2 %v13925_v2, %s7450_s16  ;;  %v4072_v2 = vmul.f32 %v10600_v8, %v10412_v3  ;;  %13946 = vst [vmem:[#allocation351_spill] sm:$0xff] %v11115_v16 }
 0x8fe   :  { %v4896_v13 = vpop.permute.xlu0 %4895  ;;  %v11098_v15 = vpop.permute.xlu1 %3813 }
 0x8ff   :  { %v11096_v55 = vpop.permute.xlu2 %3681  ;;  %13943 = vst [vmem:[#allocation350_spill] sm:$0xff] %v11098_v15  ;;  %v4919_v54 = vadd.f32 %v4896_v13, %v4799_v48  ;;  %v13948_v48 = vld [vmem:[#allocation132_spill] sm:$0xff] }
 0x900   :  { %v5161_v13 = vmul.f32 %v11078_v20, %v13948_v48 }
 0x904   :  { %5181 = vrot.lane.b32.xlu0 %v5162_v38, %s7450_s16  ;;  %4089 = vrot.lane.b32.xlu1 %v4072_v2, %s7451_s28  ;;  %v5163_v38 = vmul.f32 %v11115_v16, %v13741_v50  ;;  %v13951_v2 = vld [vmem:[#allocation79_spill] sm:$0xff] }
 0x905   :  { %5695 = vrot.lane.b32.xlu2 %v5679_v40, %s7451_s28  ;;  %v5281_v40 = vmul.f32 %v13657_v36, %v11078_v20  ;;  %v4704_v50 = vmul.f32 %v13951_v2, %v10885_v37  ;;  %v13963_v2 = vld [vmem:[#allocation120_spill] sm:$0xff] }
 0x906   :  { %v5016_v15 = vpop.permute.xlu0 %5015  ;;  %v4778_v58 = vpop.permute.xlu1 %4777 }
 0x907   :  { %v11111_v9 = vpop.permute.xlu2 %3809  ;;  %v5039_v11 = vadd.f32 %v5016_v15, %v4919_v54  ;;  %v5283_v54 = vmul.f32 %v13747_v17, %v11115_v16  ;;  %v4025_v17 = vmul.f32 %v10634_v14, %v13820_v7 }
 0x909   :  { %v11117_v35 = vadd.f32 %v5095_v49, %v5039_v11  ;;  %v4800_v11 = vadd.f32 %v4778_v58, %v4704_v50  ;;  %v5401_v58 = vmul.f32 %v9691_v18, %v11078_v20  ;;  %v13958_v18 = vld [vmem:[#allocation315_spill] sm:$0xff] }
 0x90b   :  { %13947 = vst [vmem:[#allocation352_spill] sm:$0xff] %v11117_v35  ;;  %v13990_v35 = vld [vmem:[#allocation108_spill] sm:$0xff] }
 0x90c   :  { %5301 = vrot.lane.b32.xlu0 %v5282_v23, %s7451_s28  ;;  %5183 = vrot.lane.b32.xlu1 %v5163_v38, %s7450_s16  ;;  %v13953_v38 = vld [vmem:[#allocation169_spill] sm:$0xff] }
 0x90d   :  { %5179 = vrot.lane.b32.xlu2 %v5161_v13, %s7450_s16  ;;  %v5096_v37 = vmul.f32 %v13953_v38, %v10978_v10 }
 0x90e   :  { %v11128_v26 = vpop.permute.xlu0 %3921  ;;  %v4898_v49 = vpop.permute.xlu1 %4897 }
 0x90f   :  { %13949 = vst [vmem:[#allocation132_spill] sm:$0xff] %v11128_v26  ;;  %v11130_v15 = vpop.permute.xlu2 %5583  ;;  %v4920_v48 = vadd.f32 %v4898_v49, %v4800_v11  ;;  %v11158_v49 = vpop.f32.mrf.mxu0 }
 0x910   :  { %13950 = vst [vmem:[#allocation353_spill] sm:$0xff] %v11130_v15  ;;  %v13965_v15 = vld [vmem:[#allocation329_spill] sm:$0xff] }
 0x914   :  { %5421 = vrot.lane.b32.xlu0 %v5402_v0, %s7445_s21  ;;  %5303 = vrot.lane.b32.xlu1 %v5283_v54, %s7451_s28 }
 0x915   :  { %5299 = vrot.lane.b32.xlu2 %v5281_v40, %s7451_s28  ;;  %v13955_v40 = vld [vmem:[#allocation208_spill] sm:$0xff] }
 0x916   :  { %v11143_v23 = vpop.permute.xlu0 %4135  ;;  %v5018_v13 = vpop.permute.xlu1 %5017  ;;  %v5403_v50 = vmul.f32 %v13955_v40, %v11115_v16 }
 0x917   :  { %v11145_v1 = vpop.permute.xlu2 %3919  ;;  %v5040_v36 = vadd.f32 %v5018_v13, %v4920_v48  ;;  %v5681_v48 = vmul.f32 %v13958_v18, %v10739_v21  ;;  %v13959_v13 = vld [vmem:[#allocation65_spill] sm:$0xff]  ;;  %v4024_v18 = vmul.f32 %v10600_v8, %v13963_v2 }
 0x918   :  { %13952 = vst [vmem:[#allocation354_spill] sm:$0xff] %v11145_v1 }
 0x919   :  { %v11153_v0 = vadd.f32 %v5096_v37, %v5040_v36  ;;  %v13960_v36 = vld [vmem:[#allocation191_spill] sm:$0xff] }
 0x91a   :  { %v4026_v37 = vmul.f32 %v13960_v36, %v13959_v13 }
 0x91b   :  { %13954 = vst [vmem:[#allocation355_spill] sm:$0xff] %v11153_v0  ;;  %v13972_v0 = vld [vmem:[#allocation66_spill] sm:$0xff] }
 0x91c   :  { %4043 = vrot.lane.b32.xlu0 %v4025_v17, %s7451_s28  ;;  %5423 = vrot.lane.b32.xlu1 %v5403_v50, %s7445_s21 }
 0x91d   :  { %5419 = vrot.lane.b32.xlu2 %v5401_v58, %s7445_s21  ;;  %v11178_v58 = vpop.f32.mrf.mxu0 }
 0x91e   :  { %v11162_v10 = vpop.permute.xlu0 %3971  ;;  %v11166_v11 = vpop.permute.xlu1 %3923  ;;  %v4765_v38 = vmul.f32 %v11178_v58, %v13962_v62  ;;  %v13970_v62 = vld [vmem:[#allocation151_spill] sm:$0xff] }
 0x91f   :  { %13956 = vst [vmem:[#allocation208_spill] sm:$0xff] %v11162_v10  ;;  %v11164_v54 = vpop.permute.xlu2 %4133  ;;  %v4885_v8 = vmul.f32 %v13970_v62, %v11178_v58  ;;  %v5005_v62 = vmul.f32 %v13975_v51, %v11178_v58  ;;  %v13976_v10 = vld [vmem:[#allocation205_spill] sm:$0xff] }
 0x920   :  { %13957 = vst [vmem:[#allocation356_spill] sm:$0xff] %v11166_v11  ;;  %v13971_v11 = vld [vmem:[#allocation62_spill] sm:$0xff] }
 0x924   :  { %5699 = vrot.lane.b32.xlu0 %v5681_v48, %s7451_s28  ;;  %4045 = vrot.lane.b32.xlu1 %v4026_v37, %s7451_s28  ;;  %v13964_v48 = vld [vmem:[#allocation323_spill] sm:$0xff] }
 0x925   :  { %5741 = vrot.lane.b32.xlu2 %v13940_v33, %s7451_s28  ;;  %v5682_v16 = vmul.f32 %v13965_v15, %v13964_v48  ;;  %v11199_v26 = vpop.f32.mrf.mxu0  ;;  %v4764_v15 = vmul.f32 %v11158_v49, %v13971_v11  ;;  %v4884_v11 = vmul.f32 %v13976_v10, %v11158_v49 }
 0x926   :  { %v11176_v17 = vpop.permute.xlu0 %5175  ;;  %v11182_v50 = vpop.permute.xlu1 %4137  ;;  %13969 = vst [vmem:[#allocation359_spill] sm:$0xff] %v11199_v26 }
 0x927   :  { %13961 = vst [vmem:[#allocation191_spill] sm:$0xff] %v11176_v17  ;;  %v11180_v40 = vpop.permute.xlu2 %3969 }
 0x92c   :  { %4787 = vrot.lane.b32.xlu0 %v4765_v38, %s7450_s16  ;;  %5701 = vrot.lane.b32.xlu1 %v5682_v16, %s7451_s28  ;;  %v4766_v38 = vmul.f32 %v11199_v26, %v13972_v0 }
 0x92d   :  { %4041 = vrot.lane.b32.xlu2 %v4024_v18, %s7451_s28 }
 0x92e   :  { %v11193_v33 = vpop.permute.xlu0 %5295  ;;  %v11197_v1 = vpop.permute.xlu1 %3973 }
 0x92f   :  { %13966 = vst [vmem:[#allocation64_spill] sm:$0xff] %v11193_v33  ;;  %v11195_v37 = vpop.permute.xlu2 %5735  ;;  %v13982_v33 = vld [vmem:[#allocation164_spill] sm:$0xff] }
 0x930   :  { %13967 = vst [vmem:[#allocation357_spill] sm:$0xff] %v11195_v37 }
 0x931   :  { %13968 = vst [vmem:[#allocation358_spill] sm:$0xff] %v11197_v1  ;;  %v13977_v1 = vld [vmem:[#allocation8_spill] sm:$0xff] }
 0x932   :  { %v4886_v0 = vmul.f32 %v13977_v1, %v11199_v26  ;;  %v5006_v1 = vmul.f32 %v13982_v33, %v11199_v26 }
 0x934   :  { %4907 = vrot.lane.b32.xlu0 %v4885_v8, %s7451_s28  ;;  %4789 = vrot.lane.b32.xlu1 %v4766_v38, %s7450_s16 }
 0x935   :  { %4785 = vrot.lane.b32.xlu2 %v4764_v15, %s7450_s16 }
 0x936   :  { %v11210_v16 = vpop.permute.xlu0 %5415  ;;  %v11212_v37 = vpop.permute.xlu1 %5177 }
 0x937   :  { %13973 = vst [vmem:[#allocation151_spill] sm:$0xff] %v11210_v16  ;;  %v4780_v18 = vpop.permute.xlu2 %4779  ;;  %v13981_v16 = vld [vmem:[#allocation138_spill] sm:$0xff] }
 0x938   :  { %13974 = vst [vmem:[#allocation62_spill] sm:$0xff] %v11212_v37  ;;  %v13980_v37 = vld [vmem:[#allocation85_spill] sm:$0xff]  ;;  %v5004_v10 = vmul.f32 %v13981_v16, %v11158_v49 }
 0x939   :  { %v4705_v51 = vmul.f32 %v13980_v37, %v10985_v24 }
 0x93b   :  { %v4801_v17 = vadd.f32 %v4780_v18, %v4705_v51  ;;  %v13987_v18 = vld [vmem:[#allocation295_spill] sm:$0xff] }
 0x93c   :  { %5027 = vrot.lane.b32.xlu0 %v5005_v62, %s7445_s21  ;;  %4909 = vrot.lane.b32.xlu1 %v4886_v0, %s7451_s28  ;;  %v13983_v62 = vld [vmem:[#allocation213_spill] sm:$0xff]  ;;  %v4074_v51 = vmul.f32 %v13960_v36, %v13987_v18  ;;  %v11263_v36 = vpop.f32.mrf.mxu0 }
 0x93d   :  { %4905 = vrot.lane.b32.xlu2 %v4884_v11, %s7451_s28  ;;  %v11235_v11 = vpop.f32.mrf.mxu1 }
 0x93e   :  { %v11223_v15 = vpop.permute.xlu0 %5737  ;;  %v11225_v38 = vpop.permute.xlu1 %5297 }
 0x93f   :  { %13978 = vst [vmem:[#allocation66_spill] sm:$0xff] %v11223_v15  ;;  %v4900_v8 = vpop.permute.xlu2 %4899  ;;  %v13986_v15 = vld [vmem:[#allocation144_spill] sm:$0xff] }
 0x940   :  { %13979 = vst [vmem:[#allocation166_spill] sm:$0xff] %v11225_v38  ;;  %v4921_v0 = vadd.f32 %v4900_v8, %v4801_v17  ;;  %v5097_v33 = vmul.f32 %v13986_v15, %v11078_v20  ;;  %v13991_v17 = vld [vmem:[#allocation210_spill] sm:$0xff] }
 0x944   :  { %5857 = vrot.lane.b32.xlu0 %v13983_v62, %s7450_s16  ;;  %5029 = vrot.lane.b32.xlu1 %v5006_v1, %s7445_s21  ;;  %v13989_v62 = vld [vmem:[#allocation297_spill] sm:$0xff] }
 0x945   :  { %5025 = vrot.lane.b32.xlu2 %v5004_v10, %s7445_s21  ;;  %v4075_v10 = vmul.f32 %v13990_v35, %v13989_v62  ;;  %v11257_v1 = vpop.f32.mrf.mxu1 }
 0x946   :  { %v11239_v38 = vpop.permute.xlu0 %4781  ;;  %v11241_v37 = vpop.permute.xlu1 %5417 }
 0x947   :  { %13984 = vst [vmem:[#allocation205_spill] sm:$0xff] %v11239_v38  ;;  %v5020_v24 = vpop.permute.xlu2 %5019 }
 0x948   :  { %13985 = vst [vmem:[#allocation8_spill] sm:$0xff] %v11241_v37  ;;  %v5041_v16 = vadd.f32 %v5020_v24, %v4921_v0  ;;  %v4073_v24 = vmul.f32 %v10634_v14, %v10437_v63  ;;  %v14001_v14 = vld [vmem:[#allocation153_spill] sm:$0xff] }
 0x949   :  { %v5164_v37 = vmul.f32 %v11235_v11, %v14001_v14 }
 0x94a   :  { %v11247_v26 = vadd.f32 %v5097_v33, %v5041_v16  ;;  %v13995_v16 = vld [vmem:[#allocation217_spill] sm:$0xff]  ;;  %v13996_v33 = vld [vmem:[#allocation220_spill] sm:$0xff] }
 0x94c   :  { %13988 = vst [vmem:[#allocation138_spill] sm:$0xff] %v11247_v26  ;;  %4093 = vrot.lane.b32.xlu0 %v4074_v51, %s7451_s28  ;;  %4095 = vrot.lane.b32.xlu1 %v4075_v10, %s7451_s28 }
 0x94d   :  { %5855 = vrot.lane.b32.xlu2 %v13991_v17, %s7450_s16  ;;  %v14000_v17 = vld [vmem:[#allocation73_spill] sm:$0xff] }
 0x94e   :  { %v11255_v8 = vpop.permute.xlu0 %4901  ;;  %v11261_v0 = vpop.permute.xlu1 %5739 }
 0x94f   :  { %13992 = vst [vmem:[#allocation164_spill] sm:$0xff] %v11255_v8  ;;  %v11259_v20 = vpop.permute.xlu2 %3925  ;;  %v14007_v8 = vld [vmem:[#allocation156_spill] sm:$0xff] }
 0x950   :  { %13993 = vst [vmem:[#allocation108_spill] sm:$0xff] %v11259_v20  ;;  %v5165_v20 = vmul.f32 %v11257_v1, %v14000_v17  ;;  %v14006_v17 = vld [vmem:[#allocation189_spill] sm:$0xff]  ;;  %v5284_v38 = vmul.f32 %v14007_v8, %v11235_v11 }
 0x951   :  { %13994 = vst [vmem:[#allocation360_spill] sm:$0xff] %v11261_v0  ;;  %v11278_v0 = vpop.f32.mrf.mxu1  ;;  %v5285_v14 = vmul.f32 %v14006_v17, %v11257_v1  ;;  %v14012_v8 = vld [vmem:[#allocation221_spill] sm:$0xff] }
 0x952   :  { %13999 = vst [vmem:[#allocation363_spill] sm:$0xff] %v11278_v0 }
 0x954   :  { %5859 = vrot.lane.b32.xlu0 %v13995_v16, %s7450_s16  ;;  %5861 = vrot.lane.b32.xlu1 %v13996_v33, %s7450_s16  ;;  %v11284_v16 = vpop.f32.mrf.mxu0 }
 0x955   :  { %4091 = vrot.lane.b32.xlu2 %v4073_v24, %s7451_s28  ;;  %v14002_v24 = vld [vmem:[#allocation69_spill] sm:$0xff] }
 0x956   :  { %v11272_v51 = vpop.permute.xlu0 %5021  ;;  %v11276_v15 = vpop.permute.xlu1 %4039  ;;  %v5166_v26 = vmul.f32 %v11278_v0, %v14002_v24  ;;  %v14008_v24 = vld [vmem:[#allocation187_spill] sm:$0xff] }
 0x957   :  { %13997 = vst [vmem:[#allocation361_spill] sm:$0xff] %v11272_v51  ;;  %v11274_v10 = vpop.permute.xlu2 %4139  ;;  %v5286_v61 = vmul.f32 %v14008_v24, %v11278_v0  ;;  %v14013_v24 = vld [vmem:[#allocation188_spill] sm:$0xff] }
 0x958   :  { %13998 = vst [vmem:[#allocation362_spill] sm:$0xff] %v11276_v15 }
 0x95c   :  { %5187 = vrot.lane.b32.xlu0 %v5165_v20, %s7450_s16  ;;  %5189 = vrot.lane.b32.xlu1 %v5166_v26, %s7450_s16  ;;  %v2227_v20 = vpop.f32.mrf.mxu3 }
 0x95d   :  { %5185 = vrot.lane.b32.xlu2 %v5164_v37, %s7450_s16  ;;  %v11304_v37 = vpop.f32.mrf.mxu0 }
 0x95e   :  { %v11291_v33 = vpop.permute.xlu0 %4087  ;;  %v11295_v51 = vpop.permute.xlu1 %4783  ;;  %14009 = vst [vmem:[#allocation189_spill] sm:$0xff] %v11304_v37 }
 0x95f   :  { %14003 = vst [vmem:[#allocation73_spill] sm:$0xff] %v11291_v33  ;;  %v11293_v15 = vpop.permute.xlu2 %5695  ;;  %v5405_v33 = vmul.f32 %v14012_v8, %v11257_v1 }
 0x960   :  { %14004 = vst [vmem:[#allocation153_spill] sm:$0xff] %v11293_v15  ;;  %v5404_v15 = vmul.f32 %v14013_v24, %v11235_v11  ;;  %v14019_v24 = vld [vmem:[#allocation93_spill] sm:$0xff] }
 0x961   :  { %14005 = vst [vmem:[#allocation69_spill] sm:$0xff] %v11295_v51  ;;  %v4028_v45 = vmul.f32 %v14019_v24, %v13894_v25 }
 0x964   :  { %5307 = vrot.lane.b32.xlu0 %v5285_v14, %s7451_s28  ;;  %5309 = vrot.lane.b32.xlu1 %v5286_v61, %s7451_s28  ;;  %v14014_v14 = vld [vmem:[#allocation224_spill] sm:$0xff]  ;;  %v2229_v8 = vpop.f32.mrf.mxu3 }
 0x965   :  { %5305 = vrot.lane.b32.xlu2 %v5284_v38, %s7451_s28  ;;  %v5406_v60 = vmul.f32 %v14014_v14, %v11278_v0  ;;  %v11325_v38 = vpop.f32.mrf.mxu0  ;;  %v4027_v14 = vmul.f32 %v13990_v35, %v13916_v56  ;;  %v4077_v35 = vmul.f32 %v10881_v32, %v10524_v6 }
 0x966   :  { %v11308_v26 = vpop.permute.xlu0 %4141  ;;  %v11312_v17 = vpop.permute.xlu1 %4903  ;;  %14016 = vst [vmem:[#allocation188_spill] sm:$0xff] %v11325_v38 }
 0x967   :  { %v11310_v51 = vpop.permute.xlu2 %5179  ;;  %14011 = vst [vmem:[#allocation187_spill] sm:$0xff] %v11312_v17 }
 0x968   :  { %14010 = vst [vmem:[#allocation156_spill] sm:$0xff] %v11310_v51 }
 0x96c   :  { %5427 = vrot.lane.b32.xlu0 %v5405_v33, %s7445_s21  ;;  %5429 = vrot.lane.b32.xlu1 %v5406_v60, %s7445_s21 }
 0x96d   :  { %5425 = vrot.lane.b32.xlu2 %v5404_v15, %s7445_s21  ;;  %v4029_v15 = vmul.f32 %v10881_v32, %v13903_v41  ;;  %v4199_v32 = vmul.f32 %v11022_v46, %v10393_v4 }
 0x96e   :  { %v11323_v61 = vpop.permute.xlu0 %5697  ;;  %v11329_v51 = vpop.permute.xlu1 %5023 }
 0x96f   :  { %14015 = vst [vmem:[#allocation221_spill] sm:$0xff] %v11323_v61  ;;  %v11327_v17 = vpop.permute.xlu2 %5299  ;;  %v11350_v61 = vpop.f32.mrf.mxu3 }
 0x970   :  { %14017 = vst [vmem:[#allocation224_spill] sm:$0xff] %v11327_v17 }
 0x971   :  { %14018 = vst [vmem:[#allocation364_spill] sm:$0xff] %v11329_v51  ;;  %v11346_v51 = vpop.f32.mrf.mxu0 }
 0x972   :  { %14023 = vst [vmem:[#allocation367_spill] sm:$0xff] %v11346_v51 }
 0x974   :  { %4049 = vrot.lane.b32.xlu0 %v4028_v45, %s7451_s28  ;;  %4051 = vrot.lane.b32.xlu1 %v4029_v15, %s7451_s28  ;;  %v4076_v45 = vmul.f32 %v14019_v24, %v10500_v52 }
 0x975   :  { %4047 = vrot.lane.b32.xlu2 %v4027_v14, %s7451_s28  ;;  %v14024_v14 = vld [vmem:[#allocation123_spill] sm:$0xff] }
 0x976   :  { %v11340_v60 = vpop.permute.xlu0 %5181  ;;  %v11344_v0 = vpop.permute.xlu1 %4089  ;;  %v4078_v17 = vmul.f32 %v14024_v14, %v10544_v30  ;;  %v4030_v24 = vmul.f32 %v14024_v14, %v13939_v42  ;;  %v5799_v14 = vmul.f32 %v10899_v27, %v10562_v53 }
 0x977   :  { %14020 = vst [vmem:[#allocation93_spill] sm:$0xff] %v11340_v60  ;;  %v11342_v33 = vpop.permute.xlu2 %5419 }
 0x978   :  { %14021 = vst [vmem:[#allocation365_spill] sm:$0xff] %v11342_v33 }
 0x979   :  { %14022 = vst [vmem:[#allocation366_spill] sm:$0xff] %v11344_v0  ;;  %v11367_v33 = vpop.f32.mrf.mxu0 }
 0x97c   :  { %4099 = vrot.lane.b32.xlu0 %v4077_v35, %s7451_s28  ;;  %4101 = vrot.lane.b32.xlu1 %v4078_v17, %s7451_s28  ;;  %v4151_v35 = vmul.f32 %v11022_v46, %v13787_v39  ;;  %v11374_v17 = vpop.f32.mrf.mxu3  ;;  %v4152_v46 = vmul.f32 %v10972_v28, %v13963_v2 }
 0x97d   :  { %4097 = vrot.lane.b32.xlu2 %v4076_v45, %s7451_s28 }
 0x97e   :  { %v11359_v15 = vpop.permute.xlu0 %5301  ;;  %v11363_v60 = vpop.permute.xlu1 %5183 }
 0x97f   :  { %v11361_v0 = vpop.permute.xlu2 %5741  ;;  %14026 = vst [vmem:[#allocation368_spill] sm:$0xff] %v11363_v60 }
 0x980   :  { %14025 = vst [vmem:[#allocation123_spill] sm:$0xff] %v11361_v0 }
 0x984   :  { %4215 = vrot.lane.b32.xlu0 %v4199_v32, %s7445_s21  ;;  %4167 = vrot.lane.b32.xlu1 %v4151_v35, %s7445_s21  ;;  %v4200_v32 = vmul.f32 %v10972_v28, %v10412_v3  ;;  %v11392_v35 = vpop.f32.mrf.mxu0  ;;  %v4153_v28 = vmul.f32 %v11024_v12, %v13820_v7  ;;  %v5800_v3 = vmul.f32 %v11068_v44, %v10718_v31  ;;  %v14037_v44 = vld [vmem:[#allocation91_spill] sm:$0xff] }
 0x985   :  { %4053 = vrot.lane.b32.xlu2 %v4030_v24, %s7451_s28  ;;  %v14030_v24 = vld [vmem:[#allocation71_spill] sm:$0xff]  ;;  %v4201_v7 = vmul.f32 %v11024_v12, %v10437_v63 }
 0x986   :  { %v11378_v45 = vpop.permute.xlu0 %5421  ;;  %v11382_v0 = vpop.permute.xlu1 %5303  ;;  %v2300_v4 = vrot.slane %v14030_v24, 5 }
 0x987   :  { %14027 = vst [vmem:[#allocation369_spill] sm:$0xff] %v11378_v45  ;;  %v11380_v60 = vpop.permute.xlu2 %4041 }
 0x988   :  { %14028 = vst [vmem:[#allocation370_spill] sm:$0xff] %v11380_v60  ;;  %v2237_v60 = vpop.f32.mrf.mxu3  ;;  %v11400_v2 = vperm.slane %v2300_v4, 0 }
 0x989   :  { %14029 = vst [vmem:[#allocation371_spill] sm:$0xff] %v11382_v0 }
 0x98c   :  { %5815 = vrot.lane.b32.xlu0 %v5799_v14, %s7445_s21  ;;  %4217 = vrot.lane.b32.xlu1 %v4200_v32, %s7445_s21  ;;  %v11405_v14 = vadd.f32 %v11400_v2, %v2227_v20  ;;  %v11415_v4 = vpop.f32.mrf.mxu0  ;;  %v11422_v20 = vadd.f32 %v11400_v2, %v2229_v8 }
 0x98d   :  { %4169 = vrot.lane.b32.xlu2 %v4152_v46, %s7445_s21 }
 0x98e   :  { %v11396_v0 = vpop.permute.xlu0 %4043  ;;  %v11398_v39 = vpop.permute.xlu1 %5423  ;;  %14033 = vst [vmem:[#allocation373_spill] sm:$0xff] %v11405_v14 }
 0x98f   :  { %14031 = vst [vmem:[#allocation71_spill] sm:$0xff] %v11396_v0  ;;  %v4786_v27 = vpop.permute.xlu2 %4785 }
 0x990   :  { %14032 = vst [vmem:[#allocation372_spill] sm:$0xff] %v11398_v39  ;;  %v11419_v0 = vpop.f32.mrf.mxu3 }
 0x991   :  { %14036 = vst [vmem:[#allocation376_spill] sm:$0xff] %v11422_v20 }
 0x994   :  { %4171 = vrot.lane.b32.xlu0 %v4153_v28, %s7445_s21  ;;  %5817 = vrot.lane.b32.xlu1 %v5800_v3, %s7445_s21  ;;  %v4708_v28 = vmul.f32 %v14037_v44, %v11158_v49  ;;  %v5801_v3 = vmul.f32 %v11020_v57, %v10739_v21  ;;  %v14039_v44 = vld [vmem:[#allocation165_spill] sm:$0xff]  ;;  %v11438_v63 = vpop.f32.mrf.mxu0 }
 0x995   :  { %4287 = vrot.lane.b32.xlu2 %v11405_v14, %s7445_s21  ;;  %v5100_v12 = vmul.f32 %v14039_v44, %v11235_v11 }
 0x996   :  { %v11413_v46 = vpop.permute.xlu0 %5699  ;;  %v11417_v39 = vpop.permute.xlu1 %4045  ;;  %v4804_v31 = vadd.f32 %v4786_v27, %v4708_v28  ;;  %v4202_v27 = vmul.f32 %v11164_v54, %v13987_v18 }
 0x997   :  { %14034 = vst [vmem:[#allocation374_spill] sm:$0xff] %v11413_v46  ;;  %v4906_v32 = vpop.permute.xlu2 %4905 }
 0x998   :  { %14035 = vst [vmem:[#allocation375_spill] sm:$0xff] %v11417_v39  ;;  %v4924_v39 = vadd.f32 %v4906_v32, %v4804_v31  ;;  %v11444_v57 = vpop.f32.mrf.mxu3  ;;  %v4154_v31 = vmul.f32 %v11164_v54, %v13959_v13  ;;  %v14043_v32 = vld [vmem:[#allocation80_spill] sm:$0xff]  ;;  %v4155_v54 = vmul.f32 %v11143_v23, %v13916_v56 }
 0x99c   :  { %4289 = vrot.lane.b32.xlu0 %v11422_v20, %s7445_s21  ;;  %5819 = vrot.lane.b32.xlu1 %v5801_v3, %s7445_s21  ;;  %v4709_v3 = vmul.f32 %v14043_v32, %v11178_v58 }
 0x99d   :  { %4219 = vrot.lane.b32.xlu2 %v4201_v7, %s7445_s21  ;;  %v5802_v7 = vmul.f32 %v11053_v34, %v13964_v48  ;;  %v14046_v34 = vld [vmem:[#allocation212_spill] sm:$0xff] }
 0x99e   :  { %v4788_v8 = vpop.permute.xlu0 %4787  ;;  %v11434_v45 = vpop.permute.xlu1 %5701 }
 0x99f   :  { %v5026_v46 = vpop.permute.xlu2 %5025  ;;  %14038 = vst [vmem:[#allocation377_spill] sm:$0xff] %v11434_v45 }
 0x9a0   :  { %v5044_v49 = vadd.f32 %v5026_v46, %v4924_v39 }
 0x9a2   :  { %v11442_v28 = vadd.f32 %v5100_v12, %v5044_v49  ;;  %v4156_v49 = vmul.f32 %v11182_v50, %v13894_v25  ;;  %v11461_v12 = vpop.f32.mrf.mxu0 }
 0x9a4   :  { %14040 = vst [vmem:[#allocation378_spill] sm:$0xff] %v11442_v28  ;;  %4221 = vrot.lane.b32.xlu0 %v4202_v27, %s7445_s21  ;;  %4173 = vrot.lane.b32.xlu1 %v4154_v31, %s7445_s21  ;;  %v4805_v27 = vadd.f32 %v4788_v8, %v4709_v3  ;;  %v2244_v31 = vpop.f32.mrf.mxu3  ;;  %v5101_v8 = vmul.f32 %v14046_v34, %v11257_v1 }
 0x9a5   :  { %5821 = vrot.lane.b32.xlu2 %v5802_v7, %s7445_s21  ;;  %v11467_v7 = vadd.f32 %v11400_v2, %v11350_v61 }
 0x9a6   :  { %v4908_v39 = vpop.permute.xlu0 %4907  ;;  %v11455_v46 = vpop.permute.xlu1 %4789 }
 0x9a7   :  { %v11453_v11 = vpop.permute.xlu2 %5855  ;;  %14042 = vst [vmem:[#allocation380_spill] sm:$0xff] %v11455_v46  ;;  %v4925_v44 = vadd.f32 %v4908_v39, %v4805_v27  ;;  %v11486_v39 = vadd.f32 %v11400_v2, %v11374_v17  ;;  %v4204_v27 = vmul.f32 %v11182_v50, %v10500_v52 }
 0x9a8   :  { %14041 = vst [vmem:[#allocation379_spill] sm:$0xff] %v11453_v11 }
 0x9a9   :  { %14044 = vst [vmem:[#allocation381_spill] sm:$0xff] %v11467_v7 }
 0x9aa   :  { %14050 = vst [vmem:[#allocation386_spill] sm:$0xff] %v11486_v39 }
 0x9ac   :  { %4177 = vrot.lane.b32.xlu0 %v4156_v49, %s7445_s21  ;;  %4291 = vrot.lane.b32.xlu1 %v11467_v7, %s7445_s21  ;;  %v11482_v49 = vadd.f32 %v11400_v2, %v2237_v60  ;;  %v2247_v60 = vpop.f32.mrf.mxu3 }
 0x9ad   :  { %4175 = vrot.lane.b32.xlu2 %v4155_v54, %s7445_s21  ;;  %v4203_v54 = vmul.f32 %v11143_v23, %v13989_v62  ;;  %v4205_v23 = vmul.f32 %v11274_v10, %v10524_v6 }
 0x9ae   :  { %v5028_v58 = vpop.permute.xlu0 %5027  ;;  %v11477_v3 = vpop.permute.xlu1 %4909  ;;  %14049 = vst [vmem:[#allocation385_spill] sm:$0xff] %v11482_v49 }
 0x9af   :  { %v5045_v32 = vadd.f32 %v5028_v58, %v4925_v44  ;;  %v11473_v46 = vpop.permute.xlu2 %4091  ;;  %14047 = vst [vmem:[#allocation383_spill] sm:$0xff] %v11477_v3  ;;  %v11492_v44 = vpop.f32.mrf.mxu0  ;;  %v5959_v58 = vmul.f32 %v11438_v63, %v11405_v14  ;;  %v5960_v3 = vmul.f32 %v11461_v12, %v11422_v20 }
 0x9b0   :  { %14045 = vst [vmem:[#allocation382_spill] sm:$0xff] %v11473_v46  ;;  %v5961_v20 = vmul.f32 %v11492_v44, %v11467_v7 }
 0x9b1   :  { %v11479_v61 = vadd.f32 %v5101_v8, %v5045_v32 }
 0x9b3   :  { %14048 = vst [vmem:[#allocation384_spill] sm:$0xff] %v11479_v61 }
 0x9b4   :  { %4295 = vrot.lane.b32.xlu0 %v11482_v49, %s7445_s21  ;;  %4223 = vrot.lane.b32.xlu1 %v4203_v54, %s7445_s21 }
 0x9b5   :  { %4293 = vrot.lane.b32.xlu2 %v11486_v39, %s7445_s21 }
 0x9b6   :  { %v11497_v1 = vpop.permute.xlu0 %5857  ;;  %v11501_v17 = vpop.permute.xlu1 %5029 }
 0x9b7   :  { %14051 = vst [vmem:[#allocation387_spill] sm:$0xff] %v11497_v1  ;;  %v11499_v32 = vpop.permute.xlu2 %5185  ;;  %v11514_v54 = vpop.f32.mrf.mxu0  ;;  %v14098_v1 = vld [vmem:[#allocation53_spill] sm:$0xff] }
 0x9b8   :  { %14052 = vst [vmem:[#allocation388_spill] sm:$0xff] %v11499_v32  ;;  %v5962_v50 = vmul.f32 %v11514_v54, %v11486_v39  ;;  %v11536_v39 = vadd.f32 %v11400_v2, %v2244_v31  ;;  %v4206_v32 = vmul.f32 %v11308_v26, %v10544_v30 }
 0x9b9   :  { %14053 = vst [vmem:[#allocation389_spill] sm:$0xff] %v11501_v17  ;;  %v2249_v17 = vpop.f32.mrf.mxu3 }
 0x9ba   :  { %14060 = vst [vmem:[#allocation396_spill] sm:$0xff] %v11536_v39 }
 0x9bc   :  { %4227 = vrot.lane.b32.xlu0 %v4205_v23, %s7445_s21  ;;  %5975 = vrot.lane.b32.xlu1 %v5959_v58, %s7450_s16  ;;  %v4157_v23 = vmul.f32 %v11274_v10, %v13903_v41  ;;  %v2301_v10 = vrot.slane %v14030_v24, 6 }
 0x9bd   :  { %4225 = vrot.lane.b32.xlu2 %v4204_v27, %s7445_s21 }
 0x9be   :  { %v11512_v8 = vpop.permute.xlu0 %4093  ;;  %v11518_v61 = vpop.permute.xlu1 %4095 }
 0x9bf   :  { %14054 = vst [vmem:[#allocation390_spill] sm:$0xff] %v11512_v8  ;;  %v11516_v34 = vpop.permute.xlu2 %5305 }
 0x9c0   :  { %14055 = vst [vmem:[#allocation391_spill] sm:$0xff] %v11516_v34 }
 0x9c1   :  { %14056 = vst [vmem:[#allocation392_spill] sm:$0xff] %v11518_v61  ;;  %v2252_v34 = vpop.f32.mrf.mxu3 }
 0x9c4   :  { %5981 = vrot.lane.b32.xlu0 %v5962_v50, %s7450_s16  ;;  %4179 = vrot.lane.b32.xlu1 %v4157_v23, %s7445_s21  ;;  %v2317_v23 = vperm.slane %v2301_v10, 0 }
 0x9c5   :  { %5977 = vrot.lane.b32.xlu2 %v5960_v3, %s7450_s16  ;;  %v11543_v3 = vadd.f32 %v11400_v2, %v11419_v0  ;;  %v4158_v0 = vmul.f32 %v11308_v26, %v13939_v42 }
 0x9c6   :  { %v11529_v27 = vpop.permute.xlu0 %5859  ;;  %v11533_v14 = vpop.permute.xlu1 %5861 }
 0x9c7   :  { %14057 = vst [vmem:[#allocation393_spill] sm:$0xff] %v11529_v27  ;;  %v11531_v58 = vpop.permute.xlu2 %5425 }
 0x9c8   :  { %14058 = vst [vmem:[#allocation394_spill] sm:$0xff] %v11531_v58  ;;  %v2447_v58 = vadd.f32 %v2317_v23, %v2247_v60  ;;  %v2448_v60 = vadd.f32 %v2317_v23, %v2249_v17  ;;  %v2449_v17 = vadd.f32 %v2317_v23, %v2252_v34 }
 0x9c9   :  { %14059 = vst [vmem:[#allocation395_spill] sm:$0xff] %v11533_v14 }
 0x9ca   :  { %14061 = vst [vmem:[#allocation397_spill] sm:$0xff] %v11543_v3 }
 0x9cc   :  { %4301 = vrot.lane.b32.xlu0 %v11536_v39, %s7445_s21  ;;  %4297 = vrot.lane.b32.xlu1 %v11543_v3, %s7445_s21 }
 0x9cd   :  { %5979 = vrot.lane.b32.xlu2 %v5961_v20, %s7450_s16  ;;  %v2254_v20 = vpop.f32.mrf.mxu3 }
 0x9ce   :  { %v11550_v31 = vpop.permute.xlu0 %5187  ;;  %v11554_v7 = vpop.permute.xlu1 %5189 }
 0x9cf   :  { %14062 = vst [vmem:[#allocation398_spill] sm:$0xff] %v11550_v31  ;;  %v11552_v50 = vpop.permute.xlu2 %4047 }
 0x9d0   :  { %14063 = vst [vmem:[#allocation399_spill] sm:$0xff] %v11552_v50 }
 0x9d1   :  { %14064 = vst [vmem:[#allocation400_spill] sm:$0xff] %v11554_v7  ;;  %v11571_v7 = vadd.f32 %v11400_v2, %v11444_v57 }
 0x9d3   :  { %14067 = vst [vmem:[#allocation403_spill] sm:$0xff] %v11571_v7 }
 0x9d4   :  { %6007 = vrot.lane.b32.xlu0 %v2447_v58, %s7445_s21  ;;  %4229 = vrot.lane.b32.xlu1 %v4206_v32, %s7445_s21 }
 0x9d5   :  { %4181 = vrot.lane.b32.xlu2 %v4158_v0, %s7445_s21  ;;  %v2257_v32 = vpop.f32.mrf.mxu3 }
 0x9d6   :  { %v11563_v31 = vpop.permute.xlu0 %5307  ;;  %v11567_v10 = vpop.permute.xlu1 %5309  ;;  %v2451_v61 = vadd.f32 %v2317_v23, %v2257_v32 }
 0x9d7   :  { %14065 = vst [vmem:[#allocation401_spill] sm:$0xff] %v11563_v31  ;;  %v11565_v28 = vpop.permute.xlu2 %4097 }
 0x9d8   :  { %14066 = vst [vmem:[#allocation402_spill] sm:$0xff] %v11567_v10  ;;  %v2450_v10 = vadd.f32 %v2317_v23, %v2254_v20 }
 0x9dc   :  { %4417 = vrot.lane.b32.xlu0 %v2448_v60, %s7451_s28  ;;  %6009 = vrot.lane.b32.xlu1 %v2448_v60, %s7445_s21 }
 0x9dd   :  { %4299 = vrot.lane.b32.xlu2 %v11571_v7, %s7445_s21 }
 0x9de   :  { %v11577_v26 = vpop.permute.xlu0 %5427  ;;  %v11581_v31 = vpop.permute.xlu1 %5429 }
 0x9df   :  { %14068 = vst [vmem:[#allocation404_spill] sm:$0xff] %v11577_v26  ;;  %v11579_v0 = vpop.permute.xlu2 %4053  ;;  %v2259_v26 = vpop.f32.mrf.mxu3 }
 0x9e0   :  { %14069 = vst [vmem:[#allocation405_spill] sm:$0xff] %v11579_v0  ;;  %v2452_v62 = vadd.f32 %v2317_v23, %v2259_v26  ;;  %v14090_v0 = vld [vmem:[#allocation42_spill] sm:$0xff] }
 0x9e1   :  { %14070 = vst [vmem:[#allocation406_spill] sm:$0xff] %v11581_v31 }
 0x9e4   :  { %6013 = vrot.lane.b32.xlu0 %v2450_v10, %s7445_s21  ;;  %4419 = vrot.lane.b32.xlu1 %v2449_v17, %s7451_s28 }
 0x9e5   :  { %4415 = vrot.lane.b32.xlu2 %v2447_v58, %s7451_s28 }
 0x9e6   :  { %v11586_v57 = vpop.permute.xlu0 %4049  ;;  %v11590_v60 = vpop.permute.xlu1 %4051 }
 0x9e7   :  { %14071 = vst [vmem:[#allocation407_spill] sm:$0xff] %v11586_v57  ;;  %v11588_v2 = vpop.permute.xlu2 %4169  ;;  %v2262_v31 = vpop.f32.mrf.mxu3 }
 0x9e8   :  { %14072 = vst [vmem:[#allocation408_spill] sm:$0xff] %v11588_v2  ;;  %v2453_v46 = vadd.f32 %v2317_v23, %v2262_v31 }
 0x9e9   :  { %14073 = vst [vmem:[#allocation409_spill] sm:$0xff] %v11590_v60  ;;  %v14093_v60 = vld [vmem:[#allocation49_spill] sm:$0xff] }
 0x9ec   :  { %4423 = vrot.lane.b32.xlu0 %v2451_v61, %s7451_s28  ;;  %4425 = vrot.lane.b32.xlu1 %v2452_v62, %s7451_s28 }
 0x9ed   :  { %6011 = vrot.lane.b32.xlu2 %v2449_v17, %s7445_s21 }
 0x9ee   :  { %v11595_v34 = vpop.permute.xlu0 %4099  ;;  %v11597_v20 = vpop.permute.xlu1 %4101 }
 0x9ef   :  { %v4288_v58 = vpop.permute.xlu2 %4287  ;;  %v2264_v18 = vpop.f32.mrf.mxu3 }
 0x9f0   :  { %v4359_v17 = vmul.f32 %v4288_v58, %v11263_v36  ;;  %v2454_v39 = vadd.f32 %v2317_v23, %v2264_v18 }
 0x9f4   :  { %6015 = vrot.lane.b32.xlu0 %v2451_v61, %s7445_s21  ;;  %6017 = vrot.lane.b32.xlu1 %v2452_v62, %s7445_s21 }
 0x9f5   :  { %4421 = vrot.lane.b32.xlu2 %v2450_v10, %s7451_s28 }
 0x9f6   :  { %v11602_v32 = vpop.permute.xlu0 %4215  ;;  %v11606_v8 = vpop.permute.xlu1 %4167 }
 0x9f7   :  { %14074 = vst [vmem:[#allocation410_spill] sm:$0xff] %v11602_v32  ;;  %v11604_v26 = vpop.permute.xlu2 %4219  ;;  %v14083_v32 = vld [vmem:[#allocation37_spill] sm:$0xff] }
 0x9f8   :  { %14075 = vst [vmem:[#allocation411_spill] sm:$0xff] %v11604_v26  ;;  %v14079_v26 = vld [vmem:[#allocation35_spill] sm:$0xff] }
 0x9f9   :  { %14076 = vst [vmem:[#allocation412_spill] sm:$0xff] %v11606_v8  ;;  %v4311_v50 = vmul.f32 %v4288_v58, %v14079_v26  ;;  %v14086_v8 = vld [vmem:[#allocation44_spill] sm:$0xff] }
 0x9fc   :  { %4375 = vrot.lane.b32.xlu0 %v4359_v17, %s7450_s16  ;;  %6019 = vrot.lane.b32.xlu1 %v2453_v46, %s7445_s21 }
 0x9fd   :  { %4427 = vrot.lane.b32.xlu2 %v2453_v46, %s7451_s28  ;;  %v2267_v46 = vpop.f32.mrf.mxu3 }
 0x9fe   :  { %v11612_v61 = vpop.permute.xlu0 %5815  ;;  %v11616_v62 = vpop.permute.xlu1 %4217 }
 0x9ff   :  { %v11614_v10 = vpop.permute.xlu2 %5821  ;;  %14078 = vst [vmem:[#allocation414_spill] sm:$0xff] %v11616_v62  ;;  %v2302_v62 = vrot.slane %v14030_v24, 7 }
 0xa00   :  { %14077 = vst [vmem:[#allocation413_spill] sm:$0xff] %v11614_v10 }
 0xa04   :  { %4429 = vrot.lane.b32.xlu0 %v2454_v39, %s7451_s28  ;;  %4327 = vrot.lane.b32.xlu1 %v4311_v50, %s7450_s16  ;;  %v11635_v50 = vperm.slane %v2302_v62, 0 }
 0xa05   :  { %6021 = vrot.lane.b32.xlu2 %v2454_v39, %s7445_s21  ;;  %v2269_v39 = vpop.f32.mrf.mxu3 }
 0xa06   :  { %v11622_v31 = vpop.permute.xlu0 %4171  ;;  %v11626_v13 = vpop.permute.xlu1 %5817 }
 0xa07   :  { %14080 = vst [vmem:[#allocation35_spill] sm:$0xff] %v11622_v31  ;;  %v11624_v17 = vpop.permute.xlu2 %4175 }
 0xa08   :  { %14081 = vst [vmem:[#allocation415_spill] sm:$0xff] %v11624_v17  ;;  %v2455_v17 = vadd.f32 %v11635_v50, %v2267_v46 }
 0xa09   :  { %14082 = vst [vmem:[#allocation416_spill] sm:$0xff] %v11626_v13 }
 0xa0e   :  { %v4290_v7 = vpop.permute.xlu0 %4289  ;;  %v11630_v58 = vpop.permute.xlu1 %5819 }
 0xa0f   :  { %v4312_v56 = vmul.f32 %v4290_v7, %v14083_v32  ;;  %v4360_v18 = vmul.f32 %v4290_v7, %v11284_v16  ;;  %v4294_v23 = vpop.permute.xlu2 %4293  ;;  %14084 = vst [vmem:[#allocation37_spill] sm:$0xff] %v11630_v58 }
 0xa10   :  { %v4314_v2 = vmul.f32 %v4294_v23, %v14086_v8 }
 0xa11   :  { %4329 = vrot.lane.b32.xlu2 %v4312_v56, %s7450_s16  ;;  %4377 = vrot.lane.b32.xlu1 %v4360_v18, %s7450_s16  ;;  %v2272_v56 = vpop.f32.mrf.mxu3 }
 0xa12   :  { %v2457_v62 = vadd.f32 %v11635_v50, %v2272_v56  ;;  %v2456_v56 = vadd.f32 %v11635_v50, %v2269_v39 }
 0xa16   :  { %v11637_v31 = vpop.permute.xlu0 %4221  ;;  %v11643_v7 = vpop.permute.xlu1 %4173 }
 0xa17   :  { %14085 = vst [vmem:[#allocation417_spill] sm:$0xff] %v11637_v31  ;;  %v11641_v57 = vpop.permute.xlu2 %4225 }
 0xa18   :  { %14087 = vst [vmem:[#allocation418_spill] sm:$0xff] %v11643_v7 }
 0xa19   :  { %4543 = vrot.lane.b32.xlu2 %v2455_v17, %s7450_s16  ;;  %4333 = vrot.lane.b32.xlu1 %v4314_v2, %s7450_s16 }
 0xa1e   :  { %v11647_v24 = vpop.permute.xlu0 %4177  ;;  %v4292_v31 = vpop.permute.xlu1 %4291 }
 0xa1f   :  { %14088 = vst [vmem:[#allocation419_spill] sm:$0xff] %v11647_v24  ;;  %v11650_v18 = vpop.permute.xlu2 %5977  ;;  %v4313_v46 = vmul.f32 %v4292_v31, %v14090_v0  ;;  %v4361_v25 = vmul.f32 %v4292_v31, %v11304_v37  ;;  %v2274_v24 = vpop.f32.mrf.mxu3 }
 0xa20   :  { %14089 = vst [vmem:[#allocation420_spill] sm:$0xff] %v11650_v18 }
 0xa21   :  { %6127 = vrot.lane.b32.xlu2 %v2455_v17, %s7451_s28  ;;  %4547 = vrot.lane.b32.xlu1 %v2457_v62, %s7450_s16 }
 0xa22   :  { %4331 = vrot.lane.b32.xlu0 %v4313_v46, %s7450_s16 }
 0xa26   :  { %v4296_v7 = vpop.permute.xlu0 %4295  ;;  %v11659_v42 = vpop.permute.xlu1 %4223 }
 0xa27   :  { %v11657_v2 = vpop.permute.xlu2 %5979  ;;  %14092 = vst [vmem:[#allocation422_spill] sm:$0xff] %v11659_v42  ;;  %v4315_v46 = vmul.f32 %v4296_v7, %v14093_v60  ;;  %v4363_v3 = vmul.f32 %v4296_v7, %v11346_v51  ;;  %v4362_v7 = vmul.f32 %v4294_v23, %v11325_v38 }
 0xa28   :  { %14091 = vst [vmem:[#allocation421_spill] sm:$0xff] %v11657_v2 }
 0xa29   :  { %4379 = vrot.lane.b32.xlu2 %v4361_v25, %s7450_s16  ;;  %6131 = vrot.lane.b32.xlu1 %v2457_v62, %s7451_s28  ;;  %v2277_v25 = vpop.f32.mrf.mxu3  ;;  %v2458_v62 = vadd.f32 %v11635_v50, %v2274_v24 }
 0xa2a   :  { %4545 = vrot.lane.b32.xlu0 %v2456_v56, %s7450_s16  ;;  %v2459_v42 = vadd.f32 %v11635_v50, %v2277_v25 }
 0xa2e   :  { %v11665_v17 = vpop.permute.xlu0 %4227  ;;  %v11671_v49 = vpop.permute.xlu1 %5975 }
 0xa2f   :  { %v11669_v31 = vpop.permute.xlu2 %4181 }
 0xa30   :  { %14094 = vst [vmem:[#allocation423_spill] sm:$0xff] %v11669_v31 }
 0xa31   :  { %4335 = vrot.lane.b32.xlu2 %v4315_v46, %s7450_s16  ;;  %4383 = vrot.lane.b32.xlu1 %v4363_v3, %s7450_s16  ;;  %v2279_v23 = vpop.f32.mrf.mxu3 }
 0xa32   :  { %6129 = vrot.lane.b32.xlu0 %v2456_v56, %s7451_s28  ;;  %v14097_v56 = vld [vmem:[#allocation6_spill] sm:$0xff]  ;;  %v2460_v25 = vadd.f32 %v11635_v50, %v2279_v23 }
 0xa36   :  { %v11676_v39 = vpop.permute.xlu0 %5981  ;;  %v11680_v41 = vpop.permute.xlu1 %4179 }
 0xa37   :  { %14095 = vst [vmem:[#allocation424_spill] sm:$0xff] %v11676_v39  ;;  %v4300_v18 = vpop.permute.xlu2 %4299 }
 0xa38   :  { %14096 = vst [vmem:[#allocation425_spill] sm:$0xff] %v11680_v41  ;;  %v4317_v46 = vmul.f32 %v4300_v18, %v14097_v56  ;;  %v4365_v23 = vmul.f32 %v4300_v18, %v11392_v35 }
 0xa39   :  { %4549 = vrot.lane.b32.xlu2 %v2458_v62, %s7450_s16  ;;  %6135 = vrot.lane.b32.xlu1 %v2459_v42, %s7451_s28  ;;  %v2282_v10 = vpop.f32.mrf.mxu3 }
 0xa3a   :  { %4381 = vrot.lane.b32.xlu0 %v4362_v7, %s7450_s16 }
 0xa3e   :  { %v4302_v3 = vpop.permute.xlu0 %4301  ;;  %v4298_v39 = vpop.permute.xlu1 %4297 }
 0xa3f   :  { %v4416_v31 = vpop.permute.xlu2 %4415  ;;  %v4316_v24 = vmul.f32 %v4298_v39, %v14098_v1  ;;  %v4364_v41 = vmul.f32 %v4298_v39, %v11367_v33 }
 0xa40   :  { %v4439_v45 = vmul.f32 %v4416_v31, %v14079_v26  ;;  %v4487_v27 = vmul.f32 %v4416_v31, %v11263_v36 }
 0xa41   :  { %6133 = vrot.lane.b32.xlu2 %v2458_v62, %s7451_s28  ;;  %4339 = vrot.lane.b32.xlu1 %v4317_v46, %s7450_s16  ;;  %v4366_v62 = vmul.f32 %v4302_v3, %v11415_v4 }
 0xa42   :  { %4337 = vrot.lane.b32.xlu0 %v4316_v24, %s7450_s16 }
 0xa46   :  { %v11695_v7 = vpop.permute.xlu0 %6007  ;;  %v11697_v14 = vpop.permute.xlu1 %4229 }
 0xa47   :  { %v11693_v13 = vpop.permute.xlu2 %6011  ;;  %14100 = vst [vmem:[#allocation53_spill] sm:$0xff] %v11695_v7 }
 0xa48   :  { %14099 = vst [vmem:[#allocation6_spill] sm:$0xff] %v11693_v13 }
 0xa49   :  { %4385 = vrot.lane.b32.xlu2 %v4364_v41, %s7450_s16  ;;  %4553 = vrot.lane.b32.xlu1 %v2460_v25, %s7450_s16  ;;  %v14102_v41 = vld [vmem:[#allocation5_spill] sm:$0xff] }
 0xa4a   :  { %4551 = vrot.lane.b32.xlu0 %v2459_v42, %s7450_s16  ;;  %v4318_v2 = vmul.f32 %v4302_v3, %v14102_v41 }
 0xa4e   :  { %v11703_v24 = vpop.permute.xlu1 %6009  ;;  %v4418_v39 = vpop.permute.xlu0 %4417 }
 0xa4f   :  { %v4422_v46 = vpop.permute.xlu2 %4421  ;;  %14101 = vst [vmem:[#allocation426_spill] sm:$0xff] %v11703_v24  ;;  %v4488_v3 = vmul.f32 %v4418_v39, %v11284_v16 }
 0xa51   :  { %6137 = vrot.lane.b32.xlu2 %v2460_v25, %s7451_s28  ;;  %4389 = vrot.lane.b32.xlu1 %v4366_v62, %s7450_s16  ;;  %v2284_v25 = vpop.f32.mrf.mxu3  ;;  %v2461_v62 = vadd.f32 %v11635_v50, %v2282_v10 }
 0xa52   :  { %4387 = vrot.lane.b32.xlu0 %v4365_v23, %s7450_s16  ;;  %v2462_v48 = vadd.f32 %v11635_v50, %v2284_v25  ;;  %v6079_v50 = vmul.f32 %v11695_v7, %v11438_v63  ;;  %v4442_v25 = vmul.f32 %v4422_v46, %v14086_v8 }
 0xa56   :  { %v4420_v42 = vpop.permute.xlu1 %4419  ;;  %v11717_v18 = vpop.permute.xlu0 %6013 }
 0xa57   :  { %v11712_v58 = vpop.permute.xlu2 %4427  ;;  %14103 = vst [vmem:[#allocation5_spill] sm:$0xff] %v11717_v18  ;;  %v4441_v7 = vmul.f32 %v4420_v42, %v14090_v0 }
 0xa59   :  { %4341 = vrot.lane.b32.xlu2 %v4318_v2, %s7450_s16  ;;  %4455 = vrot.lane.b32.xlu1 %v4439_v45, %s7451_s28 }
 0xa5a   :  { %4503 = vrot.lane.b32.xlu0 %v4487_v27, %s7451_s28  ;;  %v6081_v27 = vmul.f32 %v11693_v13, %v11492_v44  ;;  %v6080_v13 = vmul.f32 %v11703_v24, %v11461_v12 }
 0xa5e   :  { %v11721_v23 = vpop.permute.xlu1 %4425  ;;  %v4424_v45 = vpop.permute.xlu0 %4423 }
 0xa5f   :  { %v11726_v2 = vpop.permute.xlu2 %6021 }
 0xa60   :  { %14104 = vst [vmem:[#allocation427_spill] sm:$0xff] %v11726_v2 }
 0xa61   :  { %4555 = vrot.lane.b32.xlu2 %v2461_v62, %s7450_s16  ;;  %4505 = vrot.lane.b32.xlu1 %v4488_v3, %s7451_s28 }
 0xa62   :  { %4557 = vrot.lane.b32.xlu0 %v2462_v48, %s7450_s16 }
 0xa66   :  { %v11731_v31 = vpop.permute.xlu1 %6017  ;;  %v11741_v3 = vpop.permute.xlu0 %6015 }
 0xa67   :  { %14105 = vst [vmem:[#allocation428_spill] sm:$0xff] %v11731_v31  ;;  %v6082_v31 = vmul.f32 %v11717_v18, %v11514_v54 }
 0xa68   :  { %14107 = vst [vmem:[#allocation430_spill] sm:$0xff] %v11741_v3 }
 0xa69   :  { %6139 = vrot.lane.b32.xlu2 %v2461_v62, %s7451_s28  ;;  %6099 = vrot.lane.b32.xlu1 %v6081_v27, %s7451_s28  ;;  %v4440_v62 = vmul.f32 %v4418_v39, %v14083_v32  ;;  %v4491_v27 = vmul.f32 %v4424_v45, %v11346_v51  ;;  %v4445_v39 = vmul.f32 %v11712_v58, %v14097_v56 }
 0xa6a   :  { %6141 = vrot.lane.b32.xlu0 %v2462_v48, %s7451_s28 }
 0xa6b   :  { %v11736_v10 = vpop.permute.xlu2 %4329 }
 0xa6c   :  { %14106 = vst [vmem:[#allocation429_spill] sm:$0xff] %v11736_v10 }
 0xa6e   :  { %v11745_v2 = vpop.permute.xlu1 %6019  ;;  %v11755_v24 = vpop.permute.xlu0 %4375 }
 0xa6f   :  { %14108 = vst [vmem:[#allocation431_spill] sm:$0xff] %v11745_v2 }
 0xa70   :  { %14109 = vst [vmem:[#allocation432_spill] sm:$0xff] %v11755_v24  ;;  %v14114_v24 = vld [vmem:[#allocation206_spill] sm:$0xff] }
 0xa71   :  { %6095 = vrot.lane.b32.xlu2 %v6079_v50, %s7451_s28  ;;  %4461 = vrot.lane.b32.xlu1 %v4442_v25, %s7451_s28  ;;  %v4490_v25 = vmul.f32 %v4422_v46, %v11325_v38 }
 0xa72   :  { %6097 = vrot.lane.b32.xlu0 %v6080_v13, %s7451_s28  ;;  %v4489_v13 = vmul.f32 %v4420_v42, %v11304_v37 }
 0xa73   :  { %v4544_v48 = vpop.permute.xlu2 %4543 }
 0xa76   :  { %v11757_v2 = vpop.permute.xlu1 %4327  ;;  %v4430_v10 = vpop.permute.xlu0 %4429 }
 0xa77   :  { %14110 = vst [vmem:[#allocation433_spill] sm:$0xff] %v11757_v2  ;;  %v4494_v46 = vmul.f32 %v4430_v10, %v11415_v4 }
 0xa79   :  { %4457 = vrot.lane.b32.xlu2 %v4440_v62, %s7451_s28  ;;  %4511 = vrot.lane.b32.xlu1 %v4491_v27, %s7451_s28 }
 0xa7a   :  { %4459 = vrot.lane.b32.xlu0 %v4441_v7, %s7451_s28  ;;  %v14113_v7 = vld [vmem:[#allocation50_spill] sm:$0xff] }
 0xa7b   :  { %v11760_v50 = vpop.permute.xlu2 %6127  ;;  %v3028_v2 = vmul.f32 %v14114_v24, %v14113_v7 }
 0xa7c   :  { %14111 = vst [vmem:[#allocation434_spill] sm:$0xff] %v11760_v50 }
 0xa7d   :  { %v3156_v42 = vadd.f32 %v10974_v59, %v3028_v2  ;;  %v14117_v2 = vld [vmem:[#allocation90_spill] sm:$0xff] }
 0xa7e   :  { %v3436_v18 = vmul.f32 %v10783_v22, %v14117_v2 }
 0xa81   :  { %4507 = vrot.lane.b32.xlu2 %v4489_v13, %s7451_s28  ;;  %4467 = vrot.lane.b32.xlu1 %v4445_v39, %s7451_s28  ;;  %v3284_v13 = vadd.f32 %v10992_v47, %v3156_v42  ;;  %v4444_v39 = vmul.f32 %v11721_v23, %v14098_v1  ;;  %v4443_v47 = vmul.f32 %v4424_v45, %v14093_v60 }
 0xa82   :  { %4509 = vrot.lane.b32.xlu0 %v4490_v25, %s7451_s28  ;;  %v4567_v42 = vmul.f32 %v4544_v48, %v14079_v26 }
 0xa83   :  { %v11769_v62 = vpop.permute.xlu1 %4377  ;;  %v11771_v27 = vpop.permute.xlu2 %4379  ;;  %v3412_v25 = vadd.f32 %v11008_v19, %v3284_v13 }
 0xa84   :  { %14112 = vst [vmem:[#allocation435_spill] sm:$0xff] %v11771_v27 }
 0xa85   :  { %v3444_v27 = vadd.f32 %v3436_v18, %v3412_v25  ;;  %v4615_v25 = vmul.f32 %v4544_v48, %v11263_v36  ;;  %v14122_v48 = vld [vmem:[#allocation226_spill] sm:$0xff] }
 0xa89   :  { %6101 = vrot.lane.b32.xlu2 %v6082_v31, %s7451_s28  ;;  %4517 = vrot.lane.b32.xlu1 %v4494_v46, %s7451_s28  ;;  %v3572_v31 = vadd.f32 %v11082_v29, %v3444_v27  ;;  %v4493_v46 = vmul.f32 %v11712_v58, %v11392_v35  ;;  %v4492_v58 = vmul.f32 %v11721_v23, %v11367_v33 }
 0xa8a   :  { %4465 = vrot.lane.b32.xlu0 %v4444_v39, %s7451_s28  ;;  %v14119_v39 = vld [vmem:[#allocation159_spill] sm:$0xff] }
 0xa8b   :  { %v11786_v24 = vpop.permute.xlu1 %4333  ;;  %v11788_v59 = vpop.permute.xlu2 %4335  ;;  %v3700_v19 = vadd.f32 %v11096_v55, %v3572_v31  ;;  %v3852_v29 = vmul.f32 %v10500_v52, %v14119_v39 }
 0xa8c   :  { %14115 = vst [vmem:[#allocation50_spill] sm:$0xff] %v11786_v24  ;;  %v14141_v24 = vld [vmem:[#allocation211_spill] sm:$0xff] }
 0xa8d   :  { %14116 = vst [vmem:[#allocation206_spill] sm:$0xff] %v11788_v59  ;;  %v3828_v18 = vadd.f32 %v11111_v9, %v3700_v19  ;;  %v6199_v19 = vmul.f32 %v11760_v50, %v11438_v63  ;;  %v14135_v50 = vld [vmem:[#allocation207_spill] sm:$0xff]  ;;  %v14145_v59 = vld [vmem:[#allocation89_spill] sm:$0xff] }
 0xa8f   :  { %v3860_v27 = vadd.f32 %v3852_v29, %v3828_v18  ;;  %v14124_v29 = vld [vmem:[#allocation56_spill] sm:$0xff] }
 0xa91   :  { %4463 = vrot.lane.b32.xlu2 %v4443_v47, %s7451_s28  ;;  %4583 = vrot.lane.b32.xlu1 %v4567_v42, %s7445_s21  ;;  %v3988_v55 = vadd.f32 %v11180_v40, %v3860_v27  ;;  %v4268_v40 = vmul.f32 %v11367_v33, %v14122_v48 }
 0xa92   :  { %4515 = vrot.lane.b32.xlu0 %v4493_v46, %s7451_s28  ;;  %v4446_v46 = vmul.f32 %v4430_v10, %v14102_v41 }
 0xa93   :  { %v4548_v13 = vpop.permute.xlu1 %4547  ;;  %v11801_v22 = vpop.permute.xlu2 %4549  ;;  %v4116_v42 = vadd.f32 %v11565_v28, %v3988_v55 }
 0xa94   :  { %v11804_v45 = vpop.permute.xlu0 %4331 }
 0xa95   :  { %14118 = vst [vmem:[#allocation90_spill] sm:$0xff] %v11804_v45  ;;  %v4244_v52 = vadd.f32 %v11641_v57, %v4116_v42  ;;  %v14144_v45 = vld [vmem:[#allocation64_spill] sm:$0xff] }
 0xa97   :  { %v4276_v18 = vadd.f32 %v4268_v40, %v4244_v52  ;;  %v14128_v40 = vld [vmem:[#allocation343_spill] sm:$0xff] }
 0xa99   :  { %4513 = vrot.lane.b32.xlu2 %v4492_v58, %s7451_s28  ;;  %v14125_v58 = vld [vmem:[#allocation214_spill] sm:$0xff] }
 0xa9a   :  { %4631 = vrot.lane.b32.xlu0 %v4615_v25, %s7445_s21  ;;  %v3030_v27 = vmul.f32 %v14125_v58, %v14124_v29  ;;  %v14130_v58 = vld [vmem:[#allocation193_spill] sm:$0xff] }
 0xa9b   :  { %v11814_v47 = vpop.permute.xlu1 %6131  ;;  %v11816_v9 = vpop.permute.xlu2 %6133 }
 0xa9c   :  { %14120 = vst [vmem:[#allocation159_spill] sm:$0xff] %v11814_v47  ;;  %v4546_v31 = vpop.permute.xlu0 %4545  ;;  %v3158_v55 = vadd.f32 %v10976_v5, %v3030_v27 }
 0xa9d   :  { %14121 = vst [vmem:[#allocation436_spill] sm:$0xff] %v11816_v9  ;;  %v4616_v23 = vmul.f32 %v4546_v31, %v11284_v16 }
 0xa9e   :  { %v3286_v52 = vadd.f32 %v10994_v43, %v3158_v55  ;;  %v4570_v55 = vmul.f32 %v11801_v22, %v14086_v8 }
 0xa9f   :  { %4633 = vrot.lane.b32.xlu1 %v4616_v23, %s7445_s21  ;;  %v4568_v23 = vmul.f32 %v4546_v31, %v14083_v32 }
 0xaa1   :  { %4469 = vrot.lane.b32.xlu2 %v4446_v46, %s7451_s28  ;;  %v4569_v46 = vmul.f32 %v4548_v13, %v14090_v0 }
 0xaa2   :  { %6215 = vrot.lane.b32.xlu0 %v6199_v19, %s7445_s21  ;;  %v3414_v19 = vadd.f32 %v14128_v40, %v3286_v52  ;;  %v6201_v52 = vmul.f32 %v11814_v47, %v11492_v44  ;;  %v14134_v40 = vld [vmem:[#allocation58_spill] sm:$0xff] }
 0xaa3   :  { %v11829_v28 = vpop.permute.xlu1 %4383  ;;  %v4386_v57 = vpop.permute.xlu2 %4385 }
 0xaa4   :  { %14123 = vst [vmem:[#allocation226_spill] sm:$0xff] %v11829_v28  ;;  %v11833_v10 = vadd.f32 %v4386_v57, %v4276_v18  ;;  %v11835_v25 = vpop.permute.xlu0 %6129  ;;  %v14129_v57 = vld [vmem:[#allocation70_spill] sm:$0xff]  ;;  %v14138_v28 = vld [vmem:[#allocation352_spill] sm:$0xff] }
 0xaa5   :  { %14127 = vst [vmem:[#allocation214_spill] sm:$0xff] %v11835_v25  ;;  %v6200_v42 = vmul.f32 %v11835_v25, %v11461_v12  ;;  %v3438_v27 = vmul.f32 %v14130_v58, %v14129_v57 }
 0xaa6   :  { %14126 = vst [vmem:[#allocation56_spill] sm:$0xff] %v11833_v10 }
 0xaa7   :  { %6217 = vrot.lane.b32.xlu1 %v6200_v42, %s7445_s21  ;;  %v3446_v43 = vadd.f32 %v3438_v27, %v3414_v19  ;;  %v4617_v42 = vmul.f32 %v4548_v13, %v11304_v37  ;;  %v14136_v13 = vld [vmem:[#allocation161_spill] sm:$0xff] }
 0xaa9   :  { %4585 = vrot.lane.b32.xlu2 %v4568_v23, %s7445_s21  ;;  %v14132_v23 = vld [vmem:[#allocation348_spill] sm:$0xff] }
 0xaaa   :  { %4587 = vrot.lane.b32.xlu0 %v4569_v46, %s7445_s21  ;;  %v3574_v25 = vadd.f32 %v14132_v23, %v3446_v43  ;;  %v14133_v46 = vld [vmem:[#allocation341_spill] sm:$0xff]  ;;  %v14137_v23 = vld [vmem:[#allocation350_spill] sm:$0xff] }
 0xaab   :  { %v11847_v18 = vpop.permute.xlu1 %6135  ;;  %v11849_v5 = vpop.permute.xlu2 %6137  ;;  %v3573_v58 = vadd.f32 %v14134_v40, %v14133_v46  ;;  %v14142_v40 = vld [vmem:[#allocation134_spill] sm:$0xff] }
 0xaac   :  { %v11853_v31 = vpop.permute.xlu0 %4381  ;;  %v3702_v10 = vadd.f32 %v14135_v50, %v3574_v25  ;;  %v14143_v25 = vld [vmem:[#allocation94_spill] sm:$0xff] }
 0xaad   :  { %14131 = vst [vmem:[#allocation343_spill] sm:$0xff] %v11853_v31  ;;  %v3701_v43 = vadd.f32 %v14136_v13, %v3573_v58  ;;  %v14139_v31 = vld [vmem:[#allocation191_spill] sm:$0xff]  ;;  %v3853_v58 = vmul.f32 %v10524_v6, %v14145_v59  ;;  %v14149_v6 = vld [vmem:[#allocation208_spill] sm:$0xff] }
 0xaae   :  { %v5199_v47 = vadd.f32 %v14139_v31, %v14138_v28  ;;  %v4618_v28 = vmul.f32 %v11801_v22, %v11325_v38  ;;  %v14147_v31 = vld [vmem:[#allocation232_spill] sm:$0xff] }
 0xaaf   :  { %4589 = vrot.lane.b32.xlu1 %v4570_v55, %s7445_s21  ;;  %v3830_v55 = vadd.f32 %v14137_v23, %v3702_v10  ;;  %v3829_v50 = vadd.f32 %v14142_v40, %v3701_v43  ;;  %v14146_v10 = vld [vmem:[#allocation151_spill] sm:$0xff]  ;;  %v14148_v40 = vld [vmem:[#allocation358_spill] sm:$0xff] }
 0xab0   :  { %v5319_v8 = vadd.f32 %v14144_v45, %v5199_v47 }
 0xab1   :  { %4635 = vrot.lane.b32.xlu2 %v4617_v42, %s7445_s21  ;;  %v14140_v42 = vld [vmem:[#allocation340_spill] sm:$0xff]  ;;  %v3861_v43 = vadd.f32 %v3853_v58, %v3829_v50  ;;  %v14150_v58 = vld [vmem:[#allocation342_spill] sm:$0xff] }
 0xab2   :  { %6219 = vrot.lane.b32.xlu0 %v6201_v52, %s7445_s21  ;;  %v5683_v46 = vmul.f32 %v14141_v24, %v14140_v42  ;;  %v3854_v52 = vmul.f32 %v10544_v30, %v14143_v25  ;;  %v5439_v23 = vadd.f32 %v14146_v10, %v5319_v8  ;;  %v5495_v24 = vmul.f32 %v14147_v31, %v10562_v53 }
 0xab3   :  { %v11867_v19 = vpop.permute.xlu1 %4339  ;;  %v11869_v27 = vpop.permute.xlu2 %4341  ;;  %v3989_v47 = vadd.f32 %v14149_v6, %v3861_v43  ;;  %v6202_v53 = vmul.f32 %v11816_v9, %v11514_v54 }
 0xab4   :  { %v11875_v37 = vpop.permute.xlu0 %4337  ;;  %v3862_v13 = vadd.f32 %v3854_v52, %v3830_v55  ;;  %v5503_v55 = vadd.f32 %v5495_v24, %v5439_v23  ;;  %v14156_v23 = vld [vmem:[#allocation205_spill] sm:$0xff] }
 0xab5   :  { %v4117_v52 = vadd.f32 %v11595_v34, %v3989_v47  ;;  %v14155_v34 = vld [vmem:[#allocation126_spill] sm:$0xff]  ;;  %v14157_v47 = vld [vmem:[#allocation153_spill] sm:$0xff] }
 0xab6   :  { %v3990_v0 = vadd.f32 %v14148_v40, %v3862_v13  ;;  %v14151_v13 = vld [vmem:[#allocation77_spill] sm:$0xff]  ;;  %v14153_v40 = vld [vmem:[#allocation327_spill] sm:$0xff] }
 0xab7   :  { %5703 = vrot.lane.b32.xlu1 %v5683_v46, %s7451_s28  ;;  %v4706_v10 = vmul.f32 %v14151_v13, %v14150_v58  ;;  %v5599_v43 = vadd.f32 %v14153_v40, %v5503_v55  ;;  %v4245_v24 = vadd.f32 %v11665_v17, %v4117_v52  ;;  %v14158_v58 = vld [vmem:[#allocation228_spill] sm:$0xff]  ;;  %v14160_v52 = vld [vmem:[#allocation138_spill] sm:$0xff] }
 0xab8   :  { %v4118_v8 = vadd.f32 %v11597_v20, %v3990_v0  ;;  %v14154_v0 = vld [vmem:[#allocation231_spill] sm:$0xff]  ;;  %v4269_v31 = vmul.f32 %v11392_v35, %v14158_v58  ;;  %v14159_v40 = vld [vmem:[#allocation164_spill] sm:$0xff] }
 0xab9   :  { %v4802_v6 = vadd.f32 %v14156_v23, %v4706_v10 }
 0xaba   :  { %4637 = vrot.lane.b32.xlu0 %v4618_v28, %s7445_s21  ;;  %v4246_v22 = vadd.f32 %v11697_v14, %v4118_v8  ;;  %v11904_v28 = vpop.f32.mrf.mxu2  ;;  %v4270_v14 = vmul.f32 %v11415_v4, %v14154_v0  ;;  %v5719_v8 = vadd.f32 %v14157_v47, %v5599_v43  ;;  %v4277_v38 = vadd.f32 %v4269_v31, %v4245_v24  ;;  %v14163_v43 = vld [vmem:[#allocation361_spill] sm:$0xff]  ;;  %v14164_v47 = vld [vmem:[#allocation224_spill] sm:$0xff] }
 0xabb   :  { %v4554_v30 = vpop.permute.xlu1 %4553  ;;  %v11893_v45 = vpop.permute.xlu2 %4555  ;;  %14152 = vst [vmem:[#allocation70_spill] sm:$0xff] %v11904_v28  ;;  %v5564_v20 = vmul.f32 %v11904_v28, %v14155_v34  ;;  %v4922_v17 = vadd.f32 %v14159_v40, %v4802_v6  ;;  %v14167_v31 = vld [vmem:[#allocation365_spill] sm:$0xff] }
 0xabc   :  { %v4552_v46 = vpop.permute.xlu0 %4551  ;;  %v4278_v55 = vadd.f32 %v4270_v14, %v4246_v22  ;;  %v5839_v34 = vadd.f32 %v11612_v61, %v5719_v8  ;;  %v5895_v14 = vmul.f32 %v11453_v11, %v11438_v63  ;;  %v14168_v63 = vld [vmem:[#allocation209_spill] sm:$0xff] }
 0xabd   :  { %v4571_v50 = vmul.f32 %v4552_v46, %v14093_v60  ;;  %v5042_v23 = vadd.f32 %v14163_v43, %v4922_v17  ;;  %v4619_v6 = vmul.f32 %v4552_v46, %v11346_v51 }
 0xabe   :  { %v5903_v8 = vadd.f32 %v5895_v14, %v5839_v34  ;;  %v14172_v14 = vld [vmem:[#allocation355_spill] sm:$0xff] }
 0xabf   :  { %4591 = vrot.lane.b32.xlu2 %v4571_v50, %s7445_s21  ;;  %6221 = vrot.lane.b32.xlu1 %v6202_v53, %s7445_s21  ;;  %v14161_v50 = vld [vmem:[#allocation156_spill] sm:$0xff] }
 0xac0   :  { %v5201_v13 = vadd.f32 %v14161_v50, %v14160_v52  ;;  %v14165_v52 = vld [vmem:[#allocation349_spill] sm:$0xff]  ;;  %v14166_v50 = vld [vmem:[#allocation176_spill] sm:$0xff] }
 0xac1   :  { %v5098_v61 = vmul.f32 %v14166_v50, %v14165_v52  ;;  %v14175_v52 = vld [vmem:[#allocation166_spill] sm:$0xff] }
 0xac2   :  { %5585 = vrot.lane.b32.xlu0 %v5564_v20, %s7450_s16  ;;  %v5321_v60 = vadd.f32 %v14164_v47, %v5201_v13  ;;  %v4620_v20 = vmul.f32 %v4554_v30, %v11367_v33  ;;  %v4572_v13 = vmul.f32 %v4554_v30, %v14098_v1  ;;  %v5999_v33 = vadd.f32 %v11671_v49, %v5903_v8  ;;  %v14171_v30 = vld [vmem:[#allocation320_spill] sm:$0xff]  ;;  %v14174_v49 = vld [vmem:[#allocation66_spill] sm:$0xff] }
 0xac3   :  { %v4390_v53 = vpop.permute.xlu1 %4389  ;;  %v11922_v9 = vpop.permute.xlu2 %6139  ;;  %v5106_v46 = vadd.f32 %v5098_v61, %v5042_v23 }
 0xac4   :  { %14162 = vst [vmem:[#allocation193_spill] sm:$0xff] %v11922_v9  ;;  %v11925_v10 = vadd.f32 %v4390_v53, %v4278_v55  ;;  %v4388_v22 = vpop.permute.xlu0 %4387  ;;  %v5441_v24 = vadd.f32 %v14167_v31, %v5321_v60  ;;  %v5497_v55 = vmul.f32 %v14168_v63, %v10739_v21  ;;  %v14169_v53 = vld [vmem:[#allocation93_spill] sm:$0xff]  ;;  %v14173_v21 = vld [vmem:[#allocation62_spill] sm:$0xff] }
 0xac5   :  { %v11933_v40 = vadd.f32 %v4388_v22, %v4277_v38  ;;  %v5202_v60 = vadd.f32 %v14169_v53, %v5106_v46  ;;  %v5684_v22 = vmul.f32 %v14171_v30, %v11904_v28  ;;  %v5200_v23 = vadd.f32 %v14173_v21, %v14172_v14  ;;  %v14176_v31 = vld [vmem:[#allocation369_spill] sm:$0xff]  ;;  %v14181_v14 = vld [vmem:[#allocation323_spill] sm:$0xff]  ;;  %v14182_v21 = vld [vmem:[#allocation236_spill] sm:$0xff] }
 0xac6   :  { %v5505_v34 = vadd.f32 %v5497_v55, %v5441_v24  ;;  %v14177_v24 = vld [vmem:[#allocation203_spill] sm:$0xff]  ;;  %v14178_v55 = vld [vmem:[#allocation54_spill] sm:$0xff]  ;;  %v14179_v46 = vld [vmem:[#allocation17_spill] sm:$0xff]  ;;  %v5498_v11 = vmul.f32 %v14182_v21, %v14181_v14 }
 0xac7   :  { %4641 = vrot.lane.b32.xlu2 %v4620_v20, %s7445_s21  ;;  %4639 = vrot.lane.b32.xlu1 %v4619_v6, %s7445_s21  ;;  %v5804_v6 = vmul.f32 %v14174_v49, %v11904_v28  ;;  %v5322_v20 = vadd.f32 %v11359_v15, %v5202_v60  ;;  %v5320_v61 = vadd.f32 %v14175_v52, %v5200_v23  ;;  %v14183_v15 = vld [vmem:[#allocation18_spill] sm:$0xff]  ;;  %v14184_v23 = vld [vmem:[#allocation8_spill] sm:$0xff]  ;;  %v14191_v49 = vld [vmem:[#allocation37_spill] sm:$0xff] }
 0xac8   :  { %v3022_v60 = vmul.f32 %v14183_v15, %v14124_v29  ;;  %v14185_v52 = vld [vmem:[#allocation374_spill] sm:$0xff]  ;;  %v14195_v28 = vld [vmem:[#allocation36_spill] sm:$0xff] }
 0xac9   :  { %v5442_v8 = vadd.f32 %v14176_v31, %v5322_v20  ;;  %v5440_v20 = vadd.f32 %v14184_v23, %v5320_v61  ;;  %v14186_v31 = vld [vmem:[#allocation227_spill] sm:$0xff]  ;;  %v14190_v63 = vld [vmem:[#allocation294_spill] sm:$0xff]  ;;  %v14205_v30 = vld [vmem:[#allocation12_spill] sm:$0xff] }
 0xaca   :  { %4593 = vrot.lane.b32.xlu0 %v4572_v13, %s7445_s21  ;;  %v5601_v13 = vadd.f32 %v14177_v24, %v5505_v34  ;;  %v3110_v14 = vadd.f32 %v14190_v63, %v3022_v60  ;;  %v14192_v15 = vld [vmem:[#allocation230_spill] sm:$0xff]  ;;  %v14197_v63 = vld [vmem:[#allocation237_spill] sm:$0xff]  ;;  %v11995_v60 = vpop.f32.mrf.mxu0 }
 0xacb   :  { %v11945_v38 = vpop.permute.xlu1 %4455  ;;  %v6096_v17 = vpop.permute.xlu2 %6095  ;;  %v5506_v21 = vadd.f32 %v5498_v11, %v5442_v8  ;;  %v14198_v8 = vld [vmem:[#allocation244_spill] sm:$0xff] }
 0xacc   :  { %v11948_v43 = vadd.f32 %v6096_v17, %v5999_v33  ;;  %v11950_v47 = vpop.permute.xlu0 %4503  ;;  %v3021_v33 = vmul.f32 %v14179_v46, %v14178_v55  ;;  %v14180_v17 = vld [vmem:[#allocation357_spill] sm:$0xff]  ;;  %v5721_v34 = vadd.f32 %v14185_v52, %v5601_v13  ;;  %v14189_v46 = vld [vmem:[#allocation234_spill] sm:$0xff]  ;;  %v14193_v13 = vld [vmem:[#allocation16_spill] sm:$0xff] }
 0xacd   :  { %v5803_v53 = vmul.f32 %v14180_v17, %v14140_v42  ;;  %v14188_v55 = vld [vmem:[#allocation133_spill] sm:$0xff]  ;;  %v3020_v23 = vmul.f32 %v14193_v13, %v14113_v7  ;;  %v4573_v17 = vmul.f32 %v11893_v45, %v14097_v56  ;;  %v14200_v7 = vld [vmem:[#allocation180_spill] sm:$0xff]  ;;  %v14203_v13 = vld [vmem:[#allocation122_spill] sm:$0xff] }
 0xace   :  { %14170 = vst [vmem:[#allocation348_spill] sm:$0xff] %v11948_v43  ;;  %v5496_v50 = vmul.f32 %v14189_v46, %v14188_v55  ;;  %v5841_v29 = vadd.f32 %v14191_v49, %v5721_v34  ;;  %v14196_v55 = vld [vmem:[#allocation11_spill] sm:$0xff]  ;;  %v14199_v34 = vld [vmem:[#allocation245_spill] sm:$0xff]  ;;  %v14211_v42 = vld [vmem:[#allocation222_spill] sm:$0xff] }
 0xacf   :  { %5825 = vrot.lane.b32.xlu1 %v5804_v6, %s7445_s21  ;;  %5705 = vrot.lane.b32.xlu2 %v5684_v22, %s7451_s28  ;;  %v3109_v6 = vadd.f32 %v14186_v31, %v3021_v33  ;;  %v3015_v46 = vmul.f32 %v14196_v55, %v14195_v28  ;;  %v3108_v49 = vadd.f32 %v14198_v8, %v3020_v23  ;;  %v14204_v55 = vld [vmem:[#allocation38_spill] sm:$0xff] }
 0xad0   :  { %v5504_v52 = vadd.f32 %v5496_v50, %v5440_v20  ;;  %v14202_v20 = vld [vmem:[#allocation68_spill] sm:$0xff]  ;;  %v4621_v8 = vmul.f32 %v11893_v45, %v11392_v35 }
 0xad1   :  { %v3237_v61 = vadd.f32 %v14192_v15, %v3109_v6  ;;  %v3238_v6 = vadd.f32 %v14199_v34, %v3110_v14  ;;  %v5602_v15 = vadd.f32 %v14200_v7, %v5506_v21  ;;  %v14207_v14 = vld [vmem:[#allocation183_spill] sm:$0xff]  ;;  %v14208_v21 = vld [vmem:[#allocation377_spill] sm:$0xff]  ;;  %v14210_v7 = vld [vmem:[#allocation128_spill] sm:$0xff]  ;;  %v3103_v9 = vadd.f32 %v14211_v42, %v3015_v46 }
 0xad2   :  { %5823 = vrot.lane.b32.xlu0 %v5803_v53, %s7445_s21  ;;  %v14194_v53 = vld [vmem:[#allocation393_spill] sm:$0xff]  ;;  %v5600_v34 = vadd.f32 %v14207_v14, %v5504_v52  ;;  %v3422_v51 = vmul.f32 %v14210_v7, %v14129_v57  ;;  %v14214_v35 = vld [vmem:[#allocation256_spill] sm:$0xff]  ;;  %v14223_v7 = vld [vmem:[#allocation395_spill] sm:$0xff] }
 0xad3   :  { %v11976_v22 = vpop.permute.xlu1 %4505  ;;  %v11978_v24 = vpop.permute.xlu2 %4457  ;;  %v5897_v31 = vmul.f32 %v14194_v53, %v11492_v44  ;;  %v3365_v11 = vadd.f32 %v14197_v63, %v3237_v61  ;;  %v14201_v44 = vld [vmem:[#allocation223_spill] sm:$0xff]  ;;  %v3421_v53 = vmul.f32 %v14203_v13, %v14202_v20  ;;  %v3016_v61 = vmul.f32 %v14205_v30, %v14204_v55  ;;  %v14206_v63 = vld [vmem:[#allocation306_spill] sm:$0xff]  ;;  %v14215_v52 = vld [vmem:[#allocation221_spill] sm:$0xff] }
 0xad4   :  { %14187 = vst [vmem:[#allocation341_spill] sm:$0xff] %v11976_v22  ;;  %v4558_v33 = vpop.permute.xlu0 %4557  ;;  %v3236_v23 = vadd.f32 %v14206_v63, %v3108_v49  ;;  %v14212_v13 = vld [vmem:[#allocation238_spill] sm:$0xff]  ;;  %v3366_v45 = vadd.f32 %v14214_v35, %v3238_v6  ;;  %v5720_v63 = vadd.f32 %v14215_v52, %v5600_v34  ;;  %v14220_v46 = vld [vmem:[#allocation304_spill] sm:$0xff] }
 0xad5   :  { %v5905_v50 = vadd.f32 %v5897_v31, %v5841_v29  ;;  %v5722_v29 = vadd.f32 %v14208_v21, %v5602_v15  ;;  %v14209_v31 = vld [vmem:[#allocation421_spill] sm:$0xff]  ;;  %v3429_v20 = vadd.f32 %v3421_v53, %v3365_v11  ;;  %v3104_v43 = vadd.f32 %v14212_v13, %v3016_v61  ;;  %v14218_v21 = vld [vmem:[#allocation143_spill] sm:$0xff]  ;;  %v14224_v6 = vld [vmem:[#allocation416_spill] sm:$0xff] }
 0xad6   :  { %v14216_v15 = vld [vmem:[#allocation413_spill] sm:$0xff]  ;;  %v14221_v11 = vld [vmem:[#allocation251_spill] sm:$0xff]  ;;  %v5898_v13 = vmul.f32 %v14223_v7, %v11514_v54  ;;  %v5840_v35 = vadd.f32 %v14224_v6, %v5720_v63  ;;  %v4574_v34 = vmul.f32 %v4558_v33, %v14102_v41  ;;  %v3430_v52 = vadd.f32 %v3422_v51, %v3366_v45  ;;  %v14233_v6 = vld [vmem:[#allocation84_spill] sm:$0xff] }
 0xad7   :  { %4595 = vrot.lane.b32.xlu1 %v4573_v17, %s7445_s21  ;;  %5863 = vrot.lane.b32.xlu2 %v14201_v44, %s7450_s16  ;;  %v6001_v17 = vadd.f32 %v14209_v31, %v5905_v50  ;;  %v5842_v14 = vadd.f32 %v14216_v15, %v5722_v29  ;;  %v3525_v57 = vadd.f32 %v14218_v21, %v3429_v20  ;;  %v14219_v31 = vld [vmem:[#allocation285_spill] sm:$0xff]  ;;  %v14226_v20 = vld [vmem:[#allocation115_spill] sm:$0xff]  ;;  %v14290_v22 = vld [vmem:[#allocation316_spill] sm:$0xff] }
 0xad8   :  { %v3231_v42 = vadd.f32 %v14219_v31, %v3103_v9  ;;  %v3232_v53 = vadd.f32 %v14220_v46, %v3104_v43  ;;  %v3364_v61 = vadd.f32 %v14221_v11, %v3236_v23  ;;  %v4622_v29 = vmul.f32 %v4558_v33, %v11415_v4  ;;  %v14227_v43 = vld [vmem:[#allocation387_spill] sm:$0xff]  ;;  %v14228_v54 = vld [vmem:[#allocation233_spill] sm:$0xff]  ;;  %v12044_v46 = vpop.f32.mrf.mxu0 }
 0xad9   :  { %v3420_v9 = vmul.f32 %v14226_v20, %v14117_v2  ;;  %v5896_v23 = vmul.f32 %v14227_v43, %v11461_v12  ;;  %v5906_v15 = vadd.f32 %v5898_v13, %v5842_v14  ;;  %v14229_v21 = vld [vmem:[#allocation249_spill] sm:$0xff]  ;;  %v14231_v2 = vld [vmem:[#allocation424_spill] sm:$0xff]  ;;  %v14232_v45 = vld [vmem:[#allocation59_spill] sm:$0xff] }
 0xada   :  { %4643 = vrot.lane.b32.xlu0 %v4621_v8, %s7445_s21  ;;  %v3359_v63 = vadd.f32 %v14228_v54, %v3231_v42  ;;  %v3360_v31 = vadd.f32 %v14229_v21, %v3232_v53  ;;  %v14230_v4 = vld [vmem:[#allocation293_spill] sm:$0xff]  ;;  %v3415_v12 = vmul.f32 %v14233_v6, %v14232_v45  ;;  %v14234_v14 = vld [vmem:[#allocation95_spill] sm:$0xff]  ;;  %v14235_v13 = vld [vmem:[#allocation88_spill] sm:$0xff] }
 0xadb   :  { %v6100_v30 = vpop.permute.xlu1 %6099  ;;  %v12017_v49 = vpop.permute.xlu2 %4507  ;;  %v5904_v11 = vadd.f32 %v5896_v23, %v5840_v35  ;;  %v6002_v51 = vadd.f32 %v14231_v2, %v5906_v15  ;;  %v14239_v35 = vld [vmem:[#allocation111_spill] sm:$0xff]  ;;  %v14242_v6 = vld [vmem:[#allocation385_spill] sm:$0xff] }
 0xadc   :  { %14213 = vst [vmem:[#allocation58_spill] sm:$0xff] %v12017_v49  ;;  %v12022_v50 = vadd.f32 %v6100_v30, %v6001_v17  ;;  %v12028_v8 = vpop.permute.xlu0 %6141  ;;  %v14225_v17 = vld [vmem:[#allocation246_spill] sm:$0xff]  ;;  %v3423_v54 = vadd.f32 %v3415_v12, %v3359_v63  ;;  %v12063_v2 = vpop.f32.mrf.mxu2  ;;  %v14248_v63 = vld [vmem:[#allocation259_spill] sm:$0xff]  ;;  %v14249_v12 = vld [vmem:[#allocation356_spill] sm:$0xff] }
 0xadd   :  { %14222 = vst [vmem:[#allocation161_spill] sm:$0xff] %v12028_v8  ;;  %v3653_v30 = vadd.f32 %v14225_v17, %v3525_v57  ;;  %v3428_v57 = vadd.f32 %v3420_v9, %v3364_v61  ;;  %v14240_v9 = vld [vmem:[#allocation420_spill] sm:$0xff]  ;;  %v14282_v44 = vld [vmem:[#allocation137_spill] sm:$0xff] }
 0xade   :  { %14217 = vst [vmem:[#allocation207_spill] sm:$0xff] %v12022_v50  ;;  %v6000_v23 = vadd.f32 %v14240_v9, %v5904_v11  ;;  %v14272_v50 = vld [vmem:[#allocation120_spill] sm:$0xff] }
 0xadf   :  { %4645 = vrot.lane.b32.xlu1 %v4622_v29, %s7445_s21  ;;  %4597 = vrot.lane.b32.xlu2 %v4574_v34, %s7445_s21  ;;  %v3781_v33 = vadd.f32 %v14230_v4, %v3653_v30  ;;  %v3416_v29 = vmul.f32 %v14235_v13, %v14234_v14  ;;  %v14236_v34 = vld [vmem:[#allocation154_spill] sm:$0xff]  ;;  %v14238_v30 = vld [vmem:[#allocation260_spill] sm:$0xff]  ;;  %v3524_v20 = vadd.f32 %v14239_v35, %v3428_v57 }
 0xae0   :  { %v3837_v17 = vmul.f32 %v14236_v34, %v14145_v59  ;;  %v3526_v61 = vadd.f32 %v14238_v30, %v3430_v52  ;;  %v5963_v13 = vmul.f32 %v11995_v60, %v14242_v6  ;;  %v14243_v34 = vld [vmem:[#allocation397_spill] sm:$0xff]  ;;  %v14245_v52 = vld [vmem:[#allocation296_spill] sm:$0xff]  ;;  %v14246_v30 = vld [vmem:[#allocation311_spill] sm:$0xff]  ;;  %v6083_v35 = vmul.f32 %v11741_v3, %v11995_v60 }
 0xae1   :  { %v3424_v21 = vadd.f32 %v3416_v29, %v3360_v31  ;;  %v5964_v43 = vmul.f32 %v12044_v46, %v14243_v34  ;;  %v3519_v57 = vadd.f32 %v14245_v52, %v3423_v54  ;;  %v3652_v31 = vadd.f32 %v14248_v63, %v3524_v20  ;;  %v14254_v52 = vld [vmem:[#allocation43_spill] sm:$0xff] }
 0xae2   :  { %5865 = vrot.lane.b32.xlu0 %v14122_v48, %s7450_s16  ;;  %v3845_v7 = vadd.f32 %v3837_v17, %v3781_v33  ;;  %v14250_v33 = vld [vmem:[#allocation41_spill] sm:$0xff]  ;;  %v14256_v20 = vld [vmem:[#allocation47_spill] sm:$0xff] }
 0xae3   :  { %v12056_v42 = vpop.permute.xlu1 %4461  ;;  %v6102_v53 = vpop.permute.xlu2 %6101  ;;  %v3520_v11 = vadd.f32 %v14246_v30, %v3424_v21  ;;  %v14251_v17 = vld [vmem:[#allocation13_spill] sm:$0xff] }
 0xae4   :  { %14237 = vst [vmem:[#allocation350_spill] sm:$0xff] %v12056_v42  ;;  %v12061_v15 = vadd.f32 %v6102_v53, %v6002_v51  ;;  %v6098_v4 = vpop.permute.xlu0 %6097  ;;  %v14247_v51 = vld [vmem:[#allocation274_spill] sm:$0xff]  ;;  %v3941_v29 = vadd.f32 %v14249_v12, %v3845_v7  ;;  %v3017_v9 = vmul.f32 %v14251_v17, %v14250_v33  ;;  %v14257_v7 = vld [vmem:[#allocation15_spill] sm:$0xff]  ;;  %v14263_v17 = vld [vmem:[#allocation96_spill] sm:$0xff] }
 0xae5   :  { %v12069_v49 = vadd.f32 %v6098_v4, %v6000_v23  ;;  %v3654_v53 = vadd.f32 %v14247_v51, %v3526_v61  ;;  %v14252_v23 = vld [vmem:[#allocation309_spill] sm:$0xff]  ;;  %v14255_v61 = vld [vmem:[#allocation14_spill] sm:$0xff]  ;;  %v3019_v51 = vmul.f32 %v14257_v7, %v14256_v20 }
 0xae6   :  { %14241 = vst [vmem:[#allocation352_spill] sm:$0xff] %v12061_v15  ;;  %v14253_v4 = vld [vmem:[#allocation409_spill] sm:$0xff]  ;;  %v12086_v30 = vmul.f32 %v14255_v61, %v14254_v52  ;;  %v14265_v61 = vld [vmem:[#allocation67_spill] sm:$0xff]  ;;  %v14271_v15 = vld [vmem:[#allocation74_spill] sm:$0xff] }
 0xae7   :  { %14244 = vst [vmem:[#allocation191_spill] sm:$0xff] %v12069_v49  ;;  %5983 = vrot.lane.b32.xlu1 %v5963_v13, %s7450_s16  ;;  %5985 = vrot.lane.b32.xlu2 %v5964_v43, %s7450_s16  ;;  %v3782_v54 = vadd.f32 %v14252_v23, %v3654_v53  ;;  %v4069_v21 = vadd.f32 %v14253_v4, %v3941_v29  ;;  %v14258_v13 = vld [vmem:[#allocation239_spill] sm:$0xff]  ;;  %v14259_v43 = vld [vmem:[#allocation264_spill] sm:$0xff]  ;;  %v14266_v7 = vld [vmem:[#allocation425_spill] sm:$0xff] }
 0xae8   :  { %v3647_v63 = vadd.f32 %v14258_v13, %v3519_v57  ;;  %v3648_v12 = vadd.f32 %v14259_v43, %v3520_v11  ;;  %v14262_v53 = vld [vmem:[#allocation76_spill] sm:$0xff]  ;;  %v3838_v34 = vmul.f32 %v14265_v61, %v14143_v25  ;;  %v14267_v57 = vld [vmem:[#allocation101_spill] sm:$0xff]  ;;  %v3832_v42 = vmul.f32 %v14272_v50, %v14271_v15  ;;  %v7304_v50 = vld [vmem:[%s12935_s12 + $0x8] sm:$0xff] }
 0xae9   :  { %v12099_v29 = vmul.f32 %v14263_v17, %v14262_v53  ;;  %v14264_v23 = vld [vmem:[#allocation276_spill] sm:$0xff]  ;;  %v4197_v6 = vadd.f32 %v14266_v7, %v4069_v21  ;;  %v14268_v13 = vld [vmem:[#allocation109_spill] sm:$0xff]  ;;  %v14273_v53 = vld [vmem:[#allocation146_spill] sm:$0xff]  ;;  %6301 = vmatpush.bf16.msra.mxu1 %v7304_v50 }
 0xaea   :  { %6103 = vrot.lane.b32.xlu0 %v6083_v35, %s7451_s28  ;;  %v3780_v4 = vadd.f32 %v14264_v23, %v3652_v31  ;;  %v12107_v11 = vmul.f32 %v14268_v13, %v14267_v57  ;;  %v14269_v35 = vld [vmem:[#allocation72_spill] sm:$0xff]  ;;  %v14270_v43 = vld [vmem:[#allocation113_spill] sm:$0xff]  ;;  %v3836_v17 = vmul.f32 %v14273_v53, %v14119_v39  ;;  %v14275_v31 = vld [vmem:[#allocation131_spill] sm:$0xff]  ;;  %v3846_v21 = vadd.f32 %v3838_v34, %v3782_v54  ;;  %v12134_v54 = vpop.f32.mrf.mxu2 }
 0xaeb   :  { %v12093_v3 = vpop.permute.xlu1 %4511  ;;  %v12095_v33 = vpop.permute.xlu2 %4463  ;;  %v12119_v23 = vmul.f32 %v12063_v2, %v14275_v31  ;;  %v14276_v61 = vld [vmem:[#allocation428_spill] sm:$0xff]  ;;  %v4253_v13 = vmul.f32 %v14097_v56, %v14158_v58  ;;  %v14278_v53 = vld [vmem:[#allocation190_spill] sm:$0xff]  ;;  %v14280_v49 = vld [vmem:[#allocation277_spill] sm:$0xff] }
 0xaec   :  { %14260 = vst [vmem:[#allocation134_spill] sm:$0xff] %v12093_v3  ;;  %v3831_v3 = vmul.f32 %v14270_v43, %v14269_v35  ;;  %v12115_v8 = vpop.permute.xlu0 %4459  ;;  %v6084_v7 = vmul.f32 %v14276_v61, %v12044_v46  ;;  %v14277_v43 = vld [vmem:[#allocation184_spill] sm:$0xff]  ;;  %v3024_v57 = vmul.f32 %v14278_v53, %v14204_v55  ;;  %v3776_v34 = vadd.f32 %v14280_v49, %v3648_v12  ;;  %v14283_v55 = vld [vmem:[#allocation313_spill] sm:$0xff]  ;;  %v14289_v53 = vld [vmem:[#allocation130_spill] sm:$0xff] }
 0xaed   :  { %14261 = vst [vmem:[#allocation94_spill] sm:$0xff] %v12095_v33  ;;  %v3023_v39 = vmul.f32 %v14277_v43, %v14195_v28  ;;  %v3844_v61 = vadd.f32 %v3836_v17, %v3780_v4  ;;  %v14281_v33 = vld [vmem:[#allocation108_spill] sm:$0xff]  ;;  %v4261_v56 = vadd.f32 %v4253_v13, %v4197_v6  ;;  %v12142_v28 = vmul.f32 %v12134_v54, %v14282_v44  ;;  %v14287_v17 = vld [vmem:[#allocation405_spill] sm:$0xff]  ;;  %v14291_v50 = vld [vmem:[#allocation407_spill] sm:$0xff] }
 0xaee   :  { %14274 = vst [vmem:[#allocation64_spill] sm:$0xff] %v12115_v8  ;;  %v14279_v8 = vld [vmem:[#allocation250_spill] sm:$0xff]  ;;  %v3942_v20 = vadd.f32 %v14281_v33, %v3846_v21  ;;  %v4254_v49 = vmul.f32 %v14102_v41, %v14154_v0  ;;  %v14285_v12 = vld [vmem:[#allocation240_spill] sm:$0xff] }
 0xaef   :  { %v3775_v31 = vadd.f32 %v14279_v8, %v3647_v63  ;;  %6105 = vrot.lane.b32.xlu1 %v6084_v7, %s7451_s28  ;;  %5467 = vrot.lane.b32.xlu2 %v14145_v59, %s7450_s16  ;;  %v3151_v43 = vadd.f32 %v14283_v55, %v3023_v39  ;;  %v14284_v8 = vld [vmem:[#allocation97_spill] sm:$0xff]  ;;  %v3105_v33 = vadd.f32 %v14285_v12, %v3017_v9  ;;  %v14286_v6 = vld [vmem:[#allocation132_spill] sm:$0xff] }
 0xaf0   :  { %v3152_v63 = vadd.f32 %v14284_v8, %v3024_v57  ;;  %v3940_v4 = vadd.f32 %v14286_v6, %v3844_v61  ;;  %v4070_v21 = vadd.f32 %v14287_v17, %v3942_v20  ;;  %v4357_v59 = vadd.f32 %v11867_v19, %v4261_v56  ;;  %v14288_v7 = vld [vmem:[#allocation241_spill] sm:$0xff]  ;;  %v14292_v8 = vld [vmem:[#allocation423_spill] sm:$0xff]  ;;  %v14295_v6 = vld [vmem:[#allocation318_spill] sm:$0xff] }
 0xaf1   :  { %v3107_v13 = vadd.f32 %v14288_v7, %v3019_v51  ;;  %v3279_v44 = vadd.f32 %v14289_v53, %v3151_v43  ;;  %v3839_v55 = vadd.f32 %v3831_v3, %v3775_v31  ;;  %v3840_v9 = vadd.f32 %v3832_v42, %v3776_v34  ;;  %v14293_v19 = vld [vmem:[#allocation145_spill] sm:$0xff]  ;;  %v14296_v3 = vld [vmem:[#allocation328_spill] sm:$0xff]  ;;  %v14297_v42 = vld [vmem:[#allocation186_spill] sm:$0xff] }
 0xaf2   :  { %v3280_v39 = vadd.f32 %v14290_v22, %v3152_v63  ;;  %5469 = vrot.lane.b32.xlu0 %v14143_v25, %s7450_s16  ;;  %v4068_v61 = vadd.f32 %v14291_v50, %v3940_v4  ;;  %v4198_v20 = vadd.f32 %v14292_v8, %v4070_v21  ;;  %v14294_v56 = vld [vmem:[#allocation181_spill] sm:$0xff]  ;;  %v14298_v4 = vld [vmem:[#allocation419_spill] sm:$0xff]  ;;  %v6203_v21 = vmul.f32 %v11847_v18, %v11995_v60 }
 0xaf3   :  { %v4468_v41 = vpop.permute.xlu1 %4467  ;;  %v12157_v57 = vpop.permute.xlu2 %4513  ;;  %v3407_v51 = vadd.f32 %v14293_v19, %v3279_v44  ;;  %v3235_v43 = vadd.f32 %v14294_v56, %v3107_v13  ;;  %v3935_v31 = vadd.f32 %v14296_v3, %v3839_v55  ;;  %v7303_v25 = vld [vmem:[%s12935_s12] sm:$0xff]  ;;  %v3936_v34 = vadd.f32 %v14297_v42, %v3840_v9  ;;  %v14300_v13 = vld [vmem:[#allocation298_spill] sm:$0xff]  ;;  %v14306_v42 = vld [vmem:[#allocation408_spill] sm:$0xff] }
 0xaf4   :  { %v12161_v12 = vadd.f32 %v4468_v41, %v4357_v59  ;;  %v3408_v22 = vadd.f32 %v14295_v6, %v3280_v39  ;;  %v12167_v63 = vpop.permute.xlu0 %4509  ;;  %v4196_v17 = vadd.f32 %v14298_v4, %v4068_v61  ;;  %v6204_v44 = vmul.f32 %v11849_v5, %v12044_v46  ;;  %v14299_v59 = vld [vmem:[#allocation194_spill] sm:$0xff]  ;;  %v14301_v39 = vld [vmem:[#allocation125_spill] sm:$0xff]  ;;  %6302 = vmatpush.bf16.msra.mxu1 %v7303_v25 }
 0xaf5   :  { %v3233_v7 = vadd.f32 %v14299_v59, %v3105_v33  ;;  %v3431_v53 = vmul.f32 %v14300_v13, %v14232_v45  ;;  %v3432_v55 = vmul.f32 %v14301_v39, %v14234_v14  ;;  %v4252_v41 = vmul.f32 %v14098_v1, %v14122_v48  ;;  %v14302_v9 = vld [vmem:[#allocation362_spill] sm:$0xff]  ;;  %v14305_v45 = vld [vmem:[#allocation253_spill] sm:$0xff]  ;;  %v14307_v1 = vld [vmem:[#allocation412_spill] sm:$0xff] }
 0xaf6   :  { %v4063_v50 = vadd.f32 %v14302_v9, %v3935_v31  ;;  %v14303_v61 = vld [vmem:[#allocation370_spill] sm:$0xff]  ;;  %v4262_v19 = vadd.f32 %v4254_v49, %v4198_v20  ;;  %v3363_v6 = vadd.f32 %v14305_v45, %v3235_v43  ;;  %v14308_v49 = vld [vmem:[#allocation225_spill] sm:$0xff] }
 0xaf7   :  { %v4064_v8 = vadd.f32 %v14303_v61, %v3936_v34  ;;  %6223 = vrot.lane.b32.xlu1 %v6203_v21, %s7445_s21  ;;  %6225 = vrot.lane.b32.xlu2 %v6204_v44, %s7445_s21  ;;  %v14304_v33 = vld [vmem:[#allocation210_spill] sm:$0xff]  ;;  %v3439_v3 = vadd.f32 %v3431_v53, %v3407_v51  ;;  %v3440_v14 = vadd.f32 %v3432_v55, %v3408_v22  ;;  %v14309_v34 = vld [vmem:[#allocation99_spill] sm:$0xff]  ;;  %v14310_v44 = vld [vmem:[#allocation321_spill] sm:$0xff] }
 0xaf8   :  { %v4247_v56 = vmul.f32 %v14079_v26, %v14304_v33  ;;  %v4191_v48 = vadd.f32 %v14307_v1, %v4063_v50  ;;  %v4260_v25 = vadd.f32 %v4252_v41, %v4196_v17  ;;  %v4358_v31 = vadd.f32 %v11869_v27, %v4262_v19  ;;  %v14311_v13 = vld [vmem:[#allocation213_spill] sm:$0xff]  ;;  %v14312_v22 = vld [vmem:[#allocation248_spill] sm:$0xff]  ;;  %v14313_v39 = vld [vmem:[#allocation142_spill] sm:$0xff] }
 0xaf9   :  { %v4192_v4 = vadd.f32 %v14306_v42, %v4064_v8  ;;  %v3106_v20 = vadd.f32 %v14308_v49, %v12086_v30  ;;  %v3567_v21 = vadd.f32 %v14309_v34, %v3439_v3  ;;  %v3568_v59 = vadd.f32 %v14310_v44, %v3440_v14  ;;  %v14314_v41 = vld [vmem:[#allocation114_spill] sm:$0xff]  ;;  %v14316_v8 = vld [vmem:[#allocation119_spill] sm:$0xff]  ;;  %v14318_v14 = vld [vmem:[#allocation129_spill] sm:$0xff] }
 0xafa   :  { %v4248_v26 = vmul.f32 %v14083_v32, %v14311_v13  ;;  %5587 = vrot.lane.b32.xlu0 %v12119_v23, %s7450_s16  ;;  %v3361_v53 = vadd.f32 %v14312_v22, %v3233_v7  ;;  %v4356_v17 = vadd.f32 %v11875_v37, %v4260_v25  ;;  %v3427_v32 = vadd.f32 %v12107_v11, %v3363_v6  ;;  %v14315_v50 = vld [vmem:[#allocation322_spill] sm:$0xff]  ;;  %v14319_v1 = vld [vmem:[#allocation325_spill] sm:$0xff] }
 0xafb   :  { %v4518_v51 = vpop.permute.xlu1 %4517  ;;  %v4470_v43 = vpop.permute.xlu2 %4469  ;;  %v3234_v55 = vadd.f32 %v14313_v39, %v3106_v20  ;;  %v3695_v9 = vadd.f32 %v14314_v41, %v3567_v21  ;;  %v3696_v61 = vadd.f32 %v14315_v50, %v3568_v59  ;;  %v5685_v19 = vmul.f32 %v14316_v8, %v12063_v2  ;;  %v14320_v49 = vld [vmem:[#allocation429_spill] sm:$0xff]  ;;  %v14324_v21 = vld [vmem:[#allocation55_spill] sm:$0xff] }
 0xafc   :  { %v12206_v27 = vadd.f32 %v4518_v51, %v11925_v10  ;;  %v12208_v30 = vadd.f32 %v4470_v43, %v4358_v31  ;;  %v4466_v23 = vpop.permute.xlu0 %4465  ;;  %v4256_v7 = vadd.f32 %v4248_v26, %v4192_v4  ;;  %v4255_v45 = vadd.f32 %v4247_v56, %v4191_v48  ;;  %v14317_v10 = vld [vmem:[#allocation118_spill] sm:$0xff]  ;;  %v14321_v6 = vld [vmem:[#allocation433_spill] sm:$0xff]  ;;  %v14322_v56 = vld [vmem:[#allocation283_spill] sm:$0xff]  ;;  %v12241_v50 = vpop.f32.mrf.mxu0 }
 0xafd   :  { %v12216_v37 = vadd.f32 %v4466_v23, %v4356_v17  ;;  %v3523_v3 = vadd.f32 %v14317_v10, %v3427_v32  ;;  %v3823_v42 = vadd.f32 %v14318_v14, %v3695_v9  ;;  %v3824_v25 = vadd.f32 %v14319_v1, %v3696_v61  ;;  %v14323_v48 = vld [vmem:[#allocation235_spill] sm:$0xff]  ;;  %v14326_v26 = vld [vmem:[#allocation229_spill] sm:$0xff]  ;;  %v14328_v17 = vld [vmem:[#allocation102_spill] sm:$0xff] }
 0xafe   :  { %v3425_v31 = vadd.f32 %v12099_v29, %v3361_v53  ;;  %v4352_v11 = vadd.f32 %v14320_v49, %v4256_v7  ;;  %v4351_v20 = vadd.f32 %v14321_v6, %v4255_v45  ;;  %v3847_v4 = vmul.f32 %v14322_v56, %v14269_v35  ;;  %v14325_v59 = vld [vmem:[#allocation83_spill] sm:$0xff]  ;;  %v14329_v39 = vld [vmem:[#allocation269_spill] sm:$0xff]  ;;  %v14332_v23 = vld [vmem:[#allocation136_spill] sm:$0xff] }
 0xaff   :  { %5707 = vrot.lane.b32.xlu2 %v5685_v19, %s7451_s28  ;;  %5589 = vrot.lane.b32.xlu1 %v12142_v28, %s7450_s16  ;;  %v3362_v34 = vadd.f32 %v14323_v48, %v3234_v55  ;;  %v5686_v44 = vmul.f32 %v14324_v21, %v12134_v54  ;;  %v3848_v29 = vmul.f32 %v14325_v59, %v14271_v15  ;;  %v14327_v53 = vld [vmem:[#allocation63_spill] sm:$0xff]  ;;  %v14333_v19 = vld [vmem:[#allocation334_spill] sm:$0xff]  ;;  %v14335_v14 = vld [vmem:[#allocation360_spill] sm:$0xff] }
 0xb00   :  { %v3521_v51 = vadd.f32 %v14326_v26, %v3425_v31  ;;  %v4479_v43 = vadd.f32 %v11945_v38, %v4351_v20  ;;  %v4480_v22 = vadd.f32 %v11978_v24, %v4352_v11  ;;  %v3418_v28 = vmul.f32 %v14328_v17, %v14327_v53  ;;  %v14334_v10 = vld [vmem:[#allocation255_spill] sm:$0xff]  ;;  %v14337_v49 = vld [vmem:[#allocation308_spill] sm:$0xff]  ;;  %v14339_v56 = vld [vmem:[#allocation73_spill] sm:$0xff] }
 0xb01   :  { %v3651_v41 = vadd.f32 %v14329_v39, %v3523_v3  ;;  %v3855_v35 = vadd.f32 %v3847_v4, %v3823_v42  ;;  %v3856_v9 = vadd.f32 %v3848_v29, %v3824_v25  ;;  %v5805_v42 = vmul.f32 %v14335_v14, %v12063_v2  ;;  %v14336_v1 = vld [vmem:[#allocation123_spill] sm:$0xff]  ;;  %v14340_v48 = vld [vmem:[#allocation366_spill] sm:$0xff]  ;;  %v14342_v29 = vld [vmem:[#allocation81_spill] sm:$0xff] }
 0xb02   :  { %5709 = vrot.lane.b32.xlu0 %v5686_v44, %s7451_s28  ;;  %v3426_v38 = vadd.f32 %v3418_v28, %v3362_v34  ;;  %v3649_v3 = vadd.f32 %v14334_v10, %v3521_v51  ;;  %v5806_v25 = vmul.f32 %v14336_v1, %v12134_v54  ;;  %v14338_v6 = vld [vmem:[#allocation107_spill] sm:$0xff]  ;;  %v14341_v44 = vld [vmem:[#allocation197_spill] sm:$0xff]  ;;  %v14352_v10 = vld [vmem:[#allocation354_spill] sm:$0xff] }
 0xb03   :  { %v4584_v55 = vpop.permute.xlu1 %4583  ;;  %v4586_v32 = vpop.permute.xlu2 %4585  ;;  %v3983_v24 = vadd.f32 %v14332_v23, %v3855_v35  ;;  %v3984_v7 = vadd.f32 %v14333_v19, %v3856_v9  ;;  %v3779_v20 = vadd.f32 %v14338_v6, %v3651_v41  ;;  %v3026_v59 = vmul.f32 %v14341_v44, %v14254_v52  ;;  %v14343_v26 = vld [vmem:[#allocation139_spill] sm:$0xff]  ;;  %v14348_v9 = vld [vmem:[#allocation242_spill] sm:$0xff]  ;;  %v14349_v23 = vld [vmem:[#allocation117_spill] sm:$0xff] }
 0xb04   :  { %v12243_v15 = vadd.f32 %v4584_v55, %v4479_v43  ;;  %v12245_v61 = vadd.f32 %v4586_v32, %v4480_v22  ;;  %v4516_v45 = vpop.permute.xlu0 %4515  ;;  %v3522_v11 = vadd.f32 %v14337_v49, %v3426_v38  ;;  %v3835_v51 = vmul.f32 %v14343_v26, %v14342_v29  ;;  %v14345_v22 = vld [vmem:[#allocation414_spill] sm:$0xff]  ;;  %v14346_v28 = vld [vmem:[#allocation103_spill] sm:$0xff]  ;;  %v14350_v19 = vld [vmem:[#allocation148_spill] sm:$0xff] }
 0xb05   :  { %v12255_v31 = vadd.f32 %v4516_v45, %v11933_v40  ;;  %v4111_v4 = vadd.f32 %v14339_v56, %v3983_v24  ;;  %v4112_v34 = vadd.f32 %v14340_v48, %v3984_v7  ;;  %v14344_v40 = vld [vmem:[#allocation410_spill] sm:$0xff]  ;;  %v3154_v39 = vadd.f32 %v14346_v28, %v3026_v59  ;;  %v14347_v41 = vld [vmem:[#allocation263_spill] sm:$0xff]  ;;  %v14359_v59 = vld [vmem:[#allocation432_spill] sm:$0xff] }
 0xb06   :  { %14330 = vst [vmem:[#allocation89_spill] sm:$0xff] %v12243_v15  ;;  %v3777_v35 = vadd.f32 %v14347_v41, %v3649_v3  ;;  %v3650_v55 = vadd.f32 %v14348_v9, %v3522_v11  ;;  %v3843_v32 = vadd.f32 %v3835_v51, %v3779_v20  ;;  %v4263_v52 = vmul.f32 %v11263_v36, %v14304_v33  ;;  %v14351_v7 = vld [vmem:[#allocation127_spill] sm:$0xff]  ;;  %v12284_v36 = vpop.f32.mrf.mxu0  ;;  %v14354_v33 = vld [vmem:[#allocation104_spill] sm:$0xff]  ;;  %v14355_v20 = vld [vmem:[#allocation78_spill] sm:$0xff] }
 0xb07   :  { %14331 = vst [vmem:[#allocation151_spill] sm:$0xff] %v12245_v61  ;;  %5829 = vrot.lane.b32.xlu2 %v5806_v25, %s7445_s21  ;;  %5827 = vrot.lane.b32.xlu1 %v5805_v42, %s7445_s21  ;;  %v4239_v43 = vadd.f32 %v14344_v40, %v4111_v4  ;;  %v4240_v17 = vadd.f32 %v14345_v22, %v4112_v34  ;;  %v14353_v11 = vld [vmem:[#allocation403_spill] sm:$0xff]  ;;  %v14357_v4 = vld [vmem:[#allocation254_spill] sm:$0xff]  ;;  %v14361_v22 = vld [vmem:[#allocation336_spill] sm:$0xff] }
 0xb08   :  { %v4264_v38 = vmul.f32 %v11284_v16, %v14311_v13  ;;  %v3282_v24 = vadd.f32 %v14349_v23, %v3154_v39  ;;  %v3833_v45 = vmul.f32 %v14351_v7, %v14350_v19  ;;  %v3939_v42 = vadd.f32 %v14352_v10, %v3843_v32  ;;  %v14358_v34 = vld [vmem:[#allocation399_spill] sm:$0xff]  ;;  %v14360_v40 = vld [vmem:[#allocation158_spill] sm:$0xff]  ;;  %v14368_v23 = vld [vmem:[#allocation49_spill] sm:$0xff] }
 0xb09   :  { %v4271_v3 = vadd.f32 %v4263_v52, %v4239_v43  ;;  %v5965_v6 = vmul.f32 %v12241_v50, %v14353_v11  ;;  %v3778_v48 = vadd.f32 %v14357_v4, %v3650_v55  ;;  %v3434_v43 = vmul.f32 %v14360_v40, %v14327_v53  ;;  %v14362_v28 = vld [vmem:[#allocation347_spill] sm:$0xff]  ;;  %v14363_v39 = vld [vmem:[#allocation82_spill] sm:$0xff]  ;;  %v14366_v52 = vld [vmem:[#allocation341_spill] sm:$0xff] }
 0xb0a   :  { %5867 = vrot.lane.b32.xlu0 %v14158_v58, %s7450_s16  ;;  %v4272_v25 = vadd.f32 %v4264_v38, %v4240_v17  ;;  %v3410_v16 = vadd.f32 %v14354_v33, %v3282_v24  ;;  %v3841_v13 = vadd.f32 %v3833_v45, %v3777_v35  ;;  %v14356_v58 = vld [vmem:[#allocation65_spill] sm:$0xff]  ;;  %v4067_v44 = vadd.f32 %v14358_v34, %v3939_v42  ;;  %v14364_v35 = vld [vmem:[#allocation396_spill] sm:$0xff]  ;;  %v14365_v55 = vld [vmem:[#allocation415_spill] sm:$0xff] }
 0xb0b   :  { %v3834_v56 = vmul.f32 %v14356_v58, %v14355_v20  ;;  %v4399_v26 = vadd.f32 %v14359_v59, %v4271_v3  ;;  %v4707_v41 = vmul.f32 %v14363_v39, %v14362_v28  ;;  %v5966_v9 = vmul.f32 %v12284_v36, %v14364_v35  ;;  %v14367_v53 = vld [vmem:[#allocation223_spill] sm:$0xff]  ;;  %v12309_v42 = vpop.permute.xlu2 %4635  ;;  %v14371_v58 = vld [vmem:[#allocation217_spill] sm:$0xff]  ;;  %v14516_v15 = vld [vmem:[#allocation402_spill] sm:$0xff] }
 0xb0c   :  { %v4632_v49 = vpop.permute.xlu0 %4631  ;;  %v4400_v51 = vadd.f32 %v11769_v62, %v4272_v25  ;;  %v3937_v17 = vadd.f32 %v14361_v22, %v3841_v13  ;;  %v4195_v32 = vadd.f32 %v14365_v55, %v4067_v44  ;;  %v4251_v24 = vmul.f32 %v14368_v23, %v14367_v53  ;;  %v14369_v45 = vld [vmem:[#allocation71_spill] sm:$0xff]  ;;  %v14374_v44 = vld [vmem:[#allocation201_spill] sm:$0xff] }
 0xb0d   :  { %v4527_v62 = vadd.f32 %v11950_v47, %v4399_v26  ;;  %v3442_v7 = vadd.f32 %v3434_v43, %v3410_v16  ;;  %v3842_v25 = vadd.f32 %v3834_v56, %v3778_v48  ;;  %v14372_v47 = vld [vmem:[#allocation42_spill] sm:$0xff]  ;;  %v14373_v34 = vld [vmem:[#allocation47_spill] sm:$0xff]  ;;  %v14380_v55 = vld [vmem:[#allocation57_spill] sm:$0xff] }
 0xb0e   :  { %v4528_v38 = vadd.f32 %v14366_v52, %v4400_v51  ;;  %v4065_v10 = vadd.f32 %v14369_v45, %v3937_v17  ;;  %v4249_v4 = vmul.f32 %v14372_v47, %v14371_v58  ;;  %v3027_v59 = vmul.f32 %v14374_v44, %v14373_v34  ;;  %v14375_v26 = vld [vmem:[#allocation10_spill] sm:$0xff]  ;;  %v14376_v51 = vld [vmem:[#allocation35_spill] sm:$0xff]  ;;  %v14383_v45 = vld [vmem:[#allocation348_spill] sm:$0xff] }
 0xb0f   :  { %5987 = vrot.lane.b32.xlu2 %v5965_v6, %s7450_s16  ;;  %5869 = vrot.lane.b32.xlu1 %v14154_v0, %s7450_s16  ;;  %v14370_v0 = vld [vmem:[#allocation69_spill] sm:$0xff]  ;;  %v4655_v33 = vadd.f32 %v4632_v49, %v4527_v62  ;;  %v3570_v16 = vadd.f32 %v14375_v26, %v3442_v7  ;;  %v14377_v43 = vld [vmem:[#allocation199_spill] sm:$0xff]  ;;  %v4259_v48 = vadd.f32 %v4251_v24, %v4195_v32 }
 0xb10   :  { %v4803_v6 = vadd.f32 %v14370_v0, %v4707_v41  ;;  %v4193_v40 = vadd.f32 %v14376_v51, %v4065_v10  ;;  %v3938_v22 = vadd.f32 %v14377_v43, %v3842_v25  ;;  %v14378_v17 = vld [vmem:[#allocation187_spill] sm:$0xff]  ;;  %v14379_v41 = vld [vmem:[#allocation332_spill] sm:$0xff]  ;;  %v14386_v0 = vld [vmem:[#allocation174_spill] sm:$0xff] }
 0xb11   :  { %v4634_v3 = vpop.permute.xlu1 %4633  ;;  %v14381_v62 = vld [vmem:[#allocation427_spill] sm:$0xff]  ;;  %v14384_v10 = vld [vmem:[#allocation364_spill] sm:$0xff]  ;;  %v14389_v47 = vld [vmem:[#allocation333_spill] sm:$0xff] }
 0xb12   :  { %v4656_v13 = vadd.f32 %v4634_v3, %v4528_v38  ;;  %5989 = vrot.lane.b32.xlu0 %v5966_v9, %s7450_s16  ;;  %v4923_v56 = vadd.f32 %v14378_v17, %v4803_v6  ;;  %v3569_v9 = vadd.f32 %v14380_v55, %v14379_v41  ;;  %v6086_v52 = vmul.f32 %v14381_v62, %v12284_v36  ;;  %v14382_v38 = vld [vmem:[#allocation431_spill] sm:$0xff]  ;;  %v14390_v44 = vld [vmem:[#allocation337_spill] sm:$0xff]  ;;  %v14391_v43 = vld [vmem:[#allocation330_spill] sm:$0xff] }
 0xb13   :  { %v6085_v23 = vmul.f32 %v14382_v38, %v12241_v50  ;;  %v14385_v25 = vld [vmem:[#allocation351_spill] sm:$0xff]  ;;  %v3698_v34 = vadd.f32 %v14389_v47, %v3570_v16  ;;  %v4257_v51 = vadd.f32 %v4249_v4, %v4193_v40  ;;  %v3155_v17 = vadd.f32 %v14391_v43, %v3027_v59  ;;  %v14393_v41 = vld [vmem:[#allocation193_spill] sm:$0xff]  ;;  %v14394_v55 = vld [vmem:[#allocation94_spill] sm:$0xff] }
 0xb14   :  { %v6247_v28 = vpack.c.bf16 %v4656_v13, %v4655_v33  ;;  %v6216_v49 = vpop.permute.xlu0 %6215  ;;  %v5043_v3 = vadd.f32 %v14384_v10, %v4923_v56  ;;  %v5099_v6 = vmul.f32 %v14386_v0, %v14385_v25  ;;  %v14387_v32 = vld [vmem:[#allocation375_spill] sm:$0xff]  ;;  %v14388_v33 = vld [vmem:[#allocation206_spill] sm:$0xff]  ;;  %v3697_v26 = vadd.f32 %v14390_v44, %v3569_v9  ;;  %v14396_v10 = vld [vmem:[#allocation124_spill] sm:$0xff] }
 0xb15   :  { %v12328_v7 = vadd.f32 %v6216_v49, %v14383_v45  ;;  %v4066_v24 = vadd.f32 %v14387_v32, %v3938_v22  ;;  %v4355_v13 = vadd.f32 %v14388_v33, %v4259_v48  ;;  %v14392_v56 = vld [vmem:[#allocation418_spill] sm:$0xff]  ;;  %v6205_v22 = vmul.f32 %v14393_v41, %v12241_v50  ;;  %v14395_v45 = vld [vmem:[#allocation157_spill] sm:$0xff]  ;;  %v14397_v25 = vld [vmem:[#allocation220_spill] sm:$0xff] }
 0xb16   :  { %7171 = vmatmul.msk.bf16.vlgmr.msra.gmra.mxu1 %vm124_vm0, %v6247_v28  ;;  %v3826_v28 = vadd.f32 %v14395_v45, %v3698_v34  ;;  %v3825_v16 = vadd.f32 %v14396_v10, %v3697_v26  ;;  %v14398_v9 = vld [vmem:[#allocation44_spill] sm:$0xff]  ;;  %v14399_v40 = vld [vmem:[#allocation90_spill] sm:$0xff]  ;;  %v5107_v47 = vadd.f32 %v5099_v6, %v5043_v3 }
 0xb17   :  { %6109 = vrot.lane.b32.xlu2 %v6086_v52, %s7451_s28  ;;  %6107 = vrot.lane.b32.xlu1 %v6085_v23, %s7451_s28  ;;  %v4194_v49 = vadd.f32 %v14392_v56, %v4066_v24  ;;  %v4483_v48 = vadd.f32 %v14394_v55, %v4355_v13  ;;  %v4250_v4 = vmul.f32 %v14398_v9, %v14397_v25  ;;  %v14400_v33 = vld [vmem:[#allocation112_spill] sm:$0xff]  ;;  %v14401_v24 = vld [vmem:[#allocation191_spill] sm:$0xff]  ;;  %v14405_v56 = vld [vmem:[#allocation266_spill] sm:$0xff] }
 0xb18   :  { %v4353_v52 = vadd.f32 %v14399_v40, %v4257_v51  ;;  %v3283_v59 = vadd.f32 %v14400_v33, %v3155_v17  ;;  %v14403_v13 = vld [vmem:[#allocation291_spill] sm:$0xff]  ;;  %v14404_v26 = vld [vmem:[#allocation100_spill] sm:$0xff] }
 0xb19   :  { %v6218_v32 = vpop.permute.xlu1 %6217  ;;  %v4592_v23 = vpop.permute.xlu2 %4591  ;;  %v3849_v34 = vmul.f32 %v14403_v13, %v14350_v19  ;;  %v5511_v55 = vmul.f32 %v14405_v56, %v14404_v26  ;;  %v14406_v51 = vld [vmem:[#allocation295_spill] sm:$0xff]  ;;  %v14407_v10 = vld [vmem:[#allocation64_spill] sm:$0xff]  ;;  %v14410_v19 = vld [vmem:[#allocation161_spill] sm:$0xff] }
 0xb1a   :  { %v12352_v44 = vadd.f32 %v6218_v32, %v14401_v24  ;;  %v12354_v43 = vadd.f32 %v4592_v23, %v4483_v48  ;;  %6227 = vrot.lane.b32.xlu0 %v6205_v22, %s7445_s21  ;;  %v3850_v45 = vmul.f32 %v14406_v51, %v14355_v20  ;;  %v4481_v9 = vadd.f32 %v14407_v10, %v4353_v52  ;;  %v14408_v17 = vld [vmem:[#allocation331_spill] sm:$0xff]  ;;  %v14409_v6 = vld [vmem:[#allocation368_spill] sm:$0xff]  ;;  %v14412_v26 = vld [vmem:[#allocation101_spill] sm:$0xff] }
 0xb1b   :  { %v3411_v3 = vadd.f32 %v14408_v17, %v3283_v59  ;;  %v5203_v40 = vadd.f32 %v14409_v6, %v5107_v47  ;;  %v4258_v32 = vadd.f32 %v4250_v4, %v4194_v49  ;;  %v3857_v33 = vadd.f32 %v3849_v34, %v3825_v16  ;;  %v14413_v20 = vld [vmem:[#allocation219_spill] sm:$0xff]  ;;  %v14415_v59 = vld [vmem:[#allocation50_spill] sm:$0xff]  ;;  %v14416_v47 = vld [vmem:[#allocation192_spill] sm:$0xff] }
 0xb1c   :  { %14402 = vst [vmem:[#allocation358_spill] sm:$0xff] %v12354_v43  ;;  %v4588_v22 = vpop.permute.xlu0 %4587  ;;  %v3858_v23 = vadd.f32 %v3850_v45, %v3826_v28  ;;  %v6206_v24 = vmul.f32 %v14410_v19, %v12284_v36  ;;  %v3435_v51 = vmul.f32 %v14413_v20, %v14412_v26  ;;  %v14414_v52 = vld [vmem:[#allocation371_spill] sm:$0xff]  ;;  %v14417_v4 = vld [vmem:[#allocation345_spill] sm:$0xff]  ;;  %v14418_v16 = vld [vmem:[#allocation372_spill] sm:$0xff] }
 0xb1d   :  { %v12370_v13 = vadd.f32 %v4588_v22, %v4481_v9  ;;  %v5323_v10 = vadd.f32 %v14414_v52, %v5203_v40  ;;  %v4354_v17 = vadd.f32 %v14415_v59, %v4258_v32  ;;  %v3985_v6 = vadd.f32 %v14417_v4, %v3857_v33  ;;  %v14419_v45 = vld [vmem:[#allocation350_spill] sm:$0xff]  ;;  %v14421_v48 = vld [vmem:[#allocation271_spill] sm:$0xff]  ;;  %v14424_v33 = vld [vmem:[#allocation340_spill] sm:$0xff] }
 0xb1e   :  { %v3986_v49 = vadd.f32 %v14416_v47, %v3858_v23  ;;  %v3443_v28 = vadd.f32 %v3435_v51, %v3411_v3  ;;  %v14420_v22 = vld [vmem:[#allocation106_spill] sm:$0xff]  ;;  %v14428_v51 = vld [vmem:[#allocation411_spill] sm:$0xff] }
 0xb1f   :  { %14411 = vst [vmem:[#allocation208_spill] sm:$0xff] %v12370_v13  ;;  %5527 = vrot.lane.b32.xlu2 %v5511_v55, %s7450_s16  ;;  %6229 = vrot.lane.b32.xlu1 %v6206_v24, %s7445_s21  ;;  %v5443_v34 = vadd.f32 %v14418_v16, %v5323_v10  ;;  %v4482_v9 = vadd.f32 %v14419_v45, %v4354_v17  ;;  %v14422_v20 = vld [vmem:[#allocation382_spill] sm:$0xff]  ;;  %v14429_v17 = vld [vmem:[#allocation417_spill] sm:$0xff]  ;;  %v14430_v45 = vld [vmem:[#allocation163_spill] sm:$0xff] }
 0xb20   :  { %v5512_v26 = vmul.f32 %v14421_v48, %v14420_v22  ;;  %v4113_v40 = vadd.f32 %v14422_v20, %v3985_v6  ;;  %v14423_v52 = vld [vmem:[#allocation390_spill] sm:$0xff]  ;;  %v14431_v6 = vld [vmem:[#allocation147_spill] sm:$0xff]  ;;  %v14433_v13 = vld [vmem:[#allocation189_spill] sm:$0xff] }
 0xb21   :  { %v4114_v32 = vadd.f32 %v14423_v52, %v3986_v49  ;;  %v4590_v59 = vpop.permute.xlu1 %4589  ;;  %v12386_v23 = vpop.permute.xlu2 %4641  ;;  %v14425_v47 = vld [vmem:[#allocation150_spill] sm:$0xff]  ;;  %v5513_v22 = vmul.f32 %v14431_v6, %v14430_v45  ;;  %v14432_v49 = vld [vmem:[#allocation196_spill] sm:$0xff] }
 0xb22   :  { %v5499_v55 = vmul.f32 %v14425_v47, %v14424_v33  ;;  %v14426_v4 = vld [vmem:[#allocation338_spill] sm:$0xff]  ;;  %v12391_v3 = vadd.f32 %v4590_v59, %v4482_v9  ;;  %5529 = vrot.lane.b32.xlu0 %v5512_v26, %s7450_s16  ;;  %v4241_v10 = vadd.f32 %v14428_v51, %v4113_v40  ;;  %v4265_v33 = vmul.f32 %v14433_v13, %v14371_v58  ;;  %v14435_v59 = vld [vmem:[#allocation207_spill] sm:$0xff]  ;;  %v14436_v26 = vld [vmem:[#allocation116_spill] sm:$0xff] }
 0xb23   :  { %v3571_v24 = vadd.f32 %v14426_v4, %v3443_v28  ;;  %v4242_v16 = vadd.f32 %v14429_v17, %v4114_v32  ;;  %v14434_v28 = vld [vmem:[#allocation188_spill] sm:$0xff]  ;;  %v14438_v32 = vld [vmem:[#allocation339_spill] sm:$0xff]  ;;  %v14440_v13 = vld [vmem:[#allocation121_spill] sm:$0xff] }
 0xb24   :  { %14427 = vst [vmem:[#allocation342_spill] sm:$0xff] %v12391_v3  ;;  %v5507_v52 = vadd.f32 %v5499_v55, %v5443_v34  ;;  %v6220_v43 = vpop.permute.xlu0 %6219  ;;  %v4266_v9 = vmul.f32 %v14434_v28, %v14397_v25  ;;  %v14437_v40 = vld [vmem:[#allocation280_spill] sm:$0xff]  ;;  %v4273_v3 = vadd.f32 %v4265_v33, %v4241_v10  ;;  %v14439_v34 = vld [vmem:[#allocation297_spill] sm:$0xff]  ;;  %v14441_v55 = vld [vmem:[#allocation286_spill] sm:$0xff] }
 0xb25   :  { %v3699_v20 = vadd.f32 %v14432_v49, %v3571_v24  ;;  %v12404_v4 = vadd.f32 %v6220_v43, %v14435_v59  ;;  %v5514_v51 = vmul.f32 %v14437_v40, %v14436_v26  ;;  %v3851_v58 = vmul.f32 %v14439_v34, %v14342_v29  ;;  %v14442_v24 = vld [vmem:[#allocation353_spill] sm:$0xff]  ;;  %v14443_v49 = vld [vmem:[#allocation435_spill] sm:$0xff] }
 0xb26   :  { %v4274_v45 = vadd.f32 %v4266_v9, %v4242_v16  ;;  %v5515_v25 = vmul.f32 %v14441_v55, %v14440_v13  ;;  %v5603_v43 = vadd.f32 %v14442_v24, %v5507_v52  ;;  %v4401_v28 = vadd.f32 %v14443_v49, %v4273_v3  ;;  %v14444_v59 = vld [vmem:[#allocation343_spill] sm:$0xff]  ;;  %v14446_v9 = vld [vmem:[#allocation344_spill] sm:$0xff]  ;;  %v14448_v34 = vld [vmem:[#allocation105_spill] sm:$0xff] }
 0xb27   :  { %v3827_v17 = vadd.f32 %v14438_v32, %v3699_v20  ;;  %5533 = vrot.lane.b32.xlu2 %v5514_v51, %s7450_s16  ;;  %5531 = vrot.lane.b32.xlu1 %v5513_v22, %s7450_s16  ;;  %v14445_v22 = vld [vmem:[#allocation58_spill] sm:$0xff]  ;;  %v14447_v52 = vld [vmem:[#allocation131_spill] sm:$0xff] }
 0xb28   :  { %v4402_v26 = vadd.f32 %v14444_v59, %v4274_v45  ;;  %v4529_v33 = vadd.f32 %v14445_v22, %v4401_v28  ;;  %v5517_v3 = vmul.f32 %v14448_v34, %v14447_v52  ;;  %v14449_v24 = vld [vmem:[#allocation126_spill] sm:$0xff]  ;;  %v14453_v28 = vld [vmem:[#allocation137_spill] sm:$0xff]  ;;  %v14456_v22 = vld [vmem:[#allocation367_spill] sm:$0xff] }
 0xb29   :  { %v5704_v61 = vpop.permute.xlu1 %5703  ;;  %v12418_v20 = vpop.permute.xlu2 %5705  ;;  %v3859_v10 = vadd.f32 %v3851_v58, %v3827_v17  ;;  %v14450_v49 = vld [vmem:[#allocation290_spill] sm:$0xff] }
 0xb2a   :  { %v12420_v16 = vadd.f32 %v5704_v61, %v5603_v43  ;;  %5535 = vrot.lane.b32.xlu0 %v5515_v25, %s7450_s16  ;;  %v4530_v29 = vadd.f32 %v12167_v63, %v4402_v26  ;;  %v4657_v45 = vadd.f32 %v12309_v42, %v4529_v33  ;;  %v5516_v17 = vmul.f32 %v14450_v49, %v14449_v24  ;;  %v14451_v61 = vld [vmem:[#allocation392_spill] sm:$0xff]  ;;  %v14452_v63 = vld [vmem:[#allocation422_spill] sm:$0xff] }
 0xb2b   :  { %v3987_v51 = vadd.f32 %v14446_v9, %v3859_v10  ;;  %v14454_v59 = vld [vmem:[#allocation162_spill] sm:$0xff]  ;;  %v4267_v33 = vmul.f32 %v14456_v22, %v14367_v53  ;;  %v14461_v53 = vld [vmem:[#allocation315_spill] sm:$0xff] }
 0xb2c   :  { %v4638_v32 = vpop.permute.xlu0 %4637  ;;  %v5518_v26 = vmul.f32 %v14454_v59, %v14453_v28 }
 0xb2d   :  { %v4658_v13 = vadd.f32 %v4638_v32, %v4530_v29  ;;  %v4115_v58 = vadd.f32 %v14451_v61, %v3987_v51  ;;  %v14457_v29 = vld [vmem:[#allocation352_spill] sm:$0xff] }
 0xb2f   :  { %v6248_v43 = vpack.c.bf16 %v4658_v13, %v4657_v45  ;;  %5539 = vrot.lane.b32.xlu2 %v5517_v3, %s7450_s16  ;;  %5537 = vrot.lane.b32.xlu1 %v5516_v17, %s7450_s16  ;;  %v4243_v25 = vadd.f32 %v14452_v63, %v4115_v58  ;;  %v14458_v3 = vld [vmem:[#allocation172_spill] sm:$0xff]  ;;  %v14459_v13 = vld [vmem:[#allocation319_spill] sm:$0xff]  ;;  %v14460_v17 = vld [vmem:[#allocation226_spill] sm:$0xff]  ;;  %v5633_v58 = vmul.f32 %v14461_v53, %v14431_v6 }
 0xb30   :  { %v5632_v45 = vmul.f32 %v14458_v3, %v14421_v48  ;;  %v5631_v24 = vmul.f32 %v14459_v13, %v14405_v56 }
 0xb31   :  { %v6222_v10 = vpop.permute.xlu1 %6221  ;;  %7172 = vmatmul.msk.bf16.gmra.mxu1 %vm124_vm0, %v6248_v43  ;;  %v12438_v42 = vpop.permute.xlu2 %5863  ;;  %v4275_v51 = vadd.f32 %v4267_v33, %v4243_v25  ;;  %v14462_v43 = vld [vmem:[#allocation134_spill] sm:$0xff]  ;;  %v14463_v25 = vld [vmem:[#allocation56_spill] sm:$0xff] }
 0xb32   :  { %14455 = vst [vmem:[#allocation327_spill] sm:$0xff] %v12438_v42  ;;  %v12443_v9 = vadd.f32 %v6222_v10, %v14457_v29  ;;  %5541 = vrot.lane.b32.xlu0 %v5518_v26, %s7450_s16  ;;  %v4532_v28 = vadd.f32 %v12157_v57, %v14463_v25 }
 0xb33   :  { %v4403_v61 = vadd.f32 %v14460_v17, %v4275_v51 }
 0xb34   :  { %v5586_v52 = vpop.permute.xlu0 %5585  ;;  %v4660_v22 = vadd.f32 %v12386_v23, %v4532_v28 }
 0xb35   :  { %v4531_v63 = vadd.f32 %v14462_v43, %v4403_v61  ;;  %v5637_v43 = vmul.f32 %v14316_v8, %v14448_v34  ;;  %v14471_v8 = vld [vmem:[#allocation60_spill] sm:$0xff] }
 0xb37   :  { %5649 = vrot.lane.b32.xlu2 %v5632_v45, %s7451_s28  ;;  %5647 = vrot.lane.b32.xlu1 %v5631_v24, %s7451_s28  ;;  %v14465_v45 = vld [vmem:[#allocation211_spill] sm:$0xff]  ;;  %v14466_v24 = vld [vmem:[#allocation329_spill] sm:$0xff] }
 0xb38   :  { %v5635_v13 = vmul.f32 %v14465_v45, %v14441_v55  ;;  %v5634_v17 = vmul.f32 %v14466_v24, %v14437_v40  ;;  %v14474_v45 = vld [vmem:[#allocation388_spill] sm:$0xff]  ;;  %v14475_v24 = vld [vmem:[#allocation346_spill] sm:$0xff] }
 0xb39   :  { %v4640_v26 = vpop.permute.xlu1 %4639  ;;  %v4598_v10 = vpop.permute.xlu2 %4597 }
 0xb3a   :  { %v4659_v33 = vadd.f32 %v4640_v26, %v4531_v63  ;;  %v12462_v29 = vadd.f32 %v4598_v10, %v12208_v30  ;;  %5651 = vrot.lane.b32.xlu0 %v5633_v58, %s7451_s28  ;;  %v14468_v30 = vld [vmem:[#allocation320_spill] sm:$0xff]  ;;  %v14469_v63 = vld [vmem:[#allocation335_spill] sm:$0xff] }
 0xb3b   :  { %v5636_v23 = vmul.f32 %v14468_v30, %v14450_v49  ;;  %v5751_v25 = vmul.f32 %v14469_v63, %v14405_v56 }
 0xb3c   :  { %14464 = vst [vmem:[#allocation231_spill] sm:$0xff] %v12462_v29  ;;  %v6249_v51 = vpack.c.bf16 %v4660_v22, %v4659_v33  ;;  %v4594_v3 = vpop.permute.xlu0 %4593  ;;  %v5753_v33 = vmul.f32 %v14471_v8, %v14431_v6  ;;  %v14478_v8 = vld [vmem:[#allocation70_spill] sm:$0xff] }
 0xb3d   :  { %v12470_v57 = vadd.f32 %v4594_v3, %v12216_v37  ;;  %v5638_v37 = vmul.f32 %v14324_v21, %v14454_v59  ;;  %v14472_v21 = vld [vmem:[#allocation61_spill] sm:$0xff]  ;;  %v14473_v3 = vld [vmem:[#allocation378_spill] sm:$0xff] }
 0xb3f   :  { %14467 = vst [vmem:[#allocation205_spill] sm:$0xff] %v12470_v57  ;;  %5655 = vrot.lane.b32.xlu2 %v5635_v13, %s7451_s28  ;;  %5653 = vrot.lane.b32.xlu1 %v5634_v17, %s7451_s28  ;;  %v5204_v13 = vadd.f32 %v14474_v45, %v14473_v3  ;;  %v14476_v17 = vld [vmem:[#allocation391_spill] sm:$0xff]  ;;  %v14481_v45 = vld [vmem:[#allocation357_spill] sm:$0xff] }
 0xb41   :  { %7173 = vmatmul.msk.bf16.gmra.mxu1 %vm124_vm0, %v6249_v51  ;;  %v5826_v61 = vpop.permute.xlu1 %5825  ;;  %v5986_v53 = vpop.permute.xlu2 %5985  ;;  %v5752_v51 = vmul.f32 %v14472_v21, %v14421_v48  ;;  %v5324_v30 = vadd.f32 %v14476_v17, %v5204_v13  ;;  %v14479_v21 = vld [vmem:[#allocation215_spill] sm:$0xff]  ;;  %v14482_v13 = vld [vmem:[#allocation66_spill] sm:$0xff] }
 0xb42   :  { %5657 = vrot.lane.b32.xlu0 %v5636_v23, %s7451_s28  ;;  %v5756_v17 = vmul.f32 %v14482_v13, %v14450_v49 }
 0xb44   :  { %v5824_v58 = vpop.permute.xlu0 %5823 }
 0xb47   :  { %5661 = vrot.lane.b32.xlu2 %v5638_v37, %s7451_s28  ;;  %5659 = vrot.lane.b32.xlu1 %v5637_v43, %s7451_s28  ;;  %v14477_v37 = vld [vmem:[#allocation394_spill] sm:$0xff] }
 0xb48   :  { %v5444_v63 = vadd.f32 %v14477_v37, %v5324_v30 }
 0xb49   :  { %v4596_v28 = vpop.permute.xlu1 %4595  ;;  %v12486_v26 = vpop.permute.xlu2 %5467 }
 0xb4a   :  { %v12489_v10 = vadd.f32 %v4596_v28, %v12161_v12  ;;  %5767 = vrot.lane.b32.xlu0 %v5751_v25, %s7445_s21  ;;  %v5754_v12 = vmul.f32 %v14475_v24, %v14437_v40  ;;  %v5755_v24 = vmul.f32 %v14481_v45, %v14441_v55 }
 0xb4c   :  { %14470 = vst [vmem:[#allocation153_spill] sm:$0xff] %v12489_v10  ;;  %v4644_v22 = vpop.permute.xlu0 %4643 }
 0xb4d   :  { %v4661_v25 = vadd.f32 %v4644_v22, %v12255_v31 }
 0xb4f   :  { %5771 = vrot.lane.b32.xlu2 %v5753_v33, %s7445_s21  ;;  %5769 = vrot.lane.b32.xlu1 %v5752_v51, %s7445_s21  ;;  %v5500_v33 = vmul.f32 %v14479_v21, %v14478_v8  ;;  %v5758_v8 = vmul.f32 %v14336_v1, %v14454_v59 }
 0xb51   :  { %v4646_v23 = vpop.permute.xlu1 %4645  ;;  %v6226_v43 = vpop.permute.xlu2 %6225  ;;  %v5508_v32 = vadd.f32 %v5500_v33, %v5444_v63  ;;  %v14483_v63 = vld [vmem:[#allocation373_spill] sm:$0xff] }
 0xb52   :  { %v4662_v28 = vadd.f32 %v4646_v23, %v12206_v27  ;;  %5773 = vrot.lane.b32.xlu0 %v5754_v12, %s7445_s21  ;;  %v5757_v27 = vmul.f32 %v14335_v14, %v14448_v34  ;;  %v5843_v14 = vadd.f32 %v5824_v58, %v12420_v16  ;;  %v14487_v58 = vld [vmem:[#allocation381_spill] sm:$0xff] }
 0xb53   :  { %v5604_v31 = vadd.f32 %v5586_v52, %v5508_v32  ;;  %v14485_v32 = vld [vmem:[#allocation376_spill] sm:$0xff]  ;;  %v14486_v52 = vld [vmem:[#allocation247_spill] sm:$0xff] }
 0xb54   :  { %v6250_v3 = vpack.c.bf16 %v4662_v28, %v4661_v25  ;;  %v12509_v51 = vpop.permute.xlu0 %5865  ;;  %v14484_v25 = vld [vmem:[#allocation243_spill] sm:$0xff] }
 0xb55   :  { %14480 = vst [vmem:[#allocation228_spill] sm:$0xff] %v12509_v51  ;;  %v5724_v30 = vadd.f32 %v12418_v20, %v5604_v31  ;;  %v5900_v23 = vmul.f32 %v12509_v51, %v12044_v46  ;;  %v5911_v28 = vmul.f32 %v14484_v25, %v14483_v63  ;;  %v5912_v20 = vmul.f32 %v14486_v52, %v14485_v32  ;;  %v14489_v31 = vld [vmem:[#allocation386_spill] sm:$0xff]  ;;  %v14494_v32 = vld [vmem:[#allocation359_spill] sm:$0xff] }
 0xb56   :  { %7174 = vmatmul.msk.bf16.gmra.mxu1 %vm124_vm0, %v6250_v3  ;;  %v5899_v46 = vmul.f32 %v12438_v42, %v11995_v60  ;;  %v14491_v60 = vpack.c.bf16 %v12352_v44, %v12328_v7  ;;  %v14496_v7 = vld [vmem:[#allocation380_spill] sm:$0xff]  ;;  %v14525_v51 = vld [vmem:[#allocation270_spill] sm:$0xff] }
 0xb57   :  { %5777 = vrot.lane.b32.xlu2 %v5756_v17, %s7445_s21  ;;  %5775 = vrot.lane.b32.xlu1 %v5755_v24, %s7445_s21  ;;  %v5844_v33 = vadd.f32 %v5826_v61, %v5724_v30  ;;  %v14488_v17 = vld [vmem:[#allocation252_spill] sm:$0xff]  ;;  %v14490_v30 = vld [vmem:[#allocation258_spill] sm:$0xff] }
 0xb58   :  { %v5907_v13 = vadd.f32 %v5899_v46, %v5843_v14  ;;  %v5914_v63 = vmul.f32 %v14490_v30, %v14489_v31 }
 0xb59   :  { %v5984_v22 = vpop.permute.xlu1 %5983  ;;  %v12520_v12 = vpop.permute.xlu2 %5707  ;;  %v5908_v3 = vadd.f32 %v5900_v23, %v5844_v33 }
 0xb5a   :  { %5779 = vrot.lane.b32.xlu0 %v5757_v27, %s7445_s21  ;;  %v6003_v1 = vadd.f32 %v5984_v22, %v5907_v13  ;;  %v5913_v27 = vmul.f32 %v14488_v17, %v14487_v58  ;;  %v14492_v22 = vld [vmem:[#allocation385_spill] sm:$0xff] }
 0xb5b   :  { %v6004_v61 = vadd.f32 %v5986_v53, %v5908_v3  ;;  %v14493_v53 = vld [vmem:[#allocation262_spill] sm:$0xff]  ;;  %v14497_v58 = vld [vmem:[#allocation397_spill] sm:$0xff] }
 0xb5c   :  { %v6104_v37 = vpop.permute.xlu0 %6103  ;;  %v5915_v23 = vmul.f32 %v14493_v53, %v14492_v22  ;;  %v14507_v13 = vld [vmem:[#allocation53_spill] sm:$0xff] }
 0xb5d   :  { %v6031_v29 = vmul.f32 %v14507_v13, %v14484_v25  ;;  %v14514_v13 = vld [vmem:[#allocation384_spill] sm:$0xff] }
 0xb5f   :  { %5927 = vrot.lane.b32.xlu2 %v5911_v28, %s7450_s16  ;;  %5781 = vrot.lane.b32.xlu1 %v5758_v8, %s7445_s21  ;;  %v6123_v8 = vadd.f32 %v6104_v37, %v6003_v1  ;;  %v14498_v37 = vld [vmem:[#allocation267_spill] sm:$0xff] }
 0xb60   :  { %v5916_v1 = vmul.f32 %v14498_v37, %v14497_v58 }
 0xb61   :  { %v6106_v45 = vpop.permute.xlu1 %6105  ;;  %v12537_v24 = vpop.permute.xlu2 %5829 }
 0xb62   :  { %5929 = vrot.lane.b32.xlu0 %v5912_v20, %s7450_s16  ;;  %v6124_v28 = vadd.f32 %v6106_v45, %v6004_v61  ;;  %v14495_v20 = vld [vmem:[#allocation86_spill] sm:$0xff] }
 0xb63   :  { %v4710_v46 = vmul.f32 %v14495_v20, %v14494_v32 }
 0xb64   :  { %v12540_v16 = vpop.permute.xlu0 %5469  ;;  %v12558_v3 = vadd.f32 %v6226_v43, %v6124_v28  ;;  %v7308_v43 = vld [vmem:[%s12936_s13 + $0x18] sm:$0xff]  ;;  %v14501_v28 = vld [vmem:[#allocation279_spill] sm:$0xff] }
 0xb65   :  { %v4806_v44 = vadd.f32 %v14496_v7, %v4710_v46  ;;  %v5918_v22 = vmul.f32 %v14501_v28, %v14364_v35  ;;  %6432 = vmatpush.bf16.msra.mxu2 %v7308_v43  ;;  %v14504_v46 = vld [vmem:[#allocation218_spill] sm:$0xff]  ;;  %v7307_v43 = vld [vmem:[%s12936_s13 + $0x10] sm:$0xff] }
 0xb66   :  { %7175 = vmatmul.msk.bf16.gmra.mxu1 %vm124_vm0, %v14491_v60  ;;  %v14508_v35 = vld [vmem:[#allocation426_spill] sm:$0xff] }
 0xb67   :  { %5933 = vrot.lane.b32.xlu2 %v5914_v63, %s7450_s16  ;;  %5931 = vrot.lane.b32.xlu1 %v5913_v27, %s7450_s16  ;;  %v14499_v27 = vld [vmem:[#allocation273_spill] sm:$0xff]  ;;  %v14500_v63 = vld [vmem:[#allocation383_spill] sm:$0xff] }
 0xb68   :  { %v5917_v31 = vmul.f32 %v14499_v27, %v14353_v11  ;;  %v4926_v60 = vadd.f32 %v14500_v63, %v4806_v44  ;;  %v14503_v11 = vld [vmem:[#allocation363_spill] sm:$0xff] }
 0xb69   :  { %v6224_v33 = vpop.permute.xlu1 %6223  ;;  %v12554_v14 = vpop.permute.xlu2 %5987  ;;  %v5102_v7 = vmul.f32 %v14504_v46, %v14503_v11  ;;  %v14512_v11 = vld [vmem:[#allocation79_spill] sm:$0xff]  ;;  %6433 = vmatpush.bf16.msra.mxu2 %v7307_v43  ;;  %v14524_v43 = vld [vmem:[#allocation85_spill] sm:$0xff] }
 0xb6a   :  { %v12560_v45 = vadd.f32 %v6224_v33, %v6123_v8  ;;  %5935 = vrot.lane.b32.xlu0 %v5915_v23, %s7450_s16  ;;  %v14502_v23 = vld [vmem:[#allocation389_spill] sm:$0xff] }
 0xb6b   :  { %v5046_v8 = vadd.f32 %v14502_v23, %v4926_v60  ;;  %v6032_v60 = vmul.f32 %v14508_v35, %v14486_v52  ;;  %v14509_v23 = vld [vmem:[#allocation400_spill] sm:$0xff]  ;;  %v14515_v35 = vld [vmem:[#allocation398_spill] sm:$0xff] }
 0xb6c   :  { %v5588_v61 = vpop.permute.xlu0 %5587  ;;  %v5205_v10 = vadd.f32 %v14515_v35, %v14514_v13  ;;  %v5501_v35 = vmul.f32 %v12486_v26, %v12063_v2 }
 0xb6d   :  { %v5110_v44 = vadd.f32 %v5102_v7, %v5046_v8  ;;  %v14511_v8 = vld [vmem:[#allocation20_spill] sm:$0xff] }
 0xb6e   :  { %v4696_v7 = vmul.f32 %v14512_v11, %v14511_v8 }
 0xb6f   :  { %5939 = vrot.lane.b32.xlu2 %v5917_v31, %s7450_s16  ;;  %5937 = vrot.lane.b32.xlu1 %v5916_v1, %s7450_s16  ;;  %v14505_v1 = vld [vmem:[#allocation29_spill] sm:$0xff]  ;;  %v14506_v31 = vld [vmem:[#allocation80_spill] sm:$0xff]  ;;  %v5206_v57 = vadd.f32 %v14509_v23, %v5110_v44  ;;  %v14517_v44 = vld [vmem:[#allocation6_spill] sm:$0xff] }
 0xb70   :  { %v4701_v63 = vmul.f32 %v14506_v31, %v14505_v1  ;;  %v14513_v1 = vld [vmem:[#allocation179_spill] sm:$0xff]  ;;  %v6033_v23 = vmul.f32 %v14517_v44, %v14488_v17 }
 0xb71   :  { %v12579_v33 = vpop.permute.xlu2 %6109  ;;  %v5590_v32 = vpop.permute.xlu1 %5589  ;;  %v5326_v42 = vadd.f32 %v14516_v15, %v5206_v57  ;;  %v14522_v57 = vld [vmem:[#allocation406_spill] sm:$0xff] }
 0xb72   :  { %5941 = vrot.lane.b32.xlu0 %v5918_v22, %s7450_s16  ;;  %v14510_v22 = vpack.c.bf16 %v12443_v9, %v12404_v4  ;;  %v4757_v31 = vadd.f32 %v14513_v1, %v4701_v63  ;;  %v5502_v4 = vmul.f32 %v12540_v16, %v12134_v54  ;;  %v7306_v9 = vld [vmem:[%s12936_s13 + $0x8] sm:$0xff]  ;;  %v14521_v1 = vld [vmem:[#allocation401_spill] sm:$0xff] }
 0xb73   :  { %v14518_v63 = vld [vmem:[#allocation198_spill] sm:$0xff]  ;;  %v5325_v15 = vadd.f32 %v14521_v1, %v5205_v10  ;;  %v5446_v13 = vadd.f32 %v14522_v57, %v5326_v42  ;;  %v14523_v54 = vld [vmem:[#allocation21_spill] sm:$0xff]  ;;  %6434 = vmatpush.bf16.msra.mxu2 %v7306_v9  ;;  %v14528_v10 = vld [vmem:[#allocation200_spill] sm:$0xff] }
 0xb74   :  { %v5710_v58 = vpop.permute.xlu0 %5709  ;;  %v4697_v44 = vmul.f32 %v14524_v43, %v14523_v54  ;;  %v14529_v1 = vld [vmem:[#allocation173_spill] sm:$0xff]  ;;  %v14530_v57 = vld [vmem:[#allocation212_spill] sm:$0xff]  ;;  %v14532_v54 = vld [vmem:[#allocation430_spill] sm:$0xff] }
 0xb75   :  { %v5510_v49 = vadd.f32 %v5502_v4, %v5446_v13  ;;  %v5085_v2 = vmul.f32 %v14530_v57, %v14529_v1  ;;  %v6035_v43 = vmul.f32 %v14532_v54, %v14493_v53  ;;  %v7305_v4 = vld [vmem:[%s12936_s13] sm:$0xff]  ;;  %v14534_v9 = vld [vmem:[#allocation182_spill] sm:$0xff] }
 0xb76   :  { %7176 = vmatmul.msk.bf16.gmra.mxu1 %vm124_vm0, %v14510_v22  ;;  %v14519_v22 = vld [vmem:[#allocation257_spill] sm:$0xff]  ;;  %v4753_v42 = vadd.f32 %v14528_v10, %v4697_v44  ;;  %v14535_v44 = vld [vmem:[#allocation284_spill] sm:$0xff] }
 0xb77   :  { %6049 = vrot.lane.b32.xlu2 %v6032_v60, %s7451_s28  ;;  %6047 = vrot.lane.b32.xlu1 %v6031_v29, %s7451_s28  ;;  %v4752_v60 = vadd.f32 %v14518_v63, %v4696_v7  ;;  %v4877_v29 = vadd.f32 %v14519_v22, %v4757_v31  ;;  %v14526_v7 = vld [vmem:[#allocation307_spill] sm:$0xff]  ;;  %v14527_v31 = vld [vmem:[#allocation404_spill] sm:$0xff] }
 0xb78   :  { %v5445_v22 = vadd.f32 %v14527_v31, %v5325_v15  ;;  %v5606_v15 = vadd.f32 %v5590_v32, %v5510_v49  ;;  %v4873_v13 = vadd.f32 %v14534_v9, %v4753_v42  ;;  %v14536_v10 = vld [vmem:[#allocation428_spill] sm:$0xff]  ;;  %6435 = vmatpush.bf16.msra.mxu2 %v7305_v4  ;;  %v14538_v49 = vld [vmem:[#allocation169_spill] sm:$0xff]  ;;  %v5485_v9 = vmul.f32 %v12486_v26, %v14448_v34 }
 0xb79   :  { %v12615_v8 = vpop.permute.xlu2 %5527  ;;  %v5828_v11 = vpop.permute.xlu1 %5827  ;;  %v4997_v21 = vadd.f32 %v14525_v51, %v4877_v29  ;;  %v4872_v63 = vadd.f32 %v14526_v7, %v4752_v60  ;;  %v14533_v51 = vld [vmem:[#allocation25_spill] sm:$0xff]  ;;  %v6036_v1 = vmul.f32 %v14536_v10, %v14498_v37  ;;  %v14545_v10 = vld [vmem:[#allocation144_spill] sm:$0xff] }
 0xb7a   :  { %14520 = vst [vmem:[#allocation164_spill] sm:$0xff] %v12615_v8  ;;  %6051 = vrot.lane.b32.xlu0 %v6033_v23, %s7451_s28  ;;  %v14531_v23 = vld [vmem:[#allocation5_spill] sm:$0xff]  ;;  %v4699_v60 = vmul.f32 %v14363_v39, %v14533_v51  ;;  %v5509_v29 = vadd.f32 %v5501_v35, %v5445_v22  ;;  %v14539_v35 = vld [vmem:[#allocation202_spill] sm:$0xff] }
 0xb7b   :  { %v6034_v8 = vmul.f32 %v14531_v23, %v14490_v30  ;;  %v4992_v7 = vadd.f32 %v14535_v44, %v4872_v63  ;;  %v5093_v31 = vadd.f32 %v5085_v2, %v4997_v21  ;;  %v14537_v39 = vld [vmem:[#allocation141_spill] sm:$0xff]  ;;  %v14540_v23 = vld [vmem:[#allocation310_spill] sm:$0xff]  ;;  %v5726_v21 = vadd.f32 %v5710_v58, %v5606_v15 }
 0xb7c   :  { %v12627_v40 = vpop.permute.xlu0 %5867  ;;  %v5605_v57 = vadd.f32 %v5588_v61, %v5509_v29  ;;  %v5080_v32 = vmul.f32 %v14538_v49, %v14537_v39  ;;  %v4755_v22 = vadd.f32 %v14539_v35, %v4699_v60  ;;  %v14542_v51 = vld [vmem:[#allocation98_spill] sm:$0xff]  ;;  %v14543_v29 = vld [vmem:[#allocation317_spill] sm:$0xff]  ;;  %v14546_v39 = vld [vmem:[#allocation312_spill] sm:$0xff] }
 0xb7d   :  { %v5157_v54 = vadd.f32 %v14540_v23, %v5093_v31  ;;  %v5901_v44 = vmul.f32 %v12627_v40, %v12241_v50  ;;  %v14544_v31 = vld [vmem:[#allocation149_spill] sm:$0xff]  ;;  %v5846_v26 = vadd.f32 %v12537_v24, %v5726_v21  ;;  %v14547_v50 = vpack.c.bf16 %v12558_v3, %v12560_v45  ;;  %v14551_v23 = vld [vmem:[#allocation160_spill] sm:$0xff]  ;;  %v14552_v21 = vld [vmem:[#allocation19_spill] sm:$0xff] }
 0xb7e   :  { %v4875_v4 = vadd.f32 %v14543_v29, %v4755_v22  ;;  %v5725_v60 = vadd.f32 %v12520_v12, %v5605_v57  ;;  %v14548_v57 = vld [vmem:[#allocation299_spill] sm:$0xff]  ;;  %v5083_v3 = vmul.f32 %v14386_v0, %v14551_v23 }
 0xb7f   :  { %6055 = vrot.lane.b32.xlu2 %v6035_v43, %s7451_s28  ;;  %6053 = vrot.lane.b32.xlu1 %v6034_v8, %s7451_s28  ;;  %v14541_v8 = vld [vmem:[#allocation268_spill] sm:$0xff]  ;;  %v5088_v43 = vadd.f32 %v5080_v32, %v4992_v7  ;;  %v5277_v61 = vadd.f32 %v14542_v51, %v5157_v54  ;;  %v6038_v7 = vmul.f32 %v14381_v62, %v14501_v28  ;;  %v14550_v62 = vld [vmem:[#allocation434_spill] sm:$0xff] }
 0xb80   :  { %v4993_v2 = vadd.f32 %v14541_v8, %v4873_v13  ;;  %v5081_v13 = vmul.f32 %v14545_v10, %v14544_v31  ;;  %v5845_v12 = vadd.f32 %v5828_v11, %v5725_v60  ;;  %v14549_v32 = vld [vmem:[#allocation288_spill] sm:$0xff]  ;;  %v14553_v8 = vld [vmem:[#allocation75_spill] sm:$0xff] }
 0xb81   :  { %v12651_v42 = vpop.permute.xlu2 %5533  ;;  %v12653_v63 = vpop.permute.xlu1 %5869  ;;  %v5397_v34 = vadd.f32 %v14546_v39, %v5277_v61  ;;  %v5152_v49 = vadd.f32 %v14548_v57, %v5088_v43  ;;  %v4995_v35 = vadd.f32 %v14549_v32, %v4875_v4  ;;  %v14554_v61 = vld [vmem:[#allocation302_spill] sm:$0xff]  ;;  %v14557_v10 = vld [vmem:[#allocation159_spill] sm:$0xff]  ;;  %v14559_v39 = vld [vmem:[#allocation289_spill] sm:$0xff] }
 0xb82   :  { %6057 = vrot.lane.b32.xlu0 %v6036_v1, %s7451_s28  ;;  %v5902_v58 = vmul.f32 %v12653_v63, %v12284_v36  ;;  %v6037_v1 = vmul.f32 %v14382_v38, %v14499_v27  ;;  %v5089_v36 = vadd.f32 %v5081_v13, %v4993_v2  ;;  %v6151_v38 = vmul.f32 %v14550_v62, %v14484_v25  ;;  %v14555_v4 = vld [vmem:[#allocation170_spill] sm:$0xff]  ;;  %v14563_v32 = vld [vmem:[#allocation287_spill] sm:$0xff]  ;;  %v14564_v62 = vld [vmem:[#allocation32_spill] sm:$0xff] }
 0xb83   :  { %v5909_v22 = vadd.f32 %v5901_v44, %v5845_v12  ;;  %v5493_v11 = vadd.f32 %v5485_v9, %v5397_v34  ;;  %v4695_v2 = vmul.f32 %v14553_v8, %v14552_v21  ;;  %v5091_v51 = vadd.f32 %v5083_v3, %v4995_v35  ;;  %v14556_v44 = vld [vmem:[#allocation152_spill] sm:$0xff]  ;;  %v14560_v12 = vld [vmem:[#allocation177_spill] sm:$0xff]  ;;  %v14566_v3 = vld [vmem:[#allocation22_spill] sm:$0xff] }
 0xb84   :  { %v5990_v15 = vpop.permute.xlu0 %5989  ;;  %v5910_v24 = vadd.f32 %v5902_v58, %v5846_v26  ;;  %v5272_v29 = vadd.f32 %v14554_v61, %v5152_v49  ;;  %v5153_v58 = vadd.f32 %v14556_v44, %v5089_v36  ;;  %v6153_v13 = vmul.f32 %v14557_v10, %v14488_v17  ;;  %v14561_v36 = vld [vmem:[#allocation48_spill] sm:$0xff]  ;;  %v14568_v21 = vld [vmem:[#allocation261_spill] sm:$0xff]  ;;  %v14570_v61 = vld [vmem:[#allocation91_spill] sm:$0xff] }
 0xb85   :  { %v4751_v60 = vadd.f32 %v14555_v4, %v4695_v2  ;;  %v6005_v31 = vadd.f32 %v12554_v14, %v5909_v22  ;;  %v14562_v14 = vld [vmem:[#allocation436_spill] sm:$0xff]  ;;  %v14565_v22 = vld [vmem:[#allocation234_spill] sm:$0xff] }
 0xb86   :  { %7177 = vmatmul.msk.bf16.gmra.mxu1 %vm124_vm0, %v14547_v50  ;;  %v6006_v9 = vadd.f32 %v5990_v15, %v5910_v24  ;;  %v5155_v50 = vadd.f32 %v14560_v12, %v5091_v51  ;;  %v5392_v15 = vadd.f32 %v14561_v36, %v5272_v29  ;;  %v6154_v57 = vmul.f32 %v14562_v14, %v14490_v30  ;;  %v14571_v4 = vld [vmem:[#allocation216_spill] sm:$0xff] }
 0xb87   :  { %6061 = vrot.lane.b32.xlu2 %v6038_v7, %s7451_s28  ;;  %6059 = vrot.lane.b32.xlu1 %v6037_v1, %s7451_s28  ;;  %v14558_v7 = vld [vmem:[#allocation214_spill] sm:$0xff]  ;;  %v4871_v34 = vadd.f32 %v14559_v39, %v4751_v60  ;;  %v5273_v35 = vadd.f32 %v14563_v32, %v5153_v58  ;;  %v5480_v24 = vmul.f32 %v14565_v22, %v14421_v48 }
 0xb88   :  { %v6152_v1 = vmul.f32 %v14558_v7, %v14486_v52  ;;  %v6126_v49 = vadd.f32 %v12579_v33, %v6006_v9  ;;  %v14569_v33 = vld [vmem:[#allocation28_spill] sm:$0xff]  ;;  %v14572_v58 = vld [vmem:[#allocation314_spill] sm:$0xff]  ;;  %v14573_v9 = vld [vmem:[#allocation135_spill] sm:$0xff]  ;;  %v6155_v36 = vmul.f32 %v11847_v18, %v14493_v53  ;;  %v6156_v14 = vmul.f32 %v11849_v5, %v14498_v37 }
 0xb89   :  { %v5540_v45 = vpop.permute.xlu2 %5539  ;;  %v6108_v54 = vpop.permute.xlu1 %6107  ;;  %v4991_v8 = vadd.f32 %v14568_v21, %v4871_v34  ;;  %v4700_v29 = vmul.f32 %v14570_v61, %v14569_v33  ;;  %v5488_v44 = vadd.f32 %v5480_v24, %v5392_v15  ;;  %v5275_v48 = vadd.f32 %v14572_v58, %v5155_v50  ;;  %v14582_v18 = vld [vmem:[#allocation195_spill] sm:$0xff] }
 0xb8a   :  { %v12688_v43 = vadd.f32 %v5540_v45, %v5493_v11  ;;  %6167 = vrot.lane.b32.xlu0 %v6151_v38, %s7445_s21  ;;  %v6125_v26 = vadd.f32 %v6108_v54, %v6005_v31  ;;  %v4702_v38 = vmul.f32 %v14495_v20, %v14564_v62  ;;  %v14567_v45 = vld [vmem:[#allocation77_spill] sm:$0xff]  ;;  %v14574_v31 = vld [vmem:[#allocation171_spill] sm:$0xff]  ;;  %v5483_v21 = vmul.f32 %v14425_v47, %v14441_v55  ;;  %v14590_v47 = vld [vmem:[#allocation24_spill] sm:$0xff] }
 0xb8b   :  { %v4698_v54 = vmul.f32 %v14567_v45, %v14566_v3  ;;  %v5079_v10 = vmul.f32 %v14574_v31, %v14573_v9  ;;  %v6157_v3 = vmul.f32 %v14393_v41, %v14499_v27  ;;  %v14585_v61 = vld [vmem:[#allocation275_spill] sm:$0xff]  ;;  %v14588_v9 = vld [vmem:[#allocation176_spill] sm:$0xff] }
 0xb8c   :  { %v6228_v0 = vpop.permute.xlu0 %6227  ;;  %v4758_v60 = vadd.f32 %v14571_v4, %v4702_v38  ;;  %v14580_v38 = vld [vmem:[#allocation305_spill] sm:$0xff]  ;;  %v14589_v31 = vld [vmem:[#allocation23_spill] sm:$0xff] }
 0xb8d   :  { %v6245_v2 = vadd.f32 %v6228_v0, %v6125_v26  ;;  %v14576_v0 = vld [vmem:[#allocation92_spill] sm:$0xff]  ;;  %v14577_v26 = vld [vmem:[#allocation281_spill] sm:$0xff]  ;;  %v5087_v62 = vadd.f32 %v5079_v10, %v4991_v8  ;;  %v14584_v8 = vld [vmem:[#allocation110_spill] sm:$0xff] }
 0xb8e   :  { %v5393_v34 = vadd.f32 %v14576_v0, %v5273_v35  ;;  %v4878_v12 = vadd.f32 %v14577_v26, %v4758_v60  ;;  %v14581_v35 = vld [vmem:[#allocation292_spill] sm:$0xff]  ;;  %v14586_v4 = vld [vmem:[#allocation265_spill] sm:$0xff] }
 0xb8f   :  { %6171 = vrot.lane.b32.xlu2 %v6153_v13, %s7445_s21  ;;  %6169 = vrot.lane.b32.xlu1 %v6152_v1, %s7445_s21  ;;  %v14575_v13 = vld [vmem:[#allocation175_spill] sm:$0xff] }
 0xb90   :  { %v4754_v7 = vadd.f32 %v14575_v13, %v4698_v54  ;;  %v4998_v24 = vadd.f32 %v14581_v35, %v4878_v12 }
 0xb91   :  { %v5650_v11 = vpop.permute.xlu2 %5649  ;;  %v6230_v23 = vpop.permute.xlu1 %6229 }
 0xb92   :  { %v6246_v51 = vadd.f32 %v6230_v23, %v6126_v49  ;;  %6173 = vrot.lane.b32.xlu0 %v6154_v57, %s7445_s21  ;;  %v14578_v57 = vld [vmem:[#allocation204_spill] sm:$0xff]  ;;  %v14579_v49 = vld [vmem:[#allocation209_spill] sm:$0xff]  ;;  %v4874_v22 = vadd.f32 %v14580_v38, %v4754_v7  ;;  %v5395_v23 = vadd.f32 %v14582_v18, %v5275_v48  ;;  %v14587_v48 = vld [vmem:[#allocation155_spill] sm:$0xff] }
 0xb93   :  { %v6304_v20 = vpop.f32.mrf.mxu1  ;;  %v4756_v50 = vadd.f32 %v14578_v57, %v4700_v29  ;;  %v5481_v32 = vmul.f32 %v14579_v49, %v14431_v6  ;;  %v14583_v6 = vld [vmem:[#allocation178_spill] sm:$0xff]  ;;  %v5151_v29 = vadd.f32 %v14585_v61, %v5087_v62  ;;  %v14591_v7 = vld [vmem:[#allocation272_spill] sm:$0xff]  ;;  %v14594_v57 = vld [vmem:[#allocation167_spill] sm:$0xff]  ;;  %v5486_v62 = vmul.f32 %v12540_v16, %v14454_v59 }
 0xb94   :  { %v6254_v1 = vpack.c.bf16 %v6246_v51, %v6245_v2  ;;  %v5530_v39 = vpop.permute.xlu0 %5529  ;;  %v5086_v54 = vmul.f32 %v14504_v46, %v14583_v6  ;;  %v4994_v60 = vadd.f32 %v14586_v4, %v4874_v22  ;;  %v5491_v58 = vadd.f32 %v5483_v21, %v5395_v23  ;;  %v14597_v22 = vld [vmem:[#allocation326_spill] sm:$0xff]  ;;  %v14598_v23 = vld [vmem:[#allocation168_spill] sm:$0xff]  ;;  %v14601_v16 = vld [vmem:[#allocation301_spill] sm:$0xff] }
 0xb95   :  { %v5552_v15 = vadd.f32 %v5530_v39, %v5488_v44  ;;  %v5489_v45 = vadd.f32 %v5481_v32, %v5393_v34  ;;  %v4876_v2 = vadd.f32 %v14584_v8, %v4756_v50  ;;  %v5082_v46 = vmul.f32 %v14588_v9, %v14587_v48  ;;  %v14592_v39 = vld [vmem:[#allocation185_spill] sm:$0xff]  ;;  %v14596_v32 = vld [vmem:[#allocation324_spill] sm:$0xff] }
 0xb96   :  { %7178 = vmatmul.msk.bf16.gmra.mxu1 %vm124_vm0, %v6254_v1  ;;  %v5094_v44 = vadd.f32 %v5086_v54, %v4998_v24  ;;  %v6344_v10 = vsub.f32 %v6304_v20, %v14589_v31  ;;  %v6158_v34 = vmul.f32 %v14410_v19, %v14501_v28  ;;  %v14595_v50 = vld [vmem:[#allocation165_spill] sm:$0xff]  ;;  %v14600_v21 = vld [vmem:[#allocation232_spill] sm:$0xff] }
 0xb97   :  { %6177 = vrot.lane.b32.xlu2 %v6156_v14, %s7445_s21  ;;  %6175 = vrot.lane.b32.xlu1 %v6155_v36, %s7445_s21  ;;  %v12738_v5 = vadd.f32 %v5650_v11, %v5552_v15  ;;  %v4996_v1 = vadd.f32 %v14591_v7, %v4876_v2  ;;  %v5090_v12 = vadd.f32 %v5082_v46, %v4994_v60  ;;  %v14593_v36 = vld [vmem:[#allocation278_spill] sm:$0xff]  ;;  %v14602_v61 = vld [vmem:[#allocation300_spill] sm:$0xff]  ;;  %v14605_v46 = vld [vmem:[#allocation303_spill] sm:$0xff] }
 0xb98   :  { %v5158_v0 = vadd.f32 %v14592_v39, %v5094_v44  ;;  %v5271_v14 = vadd.f32 %v14593_v36, %v5151_v29  ;;  %v5084_v49 = vmul.f32 %v14595_v50, %v14594_v57  ;;  %v5479_v8 = vmul.f32 %v14600_v21, %v14405_v56  ;;  %v14603_v60 = vld [vmem:[#allocation164_spill] sm:$0xff]  ;;  %v14608_v7 = vld [vmem:[#allocation87_spill] sm:$0xff] }
 0xb99   :  { %v5656_v51 = vpop.permute.xlu2 %5655  ;;  %v5532_v33 = vpop.permute.xlu1 %5531  ;;  %v14607_v56 = vld [vmem:[#allocation236_spill] sm:$0xff] }
 0xb9a   :  { %v5553_v11 = vadd.f32 %v5532_v33, %v5489_v45  ;;  %6179 = vrot.lane.b32.xlu0 %v6157_v3, %s7445_s21  ;;  %v5278_v20 = vadd.f32 %v14596_v32, %v5158_v0  ;;  %v5092_v19 = vadd.f32 %v5084_v49, %v4996_v1  ;;  %v5154_v3 = vadd.f32 %v14598_v23, %v5090_v12  ;;  %v14599_v45 = vld [vmem:[#allocation282_spill] sm:$0xff]  ;;  %v14610_v12 = vld [vmem:[#allocation215_spill] sm:$0xff] }
 0xb9b   :  { %v6306_v41 = vpop.f32.mrf.mxu1  ;;  %v5391_v6 = vadd.f32 %v14599_v45, %v5271_v14  ;;  %v14613_v45 = vld [vmem:[#allocation27_spill] sm:$0xff] }
 0xb9c   :  { %v6345_v55 = vsub.f32 %v6306_v41, %v14590_v47  ;;  %v5536_v13 = vpop.permute.xlu0 %5535  ;;  %v5398_v35 = vadd.f32 %v14597_v22, %v5278_v20  ;;  %v5156_v2 = vadd.f32 %v14601_v16, %v5092_v19  ;;  %v5274_v29 = vadd.f32 %v14602_v61, %v5154_v3  ;;  %v14604_v41 = vld [vmem:[#allocation140_spill] sm:$0xff]  ;;  %v14614_v16 = vld [vmem:[#allocation379_spill] sm:$0xff] }
 0xb9d   :  { %v5555_v26 = vadd.f32 %v5536_v13, %v5491_v58  ;;  %v5487_v33 = vadd.f32 %v5479_v8, %v5391_v6  ;;  %v14606_v47 = vld [vmem:[#allocation280_spill] sm:$0xff] }
 0xb9e   :  { %v6360_v15 = vpack.c.bf16 %v6345_v55, %v6344_v10  ;;  %v5494_v54 = vadd.f32 %v5486_v62, %v5398_v35  ;;  %v5276_v58 = vadd.f32 %v14604_v41, %v5156_v2  ;;  %v5394_v31 = vadd.f32 %v14605_v46, %v5274_v29  ;;  %v14611_v35 = vld [vmem:[#allocation228_spill] sm:$0xff]  ;;  %v14616_v46 = vld [vmem:[#allocation30_spill] sm:$0xff] }
 0xb9f   :  { %6181 = vrot.lane.b32.xlu1 %v6158_v34, %s7445_s21  ;;  %v12765_v38 = vadd.f32 %v5656_v51, %v5555_v26  ;;  %v5551_v44 = vadd.f32 %v14603_v60, %v5487_v33  ;;  %v5482_v55 = vmul.f32 %v14607_v56, %v14606_v47  ;;  %v14609_v26 = vld [vmem:[#allocation290_spill] sm:$0xff]  ;;  %v5879_v2 = vmul.f32 %v14614_v16, %v14484_v25  ;;  %v14617_v56 = vld [vmem:[#allocation31_spill] sm:$0xff] }
 0xba0   :  { %7195 = vmatmul.msk.bf16.vlgmr.msra.gmra.mxu2 %vm404_vm6, %v6360_v15  ;;  %v5396_v1 = vadd.f32 %v14608_v7, %v5276_v58  ;;  %v5484_v36 = vmul.f32 %v14610_v12, %v14609_v26  ;;  %v14615_v58 = vld [vmem:[#allocation395_spill] sm:$0xff] }
 0xba1   :  { %v5662_v24 = vpop.permute.xlu2 %5661  ;;  %v5538_v18 = vpop.permute.xlu1 %5537  ;;  %v5490_v0 = vadd.f32 %v5482_v55, %v5394_v31 }
 0xba2   :  { %v5492_v57 = vadd.f32 %v5484_v36, %v5396_v1  ;;  %v14618_v1 = vld [vmem:[#allocation327_spill] sm:$0xff] }
 0xba3   :  { %v5554_v15 = vadd.f32 %v12651_v42, %v5490_v0  ;;  %v14619_v36 = vld [vmem:[#allocation387_spill] sm:$0xff] }
 0xba4   :  { %v5542_v59 = vpop.permute.xlu0 %5541  ;;  %v5556_v20 = vadd.f32 %v5538_v18, %v5492_v57 }
 0xba5   :  { %v5558_v51 = vadd.f32 %v5542_v59, %v5494_v54 }
 0xba7   :  { %v12775_v4 = vadd.f32 %v5662_v24, %v5558_v51  ;;  %v5884_v24 = vmul.f32 %v14611_v35, %v14498_v37 }
 0xba9   :  { %v5772_v48 = vpop.permute.xlu2 %5771  ;;  %v5648_v9 = vpop.permute.xlu1 %5647 }
 0xbaa   :  { %v5671_v10 = vadd.f32 %v5648_v9, %v5551_v44 }
 0xbac   :  { %v5652_v13 = vpop.permute.xlu0 %5651 }
 0xbad   :  { %v5673_v39 = vadd.f32 %v5652_v13, %v5553_v11  ;;  %v14612_v11 = vld [vmem:[#allocation26_spill] sm:$0xff] }
 0xbae   :  { %v6309_v34 = vpop.f32.mrf.mxu1 }
 0xbaf   :  { %v5793_v14 = vadd.f32 %v5772_v48, %v5673_v39  ;;  %v6346_v23 = vsub.f32 %v6309_v34, %v14612_v11  ;;  %v5882_v48 = vmul.f32 %v14615_v58, %v14490_v30  ;;  %v5883_v39 = vmul.f32 %v14618_v1, %v14493_v53  ;;  %v14625_v1 = vld [vmem:[#allocation45_spill] sm:$0xff] }
 0xbb0   :  { %v5885_v34 = vmul.f32 %v12627_v40, %v14499_v27  ;;  %v5886_v53 = vmul.f32 %v12653_v63, %v14501_v28  ;;  %v14620_v40 = vld [vmem:[#allocation393_spill] sm:$0xff]  ;;  %v14622_v28 = vld [vmem:[#allocation34_spill] sm:$0xff] }
 0xbb1   :  { %v5778_v50 = vpop.permute.xlu2 %5777  ;;  %v5654_v49 = vpop.permute.xlu1 %5653  ;;  %v5881_v27 = vmul.f32 %v14620_v40, %v14488_v17  ;;  %v14629_v40 = vld [vmem:[#allocation7_spill] sm:$0xff] }
 0xbb2   :  { %v5674_v32 = vadd.f32 %v5654_v49, %v5554_v15  ;;  %v5880_v15 = vmul.f32 %v14619_v36, %v14486_v52 }
 0xbb4   :  { %v5658_v62 = vpop.permute.xlu0 %5657 }
 0xbb5   :  { %v5676_v19 = vadd.f32 %v5658_v62, %v5556_v20 }
 0xbb6   :  { %v6311_v22 = vpop.f32.mrf.mxu1 }
 0xbb7   :  { %v5796_v3 = vadd.f32 %v5778_v50, %v5676_v19  ;;  %v6347_v6 = vsub.f32 %v6311_v22, %v14613_v45  ;;  %v14621_v45 = vld [vmem:[#allocation33_spill] sm:$0xff] }
 0xbb9   :  { %v6361_v54 = vpack.c.bf16 %v6347_v6, %v6346_v23  ;;  %v5928_v21 = vpop.permute.xlu2 %5927  ;;  %v5660_v8 = vpop.permute.xlu1 %5659  ;;  %v5892_v42 = vadd.f32 %v5884_v24, %v5796_v3  ;;  %v5889_v24 = vadd.f32 %v5881_v27, %v5793_v14 }
 0xbba   :  { %v5677_v59 = vadd.f32 %v5660_v8, %v12688_v43 }
 0xbbb   :  { %7196 = vmatmul.msk.bf16.gmra.mxu2 %vm404_vm6, %v6361_v54 }
 0xbbc   :  { %v5768_v18 = vpop.permute.xlu0 %5767 }
 0xbbd   :  { %v5791_v51 = vadd.f32 %v5768_v18, %v5671_v10 }
 0xbbe   :  { %v6314_v33 = vpop.f32.mrf.mxu1 }
 0xbbf   :  { %v5887_v37 = vadd.f32 %v5879_v2, %v5791_v51  ;;  %v6348_v31 = vsub.f32 %v6314_v33, %v14616_v46 }
 0xbc1   :  { %v5934_v61 = vpop.permute.xlu2 %5933  ;;  %v5770_v29 = vpop.permute.xlu1 %5769  ;;  %v5951_v60 = vadd.f32 %v5928_v21, %v5887_v37 }
 0xbc2   :  { %v5792_v44 = vadd.f32 %v5770_v29, %v12738_v5  ;;  %v14623_v29 = vld [vmem:[#allocation39_spill] sm:$0xff] }
 0xbc4   :  { %v5774_v41 = vpop.permute.xlu0 %5773  ;;  %v5888_v20 = vadd.f32 %v5880_v15, %v5792_v44 }
 0xbc5   :  { %v5794_v9 = vadd.f32 %v5774_v41, %v5674_v32  ;;  %v14624_v41 = vld [vmem:[#allocation40_spill] sm:$0xff] }
 0xbc6   :  { %v6316_v43 = vpop.f32.mrf.mxu1 }
 0xbc7   :  { %v5890_v47 = vadd.f32 %v5882_v48, %v5794_v9  ;;  %v6349_v55 = vsub.f32 %v6316_v43, %v14617_v56 }
 0xbc9   :  { %v6362_v25 = vpack.c.bf16 %v6349_v55, %v6348_v31  ;;  %v5940_v10 = vpop.permute.xlu2 %5939  ;;  %v5776_v13 = vpop.permute.xlu1 %5775  ;;  %v5954_v7 = vadd.f32 %v5934_v61, %v5890_v47 }
 0xbca   :  { %v5795_v5 = vadd.f32 %v5776_v13, %v12765_v38 }
 0xbcb   :  { %7197 = vmatmul.msk.bf16.gmra.mxu2 %vm404_vm6, %v6362_v25 }
 0xbcc   :  { %v5780_v0 = vpop.permute.xlu0 %5779  ;;  %v5891_v30 = vadd.f32 %v5883_v39, %v5795_v5  ;;  %v14626_v5 = vld [vmem:[#allocation46_spill] sm:$0xff] }
 0xbcd   :  { %v5797_v26 = vadd.f32 %v5780_v0, %v5677_v59 }
 0xbcf   :  { %v5893_v12 = vadd.f32 %v5885_v34, %v5797_v26 }
 0xbd1   :  { %v6050_v57 = vpop.permute.xlu2 %6049  ;;  %v5782_v50 = vpop.permute.xlu1 %5781  ;;  %v5957_v49 = vadd.f32 %v5940_v10, %v5893_v12 }
 0xbd2   :  { %v5798_v38 = vadd.f32 %v5782_v50, %v12775_v4 }
 0xbd3   :  { %v6319_v32 = vpop.f32.mrf.mxu1 }
 0xbd4   :  { %v5930_v62 = vpop.permute.xlu0 %5929  ;;  %v5894_v19 = vadd.f32 %v5886_v53, %v5798_v38  ;;  %v6350_v6 = vsub.f32 %v6319_v32, %v14621_v45  ;;  %v14627_v53 = vld [vmem:[#allocation51_spill] sm:$0xff]  ;;  %v14628_v32 = vld [vmem:[#allocation52_spill] sm:$0xff] }
 0xbd5   :  { %v5952_v22 = vadd.f32 %v5930_v62, %v5888_v20 }
 0xbd7   :  { %v12812_v35 = vadd.f32 %v6050_v57, %v5952_v22 }
 0xbd9   :  { %v5932_v52 = vpop.permute.xlu1 %5931  ;;  %v6056_v11 = vpop.permute.xlu2 %6055 }
 0xbda   :  { %v5953_v23 = vadd.f32 %v5932_v52, %v5889_v24  ;;  %v14630_v24 = vld [vmem:[#allocation9_spill] sm:$0xff] }
 0xbdb   :  { %v6321_v3 = vpop.f32.mrf.mxu1 }
 0xbdc   :  { %v6351_v63 = vsub.f32 %v6321_v3, %v14622_v28  ;;  %v5936_v4 = vpop.permute.xlu0 %5935 }
 0xbdd   :  { %v5955_v54 = vadd.f32 %v5936_v4, %v5891_v30 }
 0xbde   :  { %v6363_v21 = vpack.c.bf16 %v6351_v63, %v6350_v6 }
 0xbdf   :  { %v6075_v8 = vadd.f32 %v6056_v11, %v5955_v54 }
 0xbe0   :  { %7198 = vmatmul.msk.bf16.gmra.mxu2 %vm404_vm6, %v6363_v21 }
 0xbe1   :  { %v5938_v59 = vpop.permute.xlu1 %5937  ;;  %v6062_v16 = vpop.permute.xlu2 %6061 }
 0xbe2   :  { %v5956_v18 = vadd.f32 %v5938_v59, %v5892_v42 }
 0xbe3   :  { %v6324_v17 = vpop.f32.mrf.mxu1 }
 0xbe4   :  { %v5942_v2 = vpop.permute.xlu0 %5941  ;;  %v6352_v44 = vsub.f32 %v6324_v17, %v14623_v29 }
 0xbe5   :  { %v5958_v14 = vadd.f32 %v5942_v2, %v5894_v19 }
 0xbe7   :  { %v12817_v51 = vadd.f32 %v6062_v16, %v5958_v14 }
 0xbe9   :  { %v6048_v33 = vpop.permute.xlu1 %6047  ;;  %v6172_v43 = vpop.permute.xlu2 %6171 }
 0xbea   :  { %v6071_v37 = vadd.f32 %v6048_v33, %v5951_v60 }
 0xbeb   :  { %v6326_v61 = vpop.f32.mrf.mxu1 }
 0xbec   :  { %v6353_v58 = vsub.f32 %v6326_v61, %v14624_v41  ;;  %v6052_v48 = vpop.permute.xlu0 %6051 }
 0xbed   :  { %v6073_v9 = vadd.f32 %v6052_v48, %v5953_v23  ;;  %v7374_v23 = vld [vmem:[%s12937_s14] ss:$0 sm:$0xff] }
 0xbee   :  { %v6364_v46 = vpack.c.bf16 %v6353_v58, %v6352_v44  ;;  %v14631_v48 = vld [vmem:[#allocation89_spill] sm:$0xff] }
 0xbef   :  { %v12821_v31 = vadd.f32 %v6172_v43, %v6073_v9 }
 0xbf0   :  { %7199 = vmatmul.msk.bf16.gmra.mxu2 %vm404_vm6, %v6364_v46 }
 0xbf1   :  { %v6054_v42 = vpop.permute.xlu1 %6053  ;;  %v12857_v29 = vpop.permute.xlu2 %6177 }
 0xbf2   :  { %v6074_v47 = vadd.f32 %v6054_v42, %v5954_v7 }
 0xbf3   :  { %v6329_v56 = vpop.f32.mrf.mxu1 }
 0xbf4   :  { %v6058_v55 = vpop.permute.xlu0 %6057  ;;  %v6354_v39 = vsub.f32 %v6329_v56, %v14625_v1 }
 0xbf5   :  { %v12824_v25 = vadd.f32 %v6058_v55, %v5956_v18 }
 0xbf9   :  { %v6060_v60 = vpop.permute.xlu1 %6059 }
 0xbfa   :  { %v12826_v10 = vadd.f32 %v6060_v60, %v5957_v49 }
 0xbfb   :  { %v6331_v13 = vpop.f32.mrf.mxu1 }
 0xbfc   :  { %v6355_v0 = vsub.f32 %v6331_v13, %v14626_v5  ;;  %v6168_v30 = vpop.permute.xlu0 %6167 }
 0xbfd   :  { %v12830_v34 = vadd.f32 %v6168_v30, %v6071_v37 }
 0xbfe   :  { %v6365_v26 = vpack.c.bf16 %v6355_v0, %v6354_v39  ;;  %v14632_v0 = vld [vmem:[#allocation151_spill] sm:$0xff] }
 0xc00   :  { %7200 = vmatmul.msk.bf16.gmra.mxu2 %vm404_vm6, %v6365_v26 }
 0xc01   :  { %v12833_v12 = vpop.permute.xlu1 %6169 }
 0xc03   :  { %v6334_v7 = vpop.f32.mrf.mxu1 }
 0xc04   :  { %v6174_v36 = vpop.permute.xlu0 %6173  ;;  %v6356_v38 = vsub.f32 %v6334_v7, %v14627_v53 }
 0xc05   :  { %v12835_v15 = vadd.f32 %v6174_v36, %v6074_v47 }
 0xc09   :  { %v6176_v57 = vpop.permute.xlu1 %6175 }
 0xc0a   :  { %v12837_v50 = vadd.f32 %v6176_v57, %v6075_v8  ;;  %v14633_v57 = vld [vmem:[#allocation342_spill] sm:$0xff] }
 0xc0b   :  { %v6336_v49 = vpop.f32.mrf.mxu1 }
 0xc0c   :  { %v6357_v20 = vsub.f32 %v6336_v49, %v14628_v32  ;;  %v12866_v13 = vpop.permute.xlu0 %6179 }
 0xc0e   :  { %v6366_v62 = vpack.c.bf16 %v6357_v20, %v6356_v38 }
 0xc10   :  { %7201 = vmatmul.msk.bf16.gmra.mxu2 %vm404_vm6, %v6366_v62 }
 0xc11   :  { %v6182_v32 = vpop.permute.xlu1 %6181 }
 0xc13   :  { %v6339_v19 = vpop.f32.mrf.mxu1 }
 0xc14   :  { %v6358_v27 = vsub.f32 %v6339_v19, %v14629_v40 }
 0xc1b   :  { %v6341_v22 = vpop.f32.mrf.mxu1 }
 0xc1c   :  { %v6359_v52 = vsub.f32 %v6341_v22, %v14630_v24  ;;  %v14634_v22 = vld [vmem:[#allocation208_spill] sm:$0xff] }
 0xc1e   :  { %v6367_v11 = vpack.c.bf16 %v6359_v52, %v6358_v27  ;;  %v14635_v52 = vld [vmem:[#allocation153_spill] sm:$0xff] }
 0xc20   :  { %7202 = vmatmul.msk.bf16.gmra.mxu2 %vm404_vm6, %v6367_v11 }
 0xc23   :  { %v6437_v3 = vpop.f32.mrf.mxu2 }
 0xc24   :  { %v6438_v45 = vadd.f32 %v7374_v23, %v6437_v3 }
 0xc26   :  { %6493 = vrot.lane.b32.xlu2 %v6438_v45, %s7445_s21 }
 0xc2b   :  { %v6439_v6 = vpop.f32.mrf.mxu2 }
 0xc2c   :  { %v6440_v28 = vadd.f32 %v7374_v23, %v6439_v6  ;;  %v14636_v6 = vld [vmem:[#allocation358_spill] sm:$0xff] }
 0xc2e   :  { %6495 = vrot.lane.b32.xlu0 %v6440_v28, %s7445_s21 }
 0xc3e   :  { %v6442_v63 = vpop.f32.mrf.mxu2 }
 0xc3f   :  { %v6443_v4 = vadd.f32 %v7374_v23, %v6442_v63 }
 0xc41   :  { %6497 = vrot.lane.b32.xlu1 %v6443_v4, %s7445_s21  ;;  %v14637_v4 = vld [vmem:[#allocation205_spill] sm:$0xff] }
 0xc46   :  { %v6444_v54 = vpop.f32.mrf.mxu2 }
 0xc47   :  { %v6445_v21 = vadd.f32 %v7374_v23, %v6444_v54 }
 0xc49   :  { %6499 = vrot.lane.b32.xlu2 %v6445_v21, %s7445_s21 }
 0xc4e   :  { %v6447_v8 = vpop.f32.mrf.mxu2 }
 0xc4f   :  { %v6448_v59 = vadd.f32 %v7374_v23, %v6447_v8  ;;  %v6192_v8 = vadd.f32 %v12833_v12, %v12812_v35 }
 0xc51   :  { %6501 = vrot.lane.b32.xlu0 %v6448_v59, %s7445_s21 }
 0xc56   :  { %v6449_v18 = vpop.f32.mrf.mxu2 }
 0xc57   :  { %v6450_v17 = vadd.f32 %v7374_v23, %v6449_v18 }
 0xc59   :  { %6503 = vrot.lane.b32.xlu1 %v6450_v17, %s7445_s21 }
 0xc63   :  { %v6452_v16 = vpop.f32.mrf.mxu2 }
 0xc64   :  { %v6453_v2 = vadd.f32 %v7374_v23, %v6452_v16 }
 0xc66   :  { %6505 = vrot.lane.b32.xlu2 %v6453_v2, %s7445_s21  ;;  %v14638_v2 = vld [vmem:[#allocation231_spill] sm:$0xff] }
 0xc6b   :  { %v6454_v14 = vpop.f32.mrf.mxu2 }
 0xc6c   :  { %v6455_v33 = vadd.f32 %v7374_v23, %v6454_v14 }
 0xc6e   :  { %6507 = vrot.lane.b32.xlu0 %v6455_v33, %s7445_s21 }
 0xc73   :  { %v6457_v37 = vpop.f32.mrf.mxu2 }
 0xc74   :  { %v6458_v61 = vadd.f32 %v7374_v23, %v6457_v37 }
 0xc76   :  { %6509 = vrot.lane.b32.xlu1 %v6458_v61, %s7445_s21 }
 0xc7b   :  { %v6459_v44 = vpop.f32.mrf.mxu2 }
 0xc7c   :  { %v6460_v41 = vadd.f32 %v7374_v23, %v6459_v44 }
 0xc7e   :  { %6511 = vrot.lane.b32.xlu2 %v6460_v41, %s7445_s21 }
 0xc80   :  { %v6494_v58 = vpop.permute.xlu2 %6493 }
 0xc81   :  { %v6541_v9 = vsel %vm124_vm0, %v14631_v48, %v6494_v58 }
 0xc82   :  { %v6557_v43 = vsel %vm1227_vm14, %v6541_v9, 0.0 }
 0xc83   :  { %6573 = vst [vmem:[#allocation2] sm:$0xff] %v6557_v43  ;;  %v6462_v46 = vpop.f32.mrf.mxu2 }
 0xc84   :  { %v6463_v42 = vadd.f32 %v7374_v23, %v6462_v46 }
 0xc86   :  { %6513 = vrot.lane.b32.xlu0 %v6463_v42, %s7445_s21  ;;  %v6198_v42 = vadd.f32 %v6182_v32, %v12817_v51  ;;  %v6197_v51 = vadd.f32 %v12866_v13, %v12826_v10 }
 0xc8b   :  { %v6464_v47 = vpop.f32.mrf.mxu2 }
 0xc8c   :  { %v6465_v56 = vadd.f32 %v7374_v23, %v6464_v47 }
 0xc8e   :  { %6515 = vrot.lane.b32.xlu1 %v6465_v56, %s7445_s21 }
 0xc93   :  { %v6467_v55 = vpop.f32.mrf.mxu2 }
 0xc94   :  { %v6468_v60 = vadd.f32 %v7374_v23, %v6467_v55 }
 0xc96   :  { %6517 = vrot.lane.b32.xlu2 %v6468_v60, %s7445_s21 }
 0xc9b   :  { %v6469_v1 = vpop.f32.mrf.mxu2 }
 0xc9c   :  { %v6470_v39 = vadd.f32 %v7374_v23, %v6469_v1 }
 0xc9e   :  { %6519 = vrot.lane.b32.xlu0 %v6470_v39, %s7445_s21 }
 0xca0   :  { %v6496_v5 = vpop.permute.xlu0 %6495 }
 0xca1   :  { %v6542_v30 = vsel %vm124_vm0, %v14632_v0, %v6496_v5 }
 0xca2   :  { %v6558_v26 = vsel %vm1227_vm14, %v6542_v30, 0.0 }
 0xca3   :  { %6574 = vst [vmem:[#allocation2 + $0x8] sm:$0xff] %v6558_v26  ;;  %v6500_v7 = vpop.permute.xlu2 %6499  ;;  %v6472_v36 = vpop.f32.mrf.mxu2 }
 0xca4   :  { %v6544_v49 = vsel %vm124_vm0, %v14633_v57, %v6500_v7  ;;  %v6473_v53 = vadd.f32 %v7374_v23, %v6472_v36 }
 0xca5   :  { %v6560_v38 = vsel %vm1227_vm14, %v6544_v49, 0.0 }
 0xca6   :  { %6576 = vst [vmem:[#allocation2 + $0x18] sm:$0xff] %v6560_v38  ;;  %6521 = vrot.lane.b32.xlu1 %v6473_v53, %s7445_s21 }
 0xcab   :  { %v6474_v20 = vpop.f32.mrf.mxu2 }
 0xcac   :  { %v6475_v62 = vadd.f32 %v7374_v23, %v6474_v20 }
 0xcae   :  { %6523 = vrot.lane.b32.xlu2 %v6475_v62, %s7445_s21 }
 0xcb3   :  { %v6498_v19 = vpop.permute.xlu1 %6497 }
 0xcb4   :  { %v6543_v40 = vsel %vm124_vm0, %v14634_v22, %v6498_v19 }
 0xcb5   :  { %v6559_v27 = vsel %vm1227_vm14, %v6543_v40, 0.0 }
 0xcb6   :  { %6575 = vst [vmem:[#allocation2 + $0x10] sm:$0xff] %v6559_v27 }
 0xcc0   :  { %v6506_v24 = vpop.permute.xlu2 %6505 }
 0xcc1   :  { %v6547_v11 = vsel %vm124_vm0, %v14635_v52, %v6506_v24 }
 0xcc2   :  { %v6563_v3 = vsel %vm1227_vm14, %v6547_v11, 0.0 }
 0xcc3   :  { %6579 = vst [vmem:[#allocation2 + $0x30] sm:$0xff] %v6563_v3  ;;  %v6502_v45 = vpop.permute.xlu0 %6501 }
 0xcc4   :  { %v6545_v23 = vsel %vm124_vm0, %v14636_v6, %v6502_v45 }
 0xcc5   :  { %v6561_v28 = vsel %vm1227_vm14, %v6545_v23, 0.0 }
 0xcc6   :  { %6577 = vst [vmem:[#allocation2 + $0x20] sm:$0xff] %v6561_v28 }
 0xccb   :  { %v6504_v63 = vpop.permute.xlu1 %6503 }
 0xccc   :  { %v6546_v54 = vsel %vm124_vm0, %v14637_v4, %v6504_v63 }
 0xccd   :  { %v6562_v21 = vsel %vm1227_vm14, %v6546_v54, 0.0 }
 0xcce   :  { %6578 = vst [vmem:[#allocation2 + $0x28] sm:$0xff] %v6562_v21 }
 0xcd8   :  { %v6512_v59 = vpop.permute.xlu2 %6511 }
 0xcd9   :  { %v6550_v18 = vsel %vm124_vm0, %v6192_v8, %v6512_v59 }
 0xcda   :  { %v6566_v17 = vsel %vm1227_vm14, %v6550_v18, 0.0 }
 0xcdb   :  { %6582 = vst [vmem:[#allocation2 + $0x48] sm:$0xff] %v6566_v17 }
 0xce0   :  { %v6508_v16 = vpop.permute.xlu0 %6507 }
 0xce1   :  { %v6548_v14 = vsel %vm124_vm0, %v14638_v2, %v6508_v16 }
 0xce2   :  { %v6564_v33 = vsel %vm1227_vm14, %v6548_v14, 0.0 }
 0xce3   :  { %6580 = vst [vmem:[#allocation2 + $0x38] sm:$0xff] %v6564_v33 }
 0xce8   :  { %v6510_v37 = vpop.permute.xlu1 %6509 }
 0xce9   :  { %v6549_v61 = vsel %vm124_vm0, %v12830_v34, %v6510_v37 }
 0xcea   :  { %v6565_v44 = vsel %vm1227_vm14, %v6549_v61, 0.0 }
 0xceb   :  { %6581 = vst [vmem:[#allocation2 + $0x40] sm:$0xff] %v6565_v44 }
 0xcf0   :  { %v6518_v35 = vpop.permute.xlu2 %6517 }
 0xcf1   :  { %v6553_v12 = vsel %vm124_vm0, %v12837_v50, %v6518_v35 }
 0xcf2   :  { %v6569_v41 = vsel %vm1227_vm14, %v6553_v12, 0.0 }
 0xcf3   :  { %6585 = vst [vmem:[#allocation2 + $0x60] sm:$0xff] %v6569_v41 }
 0xcf8   :  { %v6514_v58 = vpop.permute.xlu0 %6513 }
 0xcf9   :  { %v6551_v48 = vsel %vm124_vm0, %v12821_v31, %v6514_v58  ;;  %v6196_v31 = vadd.f32 %v12857_v29, %v12824_v25 }
 0xcfa   :  { %v6567_v9 = vsel %vm1227_vm14, %v6551_v48, 0.0 }
 0xcfb   :  { %6583 = vst [vmem:[#allocation2 + $0x50] sm:$0xff] %v6567_v9 }
 0xd00   :  { %v6516_v43 = vpop.permute.xlu1 %6515 }
 0xd01   :  { %v6552_v34 = vsel %vm124_vm0, %v12835_v15, %v6516_v43 }
 0xd02   :  { %v6568_v46 = vsel %vm1227_vm14, %v6552_v34, 0.0 }
 0xd03   :  { %6584 = vst [vmem:[#allocation2 + $0x58] sm:$0xff] %v6568_v46 }
 0xd08   :  { %v6524_v50 = vpop.permute.xlu2 %6523 }
 0xd09   :  { %v6556_v47 = vsel %vm124_vm0, %v6198_v42, %v6524_v50 }
 0xd0a   :  { %v6572_v56 = vsel %vm1227_vm14, %v6556_v47, 0.0 }
 0xd0b   :  { %6588 = vst [vmem:[#allocation2 + $0x78] sm:$0xff] %v6572_v56 }
 0xd10   :  { %v6520_v55 = vpop.permute.xlu0 %6519 }
 0xd11   :  { %v6554_v60 = vsel %vm124_vm0, %v6196_v31, %v6520_v55 }
 0xd12   :  { %v6570_v1 = vsel %vm1227_vm14, %v6554_v60, 0.0 }
 0xd13   :  { %6586 = vst [vmem:[#allocation2 + $0x68] sm:$0xff] %v6570_v1 }
 0xd18   :  { %v6522_v15 = vpop.permute.xlu1 %6521 }
 0xd19   :  { %v6555_v39 = vsel %vm124_vm0, %v6197_v51, %v6522_v15 }
 0xd1a   :  { %v6571_v25 = vsel %vm1227_vm14, %v6555_v39, 0.0 }
 0xd1b   :  { %6587 = vst [vmem:[#allocation2 + $0x70] sm:$0xff] %v6571_v25 }
 0xd1c   :  { %6601 = dma.vmem_to_hbm [thread:$0]  %s6594_s2, 2048, %s6596_s7, [#allocation3], %s7453_s8, %s7453_s8, %s7444_s20  }
 0xd1d   :  { %7439 = dma.done.wait [#allocation3], 2048  }
 0xd1e   :  { %7440 = vsyncadd [#allocation3], 4294965248 }
 0xd1f   :  { %6606 = vsyncpa [#allocation3], 1 }

</bundles_post_ra>
